<compile_context>
chip_gen: v7x
topology: tpu7x:2x2x1
jax: 0.10.0
libtpu: 0.0.40
codegen_flags: <defaults>
</compile_context>

<pallas_src>
import functools

import jax
import jax.numpy as jnp
from jax import lax
from jax.experimental import pallas as pl
from jax.experimental.pallas import tpu as pltpu


def _round_up(x, m):
    return (x + m - 1) // m * m


def _pick_tile(d, align, max_tile):
    """Return (tile, padded_dim): largest tile (multiple of `align`,
    <= max_tile) that divides the `align`-rounded dimension."""
    dp = _round_up(d, align)
    best = align
    t = align
    while t <= min(max_tile, dp):
        if dp % t == 0:
            best = t
        t += align
    return best, dp


def _pick_tile_k(k, cap=1024):
    """Choose the K tile (multiple of 128, <= cap) minimizing
    (#K grid steps, padded K).  Padding K up to a multiple of tk trades a few
    zero MACs for far fewer grid steps (each step ~0.35us fixed overhead)."""
    best = None
    t = 128
    while t <= cap:
        kp = _round_up(k, t)
        cand = (kp // t, kp, t)
        if best is None or cand[:2] < best[:2]:
            best = cand
        t += 128
    return best[2], best[1]        # (tk, Kp)


def _ensure_two_parallel_blocks(tm, mp, tn, np_):
    """v7x megacore: make sure the (i, j) output grid has >= 2 blocks so both
    TensorCores get work.  Halve tn (then tm) while it stays aligned."""
    while (mp // tm) * (np_ // tn) < 2:
        if tn > 128 and (tn // 2) % 128 == 0 and np_ % (tn // 2) == 0:
            tn //= 2
        elif tm > 16 and (tm // 2) % 16 == 0 and mp % (tm // 2) == 0:
            tm //= 2
        else:
            break
    return tm, tn


# ---------------------------------------------------------------------------
# Pallas kernel: tiled   out = act(A @ B + bias)
#   grid = (M/tm, N/tn, K/tk); K is the sequential reduction axis.
# ---------------------------------------------------------------------------
def _matmul_bias_act_kernel(a_ref, b_ref, bias_ref, o_ref, acc_ref, *, act):
    @pl.when(pl.program_id(2) == 0)
    def _():
        acc_ref[...] = jnp.zeros_like(acc_ref)

    acc_ref[...] += jnp.dot(a_ref[...], b_ref[...],
                            preferred_element_type=jnp.float32)

    @pl.when(pl.program_id(2) == pl.num_programs(2) - 1)
    def _():
        out = acc_ref[...] + bias_ref[...]          # (tm, tn) + (1, tn), f32
        if act == "relu":
            out = jnp.maximum(out, 0.0)
        elif act == "tanh":
            out = jnp.tanh(out)
        o_ref[...] = out.astype(o_ref.dtype)


def matmul_bias_act(a, b, bias, act, out_dtype, compute_dtype=jnp.bfloat16):
    """act(a @ b + bias).  a:(M,K), b:(K,N) in compute_dtype, bias:(N,) f32."""
    M, K = a.shape
    K2, N = b.shape
    assert K2 == K

    tm, Mp = _pick_tile(M, 16, 256)     # sublane-side tiles: multiples of 16
    tn, Np = _pick_tile(N, 128, 256)    # lane-side tiles: multiples of 128
    tk, Kp = _pick_tile_k(K, 1024)      # deep K tiles, K padded to tk
    tm, tn = _ensure_two_parallel_blocks(tm, Mp, tn, Np)

    a = a.astype(compute_dtype)
    b = b.astype(compute_dtype)
    # TODO(synk): the pad of A is a second HBM round trip of the largest
    # tensor when K/M are ragged; an implicit-GEMM A (see _im2col TODO) would
    # remove it together with the im2col replication.
    if (Mp, Kp) != (M, K):
        a = jnp.pad(a, ((0, Mp - M), (0, Kp - K)))
    if (Kp, Np) != (K, N):
        b = jnp.pad(b, ((0, Kp - K), (0, Np - N)))
    bias2d = jnp.pad(bias.astype(jnp.float32), (0, Np - N)).reshape(1, Np)

    gm, gn, gk = Mp // tm, Np // tn, Kp // tk
    itemsize = jnp.dtype(compute_dtype).itemsize
    cost = pl.CostEstimate(
        flops=2 * Mp * Np * Kp,
        transcendentals=Mp * Np if act == "tanh" else 0,
        # A is re-fetched once per output-column block, B once per output-row
        # block, bias once per (i, k) step, plus the output write.
        bytes_accessed=(Mp * Kp * itemsize) * gn
        + (Kp * Np * itemsize) * gm
        + Np * 4 * gm * gk
        + Mp * Np * jnp.dtype(out_dtype).itemsize,
    )

    out = pl.pallas_call(
        functools.partial(_matmul_bias_act_kernel, act=act),
        out_shape=jax.ShapeDtypeStruct((Mp, Np), out_dtype),
        grid_spec=pltpu.PrefetchScalarGridSpec(
            num_scalar_prefetch=0,
            grid=(gm, gn, gk),
            in_specs=[
                pl.BlockSpec((tm, tk), lambda i, j, k: (i, k)),
                pl.BlockSpec((tk, tn), lambda i, j, k: (k, j)),
                pl.BlockSpec((1, tn), lambda i, j, k: (0, j)),
            ],
            out_specs=pl.BlockSpec((tm, tn), lambda i, j, k: (i, j)),
            scratch_shapes=[pltpu.VMEM((tm, tn), jnp.float32)],
        ),
        compiler_params=pltpu.CompilerParams(
            dimension_semantics=("parallel", "parallel", "arbitrary"),
            vmem_limit_bytes=32 * 1024 * 1024,   # safe for v7x's 64 MiB VMEM
        ),
        cost_estimate=cost,
    )(a, b, bias2d)

    if (Mp, Np) != (M, N):
        out = out[:M, :N]
    return out


# ---------------------------------------------------------------------------
# Conv layers as im2col (glue) + the tiled Pallas matmul kernel (hot path)
# ---------------------------------------------------------------------------
def _im2col(x_pad, kH, kW, stride):
    """x_pad: (N, Hp, Wp, C) already padded -> (N*oh*ow, kH*kW*C)."""
    # TODO(synk): for the 7x7 stride-1 convs this still replicates the
    # activation kH*kW times in HBM; an implicit-GEMM kernel (manual DMA of
    # shifted row slabs from HBM + in-VMEM tap assembly) would remove the
    # replication entirely and is the main remaining bandwidth win at real
    # CycleGAN resolutions (especially on v5e).
    N, Hp, Wp, C = x_pad.shape
    out_h = (Hp - kH) // stride + 1
    out_w = (Wp - kW) // stride + 1
    cols = []
    for i in range(kH):
        for j in range(kW):
            cols.append(
                x_pad[:, i:i + (out_h - 1) * stride + 1:stride,
                      j:j + (out_w - 1) * stride + 1:stride, :])
    patches = jnp.stack(cols, axis=3)                   # (N, oh, ow, kH*kW, C)
    a = patches.reshape(N * out_h * out_w, kH * kW * C)
    return a, (N, out_h, out_w)


def _conv_core(x, w_mat, bias, kH, kW, stride, pad_h, pad_w, act, out_dtype,
               compute_dtype):
    """x: NHWC; w_mat: (kH*kW*Cin, Cout); pad_h/pad_w: (lo, hi)."""
    if any(pad_h) or any(pad_w):
        x = jnp.pad(x, ((0, 0), pad_h, pad_w, (0, 0)))
    a, (N, oh, ow) = _im2col(x, kH, kW, stride)
    out = matmul_bias_act(a, w_mat, bias, act, out_dtype, compute_dtype)
    return out.reshape(N, oh, ow, w_mat.shape[1])


def conv_transpose2d_pallas(x, w_mat, bias4, act, out_dtype, compute_dtype):
    """ConvTranspose2d(k=3, s=2, p=1, op=1) as ONE merged matmul.

    Sub-pixel decomposition: the 4 output phases (oy%2, ox%2) each depend on
    at most a 2x2 neighbourhood of the UNdilated input.  We build the 2x2-tap
    im2col once (K = 4*Cin) and multiply by the 4 phase weight matrices
    (zero-padded to all 4 taps) concatenated along N (N = 4*Cout), then
    pixel-shuffle the phases back into the 2H x 2W output.
    """
    N, H, W, _ = x.shape
    C_out = w_mat.shape[1] // 4
    x_pad = jnp.pad(x, ((0, 0), (0, 1), (0, 1), (0, 0)))
    a, _ = _im2col(x_pad, 2, 2, 1)                      # (N*H*W, 4*Cin)
    out = matmul_bias_act(a, w_mat, bias4, act, out_dtype, compute_dtype)
    out = out.reshape(N, H, W, 2, 2, C_out)             # (n, y, x, py, px, c)
    out = jnp.transpose(out, (0, 1, 3, 2, 4, 5)).reshape(N, 2 * H, 2 * W, C_out)
    return out


# ---------------------------------------------------------------------------
# Generator: parameters + forward
# ---------------------------------------------------------------------------
_LAYER_SPECS = [
    # (kind, C_in, C_out, kernel, stride, padding, activation)
    ("conv",    3,  64, 7, 1, 3, "relu"),
    ("conv",   64, 128, 3, 2, 1, "relu"),
    ("conv",  128, 256, 3, 2, 1, "relu"),
    ("convT", 256, 128, 3, 2, 1, "relu"),
    ("convT", 128,  64, 3, 2, 1, "relu"),
    ("conv",   64,   3, 7, 1, 3, "tanh"),
]


def init_params(key):
    """PyTorch-layout weights (Conv2d: OIHW, ConvTranspose2d: IOHW) + biases."""
    params = []
    for kind, cin, cout, k, _, _, _ in _LAYER_SPECS:
        key, k1, k2 = jax.random.split(key, 3)
        fan_in = cin * k * k
        bound = 1.0 / jnp.sqrt(jnp.float32(fan_in))
        w_shape = (cout, cin, k, k) if kind == "conv" else (cin, cout, k, k)
        w = jax.random.uniform(k1, w_shape, jnp.float32, -bound, bound)
        bias = jax.random.uniform(k2, (cout,), jnp.float32, -bound, bound)
        params.append((w, bias))
    return params


def prepare_params(params, compute_dtype=jnp.bfloat16):
    """One-time weight reshape / pack / cast so the forward pass has no
    per-call transposes on the critical path."""
    prepared = []
    for (w, b), (kind, cin, cout, k, s, p, act) in zip(params, _LAYER_SPECS):
        bias = b.astype(jnp.float32)
        if kind == "conv":
            # (O, I, kH, kW) -> (kH, kW, I, O) -> (kH*kW*I, O).
            w_mat = jnp.transpose(w, (2, 3, 1, 0)).reshape(k * k * cin, cout)
            prepared.append(("conv", w_mat.astype(compute_dtype), bias,
                             k, s, p, act))
        else:
            # ConvTranspose2d(k=3, s=2, p=1, op=1), merged sub-pixel phases.
            # Output relation: oy = 2*iy + ki - 1, ox = 2*ix + kj - 1.
            # tap (dy, dx): neighbouring input pixel offset used by phase
            # (py, px) through kernel index (ki, kj).
            assert k == 3 and s == 2 and p == 1
            taps = {
                (0, 0): [((0, 0), (1, 1))],
                (0, 1): [((0, 0), (1, 2)), ((0, 1), (1, 0))],
                (1, 0): [((0, 0), (2, 1)), ((1, 0), (0, 1))],
                (1, 1): [((0, 0), (2, 2)), ((0, 1), (2, 0)),
                         ((1, 0), (0, 2)), ((1, 1), (0, 0))],
            }
            # [tap, Cin, phase, Cout]; tap order matches _im2col(kh=kw=2).
            w_m = jnp.zeros((4, cin, 4, cout), jnp.float32)
            for (py, px), lst in taps.items():
                ph = 2 * py + px
                for (dy, dx), (ki, kj) in lst:
                    w_m = w_m.at[2 * dy + dx, :, ph, :].set(w[:, :, ki, kj])
            w_mat = w_m.reshape(4 * cin, 4 * cout).astype(compute_dtype)
            bias4 = jnp.tile(bias, 4)                    # [phase, Cout] layout
            prepared.append(("convT", w_mat, bias4, k, s, p, act))
    return prepared


def generator_forward(x_nchw, prepared, compute_dtype=jnp.bfloat16):
    x = jnp.transpose(x_nchw, (0, 2, 3, 1)).astype(compute_dtype)  # NCHW->NHWC
    n_layers = len(prepared)
    for li, layer in enumerate(prepared):
        out_dtype = jnp.float32 if li == n_layers - 1 else compute_dtype
        if layer[0] == "conv":
            _, w_mat, bias, k, s, p, act = layer
            x = _conv_core(x, w_mat, bias, k, k, s, (p, p), (p, p), act,
                           out_dtype, compute_dtype)
        else:
            _, w_mat, bias4, _, _, _, act = layer
            x = conv_transpose2d_pallas(x, w_mat, bias4, act, out_dtype,
                                        compute_dtype)
    return jnp.transpose(x, (0, 3, 1, 2))                          # NHWC->NCHW


# ---------------------------------------------------------------------------
# Pure-JAX f32 reference (lax convolutions) for correctness checks
# ---------------------------------------------------------------------------
def generator_ref(x_nchw, params):
    x = jnp.transpose(x_nchw, (0, 2, 3, 1)).astype(jnp.float32)
    dn = ("NHWC", "HWIO", "NHWC")
    for (w, b), (kind, _, _, k, s, p, act) in zip(params, _LAYER_SPECS):
        if kind == "conv":
            w_hwio = jnp.transpose(w, (2, 3, 1, 0))
            y = lax.conv_general_dilated(x, w_hwio, (s, s), [(p, p), (p, p)],
                                         dimension_numbers=dn,
                                         precision="highest") + b
        else:
            w_conv = jnp.transpose(w[:, :, ::-1, ::-1], (1, 0, 2, 3))  # OIHW
            w_hwio = jnp.transpose(w_conv, (2, 3, 1, 0))
            lo, hi = k - 1 - p, k - 1 - p + 1     # output_padding = 1
            y = lax.conv_general_dilated(x, w_hwio, (1, 1), [(lo, hi), (lo, hi)],
                                         lhs_dilation=(s, s),
                                         dimension_numbers=dn,
                                         precision="highest") + b
        x = jnp.maximum(y, 0.0) if act == "relu" else jnp.tanh(y)
    return jnp.transpose(x, (0, 3, 1, 2))


if __name__ == "__main__":
    key = jax.random.PRNGKey(0)
    k_param, k_x = jax.random.split(key)
    params = init_params(k_param)
    x = jax.random.normal(k_x, (2, 3, 16, 16), jnp.float32)   # NCHW input

    ref = jax.block_until_ready(generator_ref(x, params))

    # Tighter structural check: same Pallas kernels with f32 operands /
    # activations, so the merged-convT tap/phase packing and the K-padding
    # logic are verified without bf16 rounding hiding a bug.
    prepared_f32 = prepare_params(params, jnp.float32)
    fwd_f32 = jax.jit(lambda xx: generator_forward(xx, prepared_f32, jnp.float32))
    out_f32 = jax.block_until_ready(fwd_f32(x))
    assert out_f32.shape == (2, 3, 16, 16), out_f32.shape
    err_f32 = float(jnp.max(jnp.abs(out_f32 - ref)))
    assert err_f32 < 1e-2, err_f32

    # Production path: bf16 operands / bf16 inter-layer activations.
    prepared = prepare_params(params, jnp.bfloat16)
    fwd = jax.jit(lambda xx: generator_forward(xx, prepared, jnp.bfloat16))
    out = jax.block_until_ready(fwd(x))
    assert out.shape == (2, 3, 16, 16), out.shape
    err = float(jnp.max(jnp.abs(out - ref)))
    assert err < 5e-2, err

    print("KERNEL_OK")
</pallas_src>

<mosaic_0001>
module attributes {stable_mosaic.version = 11 : i64} {
  func.func @_matmul_bias_act_kernel(%arg0: i32, %arg1: i32, %arg2: i32, %arg3: memref<256x256xf32, #tpu.memory_space<vmem>>, %arg4: memref<256x128xf32, #tpu.memory_space<vmem>>, %arg5: memref<1x128xf32, #tpu.memory_space<vmem>>, %arg6: memref<256x128xf32, #tpu.memory_space<vmem>>, %arg7: memref<256x128xf32, #tpu.memory_space<vmem>>) attributes {dimension_semantics = [#tpu.dimension_semantics<parallel>, #tpu.dimension_semantics<parallel>, #tpu.dimension_semantics<arbitrary>], iteration_bounds = array<i64: 2, 1, 1>, scalar_prefetch = 0 : i64, scratch_operands = 1 : i64, tpu.core_type = #tpu.core_type<tc>, window_params = [{transform_indices = @transform_0, window_bounds = array<i64: 256, 256>}, {transform_indices = @transform_1, window_bounds = array<i64: 256, 128>}, {transform_indices = @transform_2, window_bounds = array<i64: 1, 128>}, {transform_indices = @transform_3, window_bounds = array<i64: 256, 128>}]} {
    %c0_i32 = arith.constant 0 : i32
    %0 = arith.cmpi eq, %arg2, %c0_i32 : i32
    %1 = arith.extui %0 : i1 to i32
    %c0_i32_0 = arith.constant 0 : i32
    %2 = arith.cmpi ne, %1, %c0_i32_0 : i32
    scf.if %2 {
      %cst_10 = arith.constant 0.000000e+00 : f32
      %12 = vector.broadcast %cst_10 : f32 to vector<256x128xf32>
      %c0_11 = arith.constant 0 : index
      %c0_12 = arith.constant 0 : index
      %13 = vector.load %arg7[%c0_11, %c0_12] : memref<256x128xf32, #tpu.memory_space<vmem>>, vector<256x128xf32>
      tpu.vector_store %arg7[%c0_11, %c0_12], %12 {strides = array<i32>} : memref<256x128xf32, #tpu.memory_space<vmem>>, vector<256x128xf32>,
    } else {
    }
    %c0 = arith.constant 0 : index
    %c0_1 = arith.constant 0 : index
    %3 = vector.load %arg7[%c0, %c0_1] : memref<256x128xf32, #tpu.memory_space<vmem>>, vector<256x128xf32>
    %c0_2 = arith.constant 0 : index
    %c0_3 = arith.constant 0 : index
    %4 = vector.load %arg3[%c0_2, %c0_3] : memref<256x256xf32, #tpu.memory_space<vmem>>, vector<256x256xf32>
    %c0_4 = arith.constant 0 : index
    %c0_5 = arith.constant 0 : index
    %5 = vector.load %arg4[%c0_4, %c0_5] : memref<256x128xf32, #tpu.memory_space<vmem>>, vector<256x128xf32>
    %cst = arith.constant dense<0.000000e+00> : vector<256x128xf32>
    %6 = tpu.matmul %4, %5, %cst {dimension_numbers = #tpu.dot_dimension_numbers<[1], [0], [0], [1], [0, 0, 1, 1], [], []>} : vector<256x256xf32>, vector<256x128xf32>, vector<256x128xf32> -> vector<256x128xf32>
    %7 = arith.addf %3, %6 : vector<256x128xf32>
    %c0_6 = arith.constant 0 : index
    %c0_7 = arith.constant 0 : index
    %8 = vector.load %arg7[%c0_6, %c0_7] : memref<256x128xf32, #tpu.memory_space<vmem>>, vector<256x128xf32>
    tpu.vector_store %arg7[%c0_6, %c0_7], %7 {strides = array<i32>} : memref<256x128xf32, #tpu.memory_space<vmem>>, vector<256x128xf32>,
    %c0_i32_8 = arith.constant 0 : i32
    %9 = arith.cmpi eq, %arg2, %c0_i32_8 : i32
    %10 = arith.extui %9 : i1 to i32
    %c0_i32_9 = arith.constant 0 : i32
    %11 = arith.cmpi ne, %10, %c0_i32_9 : i32
    scf.if %11 {
      %c0_10 = arith.constant 0 : index
      %c0_11 = arith.constant 0 : index
      %12 = vector.load %arg7[%c0_10, %c0_11] : memref<256x128xf32, #tpu.memory_space<vmem>>, vector<256x128xf32>
      %c0_12 = arith.constant 0 : index
      %c0_13 = arith.constant 0 : index
      %13 = vector.load %arg5[%c0_12, %c0_13] : memref<1x128xf32, #tpu.memory_space<vmem>>, vector<1x128xf32>
      %14 = vector.broadcast %13 : vector<1x128xf32> to vector<256x128xf32>
      %15 = arith.addf %12, %14 : vector<256x128xf32>
      %cst_14 = arith.constant 0.000000e+00 : f32
      %16 = vector.broadcast %cst_14 : f32 to vector<256x128xf32>
      %17 = arith.maximumf %15, %16 : vector<256x128xf32>
      %c0_15 = arith.constant 0 : index
      %c0_16 = arith.constant 0 : index
      %18 = vector.load %arg6[%c0_15, %c0_16] : memref<256x128xf32, #tpu.memory_space<vmem>>, vector<256x128xf32>
      tpu.vector_store %arg6[%c0_15, %c0_16], %17 {strides = array<i32>} : memref<256x128xf32, #tpu.memory_space<vmem>>, vector<256x128xf32>,
    } else {
    }
    return
  }
  func.func @transform_0(%arg0: i32, %arg1: i32, %arg2: i32) -> (i32, i32) {
    %c0_i32 = arith.constant 0 : i32
    return %arg0, %arg2 : i32, i32
  }
  func.func @transform_1(%arg0: i32, %arg1: i32, %arg2: i32) -> (i32, i32) {
    %c0_i32 = arith.constant 0 : i32
    return %arg2, %arg1 : i32, i32
  }
  func.func @transform_2(%arg0: i32, %arg1: i32, %arg2: i32) -> (i32, i32) {
    %c0_i32 = arith.constant 0 : i32
    %c0_i32_0 = arith.constant 0 : i32
    return %c0_i32, %arg1 : i32, i32
  }
  func.func @transform_3(%arg0: i32, %arg1: i32, %arg2: i32) -> (i32, i32) {
    %c0_i32 = arith.constant 0 : i32
    return %arg0, %arg1 : i32, i32
  }
}

module attributes {stable_mosaic.version = 11 : i64} {
  func.func @_matmul_bias_act_kernel(%arg0: i32, %arg1: i32, %arg2: i32, %arg3: memref<64x640xf32, #tpu.memory_space<vmem>>, %arg4: memref<640x128xf32, #tpu.memory_space<vmem>>, %arg5: memref<1x128xf32, #tpu.memory_space<vmem>>, %arg6: memref<64x128xf32, #tpu.memory_space<vmem>>, %arg7: memref<64x128xf32, #tpu.memory_space<vmem>>) attributes {dimension_semantics = [#tpu.dimension_semantics<parallel>, #tpu.dimension_semantics<parallel>, #tpu.dimension_semantics<arbitrary>], iteration_bounds = array<i64: 2, 1, 1>, scalar_prefetch = 0 : i64, scratch_operands = 1 : i64, tpu.core_type = #tpu.core_type<tc>, window_params = [{transform_indices = @transform_0, window_bounds = array<i64: 64, 640>}, {transform_indices = @transform_1, window_bounds = array<i64: 640, 128>}, {transform_indices = @transform_2, window_bounds = array<i64: 1, 128>}, {transform_indices = @transform_3, window_bounds = array<i64: 64, 128>}]} {
    %c0_i32 = arith.constant 0 : i32
    %0 = arith.cmpi eq, %arg2, %c0_i32 : i32
    %1 = arith.extui %0 : i1 to i32
    %c0_i32_0 = arith.constant 0 : i32
    %2 = arith.cmpi ne, %1, %c0_i32_0 : i32
    scf.if %2 {
      %cst_10 = arith.constant 0.000000e+00 : f32
      %12 = vector.broadcast %cst_10 : f32 to vector<64x128xf32>
      %c0_11 = arith.constant 0 : index
      %c0_12 = arith.constant 0 : index
      %13 = vector.load %arg7[%c0_11, %c0_12] : memref<64x128xf32, #tpu.memory_space<vmem>>, vector<64x128xf32>
      tpu.vector_store %arg7[%c0_11, %c0_12], %12 {strides = array<i32>} : memref<64x128xf32, #tpu.memory_space<vmem>>, vector<64x128xf32>,
    } else {
    }
    %c0 = arith.constant 0 : index
    %c0_1 = arith.constant 0 : index
    %3 = vector.load %arg7[%c0, %c0_1] : memref<64x128xf32, #tpu.memory_space<vmem>>, vector<64x128xf32>
    %c0_2 = arith.constant 0 : index
    %c0_3 = arith.constant 0 : index
    %4 = vector.load %arg3[%c0_2, %c0_3] : memref<64x640xf32, #tpu.memory_space<vmem>>, vector<64x640xf32>
    %c0_4 = arith.constant 0 : index
    %c0_5 = arith.constant 0 : index
    %5 = vector.load %arg4[%c0_4, %c0_5] : memref<640x128xf32, #tpu.memory_space<vmem>>, vector<640x128xf32>
    %cst = arith.constant dense<0.000000e+00> : vector<64x128xf32>
    %6 = tpu.matmul %4, %5, %cst {dimension_numbers = #tpu.dot_dimension_numbers<[1], [0], [0], [1], [0, 0, 1, 1], [], []>} : vector<64x640xf32>, vector<640x128xf32>, vector<64x128xf32> -> vector<64x128xf32>
    %7 = arith.addf %3, %6 : vector<64x128xf32>
    %c0_6 = arith.constant 0 : index
    %c0_7 = arith.constant 0 : index
    %8 = vector.load %arg7[%c0_6, %c0_7] : memref<64x128xf32, #tpu.memory_space<vmem>>, vector<64x128xf32>
    tpu.vector_store %arg7[%c0_6, %c0_7], %7 {strides = array<i32>} : memref<64x128xf32, #tpu.memory_space<vmem>>, vector<64x128xf32>,
    %c0_i32_8 = arith.constant 0 : i32
    %9 = arith.cmpi eq, %arg2, %c0_i32_8 : i32
    %10 = arith.extui %9 : i1 to i32
    %c0_i32_9 = arith.constant 0 : i32
    %11 = arith.cmpi ne, %10, %c0_i32_9 : i32
    scf.if %11 {
      %c0_10 = arith.constant 0 : index
      %c0_11 = arith.constant 0 : index
      %12 = vector.load %arg7[%c0_10, %c0_11] : memref<64x128xf32, #tpu.memory_space<vmem>>, vector<64x128xf32>
      %c0_12 = arith.constant 0 : index
      %c0_13 = arith.constant 0 : index
      %13 = vector.load %arg5[%c0_12, %c0_13] : memref<1x128xf32, #tpu.memory_space<vmem>>, vector<1x128xf32>
      %14 = vector.broadcast %13 : vector<1x128xf32> to vector<64x128xf32>
      %15 = arith.addf %12, %14 : vector<64x128xf32>
      %cst_14 = arith.constant 0.000000e+00 : f32
      %16 = vector.broadcast %cst_14 : f32 to vector<64x128xf32>
      %17 = arith.maximumf %15, %16 : vector<64x128xf32>
      %c0_15 = arith.constant 0 : index
      %c0_16 = arith.constant 0 : index
      %18 = vector.load %arg6[%c0_15, %c0_16] : memref<64x128xf32, #tpu.memory_space<vmem>>, vector<64x128xf32>
      tpu.vector_store %arg6[%c0_15, %c0_16], %17 {strides = array<i32>} : memref<64x128xf32, #tpu.memory_space<vmem>>, vector<64x128xf32>,
    } else {
    }
    return
  }
  func.func @transform_0(%arg0: i32, %arg1: i32, %arg2: i32) -> (i32, i32) {
    %c0_i32 = arith.constant 0 : i32
    return %arg0, %arg2 : i32, i32
  }
  func.func @transform_1(%arg0: i32, %arg1: i32, %arg2: i32) -> (i32, i32) {
    %c0_i32 = arith.constant 0 : i32
    return %arg2, %arg1 : i32, i32
  }
  func.func @transform_2(%arg0: i32, %arg1: i32, %arg2: i32) -> (i32, i32) {
    %c0_i32 = arith.constant 0 : i32
    %c0_i32_0 = arith.constant 0 : i32
    return %c0_i32, %arg1 : i32, i32
  }
  func.func @transform_3(%arg0: i32, %arg1: i32, %arg2: i32) -> (i32, i32) {
    %c0_i32 = arith.constant 0 : i32
    return %arg0, %arg1 : i32, i32
  }
}

module attributes {stable_mosaic.version = 11 : i64} {
  func.func @_matmul_bias_act_kernel(%arg0: i32, %arg1: i32, %arg2: i32, %arg3: memref<32x640xf32, #tpu.memory_space<vmem>>, %arg4: memref<640x128xf32, #tpu.memory_space<vmem>>, %arg5: memref<1x128xf32, #tpu.memory_space<vmem>>, %arg6: memref<32x128xf32, #tpu.memory_space<vmem>>, %arg7: memref<32x128xf32, #tpu.memory_space<vmem>>) attributes {dimension_semantics = [#tpu.dimension_semantics<parallel>, #tpu.dimension_semantics<parallel>, #tpu.dimension_semantics<arbitrary>], iteration_bounds = array<i64: 1, 2, 2>, scalar_prefetch = 0 : i64, scratch_operands = 1 : i64, tpu.core_type = #tpu.core_type<tc>, window_params = [{transform_indices = @transform_0, window_bounds = array<i64: 32, 640>}, {transform_indices = @transform_1, window_bounds = array<i64: 640, 128>}, {transform_indices = @transform_2, window_bounds = array<i64: 1, 128>}, {transform_indices = @transform_3, window_bounds = array<i64: 32, 128>}]} {
    %c0_i32 = arith.constant 0 : i32
    %0 = arith.cmpi eq, %arg2, %c0_i32 : i32
    %1 = arith.extui %0 : i1 to i32
    %c0_i32_0 = arith.constant 0 : i32
    %2 = arith.cmpi ne, %1, %c0_i32_0 : i32
    scf.if %2 {
      %cst_9 = arith.constant 0.000000e+00 : f32
      %12 = vector.broadcast %cst_9 : f32 to vector<32x128xf32>
      %c0_10 = arith.constant 0 : index
      %c0_11 = arith.constant 0 : index
      %13 = vector.load %arg7[%c0_10, %c0_11] : memref<32x128xf32, #tpu.memory_space<vmem>>, vector<32x128xf32>
      tpu.vector_store %arg7[%c0_10, %c0_11], %12 {strides = array<i32>} : memref<32x128xf32, #tpu.memory_space<vmem>>, vector<32x128xf32>,
    } else {
    }
    %c0 = arith.constant 0 : index
    %c0_1 = arith.constant 0 : index
    %3 = vector.load %arg7[%c0, %c0_1] : memref<32x128xf32, #tpu.memory_space<vmem>>, vector<32x128xf32>
    %c0_2 = arith.constant 0 : index
    %c0_3 = arith.constant 0 : index
    %4 = vector.load %arg3[%c0_2, %c0_3] : memref<32x640xf32, #tpu.memory_space<vmem>>, vector<32x640xf32>
    %c0_4 = arith.constant 0 : index
    %c0_5 = arith.constant 0 : index
    %5 = vector.load %arg4[%c0_4, %c0_5] : memref<640x128xf32, #tpu.memory_space<vmem>>, vector<640x128xf32>
    %cst = arith.constant dense<0.000000e+00> : vector<32x128xf32>
    %6 = tpu.matmul %4, %5, %cst {dimension_numbers = #tpu.dot_dimension_numbers<[1], [0], [0], [1], [0, 0, 1, 1], [], []>} : vector<32x640xf32>, vector<640x128xf32>, vector<32x128xf32> -> vector<32x128xf32>
    %7 = arith.addf %3, %6 : vector<32x128xf32>
    %c0_6 = arith.constant 0 : index
    %c0_7 = arith.constant 0 : index
    %8 = vector.load %arg7[%c0_6, %c0_7] : memref<32x128xf32, #tpu.memory_space<vmem>>, vector<32x128xf32>
    tpu.vector_store %arg7[%c0_6, %c0_7], %7 {strides = array<i32>} : memref<32x128xf32, #tpu.memory_space<vmem>>, vector<32x128xf32>,
    %c1_i32 = arith.constant 1 : i32
    %9 = arith.cmpi eq, %arg2, %c1_i32 : i32
    %10 = arith.extui %9 : i1 to i32
    %c0_i32_8 = arith.constant 0 : i32
    %11 = arith.cmpi ne, %10, %c0_i32_8 : i32
    scf.if %11 {
      %c0_9 = arith.constant 0 : index
      %c0_10 = arith.constant 0 : index
      %12 = vector.load %arg7[%c0_9, %c0_10] : memref<32x128xf32, #tpu.memory_space<vmem>>, vector<32x128xf32>
      %c0_11 = arith.constant 0 : index
      %c0_12 = arith.constant 0 : index
      %13 = vector.load %arg5[%c0_11, %c0_12] : memref<1x128xf32, #tpu.memory_space<vmem>>, vector<1x128xf32>
      %14 = vector.broadcast %13 : vector<1x128xf32> to vector<32x128xf32>
      %15 = arith.addf %12, %14 : vector<32x128xf32>
      %cst_13 = arith.constant 0.000000e+00 : f32
      %16 = vector.broadcast %cst_13 : f32 to vector<32x128xf32>
      %17 = arith.maximumf %15, %16 : vector<32x128xf32>
      %c0_14 = arith.constant 0 : index
      %c0_15 = arith.constant 0 : index
      %18 = vector.load %arg6[%c0_14, %c0_15] : memref<32x128xf32, #tpu.memory_space<vmem>>, vector<32x128xf32>
      tpu.vector_store %arg6[%c0_14, %c0_15], %17 {strides = array<i32>} : memref<32x128xf32, #tpu.memory_space<vmem>>, vector<32x128xf32>,
    } else {
    }
    return
  }
  func.func @transform_0(%arg0: i32, %arg1: i32, %arg2: i32) -> (i32, i32) {
    %c0_i32 = arith.constant 0 : i32
    return %arg0, %arg2 : i32, i32
  }
  func.func @transform_1(%arg0: i32, %arg1: i32, %arg2: i32) -> (i32, i32) {
    %c0_i32 = arith.constant 0 : i32
    return %arg2, %arg1 : i32, i32
  }
  func.func @transform_2(%arg0: i32, %arg1: i32, %arg2: i32) -> (i32, i32) {
    %c0_i32 = arith.constant 0 : i32
    %c0_i32_0 = arith.constant 0 : i32
    return %c0_i32, %arg1 : i32, i32
  }
  func.func @transform_3(%arg0: i32, %arg1: i32, %arg2: i32) -> (i32, i32) {
    %c0_i32 = arith.constant 0 : i32
    return %arg0, %arg1 : i32, i32
  }
}

module attributes {stable_mosaic.version = 11 : i64} {
  func.func @_matmul_bias_act_kernel(%arg0: i32, %arg1: i32, %arg2: i32, %arg3: memref<32x1024xf32, #tpu.memory_space<vmem>>, %arg4: memref<1024x256xf32, #tpu.memory_space<vmem>>, %arg5: memref<1x256xf32, #tpu.memory_space<vmem>>, %arg6: memref<32x256xf32, #tpu.memory_space<vmem>>, %arg7: memref<32x256xf32, #tpu.memory_space<vmem>>) attributes {dimension_semantics = [#tpu.dimension_semantics<parallel>, #tpu.dimension_semantics<parallel>, #tpu.dimension_semantics<arbitrary>], iteration_bounds = array<i64: 1, 2, 1>, scalar_prefetch = 0 : i64, scratch_operands = 1 : i64, tpu.core_type = #tpu.core_type<tc>, window_params = [{transform_indices = @transform_0, window_bounds = array<i64: 32, 1024>}, {transform_indices = @transform_1, window_bounds = array<i64: 1024, 256>}, {transform_indices = @transform_2, window_bounds = array<i64: 1, 256>}, {transform_indices = @transform_3, window_bounds = array<i64: 32, 256>}]} {
    %c0_i32 = arith.constant 0 : i32
    %0 = arith.cmpi eq, %arg2, %c0_i32 : i32
    %1 = arith.extui %0 : i1 to i32
    %c0_i32_0 = arith.constant 0 : i32
    %2 = arith.cmpi ne, %1, %c0_i32_0 : i32
    scf.if %2 {
      %cst_10 = arith.constant 0.000000e+00 : f32
      %12 = vector.broadcast %cst_10 : f32 to vector<32x256xf32>
      %c0_11 = arith.constant 0 : index
      %c0_12 = arith.constant 0 : index
      %13 = vector.load %arg7[%c0_11, %c0_12] : memref<32x256xf32, #tpu.memory_space<vmem>>, vector<32x256xf32>
      tpu.vector_store %arg7[%c0_11, %c0_12], %12 {strides = array<i32>} : memref<32x256xf32, #tpu.memory_space<vmem>>, vector<32x256xf32>,
    } else {
    }
    %c0 = arith.constant 0 : index
    %c0_1 = arith.constant 0 : index
    %3 = vector.load %arg7[%c0, %c0_1] : memref<32x256xf32, #tpu.memory_space<vmem>>, vector<32x256xf32>
    %c0_2 = arith.constant 0 : index
    %c0_3 = arith.constant 0 : index
    %4 = vector.load %arg3[%c0_2, %c0_3] : memref<32x1024xf32, #tpu.memory_space<vmem>>, vector<32x1024xf32>
    %c0_4 = arith.constant 0 : index
    %c0_5 = arith.constant 0 : index
    %5 = vector.load %arg4[%c0_4, %c0_5] : memref<1024x256xf32, #tpu.memory_space<vmem>>, vector<1024x256xf32>
    %cst = arith.constant dense<0.000000e+00> : vector<32x256xf32>
    %6 = tpu.matmul %4, %5, %cst {dimension_numbers = #tpu.dot_dimension_numbers<[1], [0], [0], [1], [0, 0, 1, 1], [], []>} : vector<32x1024xf32>, vector<1024x256xf32>, vector<32x256xf32> -> vector<32x256xf32>
    %7 = arith.addf %3, %6 : vector<32x256xf32>
    %c0_6 = arith.constant 0 : index
    %c0_7 = arith.constant 0 : index
    %8 = vector.load %arg7[%c0_6, %c0_7] : memref<32x256xf32, #tpu.memory_space<vmem>>, vector<32x256xf32>
    tpu.vector_store %arg7[%c0_6, %c0_7], %7 {strides = array<i32>} : memref<32x256xf32, #tpu.memory_space<vmem>>, vector<32x256xf32>,
    %c0_i32_8 = arith.constant 0 : i32
    %9 = arith.cmpi eq, %arg2, %c0_i32_8 : i32
    %10 = arith.extui %9 : i1 to i32
    %c0_i32_9 = arith.constant 0 : i32
    %11 = arith.cmpi ne, %10, %c0_i32_9 : i32
    scf.if %11 {
      %c0_10 = arith.constant 0 : index
      %c0_11 = arith.constant 0 : index
      %12 = vector.load %arg7[%c0_10, %c0_11] : memref<32x256xf32, #tpu.memory_space<vmem>>, vector<32x256xf32>
      %c0_12 = arith.constant 0 : index
      %c0_13 = arith.constant 0 : index
      %13 = vector.load %arg5[%c0_12, %c0_13] : memref<1x256xf32, #tpu.memory_space<vmem>>, vector<1x256xf32>
      %14 = vector.broadcast %13 : vector<1x256xf32> to vector<32x256xf32>
      %15 = arith.addf %12, %14 : vector<32x256xf32>
      %cst_14 = arith.constant 0.000000e+00 : f32
      %16 = vector.broadcast %cst_14 : f32 to vector<32x256xf32>
      %17 = arith.maximumf %15, %16 : vector<32x256xf32>
      %c0_15 = arith.constant 0 : index
      %c0_16 = arith.constant 0 : index
      %18 = vector.load %arg6[%c0_15, %c0_16] : memref<32x256xf32, #tpu.memory_space<vmem>>, vector<32x256xf32>
      tpu.vector_store %arg6[%c0_15, %c0_16], %17 {strides = array<i32>} : memref<32x256xf32, #tpu.memory_space<vmem>>, vector<32x256xf32>,
    } else {
    }
    return
  }
  func.func @transform_0(%arg0: i32, %arg1: i32, %arg2: i32) -> (i32, i32) {
    %c0_i32 = arith.constant 0 : i32
    return %arg0, %arg2 : i32, i32
  }
  func.func @transform_1(%arg0: i32, %arg1: i32, %arg2: i32) -> (i32, i32) {
    %c0_i32 = arith.constant 0 : i32
    return %arg2, %arg1 : i32, i32
  }
  func.func @transform_2(%arg0: i32, %arg1: i32, %arg2: i32) -> (i32, i32) {
    %c0_i32 = arith.constant 0 : i32
    %c0_i32_0 = arith.constant 0 : i32
    return %c0_i32, %arg1 : i32, i32
  }
  func.func @transform_3(%arg0: i32, %arg1: i32, %arg2: i32) -> (i32, i32) {
    %c0_i32 = arith.constant 0 : i32
    return %arg0, %arg1 : i32, i32
  }
}

module attributes {stable_mosaic.version = 11 : i64} {
  func.func @_matmul_bias_act_kernel(%arg0: i32, %arg1: i32, %arg2: i32, %arg3: memref<128x512xf32, #tpu.memory_space<vmem>>, %arg4: memref<512x128xf32, #tpu.memory_space<vmem>>, %arg5: memref<1x128xf32, #tpu.memory_space<vmem>>, %arg6: memref<128x128xf32, #tpu.memory_space<vmem>>, %arg7: memref<128x128xf32, #tpu.memory_space<vmem>>) attributes {dimension_semantics = [#tpu.dimension_semantics<parallel>, #tpu.dimension_semantics<parallel>, #tpu.dimension_semantics<arbitrary>], iteration_bounds = array<i64: 1, 2, 1>, scalar_prefetch = 0 : i64, scratch_operands = 1 : i64, tpu.core_type = #tpu.core_type<tc>, window_params = [{transform_indices = @transform_0, window_bounds = array<i64: 128, 512>}, {transform_indices = @transform_1, window_bounds = array<i64: 512, 128>}, {transform_indices = @transform_2, window_bounds = array<i64: 1, 128>}, {transform_indices = @transform_3, window_bounds = array<i64: 128, 128>}]} {
    %c0_i32 = arith.constant 0 : i32
    %0 = arith.cmpi eq, %arg2, %c0_i32 : i32
    %1 = arith.extui %0 : i1 to i32
    %c0_i32_0 = arith.constant 0 : i32
    %2 = arith.cmpi ne, %1, %c0_i32_0 : i32
    scf.if %2 {
      %cst_10 = arith.constant 0.000000e+00 : f32
      %12 = vector.broadcast %cst_10 : f32 to vector<128x128xf32>
      %c0_11 = arith.constant 0 : index
      %c0_12 = arith.constant 0 : index
      %13 = vector.load %arg7[%c0_11, %c0_12] : memref<128x128xf32, #tpu.memory_space<vmem>>, vector<128x128xf32>
      tpu.vector_store %arg7[%c0_11, %c0_12], %12 {strides = array<i32>} : memref<128x128xf32, #tpu.memory_space<vmem>>, vector<128x128xf32>,
    } else {
    }
    %c0 = arith.constant 0 : index
    %c0_1 = arith.constant 0 : index
    %3 = vector.load %arg7[%c0, %c0_1] : memref<128x128xf32, #tpu.memory_space<vmem>>, vector<128x128xf32>
    %c0_2 = arith.constant 0 : index
    %c0_3 = arith.constant 0 : index
    %4 = vector.load %arg3[%c0_2, %c0_3] : memref<128x512xf32, #tpu.memory_space<vmem>>, vector<128x512xf32>
    %c0_4 = arith.constant 0 : index
    %c0_5 = arith.constant 0 : index
    %5 = vector.load %arg4[%c0_4, %c0_5] : memref<512x128xf32, #tpu.memory_space<vmem>>, vector<512x128xf32>
    %cst = arith.constant dense<0.000000e+00> : vector<128x128xf32>
    %6 = tpu.matmul %4, %5, %cst {dimension_numbers = #tpu.dot_dimension_numbers<[1], [0], [0], [1], [0, 0, 1, 1], [], []>} : vector<128x512xf32>, vector<512x128xf32>, vector<128x128xf32> -> vector<128x128xf32>
    %7 = arith.addf %3, %6 : vector<128x128xf32>
    %c0_6 = arith.constant 0 : index
    %c0_7 = arith.constant 0 : index
    %8 = vector.load %arg7[%c0_6, %c0_7] : memref<128x128xf32, #tpu.memory_space<vmem>>, vector<128x128xf32>
    tpu.vector_store %arg7[%c0_6, %c0_7], %7 {strides = array<i32>} : memref<128x128xf32, #tpu.memory_space<vmem>>, vector<128x128xf32>,
    %c0_i32_8 = arith.constant 0 : i32
    %9 = arith.cmpi eq, %arg2, %c0_i32_8 : i32
    %10 = arith.extui %9 : i1 to i32
    %c0_i32_9 = arith.constant 0 : i32
    %11 = arith.cmpi ne, %10, %c0_i32_9 : i32
    scf.if %11 {
      %c0_10 = arith.constant 0 : index
      %c0_11 = arith.constant 0 : index
      %12 = vector.load %arg7[%c0_10, %c0_11] : memref<128x128xf32, #tpu.memory_space<vmem>>, vector<128x128xf32>
      %c0_12 = arith.constant 0 : index
      %c0_13 = arith.constant 0 : index
      %13 = vector.load %arg5[%c0_12, %c0_13] : memref<1x128xf32, #tpu.memory_space<vmem>>, vector<1x128xf32>
      %14 = vector.broadcast %13 : vector<1x128xf32> to vector<128x128xf32>
      %15 = arith.addf %12, %14 : vector<128x128xf32>
      %cst_14 = arith.constant 0.000000e+00 : f32
      %16 = vector.broadcast %cst_14 : f32 to vector<128x128xf32>
      %17 = arith.maximumf %15, %16 : vector<128x128xf32>
      %c0_15 = arith.constant 0 : index
      %c0_16 = arith.constant 0 : index
      %18 = vector.load %arg6[%c0_15, %c0_16] : memref<128x128xf32, #tpu.memory_space<vmem>>, vector<128x128xf32>
      tpu.vector_store %arg6[%c0_15, %c0_16], %17 {strides = array<i32>} : memref<128x128xf32, #tpu.memory_space<vmem>>, vector<128x128xf32>,
    } else {
    }
    return
  }
  func.func @transform_0(%arg0: i32, %arg1: i32, %arg2: i32) -> (i32, i32) {
    %c0_i32 = arith.constant 0 : i32
    return %arg0, %arg2 : i32, i32
  }
  func.func @transform_1(%arg0: i32, %arg1: i32, %arg2: i32) -> (i32, i32) {
    %c0_i32 = arith.constant 0 : i32
    return %arg2, %arg1 : i32, i32
  }
  func.func @transform_2(%arg0: i32, %arg1: i32, %arg2: i32) -> (i32, i32) {
    %c0_i32 = arith.constant 0 : i32
    %c0_i32_0 = arith.constant 0 : i32
    return %c0_i32, %arg1 : i32, i32
  }
  func.func @transform_3(%arg0: i32, %arg1: i32, %arg2: i32) -> (i32, i32) {
    %c0_i32 = arith.constant 0 : i32
    return %arg0, %arg1 : i32, i32
  }
}

module attributes {stable_mosaic.version = 11 : i64} {
  func.func @_matmul_bias_act_kernel(%arg0: i32, %arg1: i32, %arg2: i32, %arg3: memref<256x896xf32, #tpu.memory_space<vmem>>, %arg4: memref<896x128xf32, #tpu.memory_space<vmem>>, %arg5: memref<1x128xf32, #tpu.memory_space<vmem>>, %arg6: memref<256x128xf32, #tpu.memory_space<vmem>>, %arg7: memref<256x128xf32, #tpu.memory_space<vmem>>) attributes {dimension_semantics = [#tpu.dimension_semantics<parallel>, #tpu.dimension_semantics<parallel>, #tpu.dimension_semantics<arbitrary>], iteration_bounds = array<i64: 2, 1, 4>, scalar_prefetch = 0 : i64, scratch_operands = 1 : i64, tpu.core_type = #tpu.core_type<tc>, window_params = [{transform_indices = @transform_0, window_bounds = array<i64: 256, 896>}, {transform_indices = @transform_1, window_bounds = array<i64: 896, 128>}, {transform_indices = @transform_2, window_bounds = array<i64: 1, 128>}, {transform_indices = @transform_3, window_bounds = array<i64: 256, 128>}]} {
    %c0_i32 = arith.constant 0 : i32
    %0 = arith.cmpi eq, %arg2, %c0_i32 : i32
    %1 = arith.extui %0 : i1 to i32
    %c0_i32_0 = arith.constant 0 : i32
    %2 = arith.cmpi ne, %1, %c0_i32_0 : i32
    scf.if %2 {
      %cst_9 = arith.constant 0.000000e+00 : f32
      %12 = vector.broadcast %cst_9 : f32 to vector<256x128xf32>
      %c0_10 = arith.constant 0 : index
      %c0_11 = arith.constant 0 : index
      %13 = vector.load %arg7[%c0_10, %c0_11] : memref<256x128xf32, #tpu.memory_space<vmem>>, vector<256x128xf32>
      tpu.vector_store %arg7[%c0_10, %c0_11], %12 {strides = array<i32>} : memref<256x128xf32, #tpu.memory_space<vmem>>, vector<256x128xf32>,
    } else {
    }
    %c0 = arith.constant 0 : index
    %c0_1 = arith.constant 0 : index
    %3 = vector.load %arg7[%c0, %c0_1] : memref<256x128xf32, #tpu.memory_space<vmem>>, vector<256x128xf32>
    %c0_2 = arith.constant 0 : index
    %c0_3 = arith.constant 0 : index
    %4 = vector.load %arg3[%c0_2, %c0_3] : memref<256x896xf32, #tpu.memory_space<vmem>>, vector<256x896xf32>
    %c0_4 = arith.constant 0 : index
    %c0_5 = arith.constant 0 : index
    %5 = vector.load %arg4[%c0_4, %c0_5] : memref<896x128xf32, #tpu.memory_space<vmem>>, vector<896x128xf32>
    %cst = arith.constant dense<0.000000e+00> : vector<256x128xf32>
    %6 = tpu.matmul %4, %5, %cst {dimension_numbers = #tpu.dot_dimension_numbers<[1], [0], [0], [1], [0, 0, 1, 1], [], []>} : vector<256x896xf32>, vector<896x128xf32>, vector<256x128xf32> -> vector<256x128xf32>
    %7 = arith.addf %3, %6 : vector<256x128xf32>
    %c0_6 = arith.constant 0 : index
    %c0_7 = arith.constant 0 : index
    %8 = vector.load %arg7[%c0_6, %c0_7] : memref<256x128xf32, #tpu.memory_space<vmem>>, vector<256x128xf32>
    tpu.vector_store %arg7[%c0_6, %c0_7], %7 {strides = array<i32>} : memref<256x128xf32, #tpu.memory_space<vmem>>, vector<256x128xf32>,
    %c3_i32 = arith.constant 3 : i32
    %9 = arith.cmpi eq, %arg2, %c3_i32 : i32
    %10 = arith.extui %9 : i1 to i32
    %c0_i32_8 = arith.constant 0 : i32
    %11 = arith.cmpi ne, %10, %c0_i32_8 : i32
    scf.if %11 {
      %c0_9 = arith.constant 0 : index
      %c0_10 = arith.constant 0 : index
      %12 = vector.load %arg7[%c0_9, %c0_10] : memref<256x128xf32, #tpu.memory_space<vmem>>, vector<256x128xf32>
      %c0_11 = arith.constant 0 : index
      %c0_12 = arith.constant 0 : index
      %13 = vector.load %arg5[%c0_11, %c0_12] : memref<1x128xf32, #tpu.memory_space<vmem>>, vector<1x128xf32>
      %14 = vector.broadcast %13 : vector<1x128xf32> to vector<256x128xf32>
      %15 = arith.addf %12, %14 : vector<256x128xf32>
      %16 = math.tanh %15 : vector<256x128xf32>
      %c0_13 = arith.constant 0 : index
      %c0_14 = arith.constant 0 : index
      %17 = vector.load %arg6[%c0_13, %c0_14] : memref<256x128xf32, #tpu.memory_space<vmem>>, vector<256x128xf32>
      tpu.vector_store %arg6[%c0_13, %c0_14], %16 {strides = array<i32>} : memref<256x128xf32, #tpu.memory_space<vmem>>, vector<256x128xf32>,
    } else {
    }
    return
  }
  func.func @transform_0(%arg0: i32, %arg1: i32, %arg2: i32) -> (i32, i32) {
    %c0_i32 = arith.constant 0 : i32
    return %arg0, %arg2 : i32, i32
  }
  func.func @transform_1(%arg0: i32, %arg1: i32, %arg2: i32) -> (i32, i32) {
    %c0_i32 = arith.constant 0 : i32
    return %arg2, %arg1 : i32, i32
  }
  func.func @transform_2(%arg0: i32, %arg1: i32, %arg2: i32) -> (i32, i32) {
    %c0_i32 = arith.constant 0 : i32
    %c0_i32_0 = arith.constant 0 : i32
    return %c0_i32, %arg1 : i32, i32
  }
  func.func @transform_3(%arg0: i32, %arg1: i32, %arg2: i32) -> (i32, i32) {
    %c0_i32 = arith.constant 0 : i32
    return %arg0, %arg1 : i32, i32
  }
}

</mosaic_0001>

<bundles_post_ra>
// kernel: _lambda_.6
= control target key start
LH: loop header
LB: loop body
LE: loop exit
PB: predicated region body
PF: predicated region fallthrough
CT: control target
= control target key end

     0   :  { %s1138_s12 = smov 0   ;;  %s1140_s13 = smov 0   ;;  %s1440_s0 = inlined_call_operand.vmem [shape: f32[512,256], index: 0, kind: input, shape index: {}]   ;;  %s1441_s1 = inlined_call_operand.vmem [shape: f32[256,128], index: 1, kind: input, shape index: {}]   ;;  %s1442_s2 = inlined_call_operand.vmem [shape: f32[1,128], index: 2, kind: input, shape index: {}]   ;;  %s1443_s3 = inlined_call_operand.vmem [shape: f32[512,128], index: 3, kind: output, shape index: {}]  }
   0x1   :  { %s1142_s14 = smov 0  }
   0x2 LB: > { %s32_s15 = sadd.s32 1, %s1111_s13  ;;  %p978_p0 = scmp.ge.s32.totalorder %s1115_s14, 1  ;;  %s1115_s14 = sphi %s1142_s14, %s13_s14   ;;  %s1111_s13 = sphi %s1140_s13, %s1445_s13   ;;  %s1107_s12 = sphi %s1138_s12, %s1444_s12  }
   0x3   : > { %p34_p1 = scmp.ge.s32.totalorder %s32_s15, 2  ;;  %p191_p2 = scmp.lt.s32.totalorder %s1115_s14, 3 }
   0x5   : > { %s1447_s15 = smov (%p34_p1, %s32_s15), 0  ;;  %p192_p3 = pnand %p978_p0, %p191_p2 }
   0x6   : > { %v399_v0 = vld [vmem:[%s1441_s1] sm:$0xff] (!%p192_p3)  ;;  %v400_v1 = vld [vmem:[%s1441_s1 + $0x8] sm:$0xff] (!%p192_p3)  ;;  %v401_v2 = vld [vmem:[%s1441_s1 + $0x10] sm:$0xff] (!%p192_p3)  ;;  %s979_s22 = sshll.u32 (!%p192_p3), %s1107_s12, 5  ;;  %v1117_v3 = vmov (!%p192_p3), 0.0|0.0  }
   0x7   : > { %195 = sbr.rel (%p192_p3) target bundleno = 349 (0x15d), region = 32  ;;  %988 = vmatprep.subr.bf16.mxu0 (!%p192_p3), %v1117_v3  ;;  %1036 = vmatprep.subr.bf16.mxu1 (!%p192_p3), %v1117_v3  ;;  %v989_v4 = vpack.c.bf16 (!%p192_p3), %v400_v1, %v399_v0  ;;  %v402_v5 = vld [vmem:[%s1441_s1 + $0x18] sm:$0xff] (!%p192_p3)  ;;  %p236_p4 = scmp.lt.s32.totalorder (!%p192_p3), %s979_s22, 63  ;;  %v403_v7 = vld [vmem:[%s1441_s1 + $0x20] sm:$0xff] (!%p192_p3)  ;;  %v404_v8 = vld [vmem:[%s1441_s1 + $0x28] sm:$0xff] (!%p192_p3) }
   0x8   : > { %v992_v6 = vpack.c.bf16 (!%p192_p3), %v402_v5, %v401_v2  ;;  %v995_v9 = vpack.c.bf16 (!%p192_p3), %v404_v8, %v403_v7  ;;  %v405_v10 = vld [vmem:[%s1441_s1 + $0x30] sm:$0xff] (!%p192_p3)  ;;  %v406_v11 = vld [vmem:[%s1441_s1 + $0x38] sm:$0xff] (!%p192_p3)  ;;  %v407_v15 = vld [vmem:[%s1441_s1 + $0x40] sm:$0xff] (!%p192_p3) }
   0x9   : > { %990 = vmatpush1.bf16.msra.mxu0 (!%p192_p3), %v989_v4  ;;  %1052 = vmatpush1.bf16.msra.mxu1 (!%p192_p3), %v989_v4  ;;  %v998_v13 = vpack.c.bf16 (!%p192_p3), %v406_v11, %v405_v10  ;;  %v408_v16 = vld [vmem:[%s1441_s1 + $0x48] sm:$0xff] (!%p192_p3)  ;;  %v409_v18 = vld [vmem:[%s1441_s1 + $0x50] sm:$0xff] (!%p192_p3)  ;;  %v410_v19 = vld [vmem:[%s1441_s1 + $0x58] sm:$0xff] (!%p192_p3) }
   0xa   : > { %991 = vmatprep.subr.bf16.mxu0 (!%p192_p3), %v1117_v3  ;;  %1037 = vmatprep.subr.bf16.mxu1 (!%p192_p3), %v1117_v3  ;;  %v1001_v17 = vpack.c.bf16 (!%p192_p3), %v408_v16, %v407_v15  ;;  %v1004_v20 = vpack.c.bf16 (!%p192_p3), %v410_v19, %v409_v18  ;;  %v411_v21 = vld [vmem:[%s1441_s1 + $0x60] sm:$0xff] (!%p192_p3)  ;;  %v412_v22 = vld [vmem:[%s1441_s1 + $0x68] sm:$0xff] (!%p192_p3)  ;;  %v413_v24 = vld [vmem:[%s1441_s1 + $0x70] sm:$0xff] (!%p192_p3) }
   0xb   : > { %v1007_v23 = vpack.c.bf16 (!%p192_p3), %v412_v22, %v411_v21  ;;  %v414_v25 = vld [vmem:[%s1441_s1 + $0x78] sm:$0xff] (!%p192_p3)  ;;  %v415_v27 = vld [vmem:[%s1441_s1 + $0x80] sm:$0xff] (!%p192_p3)  ;;  %v416_v28 = vld [vmem:[%s1441_s1 + $0x88] sm:$0xff] (!%p192_p3) }
   0xc   : > { %v1010_v26 = vpack.c.bf16 (!%p192_p3), %v414_v25, %v413_v24  ;;  %v1013_v29 = vpack.c.bf16 (!%p192_p3), %v416_v28, %v415_v27  ;;  %v417_v30 = vld [vmem:[%s1441_s1 + $0x90] sm:$0xff] (!%p192_p3)  ;;  %v418_v31 = vld [vmem:[%s1441_s1 + $0x98] sm:$0xff] (!%p192_p3)  ;;  %v419_v33 = vld [vmem:[%s1441_s1 + $0xa0] sm:$0xff] (!%p192_p3) }
   0xd   : > { %993 = vmatpush1.bf16.msra.mxu0 (!%p192_p3), %v992_v6  ;;  %1053 = vmatpush1.bf16.msra.mxu1 (!%p192_p3), %v992_v6  ;;  %v1016_v32 = vpack.c.bf16 (!%p192_p3), %v418_v31, %v417_v30  ;;  %v420_v34 = vld [vmem:[%s1441_s1 + $0xa8] sm:$0xff] (!%p192_p3)  ;;  %v421_v36 = vld [vmem:[%s1441_s1 + $0xb0] sm:$0xff] (!%p192_p3)  ;;  %v422_v37 = vld [vmem:[%s1441_s1 + $0xb8] sm:$0xff] (!%p192_p3) }
   0xe   : > { %s1449_s22 = smov (!%p236_p4, %s979_s22), 63  ;;  %994 = vmatprep.subr.bf16.mxu0 %v1117_v3  ;;  %1038 = vmatprep.subr.bf16.mxu1 %v1117_v3  ;;  %v1019_v35 = vpack.c.bf16 %v420_v34, %v419_v33  ;;  %v1022_v38 = vpack.c.bf16 %v422_v37, %v421_v36  ;;  %v423_v39 = vld [vmem:[%s1441_s1 + $0xc0] sm:$0xff]  ;;  %v424_v40 = vld [vmem:[%s1441_s1 + $0xc8] sm:$0xff]  ;;  %v425_v42 = vld [vmem:[%s1441_s1 + $0xd0] sm:$0xff] }
   0xf   : > { %s987_s29 = sshll.u32 %s1449_s22, 4  ;;  %v1025_v41 = vpack.c.bf16 %v424_v40, %v423_v39  ;;  %v426_v43 = vld [vmem:[%s1441_s1 + $0xd8] sm:$0xff]  ;;  %v427_v45 = vld [vmem:[%s1441_s1 + $0xe0] sm:$0xff]  ;;  %v428_v46 = vld [vmem:[%s1441_s1 + $0xe8] sm:$0xff]  ;;  %s983_s19 = sshll.u32 %s1449_s22, 3 }
  0x10   : > { %s1184_s5 = scalar_lea.vmem %s1440_s0, %s987_s29  ;;  %v1028_v44 = vpack.c.bf16 %v426_v43, %v425_v42  ;;  %v1031_v47 = vpack.c.bf16 %v428_v46, %v427_v45  ;;  %v429_v48 = vld [vmem:[%s1441_s1 + $0xf0] sm:$0xff]  ;;  %v430_v49 = vld [vmem:[%s1441_s1 + $0xf8] sm:$0xff] }
  0x11   : > { %v336_v12 = vld [vmem:[%s1184_s5 + $0x8] sm:$0xff]  ;;  %996 = vmatpush1.bf16.msra.mxu0 %v995_v9  ;;  %1054 = vmatpush1.bf16.msra.mxu1 %v995_v9  ;;  %v1034_v50 = vpack.c.bf16 %v430_v49, %v429_v48  ;;  %v335_v51 = vld [vmem:[%s1184_s5] sm:$0xff]  ;;  %v338_v53 = vld [vmem:[%s1184_s5 + $0x18] sm:$0xff] }
  0x12   : > { %v368_v14 = vld [vmem:[%s1184_s5 + $0x108] sm:$0xff]  ;;  %997 = vmatprep.subr.bf16.mxu0 %v1117_v3  ;;  %1039 = vmatprep.subr.bf16.mxu1 %v1117_v3  ;;  %v367_v52 = vld [vmem:[%s1184_s5 + $0x100] sm:$0xff]  ;;  %v370_v54 = vld [vmem:[%s1184_s5 + $0x118] sm:$0xff] }
  0x13   : > { %495 = vmatprep.mubr.f32.mxu0 %v336_v12  ;;  %575 = vmatprep.mubr.f32.mxu1 %v368_v14  ;;  %v337_v55 = vld [vmem:[%s1184_s5 + $0x10] sm:$0xff]  ;;  %v340_v57 = vld [vmem:[%s1184_s5 + $0x28] sm:$0xff]  ;;  %v339_v59 = vld [vmem:[%s1184_s5 + $0x20] sm:$0xff] }
  0x14   : > { %v369_v56 = vld [vmem:[%s1184_s5 + $0x110] sm:$0xff]  ;;  %v372_v58 = vld [vmem:[%s1184_s5 + $0x128] sm:$0xff]  ;;  %v371_v60 = vld [vmem:[%s1184_s5 + $0x120] sm:$0xff] }
  0x15   : > { %999 = vmatpush1.bf16.msra.mxu0 %v998_v13  ;;  %1055 = vmatpush1.bf16.msra.mxu1 %v998_v13  ;;  %v342_v61 = vld [vmem:[%s1184_s5 + $0x38] sm:$0xff]  ;;  %v341_v63 = vld [vmem:[%s1184_s5 + $0x30] sm:$0xff]  ;;  %v344_v1 = vld [vmem:[%s1184_s5 + $0x48] sm:$0xff] }
  0x16   : > { %1000 = vmatprep.subr.bf16.mxu0 %v1117_v3  ;;  %1040 = vmatprep.subr.bf16.mxu1 %v1117_v3  ;;  %v374_v62 = vld [vmem:[%s1184_s5 + $0x138] sm:$0xff]  ;;  %v373_v0 = vld [vmem:[%s1184_s5 + $0x130] sm:$0xff]  ;;  %v376_v2 = vld [vmem:[%s1184_s5 + $0x148] sm:$0xff] }
  0x17   : > { %v375_v4 = vld [vmem:[%s1184_s5 + $0x140] sm:$0xff]  ;;  %v346_v5 = vld [vmem:[%s1184_s5 + $0x58] sm:$0xff]  ;;  %v345_v7 = vld [vmem:[%s1184_s5 + $0x50] sm:$0xff] }
  0x18   : > { %v378_v6 = vld [vmem:[%s1184_s5 + $0x158] sm:$0xff]  ;;  %v377_v8 = vld [vmem:[%s1184_s5 + $0x150] sm:$0xff]  ;;  %v348_v9 = vld [vmem:[%s1184_s5 + $0x68] sm:$0xff] }
  0x19   : > { %1002 = vmatpush1.bf16.msra.mxu0 %v1001_v17  ;;  %1056 = vmatpush1.bf16.msra.mxu1 %v1001_v17  ;;  %v380_v10 = vld [vmem:[%s1184_s5 + $0x168] sm:$0xff]  ;;  %v347_v11 = vld [vmem:[%s1184_s5 + $0x60] sm:$0xff]  ;;  %v350_v13 = vld [vmem:[%s1184_s5 + $0x78] sm:$0xff] }
  0x1a   : > { %1003 = vmatprep.subr.bf16.mxu0 %v1117_v3  ;;  %1041 = vmatprep.subr.bf16.mxu1 %v1117_v3  ;;  %v379_v12 = vld [vmem:[%s1184_s5 + $0x160] sm:$0xff]  ;;  %v382_v14 = vld [vmem:[%s1184_s5 + $0x178] sm:$0xff]  ;;  %v349_v15 = vld [vmem:[%s1184_s5 + $0x70] sm:$0xff] }
  0x1b   : > { %v381_v16 = vld [vmem:[%s1184_s5 + $0x170] sm:$0xff]  ;;  %v352_v17 = vld [vmem:[%s1184_s5 + $0x88] sm:$0xff]  ;;  %v351_v19 = vld [vmem:[%s1184_s5 + $0x80] sm:$0xff] }
  0x1c   : > { %v384_v18 = vld [vmem:[%s1184_s5 + $0x188] sm:$0xff]  ;;  %v354_v21 = vld [vmem:[%s1184_s5 + $0x98] sm:$0xff]  ;;  %v385_v24 = vld [vmem:[%s1184_s5 + $0x190] sm:$0xff] }
  0x1d   : > { %1005 = vmatpush1.bf16.msra.mxu0 %v1004_v20  ;;  %1057 = vmatpush1.bf16.msra.mxu1 %v1004_v20  ;;  %v383_v20 = vld [vmem:[%s1184_s5 + $0x180] sm:$0xff]  ;;  %v386_v22 = vld [vmem:[%s1184_s5 + $0x198] sm:$0xff]  ;;  %v356_v25 = vld [vmem:[%s1184_s5 + $0xa8] sm:$0xff] }
  0x1e   : > { %1006 = vmatprep.subr.bf16.mxu0 %v1117_v3  ;;  %1042 = vmatprep.subr.bf16.mxu1 %v1117_v3  ;;  %v355_v27 = vld [vmem:[%s1184_s5 + $0xa0] sm:$0xff]  ;;  %v390_v30 = vld [vmem:[%s1184_s5 + $0x1b8] sm:$0xff]  ;;  %v357_v31 = vld [vmem:[%s1184_s5 + $0xb0] sm:$0xff] }
  0x1f   : > { %v387_v28 = vld [vmem:[%s1184_s5 + $0x1a0] sm:$0xff]  ;;  %v360_v33 = vld [vmem:[%s1184_s5 + $0xc8] sm:$0xff]  ;;  %v362_v37 = vld [vmem:[%s1184_s5 + $0xd8] sm:$0xff] }
  0x20   : > { %v392_v34 = vld [vmem:[%s1184_s5 + $0x1c8] sm:$0xff]  ;;  %v391_v36 = vld [vmem:[%s1184_s5 + $0x1c0] sm:$0xff]  ;;  %v361_v39 = vld [vmem:[%s1184_s5 + $0xd0] sm:$0xff] }
  0x21   : > { %1008 = vmatpush1.bf16.msra.mxu0 %v1007_v23  ;;  %1058 = vmatpush1.bf16.msra.mxu1 %v1007_v23  ;;  %v353_v23 = vld [vmem:[%s1184_s5 + $0x90] sm:$0xff]  ;;  %v396_v42 = vld [vmem:[%s1184_s5 + $0x1e8] sm:$0xff]  ;;  %v363_v43 = vld [vmem:[%s1184_s5 + $0xe0] sm:$0xff] }
  0x22   : > { %1009 = vmatprep.subr.bf16.mxu0 %v1117_v3  ;;  %1043 = vmatprep.subr.bf16.mxu1 %v1117_v3  ;;  %v393_v40 = vld [vmem:[%s1184_s5 + $0x1d0] sm:$0xff]  ;;  %v366_v45 = vld [vmem:[%s1184_s5 + $0xf8] sm:$0xff]  ;;  %v1359_v49 = vld [vmem:[%s1442_s2] ss:$0 sm:$0xff] }
  0x23   : > { %v398_v46 = vld [vmem:[%s1184_s5 + $0x1f8] sm:$0xff]  ;;  %v397_v48 = vld [vmem:[%s1184_s5 + $0x1f0] sm:$0xff] }
  0x25   : > { %1011 = vmatpush1.bf16.msra.mxu0 %v1010_v26  ;;  %1059 = vmatpush1.bf16.msra.mxu1 %v1010_v26  ;;  %v388_v26 = vld [vmem:[%s1184_s5 + $0x1a8] sm:$0xff] }
  0x26   : > { %1012 = vmatprep.subr.bf16.mxu0 %v1117_v3  ;;  %1044 = vmatprep.subr.bf16.mxu1 %v1117_v3 }
  0x29   : > { %1014 = vmatpush1.bf16.msra.mxu0 %v1013_v29  ;;  %1060 = vmatpush1.bf16.msra.mxu1 %v1013_v29  ;;  %v358_v29 = vld [vmem:[%s1184_s5 + $0xb8] sm:$0xff] }
  0x2a   : > { %1015 = vmatprep.subr.bf16.mxu0 %v1117_v3  ;;  %1045 = vmatprep.subr.bf16.mxu1 %v1117_v3 }
  0x2d   : > { %1017 = vmatpush1.bf16.msra.mxu0 %v1016_v32  ;;  %1061 = vmatpush1.bf16.msra.mxu1 %v1016_v32  ;;  %v389_v32 = vld [vmem:[%s1184_s5 + $0x1b0] sm:$0xff] }
  0x2e   : > { %1018 = vmatprep.subr.bf16.mxu0 %v1117_v3  ;;  %1046 = vmatprep.subr.bf16.mxu1 %v1117_v3 }
  0x31   : > { %1020 = vmatpush1.bf16.msra.mxu0 %v1019_v35  ;;  %1062 = vmatpush1.bf16.msra.mxu1 %v1019_v35  ;;  %v359_v35 = vld [vmem:[%s1184_s5 + $0xc0] sm:$0xff] }
  0x32   : > { %1021 = vmatprep.subr.bf16.mxu0 %v1117_v3  ;;  %1047 = vmatprep.subr.bf16.mxu1 %v1117_v3 }
  0x35   : > { %1023 = vmatpush1.bf16.msra.mxu0 %v1022_v38  ;;  %1063 = vmatpush1.bf16.msra.mxu1 %v1022_v38  ;;  %v394_v38 = vld [vmem:[%s1184_s5 + $0x1d8] sm:$0xff] }
  0x36   : > { %1024 = vmatprep.subr.bf16.mxu0 %v1117_v3  ;;  %1048 = vmatprep.subr.bf16.mxu1 %v1117_v3 }
  0x39   : > { %1026 = vmatpush1.bf16.msra.mxu0 %v1025_v41  ;;  %1064 = vmatpush1.bf16.msra.mxu1 %v1025_v41  ;;  %v364_v41 = vld [vmem:[%s1184_s5 + $0xe8] sm:$0xff] }
  0x3a   : > { %1027 = vmatprep.subr.bf16.mxu0 %v1117_v3  ;;  %1049 = vmatprep.subr.bf16.mxu1 %v1117_v3 }
  0x3d   : > { %1029 = vmatpush1.bf16.msra.mxu0 %v1028_v44  ;;  %1065 = vmatpush1.bf16.msra.mxu1 %v1028_v44  ;;  %v395_v44 = vld [vmem:[%s1184_s5 + $0x1e0] sm:$0xff] }
  0x3e   : > { %1030 = vmatprep.subr.bf16.mxu0 %v1117_v3  ;;  %1050 = vmatprep.subr.bf16.mxu1 %v1117_v3 }
  0x41   : > { %1032 = vmatpush1.bf16.msra.mxu0 %v1031_v47  ;;  %1066 = vmatpush1.bf16.msra.mxu1 %v1031_v47  ;;  %v365_v47 = vld [vmem:[%s1184_s5 + $0xf0] sm:$0xff] }
  0x42   : > { %1033 = vmatprep.subr.bf16.mxu0 %v1117_v3  ;;  %1051 = vmatprep.subr.bf16.mxu1 %v1117_v3  ;;  %v343_v3 = vld [vmem:[%s1184_s5 + $0x40] sm:$0xff]  ;;  %s1367_s5 = scalar_lea.vmem %s1443_s3, %s983_s19 }
  0x45   : > { %1035 = vmatpush1.bf16.msra.mxu0 %v1034_v50  ;;  %1067 = vmatpush1.bf16.msra.mxu1 %v1034_v50 }
  0x48   : > { %496 = vmatmul.mubr.f32.vlgmr.msra.gmra.mrb[0].mxu0 %v335_v51  ;;  %576 = vmatmul.mubr.f32.vlgmr.msra.gmra.mrb[0].mxu1 %v367_v52 }
  0x49   : > { %500 = vmatprep.mubr.f32.mxu0 %v338_v53  ;;  %580 = vmatprep.mubr.f32.mxu1 %v370_v54 }
  0x4c   : > { %501 = vmatmul.mubr.f32.gmra.mrb[2].mxu0 %v337_v55  ;;  %581 = vmatmul.mubr.f32.gmra.mrb[2].mxu1 %v369_v56 }
  0x4d   : > { %505 = vmatprep.mubr.f32.mxu0 %v340_v57  ;;  %585 = vmatprep.mubr.f32.mxu1 %v372_v58 }
  0x50   : > { %506 = vmatmul.mubr.f32.gmra.mrb[4].mxu0 %v339_v59  ;;  %586 = vmatmul.mubr.f32.gmra.mrb[4].mxu1 %v371_v60 }
  0x51   : > { %510 = vmatprep.mubr.f32.mxu0 %v342_v61  ;;  %590 = vmatprep.mubr.f32.mxu1 %v374_v62 }
  0x54   : > { %511 = vmatmul.mubr.f32.gmra.mrb[6].mxu0 %v341_v63  ;;  %591 = vmatmul.mubr.f32.gmra.mrb[6].mxu1 %v373_v0 }
  0x55   : > { %515 = vmatprep.mubr.f32.mxu0 %v344_v1  ;;  %595 = vmatprep.mubr.f32.mxu1 %v376_v2 }
  0x58   : > { %516 = vmatmul.mubr.f32.gmra.mrb[8].mxu0 %v343_v3  ;;  %596 = vmatmul.mubr.f32.gmra.mrb[8].mxu1 %v375_v4 }
  0x59   : > { %520 = vmatprep.mubr.f32.mxu0 %v346_v5  ;;  %600 = vmatprep.mubr.f32.mxu1 %v378_v6 }
  0x5c   : > { %521 = vmatmul.mubr.f32.gmra.mrb[10].mxu0 %v345_v7  ;;  %601 = vmatmul.mubr.f32.gmra.mrb[10].mxu1 %v377_v8 }
  0x5d   : > { %525 = vmatprep.mubr.f32.mxu0 %v348_v9  ;;  %605 = vmatprep.mubr.f32.mxu1 %v380_v10 }
  0x60   : > { %526 = vmatmul.mubr.f32.gmra.mrb[12].mxu0 %v347_v11  ;;  %606 = vmatmul.mubr.f32.gmra.mrb[12].mxu1 %v379_v12 }
  0x61   : > { %530 = vmatprep.mubr.f32.mxu0 %v350_v13  ;;  %610 = vmatprep.mubr.f32.mxu1 %v382_v14 }
  0x64   : > { %531 = vmatmul.mubr.f32.gmra.mrb[14].mxu0 %v349_v15  ;;  %611 = vmatmul.mubr.f32.gmra.mrb[14].mxu1 %v381_v16 }
  0x65   : > { %535 = vmatprep.mubr.f32.mxu0 %v352_v17  ;;  %615 = vmatprep.mubr.f32.mxu1 %v384_v18 }
  0x68   : > { %536 = vmatmul.mubr.f32.gmra.mrb[16].mxu0 %v351_v19  ;;  %616 = vmatmul.mubr.f32.gmra.mrb[16].mxu1 %v383_v20 }
  0x69   : > { %540 = vmatprep.mubr.f32.mxu0 %v354_v21  ;;  %620 = vmatprep.mubr.f32.mxu1 %v386_v22 }
  0x6c   : > { %541 = vmatmul.mubr.f32.gmra.mrb[18].mxu0 %v353_v23  ;;  %621 = vmatmul.mubr.f32.gmra.mrb[18].mxu1 %v385_v24 }
  0x6d   : > { %545 = vmatprep.mubr.f32.mxu0 %v356_v25  ;;  %625 = vmatprep.mubr.f32.mxu1 %v388_v26 }
  0x70   : > { %546 = vmatmul.mubr.f32.gmra.mrb[20].mxu0 %v355_v27  ;;  %626 = vmatmul.mubr.f32.gmra.mrb[20].mxu1 %v387_v28 }
  0x71   : > { %550 = vmatprep.mubr.f32.mxu0 %v358_v29  ;;  %630 = vmatprep.mubr.f32.mxu1 %v390_v30 }
  0x74   : > { %551 = vmatmul.mubr.f32.gmra.mrb[22].mxu0 %v357_v31  ;;  %631 = vmatmul.mubr.f32.gmra.mrb[22].mxu1 %v389_v32 }
  0x75   : > { %555 = vmatprep.mubr.f32.mxu0 %v360_v33  ;;  %635 = vmatprep.mubr.f32.mxu1 %v392_v34 }
  0x78   : > { %556 = vmatmul.mubr.f32.gmra.mrb[24].mxu0 %v359_v35  ;;  %636 = vmatmul.mubr.f32.gmra.mrb[24].mxu1 %v391_v36 }
  0x79   : > { %560 = vmatprep.mubr.f32.mxu0 %v362_v37  ;;  %640 = vmatprep.mubr.f32.mxu1 %v394_v38 }
  0x7c   : > { %561 = vmatmul.mubr.f32.gmra.mrb[26].mxu0 %v361_v39  ;;  %641 = vmatmul.mubr.f32.gmra.mrb[26].mxu1 %v393_v40 }
  0x7d   : > { %565 = vmatprep.mubr.f32.mxu0 %v364_v41  ;;  %645 = vmatprep.mubr.f32.mxu1 %v396_v42 }
  0x80   : > { %566 = vmatmul.mubr.f32.gmra.mrb[28].mxu0 %v363_v43  ;;  %646 = vmatmul.mubr.f32.gmra.mrb[28].mxu1 %v395_v44 }
  0x81   : > { %570 = vmatprep.mubr.f32.mxu0 %v366_v45  ;;  %650 = vmatprep.mubr.f32.mxu1 %v398_v46 }
  0x84   : > { %571 = vmatmul.mubr.f32.gmra.mrb[30].mxu0 %v365_v47  ;;  %651 = vmatmul.mubr.f32.gmra.mrb[30].mxu1 %v397_v48 }
 0x11b   : > { %v497_v50 = vpop.f32.mrb[0].mxu0  ;;  %v577_v51 = vpop.f32.mrb[0].mxu1 }
 0x11c   : > { %v762_v52 = vadd.f32 %v1359_v49, %v497_v50  ;;  %v778_v53 = vadd.f32 %v1359_v49, %v577_v51  ;;  %v499_v54 = vpop.f32.mrb[1].mxu0  ;;  %v579_v55 = vpop.f32.mrb[1].mxu1 }
 0x11e   : > { %v794_v56 = vmax.f32 %v762_v52, 0.0  ;;  %v810_v57 = vmax.f32 %v778_v53, 0.0 }
 0x11f   : > { %v502_v58 = vpop.f32.mrb[2].mxu0  ;;  %v582_v59 = vpop.f32.mrb[2].mxu1 }
 0x120   : > { %826 = vst [vmem:[%s1367_s5] sm:$0xff] %v794_v56  ;;  %842 = vst [vmem:[%s1367_s5 + $0x80] sm:$0xff] %v810_v57  ;;  %v763_v60 = vadd.f32 %v1359_v49, %v502_v58  ;;  %v779_v61 = vadd.f32 %v1359_v49, %v582_v59  ;;  %v504_v62 = vpop.f32.mrb[3].mxu0  ;;  %v584_v63 = vpop.f32.mrb[3].mxu1 }
 0x122   : > { %v795_v0 = vmax.f32 %v763_v60, 0.0  ;;  %v811_v1 = vmax.f32 %v779_v61, 0.0 }
 0x123   : > { %v507_v2 = vpop.f32.mrb[4].mxu0  ;;  %v587_v3 = vpop.f32.mrb[4].mxu1 }
 0x124   : > { %827 = vst [vmem:[%s1367_s5 + $0x8] sm:$0xff] %v795_v0  ;;  %843 = vst [vmem:[%s1367_s5 + $0x88] sm:$0xff] %v811_v1  ;;  %v764_v4 = vadd.f32 %v1359_v49, %v507_v2  ;;  %v780_v5 = vadd.f32 %v1359_v49, %v587_v3  ;;  %v509_v6 = vpop.f32.mrb[5].mxu0  ;;  %v589_v7 = vpop.f32.mrb[5].mxu1 }
 0x126   : > { %v796_v8 = vmax.f32 %v764_v4, 0.0  ;;  %v812_v9 = vmax.f32 %v780_v5, 0.0 }
 0x127   : > { %v512_v10 = vpop.f32.mrb[6].mxu0  ;;  %v592_v11 = vpop.f32.mrb[6].mxu1 }
 0x128   : > { %828 = vst [vmem:[%s1367_s5 + $0x10] sm:$0xff] %v796_v8  ;;  %844 = vst [vmem:[%s1367_s5 + $0x90] sm:$0xff] %v812_v9  ;;  %v765_v12 = vadd.f32 %v1359_v49, %v512_v10  ;;  %v781_v13 = vadd.f32 %v1359_v49, %v592_v11  ;;  %v514_v14 = vpop.f32.mrb[7].mxu0  ;;  %v594_v15 = vpop.f32.mrb[7].mxu1 }
 0x12a   : > { %v797_v16 = vmax.f32 %v765_v12, 0.0  ;;  %v813_v17 = vmax.f32 %v781_v13, 0.0 }
 0x12b   : > { %v517_v18 = vpop.f32.mrb[8].mxu0  ;;  %v597_v19 = vpop.f32.mrb[8].mxu1 }
 0x12c   : > { %829 = vst [vmem:[%s1367_s5 + $0x18] sm:$0xff] %v797_v16  ;;  %845 = vst [vmem:[%s1367_s5 + $0x98] sm:$0xff] %v813_v17  ;;  %v766_v20 = vadd.f32 %v1359_v49, %v517_v18  ;;  %v782_v21 = vadd.f32 %v1359_v49, %v597_v19  ;;  %v519_v22 = vpop.f32.mrb[9].mxu0  ;;  %v599_v23 = vpop.f32.mrb[9].mxu1 }
 0x12e   : > { %v798_v24 = vmax.f32 %v766_v20, 0.0  ;;  %v814_v25 = vmax.f32 %v782_v21, 0.0 }
 0x12f   : > { %v522_v26 = vpop.f32.mrb[10].mxu0  ;;  %v602_v27 = vpop.f32.mrb[10].mxu1 }
 0x130   : > { %830 = vst [vmem:[%s1367_s5 + $0x20] sm:$0xff] %v798_v24  ;;  %846 = vst [vmem:[%s1367_s5 + $0xa0] sm:$0xff] %v814_v25  ;;  %v767_v28 = vadd.f32 %v1359_v49, %v522_v26  ;;  %v783_v29 = vadd.f32 %v1359_v49, %v602_v27  ;;  %v524_v30 = vpop.f32.mrb[11].mxu0  ;;  %v604_v31 = vpop.f32.mrb[11].mxu1 }
 0x132   : > { %v799_v32 = vmax.f32 %v767_v28, 0.0  ;;  %v815_v33 = vmax.f32 %v783_v29, 0.0 }
 0x133   : > { %v527_v34 = vpop.f32.mrb[12].mxu0  ;;  %v607_v35 = vpop.f32.mrb[12].mxu1 }
 0x134   : > { %831 = vst [vmem:[%s1367_s5 + $0x28] sm:$0xff] %v799_v32  ;;  %847 = vst [vmem:[%s1367_s5 + $0xa8] sm:$0xff] %v815_v33  ;;  %v768_v36 = vadd.f32 %v1359_v49, %v527_v34  ;;  %v784_v37 = vadd.f32 %v1359_v49, %v607_v35  ;;  %v529_v38 = vpop.f32.mrb[13].mxu0  ;;  %v609_v39 = vpop.f32.mrb[13].mxu1 }
 0x136   : > { %v800_v40 = vmax.f32 %v768_v36, 0.0  ;;  %v816_v41 = vmax.f32 %v784_v37, 0.0 }
 0x137   : > { %v532_v42 = vpop.f32.mrb[14].mxu0  ;;  %v612_v43 = vpop.f32.mrb[14].mxu1 }
 0x138   : > { %832 = vst [vmem:[%s1367_s5 + $0x30] sm:$0xff] %v800_v40  ;;  %848 = vst [vmem:[%s1367_s5 + $0xb0] sm:$0xff] %v816_v41  ;;  %v769_v44 = vadd.f32 %v1359_v49, %v532_v42  ;;  %v785_v45 = vadd.f32 %v1359_v49, %v612_v43  ;;  %v534_v46 = vpop.f32.mrb[15].mxu0  ;;  %v614_v47 = vpop.f32.mrb[15].mxu1 }
 0x13a   : > { %v801_v48 = vmax.f32 %v769_v44, 0.0  ;;  %v817_v50 = vmax.f32 %v785_v45, 0.0 }
 0x13b   : > { %v537_v51 = vpop.f32.mrb[16].mxu0  ;;  %v617_v52 = vpop.f32.mrb[16].mxu1 }
 0x13c   : > { %833 = vst [vmem:[%s1367_s5 + $0x38] sm:$0xff] %v801_v48  ;;  %849 = vst [vmem:[%s1367_s5 + $0xb8] sm:$0xff] %v817_v50  ;;  %v770_v53 = vadd.f32 %v1359_v49, %v537_v51  ;;  %v786_v54 = vadd.f32 %v1359_v49, %v617_v52  ;;  %v539_v55 = vpop.f32.mrb[17].mxu0  ;;  %v619_v56 = vpop.f32.mrb[17].mxu1 }
 0x13e   : > { %v802_v57 = vmax.f32 %v770_v53, 0.0  ;;  %v818_v58 = vmax.f32 %v786_v54, 0.0 }
 0x13f   : > { %v542_v59 = vpop.f32.mrb[18].mxu0  ;;  %v622_v60 = vpop.f32.mrb[18].mxu1 }
 0x140   : > { %834 = vst [vmem:[%s1367_s5 + $0x40] sm:$0xff] %v802_v57  ;;  %850 = vst [vmem:[%s1367_s5 + $0xc0] sm:$0xff] %v818_v58  ;;  %v771_v61 = vadd.f32 %v1359_v49, %v542_v59  ;;  %v787_v62 = vadd.f32 %v1359_v49, %v622_v60  ;;  %v544_v63 = vpop.f32.mrb[19].mxu0  ;;  %v624_v0 = vpop.f32.mrb[19].mxu1 }
 0x142   : > { %v803_v1 = vmax.f32 %v771_v61, 0.0  ;;  %v819_v2 = vmax.f32 %v787_v62, 0.0 }
 0x143   : > { %v547_v3 = vpop.f32.mrb[20].mxu0  ;;  %v627_v4 = vpop.f32.mrb[20].mxu1 }
 0x144   : > { %835 = vst [vmem:[%s1367_s5 + $0x48] sm:$0xff] %v803_v1  ;;  %851 = vst [vmem:[%s1367_s5 + $0xc8] sm:$0xff] %v819_v2  ;;  %v772_v5 = vadd.f32 %v1359_v49, %v547_v3  ;;  %v788_v6 = vadd.f32 %v1359_v49, %v627_v4  ;;  %v549_v7 = vpop.f32.mrb[21].mxu0  ;;  %v629_v8 = vpop.f32.mrb[21].mxu1 }
 0x146   : > { %v804_v9 = vmax.f32 %v772_v5, 0.0  ;;  %v820_v10 = vmax.f32 %v788_v6, 0.0 }
 0x147   : > { %v552_v11 = vpop.f32.mrb[22].mxu0  ;;  %v632_v12 = vpop.f32.mrb[22].mxu1 }
 0x148   : > { %836 = vst [vmem:[%s1367_s5 + $0x50] sm:$0xff] %v804_v9  ;;  %852 = vst [vmem:[%s1367_s5 + $0xd0] sm:$0xff] %v820_v10  ;;  %v773_v13 = vadd.f32 %v1359_v49, %v552_v11  ;;  %v789_v14 = vadd.f32 %v1359_v49, %v632_v12  ;;  %v554_v15 = vpop.f32.mrb[23].mxu0  ;;  %v634_v16 = vpop.f32.mrb[23].mxu1 }
 0x14a   : > { %v805_v17 = vmax.f32 %v773_v13, 0.0  ;;  %v821_v18 = vmax.f32 %v789_v14, 0.0 }
 0x14b   : > { %v557_v19 = vpop.f32.mrb[24].mxu0  ;;  %v637_v20 = vpop.f32.mrb[24].mxu1 }
 0x14c   : > { %837 = vst [vmem:[%s1367_s5 + $0x58] sm:$0xff] %v805_v17  ;;  %853 = vst [vmem:[%s1367_s5 + $0xd8] sm:$0xff] %v821_v18  ;;  %v774_v21 = vadd.f32 %v1359_v49, %v557_v19  ;;  %v790_v22 = vadd.f32 %v1359_v49, %v637_v20  ;;  %v559_v23 = vpop.f32.mrb[25].mxu0  ;;  %v639_v24 = vpop.f32.mrb[25].mxu1 }
 0x14e   : > { %v806_v25 = vmax.f32 %v774_v21, 0.0  ;;  %v822_v26 = vmax.f32 %v790_v22, 0.0 }
 0x14f   : > { %v562_v27 = vpop.f32.mrb[26].mxu0  ;;  %v642_v28 = vpop.f32.mrb[26].mxu1 }
 0x150   : > { %838 = vst [vmem:[%s1367_s5 + $0x60] sm:$0xff] %v806_v25  ;;  %854 = vst [vmem:[%s1367_s5 + $0xe0] sm:$0xff] %v822_v26  ;;  %v775_v29 = vadd.f32 %v1359_v49, %v562_v27  ;;  %v791_v30 = vadd.f32 %v1359_v49, %v642_v28  ;;  %v564_v31 = vpop.f32.mrb[27].mxu0  ;;  %v644_v32 = vpop.f32.mrb[27].mxu1 }
 0x152   : > { %v807_v33 = vmax.f32 %v775_v29, 0.0  ;;  %v823_v34 = vmax.f32 %v791_v30, 0.0 }
 0x153   : > { %v567_v35 = vpop.f32.mrb[28].mxu0  ;;  %v647_v36 = vpop.f32.mrb[28].mxu1 }
 0x154   : > { %839 = vst [vmem:[%s1367_s5 + $0x68] sm:$0xff] %v807_v33  ;;  %855 = vst [vmem:[%s1367_s5 + $0xe8] sm:$0xff] %v823_v34  ;;  %v776_v37 = vadd.f32 %v1359_v49, %v567_v35  ;;  %v792_v38 = vadd.f32 %v1359_v49, %v647_v36  ;;  %v569_v39 = vpop.f32.mrb[29].mxu0  ;;  %v649_v40 = vpop.f32.mrb[29].mxu1 }
 0x156   : > { %v808_v41 = vmax.f32 %v776_v37, 0.0  ;;  %v824_v42 = vmax.f32 %v792_v38, 0.0 }
 0x157   : > { %v572_v43 = vpop.f32.mrb[30].mxu0  ;;  %v652_v44 = vpop.f32.mrb[30].mxu1 }
 0x158   : > { %840 = vst [vmem:[%s1367_s5 + $0x70] sm:$0xff] %v808_v41  ;;  %856 = vst [vmem:[%s1367_s5 + $0xf0] sm:$0xff] %v824_v42  ;;  %v777_v45 = vadd.f32 %v1359_v49, %v572_v43  ;;  %v793_v46 = vadd.f32 %v1359_v49, %v652_v44  ;;  %v574_v47 = vpop.f32.mrb[31].mxu0  ;;  %v654_v48 = vpop.f32.mrb[31].mxu1 }
 0x15a   : > { %v809_v50 = vmax.f32 %v777_v45, 0.0  ;;  %v825_v51 = vmax.f32 %v793_v46, 0.0 }
 0x15c   : > { %841 = vst [vmem:[%s1367_s5 + $0x78] sm:$0xff] %v809_v50  ;;  %857 = vst [vmem:[%s1367_s5 + $0xf8] sm:$0xff] %v825_v51 }
 0x15d PF: > { %s13_s14 = sadd.s32 1, %s1115_s14   ;;  %s1444_s12 = smov %s1111_s13 }
 0x15e   : > { %p10_p5 = scmp.ge.s32.totalorder %s13_s14, 4   ;;  %s1445_s13 = smov %s1447_s15 }
 0x160   :  { %12 = sbr.rel (!%p10_p5) target bundleno = 2 (0x2), region = 76 }

// kernel: _lambda_.7
= control target key start
LH: loop header
LB: loop body
LE: loop exit
PB: predicated region body
PF: predicated region fallthrough
CT: control target
= control target key end

     0   :  { %s1269_s12 = smov 0   ;;  %s1271_s13 = smov 0   ;;  %s1614_s0 = inlined_call_operand.vmem [shape: f32[128,640], index: 0, kind: input, shape index: {}]   ;;  %s1615_s1 = inlined_call_operand.vmem [shape: f32[640,128], index: 1, kind: input, shape index: {}]   ;;  %s1616_s2 = inlined_call_operand.vmem [shape: f32[1,128], index: 2, kind: input, shape index: {}]   ;;  %s1617_s3 = inlined_call_operand.vmem [shape: f32[128,128], index: 3, kind: output, shape index: {}]  }
   0x1   :  { %s1273_s14 = smov 0  }
   0x2 LB: > { %s32_s15 = sadd.s32 1, %s1243_s13  ;;  %p900_p0 = scmp.ge.s32.totalorder %s1247_s14, 1  ;;  %s1247_s14 = sphi %s1273_s14, %s13_s14   ;;  %s1243_s13 = sphi %s1271_s13, %s1620_s13   ;;  %s1239_s12 = sphi %s1269_s12, %s1619_s12  }
   0x3   : > { %p34_p1 = scmp.ge.s32.totalorder %s32_s15, 2  ;;  %p191_p2 = scmp.lt.s32.totalorder %s1247_s14, 3 }
   0x5   : > { %s1622_s15 = smov (%p34_p1, %s32_s15), 0  ;;  %p192_p3 = pnand %p900_p0, %p191_p2 }
   0x6   : > { %v343_v0 = vld [vmem:[%s1615_s1 + $0x80] sm:$0xff] (!%p192_p3)  ;;  %v344_v1 = vld [vmem:[%s1615_s1 + $0x88] sm:$0xff] (!%p192_p3)  ;;  %v345_v11 = vld [vmem:[%s1615_s1 + $0x90] sm:$0xff] (!%p192_p3)  ;;  %s901_s17 = sshll.u32 (!%p192_p3), %s1239_s12, 3 }
   0x7   : > { %195 = sbr.rel (%p192_p3) target bundleno = 299 (0x12b), region = 32  ;;  %v375_v2 = vld [vmem:[%s1615_s1 + $0x180] sm:$0xff] (!%p192_p3)  ;;  %v1088_v3 = vpack.c.bf16 (!%p192_p3), %v344_v1, %v343_v0  ;;  %v376_v4 = vld [vmem:[%s1615_s1 + $0x188] sm:$0xff] (!%p192_p3)  ;;  %v346_v13 = vld [vmem:[%s1615_s1 + $0x98] sm:$0xff] (!%p192_p3)  ;;  %p1355_p4 = scmp.lt.s32.totalorder (!%p192_p3), %s901_s17, 15 }
   0x8   : > { %v327_v5 = vld [vmem:[%s1615_s1] sm:$0xff] (!%p192_p3)  ;;  %v328_v6 = vld [vmem:[%s1615_s1 + $0x8] sm:$0xff] (!%p192_p3)  ;;  %v1120_v7 = vpack.c.bf16 (!%p192_p3), %v376_v4, %v375_v2  ;;  %v377_v14 = vld [vmem:[%s1615_s1 + $0x190] sm:$0xff] (!%p192_p3)  ;;  %v1092_v16 = vpack.c.bf16 (!%p192_p3), %v346_v13, %v345_v11 }
   0x9   : > { %v1090_v8 = vpack.c.bf16 (!%p192_p3), %v328_v6, %v327_v5  ;;  %v359_v9 = vld [vmem:[%s1615_s1 + $0x100] sm:$0xff] (!%p192_p3)  ;;  %v360_v10 = vld [vmem:[%s1615_s1 + $0x108] sm:$0xff] (!%p192_p3)  ;;  %1089 = vmatprep.subr.bf16.mxu0 (!%p192_p3), %v1088_v3  ;;  %v378_v15 = vld [vmem:[%s1615_s1 + $0x198] sm:$0xff] (!%p192_p3) }
   0xa   : > { %v1122_v12 = vpack.c.bf16 (!%p192_p3), %v360_v10, %v359_v9  ;;  %1121 = vmatprep.subr.bf16.mxu1 (!%p192_p3), %v1120_v7  ;;  %v1124_v17 = vpack.c.bf16 (!%p192_p3), %v378_v15, %v377_v14  ;;  %v329_v18 = vld [vmem:[%s1615_s1 + $0x10] sm:$0xff] (!%p192_p3)  ;;  %v330_v19 = vld [vmem:[%s1615_s1 + $0x18] sm:$0xff] (!%p192_p3)  ;;  %v347_v23 = vld [vmem:[%s1615_s1 + $0xa0] sm:$0xff] (!%p192_p3) }
   0xb   : > { %1091 = vmatpush3.bf16.msra.mxu0 (!%p192_p3), %v1090_v8  ;;  %v361_v20 = vld [vmem:[%s1615_s1 + $0x110] sm:$0xff] (!%p192_p3)  ;;  %v1094_v21 = vpack.c.bf16 (!%p192_p3), %v330_v19, %v329_v18  ;;  %v362_v22 = vld [vmem:[%s1615_s1 + $0x118] sm:$0xff] (!%p192_p3)  ;;  %v348_v24 = vld [vmem:[%s1615_s1 + $0xa8] sm:$0xff] (!%p192_p3) }
   0xc   : > { %1123 = vmatpush3.bf16.msra.mxu1 (!%p192_p3), %v1122_v12  ;;  %1093 = vmatprep.subr.bf16.mxu0 (!%p192_p3), %v1092_v16  ;;  %v1126_v25 = vpack.c.bf16 (!%p192_p3), %v362_v22, %v361_v20  ;;  %v1096_v26 = vpack.c.bf16 (!%p192_p3), %v348_v24, %v347_v23  ;;  %v379_v27 = vld [vmem:[%s1615_s1 + $0x1a0] sm:$0xff] (!%p192_p3)  ;;  %v380_v28 = vld [vmem:[%s1615_s1 + $0x1a8] sm:$0xff] (!%p192_p3)  ;;  %v349_v35 = vld [vmem:[%s1615_s1 + $0xb0] sm:$0xff] (!%p192_p3) }
   0xd   : > { %1125 = vmatprep.subr.bf16.mxu1 (!%p192_p3), %v1124_v17  ;;  %v331_v29 = vld [vmem:[%s1615_s1 + $0x20] sm:$0xff] (!%p192_p3)  ;;  %v1128_v30 = vpack.c.bf16 (!%p192_p3), %v380_v28, %v379_v27  ;;  %v332_v31 = vld [vmem:[%s1615_s1 + $0x28] sm:$0xff] (!%p192_p3)  ;;  %v350_v36 = vld [vmem:[%s1615_s1 + $0xb8] sm:$0xff] (!%p192_p3) }
   0xe   : > { %v363_v32 = vld [vmem:[%s1615_s1 + $0x120] sm:$0xff]  ;;  %v364_v33 = vld [vmem:[%s1615_s1 + $0x128] sm:$0xff]  ;;  %v1098_v34 = vpack.c.bf16 %v332_v31, %v331_v29  ;;  %v381_v37 = vld [vmem:[%s1615_s1 + $0x1b0] sm:$0xff]  ;;  %v1100_v39 = vpack.c.bf16 %v350_v36, %v349_v35  ;;  %s1624_s17 = smov (!%p1355_p4, %s901_s17), 15 }
   0xf   : > { %1095 = vmatpush3.bf16.msra.mxu0 %v1094_v21  ;;  %v1130_v38 = vpack.c.bf16 %v364_v33, %v363_v32  ;;  %v382_v40 = vld [vmem:[%s1615_s1 + $0x1b8] sm:$0xff]  ;;  %v333_v41 = vld [vmem:[%s1615_s1 + $0x30] sm:$0xff]  ;;  %v351_v46 = vld [vmem:[%s1615_s1 + $0xc0] sm:$0xff]  ;;  %s1200_s7 = smul.u32 40, %s1624_s17  ;;  %s904_s25 = sshll.u32 %s1624_s17, 3 }
  0x10   : > { %1127 = vmatpush3.bf16.msra.mxu1 %v1126_v25  ;;  %1097 = vmatprep.subr.bf16.mxu0 %v1096_v26  ;;  %v334_v42 = vld [vmem:[%s1615_s1 + $0x38] sm:$0xff]  ;;  %v1132_v43 = vpack.c.bf16 %v382_v40, %v381_v37  ;;  %v365_v44 = vld [vmem:[%s1615_s1 + $0x130] sm:$0xff]  ;;  %v352_v47 = vld [vmem:[%s1615_s1 + $0xc8] sm:$0xff]  ;;  %s1595_s28 = scalar_lea.vmem %s1617_s3, %s904_s25 }
  0x11   : > { %1129 = vmatprep.subr.bf16.mxu1 %v1128_v30  ;;  %v366_v45 = vld [vmem:[%s1615_s1 + $0x138] sm:$0xff]  ;;  %v383_v48 = vld [vmem:[%s1615_s1 + $0x1c0] sm:$0xff]  ;;  %v384_v49 = vld [vmem:[%s1615_s1 + $0x1c8] sm:$0xff]  ;;  %v1102_v50 = vpack.c.bf16 %v334_v42, %v333_v41  ;;  %v1104_v52 = vpack.c.bf16 %v352_v47, %v351_v46  ;;  %s1456_s30 = scalar_lea.vmem %s1614_s0, %s1200_s7 }
  0x12   : > { %v1134_v51 = vpack.c.bf16 %v366_v45, %v365_v44  ;;  %v335_v53 = vld [vmem:[%s1615_s1 + $0x40] sm:$0xff]  ;;  %v336_v54 = vld [vmem:[%s1615_s1 + $0x48] sm:$0xff]  ;;  %v1136_v56 = vpack.c.bf16 %v384_v49, %v383_v48  ;;  %v353_v58 = vld [vmem:[%s1615_s1 + $0xd0] sm:$0xff] }
  0x13   : > { %1099 = vmatpush3.bf16.msra.mxu0 %v1098_v34  ;;  %v367_v55 = vld [vmem:[%s1615_s1 + $0x140] sm:$0xff]  ;;  %v368_v57 = vld [vmem:[%s1615_s1 + $0x148] sm:$0xff]  ;;  %v354_v59 = vld [vmem:[%s1615_s1 + $0xd8] sm:$0xff]  ;;  %v1106_v62 = vpack.c.bf16 %v336_v54, %v335_v53 }
  0x14   : > { %1131 = vmatpush3.bf16.msra.mxu1 %v1130_v38  ;;  %1101 = vmatprep.subr.bf16.mxu0 %v1100_v39  ;;  %v385_v60 = vld [vmem:[%s1615_s1 + $0x1d0] sm:$0xff]  ;;  %v386_v61 = vld [vmem:[%s1615_s1 + $0x1d8] sm:$0xff]  ;;  %v1138_v63 = vpack.c.bf16 %v368_v57, %v367_v55  ;;  %v1108_v0 = vpack.c.bf16 %v354_v59, %v353_v58  ;;  %v355_v6 = vld [vmem:[%s1615_s1 + $0xe0] sm:$0xff] }
  0x15   : > { %1133 = vmatprep.subr.bf16.mxu1 %v1132_v43  ;;  %v337_v1 = vld [vmem:[%s1615_s1 + $0x50] sm:$0xff]  ;;  %v338_v2 = vld [vmem:[%s1615_s1 + $0x58] sm:$0xff]  ;;  %v1140_v4 = vpack.c.bf16 %v386_v61, %v385_v60  ;;  %v356_v7 = vld [vmem:[%s1615_s1 + $0xe8] sm:$0xff] }
  0x16   : > { %v369_v3 = vld [vmem:[%s1615_s1 + $0x150] sm:$0xff]  ;;  %v370_v5 = vld [vmem:[%s1615_s1 + $0x158] sm:$0xff]  ;;  %v387_v8 = vld [vmem:[%s1615_s1 + $0x1e0] sm:$0xff]  ;;  %v1110_v10 = vpack.c.bf16 %v338_v2, %v337_v1  ;;  %v1112_v14 = vpack.c.bf16 %v356_v7, %v355_v6 }
  0x17   : > { %1103 = vmatpush3.bf16.msra.mxu0 %v1102_v50  ;;  %v388_v9 = vld [vmem:[%s1615_s1 + $0x1e8] sm:$0xff]  ;;  %v339_v11 = vld [vmem:[%s1615_s1 + $0x60] sm:$0xff]  ;;  %v1142_v13 = vpack.c.bf16 %v370_v5, %v369_v3  ;;  %v290_v17 = vld [vmem:[%s1456_s30 + $0x18] sm:$0xff] }
  0x18   : > { %1135 = vmatpush3.bf16.msra.mxu1 %v1134_v51  ;;  %1105 = vmatprep.subr.bf16.mxu0 %v1104_v52  ;;  %v340_v12 = vld [vmem:[%s1615_s1 + $0x68] sm:$0xff]  ;;  %v371_v15 = vld [vmem:[%s1615_s1 + $0x160] sm:$0xff]  ;;  %v1144_v18 = vpack.c.bf16 %v388_v9, %v387_v8  ;;  %v357_v20 = vld [vmem:[%s1615_s1 + $0xf0] sm:$0xff] }
  0x19   : > { %1137 = vmatprep.subr.bf16.mxu1 %v1136_v56  ;;  %v288_v16 = vld [vmem:[%s1456_s30 + $0x8] sm:$0xff]  ;;  %v358_v21 = vld [vmem:[%s1615_s1 + $0xf8] sm:$0xff]  ;;  %v389_v22 = vld [vmem:[%s1615_s1 + $0x1f0] sm:$0xff]  ;;  %576 = vmatprep.mubr.f32.mxu1 %v290_v17  ;;  %v1114_v24 = vpack.c.bf16 %v340_v12, %v339_v11 }
  0x1a   : > { %v372_v19 = vld [vmem:[%s1615_s1 + $0x168] sm:$0xff]  ;;  %471 = vmatprep.mubr.f32.mxu0 %v288_v16  ;;  %v390_v23 = vld [vmem:[%s1615_s1 + $0x1f8] sm:$0xff]  ;;  %v1116_v26 = vpack.c.bf16 %v358_v21, %v357_v20  ;;  %v341_v27 = vld [vmem:[%s1615_s1 + $0x70] sm:$0xff] }
  0x1b   : > { %1107 = vmatpush3.bf16.msra.mxu0 %v1106_v62  ;;  %v1146_v25 = vpack.c.bf16 %v372_v19, %v371_v15  ;;  %v342_v28 = vld [vmem:[%s1615_s1 + $0x78] sm:$0xff]  ;;  %v373_v29 = vld [vmem:[%s1615_s1 + $0x170] sm:$0xff]  ;;  %v1148_v30 = vpack.c.bf16 %v390_v23, %v389_v22  ;;  %v391_v32 = vld [vmem:[%s1615_s1 + $0x200] sm:$0xff] }
  0x1c   : > { %1139 = vmatpush3.bf16.msra.mxu1 %v1138_v63  ;;  %1109 = vmatprep.subr.bf16.mxu0 %v1108_v0  ;;  %v374_v31 = vld [vmem:[%s1615_s1 + $0x178] sm:$0xff]  ;;  %v392_v33 = vld [vmem:[%s1615_s1 + $0x208] sm:$0xff]  ;;  %v1118_v34 = vpack.c.bf16 %v342_v28, %v341_v27  ;;  %v393_v37 = vld [vmem:[%s1615_s1 + $0x210] sm:$0xff] }
  0x1d   : > { %1141 = vmatprep.subr.bf16.mxu1 %v1140_v4  ;;  %v1150_v35 = vpack.c.bf16 %v374_v31, %v373_v29  ;;  %v1152_v36 = vpack.c.bf16 %v392_v33, %v391_v32  ;;  %v394_v38 = vld [vmem:[%s1615_s1 + $0x218] sm:$0xff]  ;;  %v287_v39 = vld [vmem:[%s1456_s30] sm:$0xff]  ;;  %v289_v40 = vld [vmem:[%s1456_s30 + $0x10] sm:$0xff] }
  0x1e   : > { %v293_v41 = vld [vmem:[%s1456_s30 + $0x30] sm:$0xff]  ;;  %v1156_v42 = vpack.c.bf16 %v394_v38, %v393_v37  ;;  %v295_v43 = vld [vmem:[%s1456_s30 + $0x40] sm:$0xff]  ;;  %v396_v45 = vld [vmem:[%s1615_s1 + $0x228] sm:$0xff] }
  0x1f   : > { %1111 = vmatpush3.bf16.msra.mxu0 %v1110_v10  ;;  %v395_v44 = vld [vmem:[%s1615_s1 + $0x220] sm:$0xff]  ;;  %v292_v46 = vld [vmem:[%s1456_s30 + $0x28] sm:$0xff]  ;;  %v294_v47 = vld [vmem:[%s1456_s30 + $0x38] sm:$0xff] }
  0x20   : > { %1143 = vmatpush3.bf16.msra.mxu1 %v1142_v13  ;;  %1113 = vmatprep.subr.bf16.mxu0 %v1112_v14  ;;  %v298_v48 = vld [vmem:[%s1456_s30 + $0x58] sm:$0xff]  ;;  %v1160_v49 = vpack.c.bf16 %v396_v45, %v395_v44  ;;  %v300_v50 = vld [vmem:[%s1456_s30 + $0x68] sm:$0xff]  ;;  %v397_v51 = vld [vmem:[%s1615_s1 + $0x230] sm:$0xff] }
  0x21   : > { %1145 = vmatprep.subr.bf16.mxu1 %v1144_v18  ;;  %v398_v52 = vld [vmem:[%s1615_s1 + $0x238] sm:$0xff]  ;;  %v297_v53 = vld [vmem:[%s1456_s30 + $0x50] sm:$0xff]  ;;  %v299_v54 = vld [vmem:[%s1456_s30 + $0x60] sm:$0xff] }
  0x22   : > { %v303_v55 = vld [vmem:[%s1456_s30 + $0x80] sm:$0xff]  ;;  %v1164_v56 = vpack.c.bf16 %v398_v52, %v397_v51  ;;  %v305_v57 = vld [vmem:[%s1456_s30 + $0x90] sm:$0xff]  ;;  %v400_v59 = vld [vmem:[%s1615_s1 + $0x248] sm:$0xff] }
  0x23   : > { %1115 = vmatpush3.bf16.msra.mxu0 %v1114_v24  ;;  %v399_v58 = vld [vmem:[%s1615_s1 + $0x240] sm:$0xff]  ;;  %v302_v60 = vld [vmem:[%s1456_s30 + $0x78] sm:$0xff]  ;;  %v304_v61 = vld [vmem:[%s1456_s30 + $0x88] sm:$0xff] }
  0x24   : > { %1147 = vmatpush3.bf16.msra.mxu1 %v1146_v25  ;;  %1117 = vmatprep.subr.bf16.mxu0 %v1116_v26  ;;  %v308_v62 = vld [vmem:[%s1456_s30 + $0xa8] sm:$0xff]  ;;  %v1168_v63 = vpack.c.bf16 %v400_v59, %v399_v58  ;;  %v310_v0 = vld [vmem:[%s1456_s30 + $0xb8] sm:$0xff]  ;;  %v401_v1 = vld [vmem:[%s1615_s1 + $0x250] sm:$0xff] }
  0x25   : > { %1149 = vmatprep.subr.bf16.mxu1 %v1148_v30  ;;  %v402_v2 = vld [vmem:[%s1615_s1 + $0x258] sm:$0xff]  ;;  %v307_v3 = vld [vmem:[%s1456_s30 + $0xa0] sm:$0xff]  ;;  %v309_v4 = vld [vmem:[%s1456_s30 + $0xb0] sm:$0xff] }
  0x26   : > { %v313_v5 = vld [vmem:[%s1456_s30 + $0xd0] sm:$0xff]  ;;  %v1172_v6 = vpack.c.bf16 %v402_v2, %v401_v1  ;;  %v315_v7 = vld [vmem:[%s1456_s30 + $0xe0] sm:$0xff]  ;;  %v404_v9 = vld [vmem:[%s1615_s1 + $0x268] sm:$0xff] }
  0x27   : > { %1119 = vmatpush3.bf16.msra.mxu0 %v1118_v34  ;;  %v403_v8 = vld [vmem:[%s1615_s1 + $0x260] sm:$0xff]  ;;  %v312_v10 = vld [vmem:[%s1456_s30 + $0xc8] sm:$0xff]  ;;  %v314_v11 = vld [vmem:[%s1456_s30 + $0xd8] sm:$0xff] }
  0x28   : > { %1151 = vmatpush3.bf16.msra.mxu1 %v1150_v35  ;;  %1153 = vmatprep.subr.bf16.mxu0 %v1152_v36  ;;  %v318_v12 = vld [vmem:[%s1456_s30 + $0xf8] sm:$0xff]  ;;  %v1176_v13 = vpack.c.bf16 %v404_v9, %v403_v8  ;;  %v320_v14 = vld [vmem:[%s1456_s30 + $0x108] sm:$0xff]  ;;  %v405_v15 = vld [vmem:[%s1615_s1 + $0x270] sm:$0xff] }
  0x29   : > { %1184 = vmatprep.subr.bf16.mxu1 %v1152_v36  ;;  %v406_v16 = vld [vmem:[%s1615_s1 + $0x278] sm:$0xff]  ;;  %v317_v17 = vld [vmem:[%s1456_s30 + $0xf0] sm:$0xff]  ;;  %v319_v18 = vld [vmem:[%s1456_s30 + $0x100] sm:$0xff] }
  0x2a   : > { %472 = vmatmul.mubr.f32.vlgmr.msra.gmra.mrb[0].mxu0 %v287_v39  ;;  %v323_v19 = vld [vmem:[%s1456_s30 + $0x120] sm:$0xff]  ;;  %v1180_v20 = vpack.c.bf16 %v406_v16, %v405_v15  ;;  %v325_v21 = vld [vmem:[%s1456_s30 + $0x130] sm:$0xff]  ;;  %v322_v22 = vld [vmem:[%s1456_s30 + $0x118] sm:$0xff] }
  0x2b   : > { %577 = vmatmul.mubr.f32.vlgmr.msra.gmra.mrb[0].mxu1 %v289_v40  ;;  %1155 = vmatpush3.bf16.msra.mxu0 %v1152_v36  ;;  %v324_v23 = vld [vmem:[%s1456_s30 + $0x128] sm:$0xff]  ;;  %v291_v24 = vld [vmem:[%s1456_s30 + $0x20] sm:$0xff]  ;;  %v301_v28 = vld [vmem:[%s1456_s30 + $0x70] sm:$0xff] }
  0x2c   : > { %1192 = vmatpush3.bf16.msra.mxu1 %v1152_v36  ;;  %476 = vmatprep.mubr.f32.mxu0 %v293_v41  ;;  %v311_v25 = vld [vmem:[%s1456_s30 + $0xc0] sm:$0xff]  ;;  %v296_v26 = vld [vmem:[%s1456_s30 + $0x48] sm:$0xff]  ;;  %v321_v29 = vld [vmem:[%s1456_s30 + $0x110] sm:$0xff] }
  0x2d   : > { %581 = vmatprep.mubr.f32.mxu1 %v295_v43  ;;  %1157 = vmatprep.subr.bf16.mxu0 %v1156_v42  ;;  %v316_v27 = vld [vmem:[%s1456_s30 + $0xe8] sm:$0xff]  ;;  %v306_v30 = vld [vmem:[%s1456_s30 + $0x98] sm:$0xff] }
  0x2e   : > { %477 = vmatmul.mubr.f32.gmra.mrb[2].mxu0 %v292_v46  ;;  %1185 = vmatprep.subr.bf16.mxu1 %v1156_v42  ;;  %v326_v31 = vld [vmem:[%s1456_s30 + $0x138] sm:$0xff] }
  0x2f   : > { %582 = vmatmul.mubr.f32.gmra.mrb[2].mxu1 %v294_v47  ;;  %1159 = vmatpush3.bf16.msra.mxu0 %v1156_v42 }
  0x30   : > { %1193 = vmatpush3.bf16.msra.mxu1 %v1156_v42  ;;  %481 = vmatprep.mubr.f32.mxu0 %v298_v48 }
  0x31   : > { %586 = vmatprep.mubr.f32.mxu1 %v300_v50  ;;  %1161 = vmatprep.subr.bf16.mxu0 %v1160_v49 }
  0x32   : > { %482 = vmatmul.mubr.f32.gmra.mrb[4].mxu0 %v297_v53  ;;  %1186 = vmatprep.subr.bf16.mxu1 %v1160_v49 }
  0x33   : > { %587 = vmatmul.mubr.f32.gmra.mrb[4].mxu1 %v299_v54  ;;  %1163 = vmatpush3.bf16.msra.mxu0 %v1160_v49 }
  0x34   : > { %1194 = vmatpush3.bf16.msra.mxu1 %v1160_v49  ;;  %486 = vmatprep.mubr.f32.mxu0 %v303_v55 }
  0x35   : > { %591 = vmatprep.mubr.f32.mxu1 %v305_v57  ;;  %1165 = vmatprep.subr.bf16.mxu0 %v1164_v56 }
  0x36   : > { %487 = vmatmul.mubr.f32.gmra.mrb[6].mxu0 %v302_v60  ;;  %1187 = vmatprep.subr.bf16.mxu1 %v1164_v56 }
  0x37   : > { %592 = vmatmul.mubr.f32.gmra.mrb[6].mxu1 %v304_v61  ;;  %1167 = vmatpush3.bf16.msra.mxu0 %v1164_v56 }
  0x38   : > { %1195 = vmatpush3.bf16.msra.mxu1 %v1164_v56  ;;  %491 = vmatprep.mubr.f32.mxu0 %v308_v62 }
  0x39   : > { %596 = vmatprep.mubr.f32.mxu1 %v310_v0  ;;  %1169 = vmatprep.subr.bf16.mxu0 %v1168_v63 }
  0x3a   : > { %492 = vmatmul.mubr.f32.gmra.mrb[8].mxu0 %v307_v3  ;;  %1188 = vmatprep.subr.bf16.mxu1 %v1168_v63 }
  0x3b   : > { %597 = vmatmul.mubr.f32.gmra.mrb[8].mxu1 %v309_v4  ;;  %1171 = vmatpush3.bf16.msra.mxu0 %v1168_v63 }
  0x3c   : > { %1196 = vmatpush3.bf16.msra.mxu1 %v1168_v63  ;;  %496 = vmatprep.mubr.f32.mxu0 %v313_v5 }
  0x3d   : > { %601 = vmatprep.mubr.f32.mxu1 %v315_v7  ;;  %1173 = vmatprep.subr.bf16.mxu0 %v1172_v6 }
  0x3e   : > { %497 = vmatmul.mubr.f32.gmra.mrb[10].mxu0 %v312_v10  ;;  %1189 = vmatprep.subr.bf16.mxu1 %v1172_v6 }
  0x3f   : > { %602 = vmatmul.mubr.f32.gmra.mrb[10].mxu1 %v314_v11  ;;  %1175 = vmatpush3.bf16.msra.mxu0 %v1172_v6 }
  0x40   : > { %1197 = vmatpush3.bf16.msra.mxu1 %v1172_v6  ;;  %501 = vmatprep.mubr.f32.mxu0 %v318_v12 }
  0x41   : > { %606 = vmatprep.mubr.f32.mxu1 %v320_v14  ;;  %1177 = vmatprep.subr.bf16.mxu0 %v1176_v13 }
  0x42   : > { %502 = vmatmul.mubr.f32.gmra.mrb[12].mxu0 %v317_v17  ;;  %1190 = vmatprep.subr.bf16.mxu1 %v1176_v13 }
  0x43   : > { %607 = vmatmul.mubr.f32.gmra.mrb[12].mxu1 %v319_v18  ;;  %1179 = vmatpush3.bf16.msra.mxu0 %v1176_v13 }
  0x44   : > { %1198 = vmatpush3.bf16.msra.mxu1 %v1176_v13  ;;  %506 = vmatprep.mubr.f32.mxu0 %v323_v19 }
  0x45   : > { %611 = vmatprep.mubr.f32.mxu1 %v325_v21  ;;  %1181 = vmatprep.subr.bf16.mxu0 %v1180_v20 }
  0x46   : > { %507 = vmatmul.mubr.f32.gmra.mrb[14].mxu0 %v322_v22  ;;  %1191 = vmatprep.subr.bf16.mxu1 %v1180_v20 }
  0x47   : > { %612 = vmatmul.mubr.f32.gmra.mrb[14].mxu1 %v324_v23  ;;  %1183 = vmatpush3.bf16.msra.mxu0 %v1180_v20 }
  0x48   : > { %1199 = vmatpush3.bf16.msra.mxu1 %v1180_v20  ;;  %1076 = vmatprep.mubr.f32.mxu0 %v291_v24  ;;  %v905_v24 = vld [vmem:[%s1616_s2] ss:$0 sm:$0xff] }
  0x49   : > { %1082 = vmatprep.mubr.f32.mxu1 %v311_v25 }
  0x4a   : > { %1077 = vmatmul.mubr.f32.vlgmr.msra.gmra.mrb[16].mxu0 %v296_v26 }
  0x4b   : > { %1083 = vmatmul.mubr.f32.vlgmr.msra.gmra.mrb[16].mxu1 %v316_v27  ;;  %1079 = vmatprep.mubr.f32.mxu0 %v301_v28 }
  0x4c   : > { %1085 = vmatprep.mubr.f32.mxu1 %v321_v29 }
  0x4e   : > { %1080 = vmatmul.mubr.f32.gmra.mrb[18].mxu0 %v306_v30 }
  0x4f   : > { %1086 = vmatmul.mubr.f32.gmra.mrb[18].mxu1 %v326_v31 }
  0xfd   : > { %v940_v32 = vpop.f32.mrb[0].mxu0 }
  0xfe   : > { %v996_v33 = vpop.f32.mrb[0].mxu1  ;;  %v941_v34 = vpop.f32.mrb[1].mxu0 }
  0xff   : > { %v942_v35 = vadd.f32 %v941_v34, %v940_v32  ;;  %v997_v36 = vpop.f32.mrb[1].mxu1 }
 0x100   : > { %v998_v37 = vadd.f32 %v997_v36, %v996_v33 }
 0x101   : > { %v943_v38 = vpop.f32.mrb[2].mxu0 }
 0x102   : > { %v999_v39 = vpop.f32.mrb[2].mxu1  ;;  %v944_v40 = vpop.f32.mrb[3].mxu0  ;;  %v579_v41 = vadd.f32 %v998_v37, %v942_v35 }
 0x103   : > { %v945_v42 = vadd.f32 %v944_v40, %v943_v38  ;;  %v1000_v43 = vpop.f32.mrb[3].mxu1 }
 0x104   : > { %v1001_v44 = vadd.f32 %v1000_v43, %v999_v39 }
 0x105   : > { %v946_v45 = vpop.f32.mrb[4].mxu0 }
 0x106   : > { %v1002_v46 = vpop.f32.mrb[4].mxu1  ;;  %v947_v47 = vpop.f32.mrb[5].mxu0  ;;  %v584_v48 = vadd.f32 %v1001_v44, %v945_v42 }
 0x107   : > { %v948_v49 = vadd.f32 %v947_v47, %v946_v45  ;;  %v1003_v50 = vpop.f32.mrb[5].mxu1 }
 0x108   : > { %v1004_v51 = vadd.f32 %v1003_v50, %v1002_v46 }
 0x109   : > { %v949_v52 = vpop.f32.mrb[6].mxu0 }
 0x10a   : > { %v1005_v53 = vpop.f32.mrb[6].mxu1  ;;  %v950_v54 = vpop.f32.mrb[7].mxu0  ;;  %v589_v55 = vadd.f32 %v1004_v51, %v948_v49 }
 0x10b   : > { %v951_v56 = vadd.f32 %v950_v54, %v949_v52  ;;  %v1006_v57 = vpop.f32.mrb[7].mxu1 }
 0x10c   : > { %v1007_v58 = vadd.f32 %v1006_v57, %v1005_v53 }
 0x10d   : > { %v952_v59 = vpop.f32.mrb[8].mxu0 }
 0x10e   : > { %v1008_v60 = vpop.f32.mrb[8].mxu1  ;;  %v953_v61 = vpop.f32.mrb[9].mxu0  ;;  %v594_v62 = vadd.f32 %v1007_v58, %v951_v56 }
 0x10f   : > { %v954_v63 = vadd.f32 %v953_v61, %v952_v59  ;;  %v1009_v0 = vpop.f32.mrb[9].mxu1 }
 0x110   : > { %v1010_v1 = vadd.f32 %v1009_v0, %v1008_v60 }
 0x111   : > { %v955_v2 = vpop.f32.mrb[10].mxu0 }
 0x112   : > { %v1011_v3 = vpop.f32.mrb[10].mxu1  ;;  %v956_v4 = vpop.f32.mrb[11].mxu0  ;;  %v599_v5 = vadd.f32 %v1010_v1, %v954_v63 }
 0x113   : > { %v957_v6 = vadd.f32 %v956_v4, %v955_v2  ;;  %v1012_v7 = vpop.f32.mrb[11].mxu1 }
 0x114   : > { %v1013_v8 = vadd.f32 %v1012_v7, %v1011_v3 }
 0x115   : > { %v958_v9 = vpop.f32.mrb[12].mxu0 }
 0x116   : > { %v1014_v10 = vpop.f32.mrb[12].mxu1  ;;  %v959_v11 = vpop.f32.mrb[13].mxu0  ;;  %v604_v12 = vadd.f32 %v1013_v8, %v957_v6 }
 0x117   : > { %v960_v13 = vadd.f32 %v959_v11, %v958_v9  ;;  %v1015_v14 = vpop.f32.mrb[13].mxu1 }
 0x118   : > { %v1016_v15 = vadd.f32 %v1015_v14, %v1014_v10 }
 0x119   : > { %v961_v16 = vpop.f32.mrb[14].mxu0 }
 0x11a   : > { %v1017_v17 = vpop.f32.mrb[14].mxu1  ;;  %v962_v18 = vpop.f32.mrb[15].mxu0  ;;  %v609_v19 = vadd.f32 %v1016_v15, %v960_v13 }
 0x11b   : > { %v963_v20 = vadd.f32 %v962_v18, %v961_v16  ;;  %v1018_v21 = vpop.f32.mrb[15].mxu1 }
 0x11c   : > { %v1019_v22 = vadd.f32 %v1018_v21, %v1017_v17 }
 0x11d   : > { %v1078_v23 = vpop.f32.mrb[16].mxu0 }
 0x11e   : > { %v689_v25 = vadd.f32 %v1078_v23, %v584_v48  ;;  %v1084_v26 = vpop.f32.mrb[16].mxu1  ;;  %v683_v27 = vpop.f32.mrb[17].mxu0  ;;  %v614_v28 = vadd.f32 %v1019_v22, %v963_v20 }
 0x11f   : > { %v709_v29 = vadd.f32 %v1084_v26, %v604_v12  ;;  %v684_v30 = vadd.f32 %v683_v27, %v579_v41  ;;  %v703_v31 = vpop.f32.mrb[17].mxu1 }
 0x120   : > { %v757_v32 = vadd.f32 %v905_v24, %v689_v25  ;;  %v704_v33 = vadd.f32 %v703_v31, %v599_v5 }
 0x121   : > { %v761_v34 = vadd.f32 %v905_v24, %v709_v29  ;;  %v756_v35 = vadd.f32 %v905_v24, %v684_v30  ;;  %v1081_v36 = vpop.f32.mrb[18].mxu0 }
 0x122   : > { %v765_v37 = vmax.f32 %v757_v32, 0.0  ;;  %v760_v38 = vadd.f32 %v905_v24, %v704_v33  ;;  %v699_v39 = vadd.f32 %v1081_v36, %v594_v62  ;;  %v1087_v40 = vpop.f32.mrb[18].mxu1  ;;  %v693_v41 = vpop.f32.mrb[19].mxu0 }
 0x123   : > { %v769_v42 = vmax.f32 %v761_v34, 0.0  ;;  %v764_v43 = vmax.f32 %v756_v35, 0.0  ;;  %v719_v44 = vadd.f32 %v1087_v40, %v614_v28  ;;  %v694_v45 = vadd.f32 %v693_v41, %v589_v55  ;;  %v713_v46 = vpop.f32.mrb[19].mxu1 }
 0x124   : > { %773 = vst [vmem:[%s1595_s28 + $0x8] sm:$0xff] %v765_v37  ;;  %v768_v47 = vmax.f32 %v760_v38, 0.0  ;;  %v759_v48 = vadd.f32 %v905_v24, %v699_v39  ;;  %v714_v49 = vadd.f32 %v713_v46, %v609_v19 }
 0x125   : > { %777 = vst [vmem:[%s1595_s28 + $0x28] sm:$0xff] %v769_v42  ;;  %772 = vst [vmem:[%s1595_s28] sm:$0xff] %v764_v43  ;;  %v763_v50 = vadd.f32 %v905_v24, %v719_v44  ;;  %v758_v51 = vadd.f32 %v905_v24, %v694_v45 }
 0x126   : > { %776 = vst [vmem:[%s1595_s28 + $0x20] sm:$0xff] %v768_v47  ;;  %v767_v52 = vmax.f32 %v759_v48, 0.0  ;;  %v762_v53 = vadd.f32 %v905_v24, %v714_v49 }
 0x127   : > { %v771_v54 = vmax.f32 %v763_v50, 0.0  ;;  %v766_v56 = vmax.f32 %v758_v51, 0.0 }
 0x128   : > { %775 = vst [vmem:[%s1595_s28 + $0x18] sm:$0xff] %v767_v52  ;;  %v770_v57 = vmax.f32 %v762_v53, 0.0 }
 0x129   : > { %779 = vst [vmem:[%s1595_s28 + $0x38] sm:$0xff] %v771_v54  ;;  %774 = vst [vmem:[%s1595_s28 + $0x10] sm:$0xff] %v766_v56 }
 0x12a   : > { %778 = vst [vmem:[%s1595_s28 + $0x30] sm:$0xff] %v770_v57 }
 0x12b PF: > { %s13_s14 = sadd.s32 1, %s1247_s14   ;;  %s1619_s12 = smov %s1243_s13 }
 0x12c   : > { %p10_p5 = scmp.ge.s32.totalorder %s13_s14, 4   ;;  %s1620_s13 = smov %s1622_s15 }
 0x12e   :  { %12 = sbr.rel (!%p10_p5) target bundleno = 2 (0x2), region = 76 }

// kernel: _lambda_.8
= control target key start
LH: loop header
LB: loop body
LE: loop exit
PB: predicated region body
PF: predicated region fallthrough
CT: control target
= control target key end

     0   :  { %s2178_s0 = inlined_call_operand.vmem [shape: f32[32,1280], index: 0, kind: input, shape index: {}]   ;;  %s2179_s1 = inlined_call_operand.vmem [shape: f32[1280,256], index: 1, kind: input, shape index: {}]   ;;  %s2180_s2 = inlined_call_operand.vmem [shape: f32[1,256], index: 2, kind: input, shape index: {}]   ;;  %s2181_s3 = inlined_call_operand.vmem [shape: f32[32,256], index: 3, kind: output, shape index: {}]  }
   0x1   :  { %2183 = sst [smem:[#allocation7_spill]] %s2178_s0 }
   0x2   :  { %2184 = sst [smem:[#allocation8_spill]] %s2179_s1 }
   0x3   :  { %s1683_s12 = smov 0   ;;  %s1685_s13 = smov 0  }
   0x4   :  { %s1687_s14 = smov 0   ;;  %s1689_s15 = smov 0  }
   0x5   :  { %s1691_s16 = smov 0   ;;  %s1693_s17 = smov 0  }
   0x6   :  { %s1695_s18 = smov 0   ;;  %s1697_s19 = smov 0  }
   0x7   :  { %s1699_s20 = smov 0   ;;  %s1701_s21 = smov 0  }
   0x8   :  { %s1703_s22 = smov 0  }
   0x9 LB: > { %s1205_s23 = sadd.s32 4294967295, %s1660_s22   ;;  %s25_s24 = sadd.s32 1, %s1652_s20  ;;  %s1660_s22 = sphi %s1703_s22, %s13_s22   ;;  %s1656_s21 = sphi %s1701_s21, %s2201_s21   ;;  %s1652_s20 = sphi %s1699_s20, %s2200_s20   ;;  %s1648_s19 = sphi %s1697_s19, %s2199_s19   ;;  %s1644_s18 = sphi %s1695_s18, %s2198_s18   ;;  %s1640_s17 = sphi %s1693_s17, %s2197_s17   ;;  %s1636_s16 = sphi %s1691_s16, %s2196_s16   ;;  %s1632_s15 = sphi %s1689_s15, %s2195_s15   ;;  %s1628_s14 = sphi %s1687_s14, %s2194_s14   ;;  %s1624_s13 = sphi %s1685_s13, %s2193_s13   ;;  %s1620_s12 = sphi %s1683_s12, %s2192_s12  }
   0xa   : > { %p26_p0 = scmp.ge.s32.totalorder %s25_s24, 2  ;;  %s28_s25 = sadd.s32 1, %s1656_s21 }
   0xb   : > { %s41_s26 = sadd.s32 1, %s1640_s17  ;;  %p48_p1 = scmp.ne.s32.totalorder %s1640_s17, %s1636_s16 }
   0xc   : > { %s2203_s24 = smov (%p26_p0, %s25_s24), 0  ;;  %s2205_s25 = smov (!%p26_p0, %s28_s25), %s1656_s21 }
   0xd   : > { %s37_s27 = ssub.s32 %s1652_s20, %s2203_s24  ;;  %p49_p2 = scmp.eq.s32.totalorder %s1660_s22, 0 }
   0xe   : > { %p30_p3 = scmp.ge.s32.totalorder %s2205_s25, 2  ;;  %p39_p4 = scmp.eq.s32.totalorder %s37_s27, 0 }
   0xf   : > { %p1750_p5 = por %p49_p2, %p48_p1  ;;  %s69_s29 = sadd.s32 1, %s1632_s15 }
  0x10   : > { %s2207_s25 = smov (%p30_p3, %s2205_s25), 0  ;;  %p76_p6 = scmp.ne.s32.totalorder %s1632_s15, %s1628_s14 }
  0x11   : > { %2186 = sst [smem:[#allocation6_spill]] %s2207_s25  ;;  %s65_s4 = ssub.s32 %s1656_s21, %s2207_s25 }
  0x12   : > { %s1758_s30 = scalar_select %p39_p4, %s1640_s17, %s41_s26  }
  0x13   : > { %s66_s5 = sor.u32 %s65_s4, %s37_s27  ;;  %p121_p7 = scmp.eq.s32.totalorder %s65_s4, 0 }
  0x14   : > { %p67_p8 = scmp.eq.s32.totalorder %s66_s5, 0  ;;  %p1764_p9 = por %p76_p6, %p49_p2 }
  0x15   : > { %s123_s7 = sadd.s32 1, %s1624_s13  ;;  %p133_p10 = scmp.ne.s32.totalorder %s1624_s13, %s1620_s12 }
  0x16   : > { %s1772_s8 = scalar_select %p67_p8, %s1632_s15, %s69_s29  }
  0x17   : > { %s1775_s9 = scalar_select %p121_p7, %s1624_s13, %s123_s7  }
  0x18   : > { %p134_p11 = scmp.eq.s32.totalorder %s1205_s23, 3  ;;  %p1208_p13 = scmp.ge.s32.totalorder %s1660_s22, 4 }
  0x1a   : > { %p1777_p12 = por %p134_p11, %p133_p10  ;;  %156 = sbr.rel (%p1208_p13) target bundleno = 101 (0x65), region = 16 }
  0x21   : > { %159 = sbr.rel (!%p1750_p5) target bundleno = 52 (0x34), region = 20  ;;  %s161_s11 = sand.u32 (%p1750_p5), 1, %s1640_s17  }
  0x22   : > { %s1221_s26 = smul.u32 (%p1750_p5), 40, %s1652_s20  ;;  %s2189_s0 = sld [smem:[#allocation7_spill]] (%p1750_p5) }
  0x23   : > { %s1481_s27 = smul.u32 (%p1750_p5), 160, %s161_s11 }
  0x25   : > { %s1794_s23 = scalar_lea.vmem (%p1750_p5), [#allocation3], %s1481_s27 }
  0x28   : > { %s1789_s5 = scalar_lea.vmem %s2189_s0, %s1221_s26 }
  0x29   : > { %v182_v0 = vld [vmem:[%s1789_s5] sm:$0xff]  ;;  %v184_v1 = vld [vmem:[%s1789_s5 + $0x8] sm:$0xff]  ;;  %v186_v2 = vld [vmem:[%s1789_s5 + $0x10] sm:$0xff] }
  0x2a   : > { %183 = vst [vmem:[%s1794_s23] sm:$0xff] %v182_v0  ;;  %185 = vst [vmem:[%s1794_s23 + $0x8] sm:$0xff] %v184_v1  ;;  %v188_v3 = vld [vmem:[%s1789_s5 + $0x18] sm:$0xff]  ;;  %v190_v4 = vld [vmem:[%s1789_s5 + $0x20] sm:$0xff] }
  0x2b   : > { %187 = vst [vmem:[%s1794_s23 + $0x10] sm:$0xff] %v186_v2  ;;  %v192_v5 = vld [vmem:[%s1789_s5 + $0x50] sm:$0xff]  ;;  %189 = vst [vmem:[%s1794_s23 + $0x18] sm:$0xff] %v188_v3  ;;  %v194_v6 = vld [vmem:[%s1789_s5 + $0x58] sm:$0xff] }
  0x2c   : > { %191 = vst [vmem:[%s1794_s23 + $0x20] sm:$0xff] %v190_v4  ;;  %193 = vst [vmem:[%s1794_s23 + $0x28] sm:$0xff] %v192_v5  ;;  %v196_v7 = vld [vmem:[%s1789_s5 + $0x60] sm:$0xff]  ;;  %v198_v8 = vld [vmem:[%s1789_s5 + $0x68] sm:$0xff] }
  0x2d   : > { %195 = vst [vmem:[%s1794_s23 + $0x30] sm:$0xff] %v194_v6  ;;  %197 = vst [vmem:[%s1794_s23 + $0x38] sm:$0xff] %v196_v7  ;;  %v200_v9 = vld [vmem:[%s1789_s5 + $0x70] sm:$0xff]  ;;  %v202_v10 = vld [vmem:[%s1789_s5 + $0xa0] sm:$0xff] }
  0x2e   : > { %199 = vst [vmem:[%s1794_s23 + $0x40] sm:$0xff] %v198_v8  ;;  %v204_v11 = vld [vmem:[%s1789_s5 + $0xa8] sm:$0xff]  ;;  %201 = vst [vmem:[%s1794_s23 + $0x48] sm:$0xff] %v200_v9  ;;  %v206_v12 = vld [vmem:[%s1789_s5 + $0xb0] sm:$0xff] }
  0x2f   : > { %203 = vst [vmem:[%s1794_s23 + $0x50] sm:$0xff] %v202_v10  ;;  %205 = vst [vmem:[%s1794_s23 + $0x58] sm:$0xff] %v204_v11  ;;  %v208_v13 = vld [vmem:[%s1789_s5 + $0xb8] sm:$0xff]  ;;  %v210_v14 = vld [vmem:[%s1789_s5 + $0xc0] sm:$0xff] }
  0x30   : > { %207 = vst [vmem:[%s1794_s23 + $0x60] sm:$0xff] %v206_v12  ;;  %209 = vst [vmem:[%s1794_s23 + $0x68] sm:$0xff] %v208_v13  ;;  %v212_v15 = vld [vmem:[%s1789_s5 + $0xf0] sm:$0xff]  ;;  %v214_v16 = vld [vmem:[%s1789_s5 + $0xf8] sm:$0xff] }
  0x31   : > { %211 = vst [vmem:[%s1794_s23 + $0x70] sm:$0xff] %v210_v14  ;;  %v216_v17 = vld [vmem:[%s1789_s5 + $0x100] sm:$0xff]  ;;  %213 = vst [vmem:[%s1794_s23 + $0x78] sm:$0xff] %v212_v15  ;;  %v218_v18 = vld [vmem:[%s1789_s5 + $0x108] sm:$0xff] }
  0x32   : > { %215 = vst [vmem:[%s1794_s23 + $0x80] sm:$0xff] %v214_v16  ;;  %217 = vst [vmem:[%s1794_s23 + $0x88] sm:$0xff] %v216_v17  ;;  %v220_v19 = vld [vmem:[%s1789_s5 + $0x110] sm:$0xff] }
  0x33   : > { %219 = vst [vmem:[%s1794_s23 + $0x90] sm:$0xff] %v218_v18  ;;  %221 = vst [vmem:[%s1794_s23 + $0x98] sm:$0xff] %v220_v19 }
  0x34 PF: > { %227 = sbr.rel (!%p1764_p9) target bundleno = 101 (0x65), region = 43  ;;  %s229_s28 = sand.u32 (%p1764_p9), 1, %s1632_s15  }
  0x35   : > { %s1222_s7 = smul.u32 (%p1764_p9), 160, %s1652_s20  ;;  %s2190_s1 = sld [smem:[#allocation8_spill]] (%p1764_p9) }
  0x36   : > { %s1482_s11 = smul.u32 (%p1764_p9), 640, %s229_s28 }
  0x37   : > { %s234_s26 = sadd.s32 (%p1764_p9), %s1656_s21, %s1222_s7 }
  0x38   : > { %s1211_s27 = sshll.u32 (%p1764_p9), %s234_s26, 3  ;;  %s1846_s6 = scalar_lea.vmem (%p1764_p9), [#allocation4], %s1482_s11 }
  0x3b   : > { %s1841_s0 = scalar_lea.vmem %s2190_s1, %s1211_s27 }
  0x3c   : > { %v422_v20 = vld [vmem:[%s1841_s0] sm:$0xff]  ;;  %v424_v21 = vld [vmem:[%s1841_s0 + $0x10] sm:$0xff] }
  0x3d   : > { %v426_v22 = vld [vmem:[%s1841_s0 + $0x20] sm:$0xff]  ;;  %423 = vst [vmem:[%s1846_s6] sm:$0xff] %v422_v20  ;;  %425 = vst [vmem:[%s1846_s6 + $0x8] sm:$0xff] %v424_v21  ;;  %v428_v23 = vld [vmem:[%s1841_s0 + $0x30] sm:$0xff] }
  0x3e   : > { %427 = vst [vmem:[%s1846_s6 + $0x10] sm:$0xff] %v426_v22  ;;  %v430_v24 = vld [vmem:[%s1841_s0 + $0x40] sm:$0xff]  ;;  %v432_v25 = vld [vmem:[%s1841_s0 + $0x50] sm:$0xff]  ;;  %429 = vst [vmem:[%s1846_s6 + $0x18] sm:$0xff] %v428_v23 }
  0x3f   : > { %431 = vst [vmem:[%s1846_s6 + $0x20] sm:$0xff] %v430_v24  ;;  %433 = vst [vmem:[%s1846_s6 + $0x28] sm:$0xff] %v432_v25  ;;  %v434_v26 = vld [vmem:[%s1841_s0 + $0x60] sm:$0xff]  ;;  %v436_v27 = vld [vmem:[%s1841_s0 + $0x70] sm:$0xff] }
  0x40   : > { %v438_v28 = vld [vmem:[%s1841_s0 + $0x80] sm:$0xff]  ;;  %435 = vst [vmem:[%s1846_s6 + $0x30] sm:$0xff] %v434_v26  ;;  %437 = vst [vmem:[%s1846_s6 + $0x38] sm:$0xff] %v436_v27  ;;  %v440_v29 = vld [vmem:[%s1841_s0 + $0x90] sm:$0xff] }
  0x41   : > { %439 = vst [vmem:[%s1846_s6 + $0x40] sm:$0xff] %v438_v28  ;;  %v442_v30 = vld [vmem:[%s1841_s0 + $0xa0] sm:$0xff]  ;;  %v444_v31 = vld [vmem:[%s1841_s0 + $0xb0] sm:$0xff]  ;;  %441 = vst [vmem:[%s1846_s6 + $0x48] sm:$0xff] %v440_v29 }
  0x42   : > { %443 = vst [vmem:[%s1846_s6 + $0x50] sm:$0xff] %v442_v30  ;;  %445 = vst [vmem:[%s1846_s6 + $0x58] sm:$0xff] %v444_v31  ;;  %v446_v32 = vld [vmem:[%s1841_s0 + $0xc0] sm:$0xff]  ;;  %v448_v33 = vld [vmem:[%s1841_s0 + $0xd0] sm:$0xff] }
  0x43   : > { %v450_v34 = vld [vmem:[%s1841_s0 + $0xe0] sm:$0xff]  ;;  %447 = vst [vmem:[%s1846_s6 + $0x60] sm:$0xff] %v446_v32  ;;  %449 = vst [vmem:[%s1846_s6 + $0x68] sm:$0xff] %v448_v33  ;;  %v452_v35 = vld [vmem:[%s1841_s0 + $0xf0] sm:$0xff] }
  0x44   : > { %451 = vst [vmem:[%s1846_s6 + $0x70] sm:$0xff] %v450_v34  ;;  %v454_v36 = vld [vmem:[%s1841_s0 + $0x100] sm:$0xff]  ;;  %v456_v37 = vld [vmem:[%s1841_s0 + $0x110] sm:$0xff]  ;;  %453 = vst [vmem:[%s1846_s6 + $0x78] sm:$0xff] %v452_v35 }
  0x45   : > { %455 = vst [vmem:[%s1846_s6 + $0x80] sm:$0xff] %v454_v36  ;;  %457 = vst [vmem:[%s1846_s6 + $0x88] sm:$0xff] %v456_v37  ;;  %v458_v38 = vld [vmem:[%s1841_s0 + $0x120] sm:$0xff]  ;;  %v460_v39 = vld [vmem:[%s1841_s0 + $0x130] sm:$0xff] }
  0x46   : > { %v462_v40 = vld [vmem:[%s1841_s0 + $0x140] sm:$0xff]  ;;  %459 = vst [vmem:[%s1846_s6 + $0x90] sm:$0xff] %v458_v38  ;;  %461 = vst [vmem:[%s1846_s6 + $0x98] sm:$0xff] %v460_v39  ;;  %v464_v41 = vld [vmem:[%s1841_s0 + $0x150] sm:$0xff] }
  0x47   : > { %463 = vst [vmem:[%s1846_s6 + $0xa0] sm:$0xff] %v462_v40  ;;  %v466_v42 = vld [vmem:[%s1841_s0 + $0x160] sm:$0xff]  ;;  %v468_v43 = vld [vmem:[%s1841_s0 + $0x170] sm:$0xff]  ;;  %465 = vst [vmem:[%s1846_s6 + $0xa8] sm:$0xff] %v464_v41 }
  0x48   : > { %467 = vst [vmem:[%s1846_s6 + $0xb0] sm:$0xff] %v466_v42  ;;  %469 = vst [vmem:[%s1846_s6 + $0xb8] sm:$0xff] %v468_v43  ;;  %v470_v44 = vld [vmem:[%s1841_s0 + $0x180] sm:$0xff]  ;;  %v472_v45 = vld [vmem:[%s1841_s0 + $0x190] sm:$0xff] }
  0x49   : > { %v474_v46 = vld [vmem:[%s1841_s0 + $0x1a0] sm:$0xff]  ;;  %471 = vst [vmem:[%s1846_s6 + $0xc0] sm:$0xff] %v470_v44  ;;  %473 = vst [vmem:[%s1846_s6 + $0xc8] sm:$0xff] %v472_v45  ;;  %v476_v47 = vld [vmem:[%s1841_s0 + $0x1b0] sm:$0xff] }
  0x4a   : > { %475 = vst [vmem:[%s1846_s6 + $0xd0] sm:$0xff] %v474_v46  ;;  %v478_v48 = vld [vmem:[%s1841_s0 + $0x1c0] sm:$0xff]  ;;  %v480_v49 = vld [vmem:[%s1841_s0 + $0x1d0] sm:$0xff]  ;;  %477 = vst [vmem:[%s1846_s6 + $0xd8] sm:$0xff] %v476_v47 }
  0x4b   : > { %479 = vst [vmem:[%s1846_s6 + $0xe0] sm:$0xff] %v478_v48  ;;  %481 = vst [vmem:[%s1846_s6 + $0xe8] sm:$0xff] %v480_v49  ;;  %v482_v50 = vld [vmem:[%s1841_s0 + $0x1e0] sm:$0xff]  ;;  %v484_v51 = vld [vmem:[%s1841_s0 + $0x1f0] sm:$0xff] }
  0x4c   : > { %v486_v52 = vld [vmem:[%s1841_s0 + $0x200] sm:$0xff]  ;;  %483 = vst [vmem:[%s1846_s6 + $0xf0] sm:$0xff] %v482_v50  ;;  %485 = vst [vmem:[%s1846_s6 + $0xf8] sm:$0xff] %v484_v51  ;;  %v488_v53 = vld [vmem:[%s1841_s0 + $0x210] sm:$0xff] }
  0x4d   : > { %487 = vst [vmem:[%s1846_s6 + $0x100] sm:$0xff] %v486_v52  ;;  %v490_v54 = vld [vmem:[%s1841_s0 + $0x220] sm:$0xff]  ;;  %v492_v55 = vld [vmem:[%s1841_s0 + $0x230] sm:$0xff]  ;;  %489 = vst [vmem:[%s1846_s6 + $0x108] sm:$0xff] %v488_v53 }
  0x4e   : > { %491 = vst [vmem:[%s1846_s6 + $0x110] sm:$0xff] %v490_v54  ;;  %493 = vst [vmem:[%s1846_s6 + $0x118] sm:$0xff] %v492_v55  ;;  %v494_v56 = vld [vmem:[%s1841_s0 + $0x240] sm:$0xff]  ;;  %v496_v57 = vld [vmem:[%s1841_s0 + $0x250] sm:$0xff] }
  0x4f   : > { %v498_v58 = vld [vmem:[%s1841_s0 + $0x260] sm:$0xff]  ;;  %495 = vst [vmem:[%s1846_s6 + $0x120] sm:$0xff] %v494_v56  ;;  %497 = vst [vmem:[%s1846_s6 + $0x128] sm:$0xff] %v496_v57  ;;  %v500_v59 = vld [vmem:[%s1841_s0 + $0x270] sm:$0xff] }
  0x50   : > { %499 = vst [vmem:[%s1846_s6 + $0x130] sm:$0xff] %v498_v58  ;;  %v502_v60 = vld [vmem:[%s1841_s0 + $0x280] sm:$0xff]  ;;  %v504_v61 = vld [vmem:[%s1841_s0 + $0x290] sm:$0xff]  ;;  %501 = vst [vmem:[%s1846_s6 + $0x138] sm:$0xff] %v500_v59 }
  0x51   : > { %503 = vst [vmem:[%s1846_s6 + $0x140] sm:$0xff] %v502_v60  ;;  %505 = vst [vmem:[%s1846_s6 + $0x148] sm:$0xff] %v504_v61  ;;  %v506_v62 = vld [vmem:[%s1841_s0 + $0x2a0] sm:$0xff]  ;;  %v508_v63 = vld [vmem:[%s1841_s0 + $0x2b0] sm:$0xff] }
  0x52   : > { %v510_v0 = vld [vmem:[%s1841_s0 + $0x2c0] sm:$0xff]  ;;  %507 = vst [vmem:[%s1846_s6 + $0x150] sm:$0xff] %v506_v62  ;;  %509 = vst [vmem:[%s1846_s6 + $0x158] sm:$0xff] %v508_v63  ;;  %v512_v1 = vld [vmem:[%s1841_s0 + $0x2d0] sm:$0xff] }
  0x53   : > { %511 = vst [vmem:[%s1846_s6 + $0x160] sm:$0xff] %v510_v0  ;;  %v514_v2 = vld [vmem:[%s1841_s0 + $0x2e0] sm:$0xff]  ;;  %v516_v3 = vld [vmem:[%s1841_s0 + $0x2f0] sm:$0xff]  ;;  %513 = vst [vmem:[%s1846_s6 + $0x168] sm:$0xff] %v512_v1 }
  0x54   : > { %515 = vst [vmem:[%s1846_s6 + $0x170] sm:$0xff] %v514_v2  ;;  %517 = vst [vmem:[%s1846_s6 + $0x178] sm:$0xff] %v516_v3  ;;  %v518_v4 = vld [vmem:[%s1841_s0 + $0x300] sm:$0xff]  ;;  %v520_v5 = vld [vmem:[%s1841_s0 + $0x310] sm:$0xff] }
  0x55   : > { %v522_v6 = vld [vmem:[%s1841_s0 + $0x320] sm:$0xff]  ;;  %519 = vst [vmem:[%s1846_s6 + $0x180] sm:$0xff] %v518_v4  ;;  %521 = vst [vmem:[%s1846_s6 + $0x188] sm:$0xff] %v520_v5  ;;  %v524_v7 = vld [vmem:[%s1841_s0 + $0x330] sm:$0xff] }
  0x56   : > { %523 = vst [vmem:[%s1846_s6 + $0x190] sm:$0xff] %v522_v6  ;;  %v526_v8 = vld [vmem:[%s1841_s0 + $0x340] sm:$0xff]  ;;  %v528_v9 = vld [vmem:[%s1841_s0 + $0x350] sm:$0xff]  ;;  %525 = vst [vmem:[%s1846_s6 + $0x198] sm:$0xff] %v524_v7 }
  0x57   : > { %527 = vst [vmem:[%s1846_s6 + $0x1a0] sm:$0xff] %v526_v8  ;;  %529 = vst [vmem:[%s1846_s6 + $0x1a8] sm:$0xff] %v528_v9  ;;  %v530_v10 = vld [vmem:[%s1841_s0 + $0x360] sm:$0xff]  ;;  %v532_v11 = vld [vmem:[%s1841_s0 + $0x370] sm:$0xff] }
  0x58   : > { %v534_v12 = vld [vmem:[%s1841_s0 + $0x380] sm:$0xff]  ;;  %531 = vst [vmem:[%s1846_s6 + $0x1b0] sm:$0xff] %v530_v10  ;;  %533 = vst [vmem:[%s1846_s6 + $0x1b8] sm:$0xff] %v532_v11  ;;  %v536_v13 = vld [vmem:[%s1841_s0 + $0x390] sm:$0xff] }
  0x59   : > { %535 = vst [vmem:[%s1846_s6 + $0x1c0] sm:$0xff] %v534_v12  ;;  %v538_v14 = vld [vmem:[%s1841_s0 + $0x3a0] sm:$0xff]  ;;  %v540_v15 = vld [vmem:[%s1841_s0 + $0x3b0] sm:$0xff]  ;;  %537 = vst [vmem:[%s1846_s6 + $0x1c8] sm:$0xff] %v536_v13 }
  0x5a   : > { %539 = vst [vmem:[%s1846_s6 + $0x1d0] sm:$0xff] %v538_v14  ;;  %541 = vst [vmem:[%s1846_s6 + $0x1d8] sm:$0xff] %v540_v15  ;;  %v542_v16 = vld [vmem:[%s1841_s0 + $0x3c0] sm:$0xff]  ;;  %v544_v17 = vld [vmem:[%s1841_s0 + $0x3d0] sm:$0xff] }
  0x5b   : > { %v546_v18 = vld [vmem:[%s1841_s0 + $0x3e0] sm:$0xff]  ;;  %543 = vst [vmem:[%s1846_s6 + $0x1e0] sm:$0xff] %v542_v16  ;;  %545 = vst [vmem:[%s1846_s6 + $0x1e8] sm:$0xff] %v544_v17  ;;  %v548_v19 = vld [vmem:[%s1841_s0 + $0x3f0] sm:$0xff] }
  0x5c   : > { %547 = vst [vmem:[%s1846_s6 + $0x1f0] sm:$0xff] %v546_v18  ;;  %v550_v20 = vld [vmem:[%s1841_s0 + $0x400] sm:$0xff]  ;;  %v552_v21 = vld [vmem:[%s1841_s0 + $0x410] sm:$0xff]  ;;  %549 = vst [vmem:[%s1846_s6 + $0x1f8] sm:$0xff] %v548_v19 }
  0x5d   : > { %551 = vst [vmem:[%s1846_s6 + $0x200] sm:$0xff] %v550_v20  ;;  %553 = vst [vmem:[%s1846_s6 + $0x208] sm:$0xff] %v552_v21  ;;  %v554_v22 = vld [vmem:[%s1841_s0 + $0x420] sm:$0xff]  ;;  %v556_v23 = vld [vmem:[%s1841_s0 + $0x430] sm:$0xff] }
  0x5e   : > { %v558_v24 = vld [vmem:[%s1841_s0 + $0x440] sm:$0xff]  ;;  %555 = vst [vmem:[%s1846_s6 + $0x210] sm:$0xff] %v554_v22  ;;  %557 = vst [vmem:[%s1846_s6 + $0x218] sm:$0xff] %v556_v23  ;;  %v560_v25 = vld [vmem:[%s1841_s0 + $0x450] sm:$0xff] }
  0x5f   : > { %559 = vst [vmem:[%s1846_s6 + $0x220] sm:$0xff] %v558_v24  ;;  %v562_v26 = vld [vmem:[%s1841_s0 + $0x460] sm:$0xff]  ;;  %v564_v27 = vld [vmem:[%s1841_s0 + $0x470] sm:$0xff]  ;;  %561 = vst [vmem:[%s1846_s6 + $0x228] sm:$0xff] %v560_v25 }
  0x60   : > { %563 = vst [vmem:[%s1846_s6 + $0x230] sm:$0xff] %v562_v26  ;;  %565 = vst [vmem:[%s1846_s6 + $0x238] sm:$0xff] %v564_v27  ;;  %v566_v28 = vld [vmem:[%s1841_s0 + $0x480] sm:$0xff]  ;;  %v568_v29 = vld [vmem:[%s1841_s0 + $0x490] sm:$0xff] }
  0x61   : > { %v570_v30 = vld [vmem:[%s1841_s0 + $0x4a0] sm:$0xff]  ;;  %567 = vst [vmem:[%s1846_s6 + $0x240] sm:$0xff] %v566_v28  ;;  %569 = vst [vmem:[%s1846_s6 + $0x248] sm:$0xff] %v568_v29  ;;  %v572_v31 = vld [vmem:[%s1841_s0 + $0x4b0] sm:$0xff] }
  0x62   : > { %571 = vst [vmem:[%s1846_s6 + $0x250] sm:$0xff] %v570_v30  ;;  %v574_v32 = vld [vmem:[%s1841_s0 + $0x4c0] sm:$0xff]  ;;  %v576_v33 = vld [vmem:[%s1841_s0 + $0x4d0] sm:$0xff]  ;;  %573 = vst [vmem:[%s1846_s6 + $0x258] sm:$0xff] %v572_v31 }
  0x63   : > { %575 = vst [vmem:[%s1846_s6 + $0x260] sm:$0xff] %v574_v32  ;;  %577 = vst [vmem:[%s1846_s6 + $0x268] sm:$0xff] %v576_v33  ;;  %v578_v34 = vld [vmem:[%s1841_s0 + $0x4e0] sm:$0xff]  ;;  %v580_v35 = vld [vmem:[%s1841_s0 + $0x4f0] sm:$0xff] }
  0x64   : > { %579 = vst [vmem:[%s1846_s6 + $0x270] sm:$0xff] %v578_v34  ;;  %581 = vst [vmem:[%s1846_s6 + $0x278] sm:$0xff] %v580_v35 }
  0x65 PF: > { %p1212_p0 = scmp.ge.s32.totalorder %s1660_s22, 1  ;;  %p592_p1 = scmp.lt.s32.totalorder %s1660_s22, 5 }
  0x67   : > { %p593_p2 = pnand %p1212_p0, %p592_p1 }
  0x68   : > { %s599_s5 = sand.u32 (!%p593_p2), 1, %s1636_s16   ;;  %s606_s23 = sand.u32 (!%p593_p2), 1, %s1628_s14  }
  0x69   : > { %596 = sbr.rel (%p593_p2) target bundleno = 427 (0x1ab), region = 85  ;;  %s632_s7 = sand.u32 (!%p593_p2), 1, %s1620_s12  }
  0x6a   : > { %s1483_s28 = smul.u32 (!%p593_p2), 160, %s599_s5  ;;  %s1213_s11 = sshll.u32 (!%p593_p2), %s632_s7, 5 }
  0x6b   : > { %s1484_s0 = smul.u32 (!%p593_p2), 640, %s606_s23  ;;  %p638_p3 = scmp.lt.s32.totalorder (!%p593_p2), %s1648_s19, 1 }
  0x6c   : > { %s2018_s6 = scalar_lea.vmem (!%p593_p2), [#allocation3], %s1483_s28  ;;  %s2022_s25 = scalar_lea.vmem (!%p593_p2), [#allocation5], %s1213_s11 }
  0x6d   : > { %s2020_s1 = scalar_lea.vmem (!%p593_p2), [#allocation4], %s1484_s0  ;;  %p1214_p4 = scmp.ne.s32.totalorder (!%p593_p2), %s1644_s18, 0 }
  0x70   : > { %s2012_s26 = scalar_select %p638_p3, %s1648_s19, 1 }
  0x71   : > { %645 = sbr.rel (%p1214_p4) target bundleno = 120 (0x78), region = 97  ;;  %v1662_v36 = vmov (!%p1214_p4), 0.0  }
  0x72   : > { %s640_s4 = scalar_lea.vmem %s2180_s2, %s2012_s26  ;;  %646 = vst [vmem:[#allocation2] sm:$0xff] (!%p1214_p4), %v1662_v36  ;;  %647 = vst [vmem:[#allocation2 + $0x8] sm:$0xff] (!%p1214_p4), %v1662_v36 }
  0x73   : > { %648 = vst [vmem:[#allocation2 + $0x10] sm:$0xff] (!%p1214_p4), %v1662_v36  ;;  %649 = vst [vmem:[#allocation2 + $0x18] sm:$0xff] (!%p1214_p4), %v1662_v36 }
  0x78 PF: > { %v690_v37 = vld [vmem:[%s2020_s1 + $0x80] sm:$0xff]  ;;  %v691_v38 = vld [vmem:[%s2020_s1 + $0x88] sm:$0xff]  ;;  %v692_v48 = vld [vmem:[%s2020_s1 + $0x90] sm:$0xff]  ;;  %p1215_p5 = scmp.ne.s32.totalorder %s1644_s18, 1 }
  0x79   : > { %v722_v39 = vld [vmem:[%s2020_s1 + $0x180] sm:$0xff]  ;;  %v1369_v40 = vpack.c.bf16 %v691_v38, %v690_v37  ;;  %v723_v41 = vld [vmem:[%s2020_s1 + $0x188] sm:$0xff]  ;;  %v693_v50 = vld [vmem:[%s2020_s1 + $0x98] sm:$0xff] }
  0x7a   : > { %v674_v42 = vld [vmem:[%s2020_s1] sm:$0xff]  ;;  %v675_v43 = vld [vmem:[%s2020_s1 + $0x8] sm:$0xff]  ;;  %v1401_v44 = vpack.c.bf16 %v723_v41, %v722_v39  ;;  %v724_v51 = vld [vmem:[%s2020_s1 + $0x190] sm:$0xff]  ;;  %v1373_v53 = vpack.c.bf16 %v693_v50, %v692_v48 }
  0x7b   : > { %v1371_v45 = vpack.c.bf16 %v675_v43, %v674_v42  ;;  %v706_v46 = vld [vmem:[%s2020_s1 + $0x100] sm:$0xff]  ;;  %v707_v47 = vld [vmem:[%s2020_s1 + $0x108] sm:$0xff]  ;;  %1370 = vmatprep.subr.bf16.mxu0 %v1369_v40  ;;  %v725_v52 = vld [vmem:[%s2020_s1 + $0x198] sm:$0xff] }
  0x7c   : > { %v1403_v49 = vpack.c.bf16 %v707_v47, %v706_v46  ;;  %1402 = vmatprep.subr.bf16.mxu1 %v1401_v44  ;;  %v1405_v54 = vpack.c.bf16 %v725_v52, %v724_v51  ;;  %v676_v55 = vld [vmem:[%s2020_s1 + $0x10] sm:$0xff]  ;;  %v677_v56 = vld [vmem:[%s2020_s1 + $0x18] sm:$0xff]  ;;  %v694_v60 = vld [vmem:[%s2020_s1 + $0xa0] sm:$0xff] }
  0x7d   : > { %1372 = vmatpush3.bf16.msra.mxu0 %v1371_v45  ;;  %v708_v57 = vld [vmem:[%s2020_s1 + $0x110] sm:$0xff]  ;;  %v1375_v58 = vpack.c.bf16 %v677_v56, %v676_v55  ;;  %v709_v59 = vld [vmem:[%s2020_s1 + $0x118] sm:$0xff]  ;;  %v695_v61 = vld [vmem:[%s2020_s1 + $0xa8] sm:$0xff] }
  0x7e   : > { %1404 = vmatpush3.bf16.msra.mxu1 %v1403_v49  ;;  %1374 = vmatprep.subr.bf16.mxu0 %v1373_v53  ;;  %v1407_v62 = vpack.c.bf16 %v709_v59, %v708_v57  ;;  %v1377_v63 = vpack.c.bf16 %v695_v61, %v694_v60  ;;  %v726_v0 = vld [vmem:[%s2020_s1 + $0x1a0] sm:$0xff]  ;;  %v727_v1 = vld [vmem:[%s2020_s1 + $0x1a8] sm:$0xff]  ;;  %v696_v8 = vld [vmem:[%s2020_s1 + $0xb0] sm:$0xff] }
  0x7f   : > { %1406 = vmatprep.subr.bf16.mxu1 %v1405_v54  ;;  %v678_v2 = vld [vmem:[%s2020_s1 + $0x20] sm:$0xff]  ;;  %v1409_v3 = vpack.c.bf16 %v727_v1, %v726_v0  ;;  %v679_v4 = vld [vmem:[%s2020_s1 + $0x28] sm:$0xff]  ;;  %v697_v9 = vld [vmem:[%s2020_s1 + $0xb8] sm:$0xff] }
  0x80   : > { %v710_v5 = vld [vmem:[%s2020_s1 + $0x120] sm:$0xff]  ;;  %v711_v6 = vld [vmem:[%s2020_s1 + $0x128] sm:$0xff]  ;;  %v1379_v7 = vpack.c.bf16 %v679_v4, %v678_v2  ;;  %v728_v10 = vld [vmem:[%s2020_s1 + $0x1b0] sm:$0xff]  ;;  %v1381_v12 = vpack.c.bf16 %v697_v9, %v696_v8 }
  0x81   : > { %1376 = vmatpush3.bf16.msra.mxu0 %v1375_v58  ;;  %v1411_v11 = vpack.c.bf16 %v711_v6, %v710_v5  ;;  %v729_v13 = vld [vmem:[%s2020_s1 + $0x1b8] sm:$0xff]  ;;  %v680_v14 = vld [vmem:[%s2020_s1 + $0x30] sm:$0xff]  ;;  %v698_v19 = vld [vmem:[%s2020_s1 + $0xc0] sm:$0xff] }
  0x82   : > { %1408 = vmatpush3.bf16.msra.mxu1 %v1407_v62  ;;  %1378 = vmatprep.subr.bf16.mxu0 %v1377_v63  ;;  %v681_v15 = vld [vmem:[%s2020_s1 + $0x38] sm:$0xff]  ;;  %v1413_v16 = vpack.c.bf16 %v729_v13, %v728_v10  ;;  %v712_v17 = vld [vmem:[%s2020_s1 + $0x130] sm:$0xff]  ;;  %v699_v20 = vld [vmem:[%s2020_s1 + $0xc8] sm:$0xff] }
  0x83   : > { %1410 = vmatprep.subr.bf16.mxu1 %v1409_v3  ;;  %v713_v18 = vld [vmem:[%s2020_s1 + $0x138] sm:$0xff]  ;;  %v730_v21 = vld [vmem:[%s2020_s1 + $0x1c0] sm:$0xff]  ;;  %v731_v22 = vld [vmem:[%s2020_s1 + $0x1c8] sm:$0xff]  ;;  %v1383_v23 = vpack.c.bf16 %v681_v15, %v680_v14  ;;  %v1385_v25 = vpack.c.bf16 %v699_v20, %v698_v19 }
  0x84   : > { %v1415_v24 = vpack.c.bf16 %v713_v18, %v712_v17  ;;  %v682_v26 = vld [vmem:[%s2020_s1 + $0x40] sm:$0xff]  ;;  %v683_v27 = vld [vmem:[%s2020_s1 + $0x48] sm:$0xff]  ;;  %v1417_v29 = vpack.c.bf16 %v731_v22, %v730_v21  ;;  %v700_v31 = vld [vmem:[%s2020_s1 + $0xd0] sm:$0xff] }
  0x85   : > { %1380 = vmatpush3.bf16.msra.mxu0 %v1379_v7  ;;  %v714_v28 = vld [vmem:[%s2020_s1 + $0x140] sm:$0xff]  ;;  %v715_v30 = vld [vmem:[%s2020_s1 + $0x148] sm:$0xff]  ;;  %v701_v32 = vld [vmem:[%s2020_s1 + $0xd8] sm:$0xff]  ;;  %v1387_v35 = vpack.c.bf16 %v683_v27, %v682_v26 }
  0x86   : > { %1412 = vmatpush3.bf16.msra.mxu1 %v1411_v11  ;;  %1382 = vmatprep.subr.bf16.mxu0 %v1381_v12  ;;  %v732_v33 = vld [vmem:[%s2020_s1 + $0x1d0] sm:$0xff]  ;;  %v733_v34 = vld [vmem:[%s2020_s1 + $0x1d8] sm:$0xff]  ;;  %v1419_v36 = vpack.c.bf16 %v715_v30, %v714_v28  ;;  %v1389_v37 = vpack.c.bf16 %v701_v32, %v700_v31  ;;  %v702_v43 = vld [vmem:[%s2020_s1 + $0xe0] sm:$0xff] }
  0x87   : > { %1414 = vmatprep.subr.bf16.mxu1 %v1413_v16  ;;  %v684_v38 = vld [vmem:[%s2020_s1 + $0x50] sm:$0xff]  ;;  %v685_v39 = vld [vmem:[%s2020_s1 + $0x58] sm:$0xff]  ;;  %v1421_v41 = vpack.c.bf16 %v733_v34, %v732_v33  ;;  %v703_v44 = vld [vmem:[%s2020_s1 + $0xe8] sm:$0xff] }
  0x88   : > { %v716_v40 = vld [vmem:[%s2020_s1 + $0x150] sm:$0xff]  ;;  %v717_v42 = vld [vmem:[%s2020_s1 + $0x158] sm:$0xff]  ;;  %v734_v45 = vld [vmem:[%s2020_s1 + $0x1e0] sm:$0xff]  ;;  %v1391_v47 = vpack.c.bf16 %v685_v39, %v684_v38  ;;  %v1393_v51 = vpack.c.bf16 %v703_v44, %v702_v43 }
  0x89   : > { %1384 = vmatpush3.bf16.msra.mxu0 %v1383_v23  ;;  %v735_v46 = vld [vmem:[%s2020_s1 + $0x1e8] sm:$0xff]  ;;  %v686_v48 = vld [vmem:[%s2020_s1 + $0x60] sm:$0xff]  ;;  %v1423_v50 = vpack.c.bf16 %v717_v42, %v716_v40  ;;  %v657_v54 = vld [vmem:[%s2018_s6 + $0x18] sm:$0xff] }
  0x8a   : > { %1416 = vmatpush3.bf16.msra.mxu1 %v1415_v24  ;;  %1386 = vmatprep.subr.bf16.mxu0 %v1385_v25  ;;  %v687_v49 = vld [vmem:[%s2020_s1 + $0x68] sm:$0xff]  ;;  %v718_v52 = vld [vmem:[%s2020_s1 + $0x160] sm:$0xff]  ;;  %v1425_v55 = vpack.c.bf16 %v735_v46, %v734_v45  ;;  %v704_v57 = vld [vmem:[%s2020_s1 + $0xf0] sm:$0xff] }
  0x8b   : > { %1418 = vmatprep.subr.bf16.mxu1 %v1417_v29  ;;  %v655_v53 = vld [vmem:[%s2018_s6 + $0x8] sm:$0xff]  ;;  %v705_v58 = vld [vmem:[%s2020_s1 + $0xf8] sm:$0xff]  ;;  %v736_v59 = vld [vmem:[%s2020_s1 + $0x1f0] sm:$0xff]  ;;  %903 = vmatprep.mubr.f32.mxu1 %v657_v54  ;;  %v1395_v61 = vpack.c.bf16 %v687_v49, %v686_v48 }
  0x8c   : > { %v719_v56 = vld [vmem:[%s2020_s1 + $0x168] sm:$0xff]  ;;  %818 = vmatprep.mubr.f32.mxu0 %v655_v53  ;;  %v737_v60 = vld [vmem:[%s2020_s1 + $0x1f8] sm:$0xff]  ;;  %v1397_v63 = vpack.c.bf16 %v705_v58, %v704_v57  ;;  %v688_v0 = vld [vmem:[%s2020_s1 + $0x70] sm:$0xff] }
  0x8d   : > { %1388 = vmatpush3.bf16.msra.mxu0 %v1387_v35  ;;  %v1427_v62 = vpack.c.bf16 %v719_v56, %v718_v52  ;;  %v689_v1 = vld [vmem:[%s2020_s1 + $0x78] sm:$0xff]  ;;  %v720_v2 = vld [vmem:[%s2020_s1 + $0x170] sm:$0xff]  ;;  %v1429_v3 = vpack.c.bf16 %v737_v60, %v736_v59  ;;  %v738_v5 = vld [vmem:[%s2020_s1 + $0x200] sm:$0xff] }
  0x8e   : > { %1420 = vmatpush3.bf16.msra.mxu1 %v1419_v36  ;;  %1390 = vmatprep.subr.bf16.mxu0 %v1389_v37  ;;  %v721_v4 = vld [vmem:[%s2020_s1 + $0x178] sm:$0xff]  ;;  %v739_v6 = vld [vmem:[%s2020_s1 + $0x208] sm:$0xff]  ;;  %v1399_v7 = vpack.c.bf16 %v689_v1, %v688_v0  ;;  %v740_v10 = vld [vmem:[%s2020_s1 + $0x210] sm:$0xff] }
  0x8f   : > { %1422 = vmatprep.subr.bf16.mxu1 %v1421_v41  ;;  %v1431_v8 = vpack.c.bf16 %v721_v4, %v720_v2  ;;  %v1433_v9 = vpack.c.bf16 %v739_v6, %v738_v5  ;;  %v741_v11 = vld [vmem:[%s2020_s1 + $0x218] sm:$0xff]  ;;  %v654_v12 = vld [vmem:[%s2018_s6] sm:$0xff]  ;;  %v656_v13 = vld [vmem:[%s2018_s6 + $0x10] sm:$0xff] }
  0x90   : > { %v1437_v14 = vpack.c.bf16 %v741_v11, %v740_v10  ;;  %v742_v15 = vld [vmem:[%s2020_s1 + $0x220] sm:$0xff]  ;;  %v743_v16 = vld [vmem:[%s2020_s1 + $0x228] sm:$0xff]  ;;  %v660_v17 = vld [vmem:[%s2018_s6 + $0x30] sm:$0xff] }
  0x91   : > { %1392 = vmatpush3.bf16.msra.mxu0 %v1391_v47  ;;  %v662_v18 = vld [vmem:[%s2018_s6 + $0x40] sm:$0xff]  ;;  %v659_v19 = vld [vmem:[%s2018_s6 + $0x28] sm:$0xff]  ;;  %v1441_v20 = vpack.c.bf16 %v743_v16, %v742_v15  ;;  %v661_v21 = vld [vmem:[%s2018_s6 + $0x38] sm:$0xff] }
  0x92   : > { %1424 = vmatpush3.bf16.msra.mxu1 %v1423_v50  ;;  %1394 = vmatprep.subr.bf16.mxu0 %v1393_v51  ;;  %v744_v22 = vld [vmem:[%s2020_s1 + $0x230] sm:$0xff]  ;;  %v745_v23 = vld [vmem:[%s2020_s1 + $0x238] sm:$0xff]  ;;  %v667_v25 = vld [vmem:[%s2018_s6 + $0x68] sm:$0xff] }
  0x93   : > { %1426 = vmatprep.subr.bf16.mxu1 %v1425_v55  ;;  %v665_v24 = vld [vmem:[%s2018_s6 + $0x58] sm:$0xff]  ;;  %v664_v26 = vld [vmem:[%s2018_s6 + $0x50] sm:$0xff]  ;;  %v1445_v27 = vpack.c.bf16 %v745_v23, %v744_v22  ;;  %v666_v28 = vld [vmem:[%s2018_s6 + $0x60] sm:$0xff] }
  0x94   : > { %v746_v29 = vld [vmem:[%s2020_s1 + $0x240] sm:$0xff]  ;;  %v747_v30 = vld [vmem:[%s2020_s1 + $0x248] sm:$0xff]  ;;  %v672_v32 = vld [vmem:[%s2018_s6 + $0x90] sm:$0xff] }
  0x95   : > { %1396 = vmatpush3.bf16.msra.mxu0 %v1395_v61  ;;  %v670_v31 = vld [vmem:[%s2018_s6 + $0x80] sm:$0xff]  ;;  %v669_v33 = vld [vmem:[%s2018_s6 + $0x78] sm:$0xff]  ;;  %v1449_v34 = vpack.c.bf16 %v747_v30, %v746_v29  ;;  %v671_v35 = vld [vmem:[%s2018_s6 + $0x88] sm:$0xff] }
  0x96   : > { %1428 = vmatpush3.bf16.msra.mxu1 %v1427_v62  ;;  %1398 = vmatprep.subr.bf16.mxu0 %v1397_v63  ;;  %v748_v36 = vld [vmem:[%s2020_s1 + $0x250] sm:$0xff]  ;;  %v749_v37 = vld [vmem:[%s2020_s1 + $0x258] sm:$0xff]  ;;  %v658_v38 = vld [vmem:[%s2018_s6 + $0x20] sm:$0xff] }
  0x97   : > { %1430 = vmatprep.subr.bf16.mxu1 %v1429_v3  ;;  %v668_v39 = vld [vmem:[%s2018_s6 + $0x70] sm:$0xff]  ;;  %v1453_v40 = vpack.c.bf16 %v749_v37, %v748_v36  ;;  %v750_v41 = vld [vmem:[%s2020_s1 + $0x260] sm:$0xff]  ;;  %v751_v42 = vld [vmem:[%s2020_s1 + $0x268] sm:$0xff] }
  0x98   : > { %v1457_v43 = vpack.c.bf16 %v751_v42, %v750_v41  ;;  %v752_v44 = vld [vmem:[%s2020_s1 + $0x270] sm:$0xff]  ;;  %v753_v45 = vld [vmem:[%s2020_s1 + $0x278] sm:$0xff]  ;;  %v663_v47 = vld [vmem:[%s2018_s6 + $0x48] sm:$0xff] }
  0x99   : > { %1400 = vmatpush3.bf16.msra.mxu0 %v1399_v7  ;;  %v1461_v46 = vpack.c.bf16 %v753_v45, %v752_v44  ;;  %v673_v48 = vld [vmem:[%s2018_s6 + $0x98] sm:$0xff]  ;;  %v652_v22 = vld [vmem:[#allocation2 + $0x10] sm:$0xff]  ;;  %v1216_v30 = vld [vmem:[%s640_s4] ss:$0 sm:$0xff] (!%p1215_p5) }
  0x9a   : > { %1432 = vmatpush3.bf16.msra.mxu1 %v1431_v8  ;;  %1434 = vmatprep.subr.bf16.mxu0 %v1433_v9  ;;  %v653_v16 = vld [vmem:[#allocation2 + $0x18] sm:$0xff] }
  0x9b   : > { %1465 = vmatprep.subr.bf16.mxu1 %v1433_v9 }
  0x9c   : > { %819 = vmatmul.mubr.f32.vlgmr.msra.gmra.mrb[0].mxu0 %v654_v12 }
  0x9d   : > { %904 = vmatmul.mubr.f32.vlgmr.msra.gmra.mrb[0].mxu1 %v656_v13  ;;  %1436 = vmatpush3.bf16.msra.mxu0 %v1433_v9  ;;  %v651_v13 = vld [vmem:[#allocation2 + $0x8] sm:$0xff] }
  0x9e   : > { %1473 = vmatpush3.bf16.msra.mxu1 %v1433_v9  ;;  %1438 = vmatprep.subr.bf16.mxu0 %v1437_v14 }
  0x9f   : > { %1466 = vmatprep.subr.bf16.mxu1 %v1437_v14  ;;  %823 = vmatprep.mubr.f32.mxu0 %v660_v17 }
  0xa0   : > { %908 = vmatprep.mubr.f32.mxu1 %v662_v18  ;;  %824 = vmatmul.mubr.f32.gmra.mrb[2].mxu0 %v659_v19  ;;  %v650_v18 = vld [vmem:[#allocation2] sm:$0xff] }
  0xa1   : > { %1440 = vmatpush3.bf16.msra.mxu0 %v1437_v14  ;;  %909 = vmatmul.mubr.f32.gmra.mrb[2].mxu1 %v661_v21 }
  0xa2   : > { %1474 = vmatpush3.bf16.msra.mxu1 %v1437_v14  ;;  %1442 = vmatprep.subr.bf16.mxu0 %v1441_v20 }
  0xa3   : > { %1467 = vmatprep.subr.bf16.mxu1 %v1441_v20  ;;  %828 = vmatprep.mubr.f32.mxu0 %v665_v24 }
  0xa4   : > { %913 = vmatprep.mubr.f32.mxu1 %v667_v25  ;;  %829 = vmatmul.mubr.f32.gmra.mrb[4].mxu0 %v664_v26 }
  0xa5   : > { %1444 = vmatpush3.bf16.msra.mxu0 %v1441_v20  ;;  %914 = vmatmul.mubr.f32.gmra.mrb[4].mxu1 %v666_v28 }
  0xa6   : > { %1475 = vmatpush3.bf16.msra.mxu1 %v1441_v20  ;;  %1446 = vmatprep.subr.bf16.mxu0 %v1445_v27 }
  0xa7   : > { %1468 = vmatprep.subr.bf16.mxu1 %v1445_v27  ;;  %833 = vmatprep.mubr.f32.mxu0 %v670_v31 }
  0xa8   : > { %918 = vmatprep.mubr.f32.mxu1 %v672_v32  ;;  %834 = vmatmul.mubr.f32.gmra.mrb[6].mxu0 %v669_v33 }
  0xa9   : > { %1448 = vmatpush3.bf16.msra.mxu0 %v1445_v27  ;;  %919 = vmatmul.mubr.f32.gmra.mrb[6].mxu1 %v671_v35 }
  0xaa   : > { %1476 = vmatpush3.bf16.msra.mxu1 %v1445_v27  ;;  %1450 = vmatprep.subr.bf16.mxu0 %v1449_v34 }
  0xab   : > { %1469 = vmatprep.subr.bf16.mxu1 %v1449_v34  ;;  %1363 = vmatprep.mubr.f32.mxu0 %v658_v38 }
  0xac   : > { %1366 = vmatprep.mubr.f32.mxu1 %v668_v39 }
  0xad   : > { %1452 = vmatpush3.bf16.msra.mxu0 %v1449_v34 }
  0xae   : > { %1477 = vmatpush3.bf16.msra.mxu1 %v1449_v34  ;;  %1454 = vmatprep.subr.bf16.mxu0 %v1453_v40 }
  0xaf   : > { %1470 = vmatprep.subr.bf16.mxu1 %v1453_v40 }
  0xb1   : > { %1456 = vmatpush3.bf16.msra.mxu0 %v1453_v40 }
  0xb2   : > { %1478 = vmatpush3.bf16.msra.mxu1 %v1453_v40  ;;  %1458 = vmatprep.subr.bf16.mxu0 %v1457_v43 }
  0xb3   : > { %1471 = vmatprep.subr.bf16.mxu1 %v1457_v43 }
  0xb5   : > { %1460 = vmatpush3.bf16.msra.mxu0 %v1457_v43 }
  0xb6   : > { %1479 = vmatpush3.bf16.msra.mxu1 %v1457_v43  ;;  %1462 = vmatprep.subr.bf16.mxu0 %v1461_v46 }
  0xb7   : > { %1472 = vmatprep.subr.bf16.mxu1 %v1461_v46 }
  0xb9   : > { %1464 = vmatpush3.bf16.msra.mxu0 %v1461_v46 }
  0xba   : > { %1480 = vmatpush3.bf16.msra.mxu1 %v1461_v46 }
  0xbc   : > { %1364 = vmatmul.mubr.f32.vlgmr.msra.gmra.mrb[8].mxu0 %v663_v47 }
  0xbd   : > { %1367 = vmatmul.mubr.f32.vlgmr.msra.gmra.mrb[8].mxu1 %v673_v48 }
 0x16f   : > { %v1255_v49 = vpop.f32.mrb[0].mxu0 }
 0x170   : > { %v1299_v50 = vpop.f32.mrb[0].mxu1  ;;  %v1256_v51 = vpop.f32.mrb[1].mxu0 }
 0x171   : > { %v1257_v52 = vadd.f32 %v1256_v51, %v1255_v49  ;;  %v1300_v53 = vpop.f32.mrb[1].mxu1 }
 0x172   : > { %v1301_v54 = vadd.f32 %v1300_v53, %v1299_v50 }
 0x173   : > { %v1258_v55 = vpop.f32.mrb[2].mxu0 }
 0x174   : > { %v1302_v56 = vpop.f32.mrb[2].mxu1  ;;  %v1259_v57 = vpop.f32.mrb[3].mxu0  ;;  %v906_v58 = vadd.f32 %v1301_v54, %v1257_v52 }
 0x175   : > { %v1260_v59 = vadd.f32 %v1259_v57, %v1258_v55  ;;  %v1303_v60 = vpop.f32.mrb[3].mxu1 }
 0x176   : > { %v1304_v61 = vadd.f32 %v1303_v60, %v1302_v56 }
 0x177   : > { %v1261_v62 = vpop.f32.mrb[4].mxu0 }
 0x178   : > { %v1305_v63 = vpop.f32.mrb[4].mxu1  ;;  %v1262_v0 = vpop.f32.mrb[5].mxu0  ;;  %v911_v1 = vadd.f32 %v1304_v61, %v1260_v59 }
 0x179   : > { %v1263_v2 = vadd.f32 %v1262_v0, %v1261_v62  ;;  %v1306_v3 = vpop.f32.mrb[5].mxu1 }
 0x17a   : > { %v1307_v4 = vadd.f32 %v1306_v3, %v1305_v63 }
 0x17b   : > { %v1264_v5 = vpop.f32.mrb[6].mxu0 }
 0x17c   : > { %v1308_v6 = vpop.f32.mrb[6].mxu1  ;;  %v1265_v7 = vpop.f32.mrb[7].mxu0  ;;  %v916_v8 = vadd.f32 %v1307_v4, %v1263_v2 }
 0x17d   : > { %v1266_v9 = vadd.f32 %v1265_v7, %v1264_v5  ;;  %v1309_v10 = vpop.f32.mrb[7].mxu1 }
 0x17e   : > { %v1310_v11 = vadd.f32 %v1309_v10, %v1308_v6 }
 0x180   : > { %v921_v12 = vadd.f32 %v1310_v11, %v1266_v9 }
 0x18f   : > { %v1365_v14 = vpop.f32.mrb[8].mxu0 }
 0x190   : > { %v996_v15 = vadd.f32 %v1365_v14, %v911_v1  ;;  %v1368_v17 = vpop.f32.mrb[8].mxu1  ;;  %v990_v19 = vpop.f32.mrb[9].mxu0  ;;  %1020 = sbr.rel (%p1215_p5) target bundleno = 419 (0x1a3), region = 101 }
 0x191   : > { %v1006_v20 = vadd.f32 %v1368_v17, %v921_v12  ;;  %v991_v21 = vadd.f32 %v990_v19, %v906_v58  ;;  %v1000_v23 = vpop.f32.mrb[9].mxu1 }
 0x192   : > { %v1010_v24 = vadd.f32 %v996_v15, %v651_v13  ;;  %v1001_v25 = vadd.f32 %v1000_v23, %v916_v8 }
 0x193   : > { %v1012_v26 = vadd.f32 %v1006_v20, %v653_v16  ;;  %v1009_v27 = vadd.f32 %v991_v21, %v650_v18 }
 0x194   : > { %1014 = vst [vmem:[#allocation2 + $0x8] sm:$0xff] %v1010_v24  ;;  %v1011_v28 = vadd.f32 %v1001_v25, %v652_v22 }
 0x195   : > { %1016 = vst [vmem:[#allocation2 + $0x18] sm:$0xff] %v1012_v26  ;;  %1013 = vst [vmem:[#allocation2] sm:$0xff] %v1009_v27 }
 0x196   : > { %1015 = vst [vmem:[#allocation2 + $0x10] sm:$0xff] %v1011_v28 }
 0x19b   : > { %v1022_v31 = vld [vmem:[#allocation2 + $0x8] sm:$0xff] }
 0x19c   : > { %v1021_v29 = vld [vmem:[#allocation2] sm:$0xff]  ;;  %v1033_v33 = vadd.f32 %v1216_v30, %v1022_v31  ;;  %v1024_v35 = vld [vmem:[#allocation2 + $0x18] sm:$0xff] }
 0x19d   : > { %v1032_v32 = vadd.f32 %v1216_v30, %v1021_v29  ;;  %v1023_v34 = vld [vmem:[#allocation2 + $0x10] sm:$0xff]  ;;  %v1035_v37 = vadd.f32 %v1216_v30, %v1024_v35 }
 0x19e   : > { %v1034_v36 = vadd.f32 %v1216_v30, %v1023_v34  ;;  %v1037_v39 = vmax.f32 %v1033_v33, 0.0 }
 0x19f   : > { %v1036_v38 = vmax.f32 %v1032_v32, 0.0  ;;  %v1039_v41 = vmax.f32 %v1035_v37, 0.0 }
 0x1a0   : > { %v1038_v40 = vmax.f32 %v1034_v36, 0.0  ;;  %1041 = vst [vmem:[%s2022_s25 + $0x8] sm:$0xff] %v1037_v39 }
 0x1a1   : > { %1040 = vst [vmem:[%s2022_s25] sm:$0xff] %v1036_v38  ;;  %1043 = vst [vmem:[%s2022_s25 + $0x18] sm:$0xff] %v1039_v41 }
 0x1a2   : > { %1042 = vst [vmem:[%s2022_s25 + $0x10] sm:$0xff] %v1038_v40 }
 0x1a3 PF: > { %1050 = sbr.rel (!%p1777_p12) target bundleno = 427 (0x1ab), region = 105  ;;  %s1218_s14 = sshll.u32 (%p1777_p12), %s1648_s19, 3 }
 0x1a4   : > { %s1055_s5 = scalar_lea.vmem (%p1777_p12), %s2181_s3, %s1218_s14 }
 0x1a7   : > { %v1091_v43 = vld [vmem:[%s2022_s25 + $0x8] sm:$0xff] (%p1777_p12) }
 0x1a8   : > { %v1089_v42 = vld [vmem:[%s2022_s25] sm:$0xff] (%p1777_p12)  ;;  %v1095_v45 = vld [vmem:[%s2022_s25 + $0x18] sm:$0xff] (%p1777_p12)  ;;  %1092 = vst [vmem:[%s1055_s5 + $0x10] sm:$0xff] (%p1777_p12), %v1091_v43 }
 0x1a9   : > { %v1093_v44 = vld [vmem:[%s2022_s25 + $0x10] sm:$0xff] (%p1777_p12)  ;;  %1090 = vst [vmem:[%s1055_s5] sm:$0xff] (%p1777_p12), %v1089_v42  ;;  %1096 = vst [vmem:[%s1055_s5 + $0x30] sm:$0xff] (%p1777_p12), %v1095_v45 }
 0x1aa   : > { %1094 = vst [vmem:[%s1055_s5 + $0x20] sm:$0xff] %v1093_v44 }
 0x1ab PF: > { %s13_s22 = sadd.s32 1, %s1660_s22   ;;  %s2191_s10 = sld [smem:[#allocation6_spill]] }
 0x1ac   : > { %p10_p6 = scmp.ge.s32.totalorder %s13_s22, 6   ;;  %s2192_s12 = smov %s1624_s13 }
 0x1ad   : > { %s2193_s13 = smov %s1775_s9  ;;  %s2194_s14 = smov %s1632_s15 }
 0x1ae   : > { %s2195_s15 = smov %s1772_s8  ;;  %s2196_s16 = smov %s1640_s17 }
 0x1af   : > { %s2197_s17 = smov %s1758_s30  ;;  %s2198_s18 = smov %s1652_s20 }
 0x1b0   : > { %s2199_s19 = smov %s1656_s21  ;;  %s2200_s20 = smov %s2203_s24 }
 0x1b1   : > { %s2201_s21 = smov %s2191_s10  ;;  %12 = sbr.rel (!%p10_p6) target bundleno = 9 (0x9), region = 185 }

// kernel: _lambda_.9
= control target key start
LH: loop header
LB: loop body
LE: loop exit
PB: predicated region body
PF: predicated region fallthrough
CT: control target
= control target key end

     0   :  { %s2059_s12 = smov 0   ;;  %s2061_s13 = smov 0   ;;  %s3027_s0 = inlined_call_operand.vmem [shape: f32[32,1024], index: 0, kind: input, shape index: {}]   ;;  %s3028_s1 = inlined_call_operand.vmem [shape: f32[1024,512], index: 1, kind: input, shape index: {}]   ;;  %s3029_s2 = inlined_call_operand.vmem [shape: f32[1,512], index: 2, kind: input, shape index: {}]   ;;  %s3030_s3 = inlined_call_operand.vmem [shape: f32[32,512], index: 3, kind: output, shape index: {}]  }
   0x1   :  { %s2063_s14 = smov 0   ;;  %s2065_s15 = smov 0  }
   0x2   :  { %s2067_s16 = smov 0  }
   0x3 LB: > { %s28_s17 = sadd.s32 1, %s2033_s15  ;;  %s1660_s18 = sadd.s32 4294967295, %s2037_s16   ;;  %s2037_s16 = sphi %s2067_s16, %s13_s16   ;;  %s2033_s15 = sphi %s2065_s15, %s3035_s15   ;;  %s2029_s14 = sphi %s2063_s14, %s3034_s14   ;;  %s2025_s13 = sphi %s2061_s13, %s3033_s13   ;;  %s2021_s12 = sphi %s2059_s12, %s3032_s12  }
   0x4   : > { %p30_p0 = scmp.ge.s32.totalorder %s28_s17, 2  ;;  %p76_p1 = scmp.ne.s32.totalorder %s2025_s13, %s2021_s12 }
   0x5   : > { %p77_p2 = scmp.eq.s32.totalorder %s2037_s16, 0  ;;  %p134_p4 = scmp.eq.s32.totalorder %s1660_s18, 1 }
   0x6   : > { %s3037_s17 = smov (%p30_p0, %s28_s17), 0  ;;  %s69_s20 = sadd.s32 1, %s2025_s13 }
   0x7   : > { %p78_p3 = por %p77_p2, %p76_p1  ;;  %s65_s19 = ssub.s32 %s2033_s15, %s3037_s17 }
   0x8   : > { %p67_p5 = scmp.eq.s32.totalorder %s65_s19, 0  ;;  %p2094_p6 = por %p134_p4, %p76_p1 }
   0x9   : > { %p1664_p7 = scmp.ge.s32.totalorder %s2037_s16, 2 }
   0xa   : > { %s2099_s22 = scalar_select %p67_p5, %s2025_s13, %s69_s20  }
   0xb   : > { %171 = sbr.rel (%p1664_p7) target bundleno = 150 (0x96), region = 20 }
  0x12   : > { %174 = sbr.rel (!%p78_p3) target bundleno = 150 (0x96), region = 24  ;;  %s176_s23 = sand.u32 (%p78_p3), 1, %s2025_s13  }
  0x13   : > { %s1677_s24 = sshll.u32 (%p78_p3), %s2033_s15, 4  ;;  %s1665_s25 = sshll.u32 (%p78_p3), %s176_s23, 11 }
  0x14   : > { %s2107_s28 = scalar_lea.vmem (%p78_p3), %s3028_s1, %s1677_s24  ;;  %s2112_s29 = scalar_lea.vmem (%p78_p3), [#allocation3], %s1665_s25 }
  0x15   : > { %v197_v0 = vld [vmem:[%s2107_s28] sm:$0xff] (%p78_p3)  ;;  %v199_v1 = vld [vmem:[%s2107_s28 + $0x8] sm:$0xff] (%p78_p3) }
  0x16   : > { %v201_v2 = vld [vmem:[%s2107_s28 + $0x20] sm:$0xff] (%p78_p3)  ;;  %198 = vst [vmem:[%s2112_s29] sm:$0xff] (%p78_p3), %v197_v0  ;;  %200 = vst [vmem:[%s2112_s29 + $0x8] sm:$0xff] (%p78_p3), %v199_v1  ;;  %v203_v3 = vld [vmem:[%s2107_s28 + $0x28] sm:$0xff] (%p78_p3) }
  0x17   : > { %202 = vst [vmem:[%s2112_s29 + $0x10] sm:$0xff] (%p78_p3), %v201_v2  ;;  %v205_v4 = vld [vmem:[%s2107_s28 + $0x40] sm:$0xff] (%p78_p3)  ;;  %v207_v5 = vld [vmem:[%s2107_s28 + $0x48] sm:$0xff] (%p78_p3)  ;;  %204 = vst [vmem:[%s2112_s29 + $0x18] sm:$0xff] (%p78_p3), %v203_v3 }
  0x18   : > { %206 = vst [vmem:[%s2112_s29 + $0x20] sm:$0xff] (%p78_p3), %v205_v4  ;;  %208 = vst [vmem:[%s2112_s29 + $0x28] sm:$0xff] (%p78_p3), %v207_v5  ;;  %v209_v6 = vld [vmem:[%s2107_s28 + $0x60] sm:$0xff] (%p78_p3)  ;;  %v211_v7 = vld [vmem:[%s2107_s28 + $0x68] sm:$0xff] (%p78_p3) }
  0x19   : > { %v213_v8 = vld [vmem:[%s2107_s28 + $0x80] sm:$0xff]  ;;  %210 = vst [vmem:[%s2112_s29 + $0x30] sm:$0xff] %v209_v6  ;;  %212 = vst [vmem:[%s2112_s29 + $0x38] sm:$0xff] %v211_v7  ;;  %v215_v9 = vld [vmem:[%s2107_s28 + $0x88] sm:$0xff] }
  0x1a   : > { %214 = vst [vmem:[%s2112_s29 + $0x40] sm:$0xff] %v213_v8  ;;  %v217_v10 = vld [vmem:[%s2107_s28 + $0xa0] sm:$0xff]  ;;  %v219_v11 = vld [vmem:[%s2107_s28 + $0xa8] sm:$0xff]  ;;  %216 = vst [vmem:[%s2112_s29 + $0x48] sm:$0xff] %v215_v9 }
  0x1b   : > { %218 = vst [vmem:[%s2112_s29 + $0x50] sm:$0xff] %v217_v10  ;;  %220 = vst [vmem:[%s2112_s29 + $0x58] sm:$0xff] %v219_v11  ;;  %v221_v12 = vld [vmem:[%s2107_s28 + $0xc0] sm:$0xff]  ;;  %v223_v13 = vld [vmem:[%s2107_s28 + $0xc8] sm:$0xff] }
  0x1c   : > { %v225_v14 = vld [vmem:[%s2107_s28 + $0xe0] sm:$0xff]  ;;  %222 = vst [vmem:[%s2112_s29 + $0x60] sm:$0xff] %v221_v12  ;;  %224 = vst [vmem:[%s2112_s29 + $0x68] sm:$0xff] %v223_v13  ;;  %v227_v15 = vld [vmem:[%s2107_s28 + $0xe8] sm:$0xff] }
  0x1d   : > { %226 = vst [vmem:[%s2112_s29 + $0x70] sm:$0xff] %v225_v14  ;;  %v229_v16 = vld [vmem:[%s2107_s28 + $0x100] sm:$0xff]  ;;  %v231_v17 = vld [vmem:[%s2107_s28 + $0x108] sm:$0xff]  ;;  %228 = vst [vmem:[%s2112_s29 + $0x78] sm:$0xff] %v227_v15 }
  0x1e   : > { %230 = vst [vmem:[%s2112_s29 + $0x80] sm:$0xff] %v229_v16  ;;  %232 = vst [vmem:[%s2112_s29 + $0x88] sm:$0xff] %v231_v17  ;;  %v233_v18 = vld [vmem:[%s2107_s28 + $0x120] sm:$0xff]  ;;  %v235_v19 = vld [vmem:[%s2107_s28 + $0x128] sm:$0xff] }
  0x1f   : > { %v237_v20 = vld [vmem:[%s2107_s28 + $0x140] sm:$0xff]  ;;  %234 = vst [vmem:[%s2112_s29 + $0x90] sm:$0xff] %v233_v18  ;;  %236 = vst [vmem:[%s2112_s29 + $0x98] sm:$0xff] %v235_v19  ;;  %v239_v21 = vld [vmem:[%s2107_s28 + $0x148] sm:$0xff] }
  0x20   : > { %238 = vst [vmem:[%s2112_s29 + $0xa0] sm:$0xff] %v237_v20  ;;  %v241_v22 = vld [vmem:[%s2107_s28 + $0x160] sm:$0xff]  ;;  %v243_v23 = vld [vmem:[%s2107_s28 + $0x168] sm:$0xff]  ;;  %240 = vst [vmem:[%s2112_s29 + $0xa8] sm:$0xff] %v239_v21 }
  0x21   : > { %242 = vst [vmem:[%s2112_s29 + $0xb0] sm:$0xff] %v241_v22  ;;  %244 = vst [vmem:[%s2112_s29 + $0xb8] sm:$0xff] %v243_v23  ;;  %v245_v24 = vld [vmem:[%s2107_s28 + $0x180] sm:$0xff]  ;;  %v247_v25 = vld [vmem:[%s2107_s28 + $0x188] sm:$0xff] }
  0x22   : > { %v249_v26 = vld [vmem:[%s2107_s28 + $0x1a0] sm:$0xff]  ;;  %246 = vst [vmem:[%s2112_s29 + $0xc0] sm:$0xff] %v245_v24  ;;  %248 = vst [vmem:[%s2112_s29 + $0xc8] sm:$0xff] %v247_v25  ;;  %v251_v27 = vld [vmem:[%s2107_s28 + $0x1a8] sm:$0xff] }
  0x23   : > { %250 = vst [vmem:[%s2112_s29 + $0xd0] sm:$0xff] %v249_v26  ;;  %v253_v28 = vld [vmem:[%s2107_s28 + $0x1c0] sm:$0xff]  ;;  %v255_v29 = vld [vmem:[%s2107_s28 + $0x1c8] sm:$0xff]  ;;  %252 = vst [vmem:[%s2112_s29 + $0xd8] sm:$0xff] %v251_v27 }
  0x24   : > { %254 = vst [vmem:[%s2112_s29 + $0xe0] sm:$0xff] %v253_v28  ;;  %256 = vst [vmem:[%s2112_s29 + $0xe8] sm:$0xff] %v255_v29  ;;  %v257_v30 = vld [vmem:[%s2107_s28 + $0x1e0] sm:$0xff]  ;;  %v259_v31 = vld [vmem:[%s2107_s28 + $0x1e8] sm:$0xff] }
  0x25   : > { %v261_v32 = vld [vmem:[%s2107_s28 + $0x200] sm:$0xff]  ;;  %258 = vst [vmem:[%s2112_s29 + $0xf0] sm:$0xff] %v257_v30  ;;  %260 = vst [vmem:[%s2112_s29 + $0xf8] sm:$0xff] %v259_v31  ;;  %v263_v33 = vld [vmem:[%s2107_s28 + $0x208] sm:$0xff] }
  0x26   : > { %262 = vst [vmem:[%s2112_s29 + $0x100] sm:$0xff] %v261_v32  ;;  %v265_v34 = vld [vmem:[%s2107_s28 + $0x220] sm:$0xff]  ;;  %v267_v35 = vld [vmem:[%s2107_s28 + $0x228] sm:$0xff]  ;;  %264 = vst [vmem:[%s2112_s29 + $0x108] sm:$0xff] %v263_v33 }
  0x27   : > { %266 = vst [vmem:[%s2112_s29 + $0x110] sm:$0xff] %v265_v34  ;;  %268 = vst [vmem:[%s2112_s29 + $0x118] sm:$0xff] %v267_v35  ;;  %v269_v36 = vld [vmem:[%s2107_s28 + $0x240] sm:$0xff]  ;;  %v271_v37 = vld [vmem:[%s2107_s28 + $0x248] sm:$0xff] }
  0x28   : > { %v273_v38 = vld [vmem:[%s2107_s28 + $0x260] sm:$0xff]  ;;  %270 = vst [vmem:[%s2112_s29 + $0x120] sm:$0xff] %v269_v36  ;;  %272 = vst [vmem:[%s2112_s29 + $0x128] sm:$0xff] %v271_v37  ;;  %v275_v39 = vld [vmem:[%s2107_s28 + $0x268] sm:$0xff] }
  0x29   : > { %274 = vst [vmem:[%s2112_s29 + $0x130] sm:$0xff] %v273_v38  ;;  %v277_v40 = vld [vmem:[%s2107_s28 + $0x280] sm:$0xff]  ;;  %v279_v41 = vld [vmem:[%s2107_s28 + $0x288] sm:$0xff]  ;;  %276 = vst [vmem:[%s2112_s29 + $0x138] sm:$0xff] %v275_v39 }
  0x2a   : > { %278 = vst [vmem:[%s2112_s29 + $0x140] sm:$0xff] %v277_v40  ;;  %280 = vst [vmem:[%s2112_s29 + $0x148] sm:$0xff] %v279_v41  ;;  %v281_v42 = vld [vmem:[%s2107_s28 + $0x2a0] sm:$0xff]  ;;  %v283_v43 = vld [vmem:[%s2107_s28 + $0x2a8] sm:$0xff] }
  0x2b   : > { %v285_v44 = vld [vmem:[%s2107_s28 + $0x2c0] sm:$0xff]  ;;  %282 = vst [vmem:[%s2112_s29 + $0x150] sm:$0xff] %v281_v42  ;;  %284 = vst [vmem:[%s2112_s29 + $0x158] sm:$0xff] %v283_v43  ;;  %v287_v45 = vld [vmem:[%s2107_s28 + $0x2c8] sm:$0xff] }
  0x2c   : > { %286 = vst [vmem:[%s2112_s29 + $0x160] sm:$0xff] %v285_v44  ;;  %v289_v46 = vld [vmem:[%s2107_s28 + $0x2e0] sm:$0xff]  ;;  %v291_v47 = vld [vmem:[%s2107_s28 + $0x2e8] sm:$0xff]  ;;  %288 = vst [vmem:[%s2112_s29 + $0x168] sm:$0xff] %v287_v45 }
  0x2d   : > { %290 = vst [vmem:[%s2112_s29 + $0x170] sm:$0xff] %v289_v46  ;;  %292 = vst [vmem:[%s2112_s29 + $0x178] sm:$0xff] %v291_v47  ;;  %v293_v48 = vld [vmem:[%s2107_s28 + $0x300] sm:$0xff]  ;;  %v295_v49 = vld [vmem:[%s2107_s28 + $0x308] sm:$0xff] }
  0x2e   : > { %v297_v50 = vld [vmem:[%s2107_s28 + $0x320] sm:$0xff]  ;;  %294 = vst [vmem:[%s2112_s29 + $0x180] sm:$0xff] %v293_v48  ;;  %296 = vst [vmem:[%s2112_s29 + $0x188] sm:$0xff] %v295_v49  ;;  %v299_v51 = vld [vmem:[%s2107_s28 + $0x328] sm:$0xff] }
  0x2f   : > { %298 = vst [vmem:[%s2112_s29 + $0x190] sm:$0xff] %v297_v50  ;;  %v301_v52 = vld [vmem:[%s2107_s28 + $0x340] sm:$0xff]  ;;  %v303_v53 = vld [vmem:[%s2107_s28 + $0x348] sm:$0xff]  ;;  %300 = vst [vmem:[%s2112_s29 + $0x198] sm:$0xff] %v299_v51 }
  0x30   : > { %302 = vst [vmem:[%s2112_s29 + $0x1a0] sm:$0xff] %v301_v52  ;;  %304 = vst [vmem:[%s2112_s29 + $0x1a8] sm:$0xff] %v303_v53  ;;  %v305_v54 = vld [vmem:[%s2107_s28 + $0x360] sm:$0xff]  ;;  %v307_v55 = vld [vmem:[%s2107_s28 + $0x368] sm:$0xff] }
  0x31   : > { %v309_v56 = vld [vmem:[%s2107_s28 + $0x380] sm:$0xff]  ;;  %306 = vst [vmem:[%s2112_s29 + $0x1b0] sm:$0xff] %v305_v54  ;;  %308 = vst [vmem:[%s2112_s29 + $0x1b8] sm:$0xff] %v307_v55  ;;  %v311_v57 = vld [vmem:[%s2107_s28 + $0x388] sm:$0xff] }
  0x32   : > { %310 = vst [vmem:[%s2112_s29 + $0x1c0] sm:$0xff] %v309_v56  ;;  %v313_v58 = vld [vmem:[%s2107_s28 + $0x3a0] sm:$0xff]  ;;  %v315_v59 = vld [vmem:[%s2107_s28 + $0x3a8] sm:$0xff]  ;;  %312 = vst [vmem:[%s2112_s29 + $0x1c8] sm:$0xff] %v311_v57 }
  0x33   : > { %314 = vst [vmem:[%s2112_s29 + $0x1d0] sm:$0xff] %v313_v58  ;;  %316 = vst [vmem:[%s2112_s29 + $0x1d8] sm:$0xff] %v315_v59  ;;  %v317_v60 = vld [vmem:[%s2107_s28 + $0x3c0] sm:$0xff]  ;;  %v319_v61 = vld [vmem:[%s2107_s28 + $0x3c8] sm:$0xff] }
  0x34   : > { %v321_v62 = vld [vmem:[%s2107_s28 + $0x3e0] sm:$0xff]  ;;  %318 = vst [vmem:[%s2112_s29 + $0x1e0] sm:$0xff] %v317_v60  ;;  %320 = vst [vmem:[%s2112_s29 + $0x1e8] sm:$0xff] %v319_v61  ;;  %v323_v63 = vld [vmem:[%s2107_s28 + $0x3e8] sm:$0xff] }
  0x35   : > { %322 = vst [vmem:[%s2112_s29 + $0x1f0] sm:$0xff] %v321_v62  ;;  %v325_v0 = vld [vmem:[%s2107_s28 + $0x400] sm:$0xff]  ;;  %v327_v1 = vld [vmem:[%s2107_s28 + $0x408] sm:$0xff]  ;;  %324 = vst [vmem:[%s2112_s29 + $0x1f8] sm:$0xff] %v323_v63 }
  0x36   : > { %326 = vst [vmem:[%s2112_s29 + $0x200] sm:$0xff] %v325_v0  ;;  %328 = vst [vmem:[%s2112_s29 + $0x208] sm:$0xff] %v327_v1  ;;  %v329_v2 = vld [vmem:[%s2107_s28 + $0x420] sm:$0xff]  ;;  %v331_v3 = vld [vmem:[%s2107_s28 + $0x428] sm:$0xff] }
  0x37   : > { %v333_v4 = vld [vmem:[%s2107_s28 + $0x440] sm:$0xff]  ;;  %330 = vst [vmem:[%s2112_s29 + $0x210] sm:$0xff] %v329_v2  ;;  %332 = vst [vmem:[%s2112_s29 + $0x218] sm:$0xff] %v331_v3  ;;  %v335_v5 = vld [vmem:[%s2107_s28 + $0x448] sm:$0xff] }
  0x38   : > { %334 = vst [vmem:[%s2112_s29 + $0x220] sm:$0xff] %v333_v4  ;;  %v337_v6 = vld [vmem:[%s2107_s28 + $0x460] sm:$0xff]  ;;  %v339_v7 = vld [vmem:[%s2107_s28 + $0x468] sm:$0xff]  ;;  %336 = vst [vmem:[%s2112_s29 + $0x228] sm:$0xff] %v335_v5 }
  0x39   : > { %338 = vst [vmem:[%s2112_s29 + $0x230] sm:$0xff] %v337_v6  ;;  %340 = vst [vmem:[%s2112_s29 + $0x238] sm:$0xff] %v339_v7  ;;  %v341_v8 = vld [vmem:[%s2107_s28 + $0x480] sm:$0xff]  ;;  %v343_v9 = vld [vmem:[%s2107_s28 + $0x488] sm:$0xff] }
  0x3a   : > { %v345_v10 = vld [vmem:[%s2107_s28 + $0x4a0] sm:$0xff]  ;;  %342 = vst [vmem:[%s2112_s29 + $0x240] sm:$0xff] %v341_v8  ;;  %344 = vst [vmem:[%s2112_s29 + $0x248] sm:$0xff] %v343_v9  ;;  %v347_v11 = vld [vmem:[%s2107_s28 + $0x4a8] sm:$0xff] }
  0x3b   : > { %346 = vst [vmem:[%s2112_s29 + $0x250] sm:$0xff] %v345_v10  ;;  %v349_v12 = vld [vmem:[%s2107_s28 + $0x4c0] sm:$0xff]  ;;  %v351_v13 = vld [vmem:[%s2107_s28 + $0x4c8] sm:$0xff]  ;;  %348 = vst [vmem:[%s2112_s29 + $0x258] sm:$0xff] %v347_v11 }
  0x3c   : > { %350 = vst [vmem:[%s2112_s29 + $0x260] sm:$0xff] %v349_v12  ;;  %352 = vst [vmem:[%s2112_s29 + $0x268] sm:$0xff] %v351_v13  ;;  %v353_v14 = vld [vmem:[%s2107_s28 + $0x4e0] sm:$0xff]  ;;  %v355_v15 = vld [vmem:[%s2107_s28 + $0x4e8] sm:$0xff] }
  0x3d   : > { %v357_v16 = vld [vmem:[%s2107_s28 + $0x500] sm:$0xff]  ;;  %354 = vst [vmem:[%s2112_s29 + $0x270] sm:$0xff] %v353_v14  ;;  %356 = vst [vmem:[%s2112_s29 + $0x278] sm:$0xff] %v355_v15  ;;  %v359_v17 = vld [vmem:[%s2107_s28 + $0x508] sm:$0xff] }
  0x3e   : > { %358 = vst [vmem:[%s2112_s29 + $0x280] sm:$0xff] %v357_v16  ;;  %v361_v18 = vld [vmem:[%s2107_s28 + $0x520] sm:$0xff]  ;;  %v363_v19 = vld [vmem:[%s2107_s28 + $0x528] sm:$0xff]  ;;  %360 = vst [vmem:[%s2112_s29 + $0x288] sm:$0xff] %v359_v17 }
  0x3f   : > { %362 = vst [vmem:[%s2112_s29 + $0x290] sm:$0xff] %v361_v18  ;;  %364 = vst [vmem:[%s2112_s29 + $0x298] sm:$0xff] %v363_v19  ;;  %v365_v20 = vld [vmem:[%s2107_s28 + $0x540] sm:$0xff]  ;;  %v367_v21 = vld [vmem:[%s2107_s28 + $0x548] sm:$0xff] }
  0x40   : > { %v369_v22 = vld [vmem:[%s2107_s28 + $0x560] sm:$0xff]  ;;  %366 = vst [vmem:[%s2112_s29 + $0x2a0] sm:$0xff] %v365_v20  ;;  %368 = vst [vmem:[%s2112_s29 + $0x2a8] sm:$0xff] %v367_v21  ;;  %v371_v23 = vld [vmem:[%s2107_s28 + $0x568] sm:$0xff] }
  0x41   : > { %370 = vst [vmem:[%s2112_s29 + $0x2b0] sm:$0xff] %v369_v22  ;;  %v373_v24 = vld [vmem:[%s2107_s28 + $0x580] sm:$0xff]  ;;  %v375_v25 = vld [vmem:[%s2107_s28 + $0x588] sm:$0xff]  ;;  %372 = vst [vmem:[%s2112_s29 + $0x2b8] sm:$0xff] %v371_v23 }
  0x42   : > { %374 = vst [vmem:[%s2112_s29 + $0x2c0] sm:$0xff] %v373_v24  ;;  %376 = vst [vmem:[%s2112_s29 + $0x2c8] sm:$0xff] %v375_v25  ;;  %v377_v26 = vld [vmem:[%s2107_s28 + $0x5a0] sm:$0xff]  ;;  %v379_v27 = vld [vmem:[%s2107_s28 + $0x5a8] sm:$0xff] }
  0x43   : > { %v381_v28 = vld [vmem:[%s2107_s28 + $0x5c0] sm:$0xff]  ;;  %378 = vst [vmem:[%s2112_s29 + $0x2d0] sm:$0xff] %v377_v26  ;;  %380 = vst [vmem:[%s2112_s29 + $0x2d8] sm:$0xff] %v379_v27  ;;  %v383_v29 = vld [vmem:[%s2107_s28 + $0x5c8] sm:$0xff] }
  0x44   : > { %382 = vst [vmem:[%s2112_s29 + $0x2e0] sm:$0xff] %v381_v28  ;;  %v385_v30 = vld [vmem:[%s2107_s28 + $0x5e0] sm:$0xff]  ;;  %v387_v31 = vld [vmem:[%s2107_s28 + $0x5e8] sm:$0xff]  ;;  %384 = vst [vmem:[%s2112_s29 + $0x2e8] sm:$0xff] %v383_v29 }
  0x45   : > { %386 = vst [vmem:[%s2112_s29 + $0x2f0] sm:$0xff] %v385_v30  ;;  %388 = vst [vmem:[%s2112_s29 + $0x2f8] sm:$0xff] %v387_v31  ;;  %v389_v32 = vld [vmem:[%s2107_s28 + $0x600] sm:$0xff]  ;;  %v391_v33 = vld [vmem:[%s2107_s28 + $0x608] sm:$0xff] }
  0x46   : > { %v393_v34 = vld [vmem:[%s2107_s28 + $0x620] sm:$0xff]  ;;  %390 = vst [vmem:[%s2112_s29 + $0x300] sm:$0xff] %v389_v32  ;;  %392 = vst [vmem:[%s2112_s29 + $0x308] sm:$0xff] %v391_v33  ;;  %v395_v35 = vld [vmem:[%s2107_s28 + $0x628] sm:$0xff] }
  0x47   : > { %394 = vst [vmem:[%s2112_s29 + $0x310] sm:$0xff] %v393_v34  ;;  %v397_v36 = vld [vmem:[%s2107_s28 + $0x640] sm:$0xff]  ;;  %v399_v37 = vld [vmem:[%s2107_s28 + $0x648] sm:$0xff]  ;;  %396 = vst [vmem:[%s2112_s29 + $0x318] sm:$0xff] %v395_v35 }
  0x48   : > { %398 = vst [vmem:[%s2112_s29 + $0x320] sm:$0xff] %v397_v36  ;;  %400 = vst [vmem:[%s2112_s29 + $0x328] sm:$0xff] %v399_v37  ;;  %v401_v38 = vld [vmem:[%s2107_s28 + $0x660] sm:$0xff]  ;;  %v403_v39 = vld [vmem:[%s2107_s28 + $0x668] sm:$0xff] }
  0x49   : > { %v405_v40 = vld [vmem:[%s2107_s28 + $0x680] sm:$0xff]  ;;  %402 = vst [vmem:[%s2112_s29 + $0x330] sm:$0xff] %v401_v38  ;;  %404 = vst [vmem:[%s2112_s29 + $0x338] sm:$0xff] %v403_v39  ;;  %v407_v41 = vld [vmem:[%s2107_s28 + $0x688] sm:$0xff] }
  0x4a   : > { %406 = vst [vmem:[%s2112_s29 + $0x340] sm:$0xff] %v405_v40  ;;  %v409_v42 = vld [vmem:[%s2107_s28 + $0x6a0] sm:$0xff]  ;;  %v411_v43 = vld [vmem:[%s2107_s28 + $0x6a8] sm:$0xff]  ;;  %408 = vst [vmem:[%s2112_s29 + $0x348] sm:$0xff] %v407_v41 }
  0x4b   : > { %410 = vst [vmem:[%s2112_s29 + $0x350] sm:$0xff] %v409_v42  ;;  %412 = vst [vmem:[%s2112_s29 + $0x358] sm:$0xff] %v411_v43  ;;  %v413_v44 = vld [vmem:[%s2107_s28 + $0x6c0] sm:$0xff]  ;;  %v415_v45 = vld [vmem:[%s2107_s28 + $0x6c8] sm:$0xff] }
  0x4c   : > { %v417_v46 = vld [vmem:[%s2107_s28 + $0x6e0] sm:$0xff]  ;;  %414 = vst [vmem:[%s2112_s29 + $0x360] sm:$0xff] %v413_v44  ;;  %416 = vst [vmem:[%s2112_s29 + $0x368] sm:$0xff] %v415_v45  ;;  %v419_v47 = vld [vmem:[%s2107_s28 + $0x6e8] sm:$0xff] }
  0x4d   : > { %418 = vst [vmem:[%s2112_s29 + $0x370] sm:$0xff] %v417_v46  ;;  %v421_v48 = vld [vmem:[%s2107_s28 + $0x700] sm:$0xff]  ;;  %v423_v49 = vld [vmem:[%s2107_s28 + $0x708] sm:$0xff]  ;;  %420 = vst [vmem:[%s2112_s29 + $0x378] sm:$0xff] %v419_v47 }
  0x4e   : > { %422 = vst [vmem:[%s2112_s29 + $0x380] sm:$0xff] %v421_v48  ;;  %424 = vst [vmem:[%s2112_s29 + $0x388] sm:$0xff] %v423_v49  ;;  %v425_v50 = vld [vmem:[%s2107_s28 + $0x720] sm:$0xff]  ;;  %v427_v51 = vld [vmem:[%s2107_s28 + $0x728] sm:$0xff] }
  0x4f   : > { %v429_v52 = vld [vmem:[%s2107_s28 + $0x740] sm:$0xff]  ;;  %426 = vst [vmem:[%s2112_s29 + $0x390] sm:$0xff] %v425_v50  ;;  %428 = vst [vmem:[%s2112_s29 + $0x398] sm:$0xff] %v427_v51  ;;  %v431_v53 = vld [vmem:[%s2107_s28 + $0x748] sm:$0xff] }
  0x50   : > { %430 = vst [vmem:[%s2112_s29 + $0x3a0] sm:$0xff] %v429_v52  ;;  %v433_v54 = vld [vmem:[%s2107_s28 + $0x760] sm:$0xff]  ;;  %v435_v55 = vld [vmem:[%s2107_s28 + $0x768] sm:$0xff]  ;;  %432 = vst [vmem:[%s2112_s29 + $0x3a8] sm:$0xff] %v431_v53 }
  0x51   : > { %434 = vst [vmem:[%s2112_s29 + $0x3b0] sm:$0xff] %v433_v54  ;;  %436 = vst [vmem:[%s2112_s29 + $0x3b8] sm:$0xff] %v435_v55  ;;  %v437_v56 = vld [vmem:[%s2107_s28 + $0x780] sm:$0xff]  ;;  %v439_v57 = vld [vmem:[%s2107_s28 + $0x788] sm:$0xff] }
  0x52   : > { %v441_v58 = vld [vmem:[%s2107_s28 + $0x7a0] sm:$0xff]  ;;  %438 = vst [vmem:[%s2112_s29 + $0x3c0] sm:$0xff] %v437_v56  ;;  %440 = vst [vmem:[%s2112_s29 + $0x3c8] sm:$0xff] %v439_v57  ;;  %v443_v59 = vld [vmem:[%s2107_s28 + $0x7a8] sm:$0xff] }
  0x53   : > { %442 = vst [vmem:[%s2112_s29 + $0x3d0] sm:$0xff] %v441_v58  ;;  %v445_v60 = vld [vmem:[%s2107_s28 + $0x7c0] sm:$0xff]  ;;  %v447_v61 = vld [vmem:[%s2107_s28 + $0x7c8] sm:$0xff]  ;;  %444 = vst [vmem:[%s2112_s29 + $0x3d8] sm:$0xff] %v443_v59 }
  0x54   : > { %446 = vst [vmem:[%s2112_s29 + $0x3e0] sm:$0xff] %v445_v60  ;;  %448 = vst [vmem:[%s2112_s29 + $0x3e8] sm:$0xff] %v447_v61  ;;  %v449_v62 = vld [vmem:[%s2107_s28 + $0x7e0] sm:$0xff]  ;;  %v451_v63 = vld [vmem:[%s2107_s28 + $0x7e8] sm:$0xff] }
  0x55   : > { %v453_v0 = vld [vmem:[%s2107_s28 + $0x800] sm:$0xff]  ;;  %450 = vst [vmem:[%s2112_s29 + $0x3f0] sm:$0xff] %v449_v62  ;;  %452 = vst [vmem:[%s2112_s29 + $0x3f8] sm:$0xff] %v451_v63  ;;  %v455_v1 = vld [vmem:[%s2107_s28 + $0x808] sm:$0xff] }
  0x56   : > { %454 = vst [vmem:[%s2112_s29 + $0x400] sm:$0xff] %v453_v0  ;;  %v457_v2 = vld [vmem:[%s2107_s28 + $0x820] sm:$0xff]  ;;  %v459_v3 = vld [vmem:[%s2107_s28 + $0x828] sm:$0xff]  ;;  %456 = vst [vmem:[%s2112_s29 + $0x408] sm:$0xff] %v455_v1 }
  0x57   : > { %458 = vst [vmem:[%s2112_s29 + $0x410] sm:$0xff] %v457_v2  ;;  %460 = vst [vmem:[%s2112_s29 + $0x418] sm:$0xff] %v459_v3  ;;  %v461_v4 = vld [vmem:[%s2107_s28 + $0x840] sm:$0xff]  ;;  %v463_v5 = vld [vmem:[%s2107_s28 + $0x848] sm:$0xff] }
  0x58   : > { %v465_v6 = vld [vmem:[%s2107_s28 + $0x860] sm:$0xff]  ;;  %462 = vst [vmem:[%s2112_s29 + $0x420] sm:$0xff] %v461_v4  ;;  %464 = vst [vmem:[%s2112_s29 + $0x428] sm:$0xff] %v463_v5  ;;  %v467_v7 = vld [vmem:[%s2107_s28 + $0x868] sm:$0xff] }
  0x59   : > { %466 = vst [vmem:[%s2112_s29 + $0x430] sm:$0xff] %v465_v6  ;;  %v469_v8 = vld [vmem:[%s2107_s28 + $0x880] sm:$0xff]  ;;  %v471_v9 = vld [vmem:[%s2107_s28 + $0x888] sm:$0xff]  ;;  %468 = vst [vmem:[%s2112_s29 + $0x438] sm:$0xff] %v467_v7 }
  0x5a   : > { %470 = vst [vmem:[%s2112_s29 + $0x440] sm:$0xff] %v469_v8  ;;  %472 = vst [vmem:[%s2112_s29 + $0x448] sm:$0xff] %v471_v9  ;;  %v473_v10 = vld [vmem:[%s2107_s28 + $0x8a0] sm:$0xff]  ;;  %v475_v11 = vld [vmem:[%s2107_s28 + $0x8a8] sm:$0xff] }
  0x5b   : > { %v477_v12 = vld [vmem:[%s2107_s28 + $0x8c0] sm:$0xff]  ;;  %474 = vst [vmem:[%s2112_s29 + $0x450] sm:$0xff] %v473_v10  ;;  %476 = vst [vmem:[%s2112_s29 + $0x458] sm:$0xff] %v475_v11  ;;  %v479_v13 = vld [vmem:[%s2107_s28 + $0x8c8] sm:$0xff] }
  0x5c   : > { %478 = vst [vmem:[%s2112_s29 + $0x460] sm:$0xff] %v477_v12  ;;  %v481_v14 = vld [vmem:[%s2107_s28 + $0x8e0] sm:$0xff]  ;;  %v483_v15 = vld [vmem:[%s2107_s28 + $0x8e8] sm:$0xff]  ;;  %480 = vst [vmem:[%s2112_s29 + $0x468] sm:$0xff] %v479_v13 }
  0x5d   : > { %482 = vst [vmem:[%s2112_s29 + $0x470] sm:$0xff] %v481_v14  ;;  %484 = vst [vmem:[%s2112_s29 + $0x478] sm:$0xff] %v483_v15  ;;  %v485_v16 = vld [vmem:[%s2107_s28 + $0x900] sm:$0xff]  ;;  %v487_v17 = vld [vmem:[%s2107_s28 + $0x908] sm:$0xff] }
  0x5e   : > { %v489_v18 = vld [vmem:[%s2107_s28 + $0x920] sm:$0xff]  ;;  %486 = vst [vmem:[%s2112_s29 + $0x480] sm:$0xff] %v485_v16  ;;  %488 = vst [vmem:[%s2112_s29 + $0x488] sm:$0xff] %v487_v17  ;;  %v491_v19 = vld [vmem:[%s2107_s28 + $0x928] sm:$0xff] }
  0x5f   : > { %490 = vst [vmem:[%s2112_s29 + $0x490] sm:$0xff] %v489_v18  ;;  %v493_v20 = vld [vmem:[%s2107_s28 + $0x940] sm:$0xff]  ;;  %v495_v21 = vld [vmem:[%s2107_s28 + $0x948] sm:$0xff]  ;;  %492 = vst [vmem:[%s2112_s29 + $0x498] sm:$0xff] %v491_v19 }
  0x60   : > { %494 = vst [vmem:[%s2112_s29 + $0x4a0] sm:$0xff] %v493_v20  ;;  %496 = vst [vmem:[%s2112_s29 + $0x4a8] sm:$0xff] %v495_v21  ;;  %v497_v22 = vld [vmem:[%s2107_s28 + $0x960] sm:$0xff]  ;;  %v499_v23 = vld [vmem:[%s2107_s28 + $0x968] sm:$0xff] }
  0x61   : > { %v501_v24 = vld [vmem:[%s2107_s28 + $0x980] sm:$0xff]  ;;  %498 = vst [vmem:[%s2112_s29 + $0x4b0] sm:$0xff] %v497_v22  ;;  %500 = vst [vmem:[%s2112_s29 + $0x4b8] sm:$0xff] %v499_v23  ;;  %v503_v25 = vld [vmem:[%s2107_s28 + $0x988] sm:$0xff] }
  0x62   : > { %502 = vst [vmem:[%s2112_s29 + $0x4c0] sm:$0xff] %v501_v24  ;;  %v505_v26 = vld [vmem:[%s2107_s28 + $0x9a0] sm:$0xff]  ;;  %v507_v27 = vld [vmem:[%s2107_s28 + $0x9a8] sm:$0xff]  ;;  %504 = vst [vmem:[%s2112_s29 + $0x4c8] sm:$0xff] %v503_v25 }
  0x63   : > { %506 = vst [vmem:[%s2112_s29 + $0x4d0] sm:$0xff] %v505_v26  ;;  %508 = vst [vmem:[%s2112_s29 + $0x4d8] sm:$0xff] %v507_v27  ;;  %v509_v28 = vld [vmem:[%s2107_s28 + $0x9c0] sm:$0xff]  ;;  %v511_v29 = vld [vmem:[%s2107_s28 + $0x9c8] sm:$0xff] }
  0x64   : > { %v513_v30 = vld [vmem:[%s2107_s28 + $0x9e0] sm:$0xff]  ;;  %510 = vst [vmem:[%s2112_s29 + $0x4e0] sm:$0xff] %v509_v28  ;;  %512 = vst [vmem:[%s2112_s29 + $0x4e8] sm:$0xff] %v511_v29  ;;  %v515_v31 = vld [vmem:[%s2107_s28 + $0x9e8] sm:$0xff] }
  0x65   : > { %514 = vst [vmem:[%s2112_s29 + $0x4f0] sm:$0xff] %v513_v30  ;;  %v517_v32 = vld [vmem:[%s2107_s28 + $0xa00] sm:$0xff]  ;;  %v519_v33 = vld [vmem:[%s2107_s28 + $0xa08] sm:$0xff]  ;;  %516 = vst [vmem:[%s2112_s29 + $0x4f8] sm:$0xff] %v515_v31 }
  0x66   : > { %518 = vst [vmem:[%s2112_s29 + $0x500] sm:$0xff] %v517_v32  ;;  %520 = vst [vmem:[%s2112_s29 + $0x508] sm:$0xff] %v519_v33  ;;  %v521_v34 = vld [vmem:[%s2107_s28 + $0xa20] sm:$0xff]  ;;  %v523_v35 = vld [vmem:[%s2107_s28 + $0xa28] sm:$0xff] }
  0x67   : > { %v525_v36 = vld [vmem:[%s2107_s28 + $0xa40] sm:$0xff]  ;;  %522 = vst [vmem:[%s2112_s29 + $0x510] sm:$0xff] %v521_v34  ;;  %524 = vst [vmem:[%s2112_s29 + $0x518] sm:$0xff] %v523_v35  ;;  %v527_v37 = vld [vmem:[%s2107_s28 + $0xa48] sm:$0xff] }
  0x68   : > { %526 = vst [vmem:[%s2112_s29 + $0x520] sm:$0xff] %v525_v36  ;;  %v529_v38 = vld [vmem:[%s2107_s28 + $0xa60] sm:$0xff]  ;;  %v531_v39 = vld [vmem:[%s2107_s28 + $0xa68] sm:$0xff]  ;;  %528 = vst [vmem:[%s2112_s29 + $0x528] sm:$0xff] %v527_v37 }
  0x69   : > { %530 = vst [vmem:[%s2112_s29 + $0x530] sm:$0xff] %v529_v38  ;;  %532 = vst [vmem:[%s2112_s29 + $0x538] sm:$0xff] %v531_v39  ;;  %v533_v40 = vld [vmem:[%s2107_s28 + $0xa80] sm:$0xff]  ;;  %v535_v41 = vld [vmem:[%s2107_s28 + $0xa88] sm:$0xff] }
  0x6a   : > { %v537_v42 = vld [vmem:[%s2107_s28 + $0xaa0] sm:$0xff]  ;;  %534 = vst [vmem:[%s2112_s29 + $0x540] sm:$0xff] %v533_v40  ;;  %536 = vst [vmem:[%s2112_s29 + $0x548] sm:$0xff] %v535_v41  ;;  %v539_v43 = vld [vmem:[%s2107_s28 + $0xaa8] sm:$0xff] }
  0x6b   : > { %538 = vst [vmem:[%s2112_s29 + $0x550] sm:$0xff] %v537_v42  ;;  %v541_v44 = vld [vmem:[%s2107_s28 + $0xac0] sm:$0xff]  ;;  %v543_v45 = vld [vmem:[%s2107_s28 + $0xac8] sm:$0xff]  ;;  %540 = vst [vmem:[%s2112_s29 + $0x558] sm:$0xff] %v539_v43 }
  0x6c   : > { %542 = vst [vmem:[%s2112_s29 + $0x560] sm:$0xff] %v541_v44  ;;  %544 = vst [vmem:[%s2112_s29 + $0x568] sm:$0xff] %v543_v45  ;;  %v545_v46 = vld [vmem:[%s2107_s28 + $0xae0] sm:$0xff]  ;;  %v547_v47 = vld [vmem:[%s2107_s28 + $0xae8] sm:$0xff] }
  0x6d   : > { %v549_v48 = vld [vmem:[%s2107_s28 + $0xb00] sm:$0xff]  ;;  %546 = vst [vmem:[%s2112_s29 + $0x570] sm:$0xff] %v545_v46  ;;  %548 = vst [vmem:[%s2112_s29 + $0x578] sm:$0xff] %v547_v47  ;;  %v551_v49 = vld [vmem:[%s2107_s28 + $0xb08] sm:$0xff] }
  0x6e   : > { %550 = vst [vmem:[%s2112_s29 + $0x580] sm:$0xff] %v549_v48  ;;  %v553_v50 = vld [vmem:[%s2107_s28 + $0xb20] sm:$0xff]  ;;  %v555_v51 = vld [vmem:[%s2107_s28 + $0xb28] sm:$0xff]  ;;  %552 = vst [vmem:[%s2112_s29 + $0x588] sm:$0xff] %v551_v49 }
  0x6f   : > { %554 = vst [vmem:[%s2112_s29 + $0x590] sm:$0xff] %v553_v50  ;;  %556 = vst [vmem:[%s2112_s29 + $0x598] sm:$0xff] %v555_v51  ;;  %v557_v52 = vld [vmem:[%s2107_s28 + $0xb40] sm:$0xff]  ;;  %v559_v53 = vld [vmem:[%s2107_s28 + $0xb48] sm:$0xff] }
  0x70   : > { %v561_v54 = vld [vmem:[%s2107_s28 + $0xb60] sm:$0xff]  ;;  %558 = vst [vmem:[%s2112_s29 + $0x5a0] sm:$0xff] %v557_v52  ;;  %560 = vst [vmem:[%s2112_s29 + $0x5a8] sm:$0xff] %v559_v53  ;;  %v563_v55 = vld [vmem:[%s2107_s28 + $0xb68] sm:$0xff] }
  0x71   : > { %562 = vst [vmem:[%s2112_s29 + $0x5b0] sm:$0xff] %v561_v54  ;;  %v565_v56 = vld [vmem:[%s2107_s28 + $0xb80] sm:$0xff]  ;;  %v567_v57 = vld [vmem:[%s2107_s28 + $0xb88] sm:$0xff]  ;;  %564 = vst [vmem:[%s2112_s29 + $0x5b8] sm:$0xff] %v563_v55 }
  0x72   : > { %566 = vst [vmem:[%s2112_s29 + $0x5c0] sm:$0xff] %v565_v56  ;;  %568 = vst [vmem:[%s2112_s29 + $0x5c8] sm:$0xff] %v567_v57  ;;  %v569_v58 = vld [vmem:[%s2107_s28 + $0xba0] sm:$0xff]  ;;  %v571_v59 = vld [vmem:[%s2107_s28 + $0xba8] sm:$0xff] }
  0x73   : > { %v573_v60 = vld [vmem:[%s2107_s28 + $0xbc0] sm:$0xff]  ;;  %570 = vst [vmem:[%s2112_s29 + $0x5d0] sm:$0xff] %v569_v58  ;;  %572 = vst [vmem:[%s2112_s29 + $0x5d8] sm:$0xff] %v571_v59  ;;  %v575_v61 = vld [vmem:[%s2107_s28 + $0xbc8] sm:$0xff] }
  0x74   : > { %574 = vst [vmem:[%s2112_s29 + $0x5e0] sm:$0xff] %v573_v60  ;;  %v577_v62 = vld [vmem:[%s2107_s28 + $0xbe0] sm:$0xff]  ;;  %v579_v63 = vld [vmem:[%s2107_s28 + $0xbe8] sm:$0xff]  ;;  %576 = vst [vmem:[%s2112_s29 + $0x5e8] sm:$0xff] %v575_v61 }
  0x75   : > { %578 = vst [vmem:[%s2112_s29 + $0x5f0] sm:$0xff] %v577_v62  ;;  %580 = vst [vmem:[%s2112_s29 + $0x5f8] sm:$0xff] %v579_v63  ;;  %v581_v0 = vld [vmem:[%s2107_s28 + $0xc00] sm:$0xff]  ;;  %v583_v1 = vld [vmem:[%s2107_s28 + $0xc08] sm:$0xff] }
  0x76   : > { %v585_v2 = vld [vmem:[%s2107_s28 + $0xc20] sm:$0xff]  ;;  %582 = vst [vmem:[%s2112_s29 + $0x600] sm:$0xff] %v581_v0  ;;  %584 = vst [vmem:[%s2112_s29 + $0x608] sm:$0xff] %v583_v1  ;;  %v587_v3 = vld [vmem:[%s2107_s28 + $0xc28] sm:$0xff] }
  0x77   : > { %586 = vst [vmem:[%s2112_s29 + $0x610] sm:$0xff] %v585_v2  ;;  %v589_v4 = vld [vmem:[%s2107_s28 + $0xc40] sm:$0xff]  ;;  %v591_v5 = vld [vmem:[%s2107_s28 + $0xc48] sm:$0xff]  ;;  %588 = vst [vmem:[%s2112_s29 + $0x618] sm:$0xff] %v587_v3 }
  0x78   : > { %590 = vst [vmem:[%s2112_s29 + $0x620] sm:$0xff] %v589_v4  ;;  %592 = vst [vmem:[%s2112_s29 + $0x628] sm:$0xff] %v591_v5  ;;  %v593_v6 = vld [vmem:[%s2107_s28 + $0xc60] sm:$0xff]  ;;  %v595_v7 = vld [vmem:[%s2107_s28 + $0xc68] sm:$0xff] }
  0x79   : > { %v597_v8 = vld [vmem:[%s2107_s28 + $0xc80] sm:$0xff]  ;;  %594 = vst [vmem:[%s2112_s29 + $0x630] sm:$0xff] %v593_v6  ;;  %596 = vst [vmem:[%s2112_s29 + $0x638] sm:$0xff] %v595_v7  ;;  %v599_v9 = vld [vmem:[%s2107_s28 + $0xc88] sm:$0xff] }
  0x7a   : > { %598 = vst [vmem:[%s2112_s29 + $0x640] sm:$0xff] %v597_v8  ;;  %v601_v10 = vld [vmem:[%s2107_s28 + $0xca0] sm:$0xff]  ;;  %v603_v11 = vld [vmem:[%s2107_s28 + $0xca8] sm:$0xff]  ;;  %600 = vst [vmem:[%s2112_s29 + $0x648] sm:$0xff] %v599_v9 }
  0x7b   : > { %602 = vst [vmem:[%s2112_s29 + $0x650] sm:$0xff] %v601_v10  ;;  %604 = vst [vmem:[%s2112_s29 + $0x658] sm:$0xff] %v603_v11  ;;  %v605_v12 = vld [vmem:[%s2107_s28 + $0xcc0] sm:$0xff]  ;;  %v607_v13 = vld [vmem:[%s2107_s28 + $0xcc8] sm:$0xff] }
  0x7c   : > { %v609_v14 = vld [vmem:[%s2107_s28 + $0xce0] sm:$0xff]  ;;  %606 = vst [vmem:[%s2112_s29 + $0x660] sm:$0xff] %v605_v12  ;;  %608 = vst [vmem:[%s2112_s29 + $0x668] sm:$0xff] %v607_v13  ;;  %v611_v15 = vld [vmem:[%s2107_s28 + $0xce8] sm:$0xff] }
  0x7d   : > { %610 = vst [vmem:[%s2112_s29 + $0x670] sm:$0xff] %v609_v14  ;;  %v613_v16 = vld [vmem:[%s2107_s28 + $0xd00] sm:$0xff]  ;;  %v615_v17 = vld [vmem:[%s2107_s28 + $0xd08] sm:$0xff]  ;;  %612 = vst [vmem:[%s2112_s29 + $0x678] sm:$0xff] %v611_v15 }
  0x7e   : > { %614 = vst [vmem:[%s2112_s29 + $0x680] sm:$0xff] %v613_v16  ;;  %616 = vst [vmem:[%s2112_s29 + $0x688] sm:$0xff] %v615_v17  ;;  %v617_v18 = vld [vmem:[%s2107_s28 + $0xd20] sm:$0xff]  ;;  %v619_v19 = vld [vmem:[%s2107_s28 + $0xd28] sm:$0xff] }
  0x7f   : > { %v621_v20 = vld [vmem:[%s2107_s28 + $0xd40] sm:$0xff]  ;;  %618 = vst [vmem:[%s2112_s29 + $0x690] sm:$0xff] %v617_v18  ;;  %620 = vst [vmem:[%s2112_s29 + $0x698] sm:$0xff] %v619_v19  ;;  %v623_v21 = vld [vmem:[%s2107_s28 + $0xd48] sm:$0xff] }
  0x80   : > { %622 = vst [vmem:[%s2112_s29 + $0x6a0] sm:$0xff] %v621_v20  ;;  %v625_v22 = vld [vmem:[%s2107_s28 + $0xd60] sm:$0xff]  ;;  %v627_v23 = vld [vmem:[%s2107_s28 + $0xd68] sm:$0xff]  ;;  %624 = vst [vmem:[%s2112_s29 + $0x6a8] sm:$0xff] %v623_v21 }
  0x81   : > { %626 = vst [vmem:[%s2112_s29 + $0x6b0] sm:$0xff] %v625_v22  ;;  %628 = vst [vmem:[%s2112_s29 + $0x6b8] sm:$0xff] %v627_v23  ;;  %v629_v24 = vld [vmem:[%s2107_s28 + $0xd80] sm:$0xff]  ;;  %v631_v25 = vld [vmem:[%s2107_s28 + $0xd88] sm:$0xff] }
  0x82   : > { %v633_v26 = vld [vmem:[%s2107_s28 + $0xda0] sm:$0xff]  ;;  %630 = vst [vmem:[%s2112_s29 + $0x6c0] sm:$0xff] %v629_v24  ;;  %632 = vst [vmem:[%s2112_s29 + $0x6c8] sm:$0xff] %v631_v25  ;;  %v635_v27 = vld [vmem:[%s2107_s28 + $0xda8] sm:$0xff] }
  0x83   : > { %634 = vst [vmem:[%s2112_s29 + $0x6d0] sm:$0xff] %v633_v26  ;;  %v637_v28 = vld [vmem:[%s2107_s28 + $0xdc0] sm:$0xff]  ;;  %v639_v29 = vld [vmem:[%s2107_s28 + $0xdc8] sm:$0xff]  ;;  %636 = vst [vmem:[%s2112_s29 + $0x6d8] sm:$0xff] %v635_v27 }
  0x84   : > { %638 = vst [vmem:[%s2112_s29 + $0x6e0] sm:$0xff] %v637_v28  ;;  %640 = vst [vmem:[%s2112_s29 + $0x6e8] sm:$0xff] %v639_v29  ;;  %v641_v30 = vld [vmem:[%s2107_s28 + $0xde0] sm:$0xff]  ;;  %v643_v31 = vld [vmem:[%s2107_s28 + $0xde8] sm:$0xff] }
  0x85   : > { %v645_v32 = vld [vmem:[%s2107_s28 + $0xe00] sm:$0xff]  ;;  %642 = vst [vmem:[%s2112_s29 + $0x6f0] sm:$0xff] %v641_v30  ;;  %644 = vst [vmem:[%s2112_s29 + $0x6f8] sm:$0xff] %v643_v31  ;;  %v647_v33 = vld [vmem:[%s2107_s28 + $0xe08] sm:$0xff] }
  0x86   : > { %646 = vst [vmem:[%s2112_s29 + $0x700] sm:$0xff] %v645_v32  ;;  %v649_v34 = vld [vmem:[%s2107_s28 + $0xe20] sm:$0xff]  ;;  %v651_v35 = vld [vmem:[%s2107_s28 + $0xe28] sm:$0xff]  ;;  %648 = vst [vmem:[%s2112_s29 + $0x708] sm:$0xff] %v647_v33 }
  0x87   : > { %650 = vst [vmem:[%s2112_s29 + $0x710] sm:$0xff] %v649_v34  ;;  %652 = vst [vmem:[%s2112_s29 + $0x718] sm:$0xff] %v651_v35  ;;  %v653_v36 = vld [vmem:[%s2107_s28 + $0xe40] sm:$0xff]  ;;  %v655_v37 = vld [vmem:[%s2107_s28 + $0xe48] sm:$0xff] }
  0x88   : > { %v657_v38 = vld [vmem:[%s2107_s28 + $0xe60] sm:$0xff]  ;;  %654 = vst [vmem:[%s2112_s29 + $0x720] sm:$0xff] %v653_v36  ;;  %656 = vst [vmem:[%s2112_s29 + $0x728] sm:$0xff] %v655_v37  ;;  %v659_v39 = vld [vmem:[%s2107_s28 + $0xe68] sm:$0xff] }
  0x89   : > { %658 = vst [vmem:[%s2112_s29 + $0x730] sm:$0xff] %v657_v38  ;;  %v661_v40 = vld [vmem:[%s2107_s28 + $0xe80] sm:$0xff]  ;;  %v663_v41 = vld [vmem:[%s2107_s28 + $0xe88] sm:$0xff]  ;;  %660 = vst [vmem:[%s2112_s29 + $0x738] sm:$0xff] %v659_v39 }
  0x8a   : > { %662 = vst [vmem:[%s2112_s29 + $0x740] sm:$0xff] %v661_v40  ;;  %664 = vst [vmem:[%s2112_s29 + $0x748] sm:$0xff] %v663_v41  ;;  %v665_v42 = vld [vmem:[%s2107_s28 + $0xea0] sm:$0xff]  ;;  %v667_v43 = vld [vmem:[%s2107_s28 + $0xea8] sm:$0xff] }
  0x8b   : > { %v669_v44 = vld [vmem:[%s2107_s28 + $0xec0] sm:$0xff]  ;;  %666 = vst [vmem:[%s2112_s29 + $0x750] sm:$0xff] %v665_v42  ;;  %668 = vst [vmem:[%s2112_s29 + $0x758] sm:$0xff] %v667_v43  ;;  %v671_v45 = vld [vmem:[%s2107_s28 + $0xec8] sm:$0xff] }
  0x8c   : > { %670 = vst [vmem:[%s2112_s29 + $0x760] sm:$0xff] %v669_v44  ;;  %v673_v46 = vld [vmem:[%s2107_s28 + $0xee0] sm:$0xff]  ;;  %v675_v47 = vld [vmem:[%s2107_s28 + $0xee8] sm:$0xff]  ;;  %672 = vst [vmem:[%s2112_s29 + $0x768] sm:$0xff] %v671_v45 }
  0x8d   : > { %674 = vst [vmem:[%s2112_s29 + $0x770] sm:$0xff] %v673_v46  ;;  %676 = vst [vmem:[%s2112_s29 + $0x778] sm:$0xff] %v675_v47  ;;  %v677_v48 = vld [vmem:[%s2107_s28 + $0xf00] sm:$0xff]  ;;  %v679_v49 = vld [vmem:[%s2107_s28 + $0xf08] sm:$0xff] }
  0x8e   : > { %v681_v50 = vld [vmem:[%s2107_s28 + $0xf20] sm:$0xff]  ;;  %678 = vst [vmem:[%s2112_s29 + $0x780] sm:$0xff] %v677_v48  ;;  %680 = vst [vmem:[%s2112_s29 + $0x788] sm:$0xff] %v679_v49  ;;  %v683_v51 = vld [vmem:[%s2107_s28 + $0xf28] sm:$0xff] }
  0x8f   : > { %682 = vst [vmem:[%s2112_s29 + $0x790] sm:$0xff] %v681_v50  ;;  %v685_v52 = vld [vmem:[%s2107_s28 + $0xf40] sm:$0xff]  ;;  %v687_v53 = vld [vmem:[%s2107_s28 + $0xf48] sm:$0xff]  ;;  %684 = vst [vmem:[%s2112_s29 + $0x798] sm:$0xff] %v683_v51 }
  0x90   : > { %686 = vst [vmem:[%s2112_s29 + $0x7a0] sm:$0xff] %v685_v52  ;;  %688 = vst [vmem:[%s2112_s29 + $0x7a8] sm:$0xff] %v687_v53  ;;  %v689_v54 = vld [vmem:[%s2107_s28 + $0xf60] sm:$0xff]  ;;  %v691_v55 = vld [vmem:[%s2107_s28 + $0xf68] sm:$0xff] }
  0x91   : > { %v693_v56 = vld [vmem:[%s2107_s28 + $0xf80] sm:$0xff]  ;;  %690 = vst [vmem:[%s2112_s29 + $0x7b0] sm:$0xff] %v689_v54  ;;  %692 = vst [vmem:[%s2112_s29 + $0x7b8] sm:$0xff] %v691_v55  ;;  %v695_v57 = vld [vmem:[%s2107_s28 + $0xf88] sm:$0xff] }
  0x92   : > { %694 = vst [vmem:[%s2112_s29 + $0x7c0] sm:$0xff] %v693_v56  ;;  %v697_v58 = vld [vmem:[%s2107_s28 + $0xfa0] sm:$0xff]  ;;  %v699_v59 = vld [vmem:[%s2107_s28 + $0xfa8] sm:$0xff]  ;;  %696 = vst [vmem:[%s2112_s29 + $0x7c8] sm:$0xff] %v695_v57 }
  0x93   : > { %698 = vst [vmem:[%s2112_s29 + $0x7d0] sm:$0xff] %v697_v58  ;;  %700 = vst [vmem:[%s2112_s29 + $0x7d8] sm:$0xff] %v699_v59  ;;  %v701_v60 = vld [vmem:[%s2107_s28 + $0xfc0] sm:$0xff]  ;;  %v703_v61 = vld [vmem:[%s2107_s28 + $0xfc8] sm:$0xff] }
  0x94   : > { %v705_v62 = vld [vmem:[%s2107_s28 + $0xfe0] sm:$0xff]  ;;  %702 = vst [vmem:[%s2112_s29 + $0x7e0] sm:$0xff] %v701_v60  ;;  %704 = vst [vmem:[%s2112_s29 + $0x7e8] sm:$0xff] %v703_v61  ;;  %v707_v63 = vld [vmem:[%s2107_s28 + $0xfe8] sm:$0xff] }
  0x95   : > { %706 = vst [vmem:[%s2112_s29 + $0x7f0] sm:$0xff] %v705_v62  ;;  %708 = vst [vmem:[%s2112_s29 + $0x7f8] sm:$0xff] %v707_v63 }
  0x96 PF: > { %p1668_p8 = scmp.ge.s32.totalorder %s2037_s16, 1  ;;  %p721_p9 = scmp.lt.s32.totalorder %s2037_s16, 3 }
  0x98   : > { %p722_p10 = pnand %p1668_p8, %p721_p9 }
  0x99   : > { %s728_s30 = sand.u32 (!%p722_p10), 1, %s2021_s12   ;;  %v806_v0 = vld [vmem:[%s3027_s0 + $0x8] sm:$0xff] (!%p722_p10)  ;;  %s1671_s25 = sshll.u32 (!%p722_p10), %s2029_s14, 1 }
  0x9a   : > { %725 = sbr.rel (%p722_p10) target bundleno = 528 (0x210), region = 51  ;;  %v810_v1 = vld [vmem:[%s3027_s0 + $0x28] sm:$0xff] (!%p722_p10)  ;;  %s1669_s8 = sshll.u32 (!%p722_p10), %s728_s30, 11  ;;  %1157 = vmatprep.mubr.f32.mxu1 (!%p722_p10), %v806_v0 }
  0x9b   : > { %1335 = vmatprep.mubr.f32.mxu0 (!%p722_p10), %v810_v1  ;;  %s2634_s9 = scalar_lea.vmem (!%p722_p10), [#allocation3], %s1669_s8  ;;  %p779_p11 = scmp.lt.s32.totalorder (!%p722_p10), %s1671_s25, 3 }
  0x9c   : > { %v838_v2 = vld [vmem:[%s2634_s9 + $0x8] sm:$0xff] (!%p722_p10)  ;;  %v840_v3 = vld [vmem:[%s2634_s9 + $0x18] sm:$0xff] (!%p722_p10)  ;;  %v837_v7 = vld [vmem:[%s2634_s9] sm:$0xff] (!%p722_p10)  ;;  %s1670_s29 = sshll.u32 (!%p722_p10), %s728_s30, 6 }
  0x9d   : > { %v966_v4 = vld [vmem:[%s2634_s9 + $0x408] sm:$0xff] (!%p722_p10)  ;;  %v1679_v5 = vpack.c.bf16 (!%p722_p10), %v840_v3, %v838_v2  ;;  %v968_v6 = vld [vmem:[%s2634_s9 + $0x418] sm:$0xff] (!%p722_p10)  ;;  %v839_v8 = vld [vmem:[%s2634_s9 + $0x10] sm:$0xff] (!%p722_p10)  ;;  %s2988_s4 = scalar_lea.vmem (!%p722_p10), [#allocation4], %s1670_s29 }
  0x9e   : > { %v1807_v9 = vpack.c.bf16 (!%p722_p10), %v968_v6, %v966_v4  ;;  %v1681_v10 = vpack.c.bf16 (!%p722_p10), %v839_v8, %v837_v7  ;;  %v965_v11 = vld [vmem:[%s2634_s9 + $0x400] sm:$0xff] (!%p722_p10)  ;;  %v967_v12 = vld [vmem:[%s2634_s9 + $0x410] sm:$0xff] (!%p722_p10)  ;;  %v842_v13 = vld [vmem:[%s2634_s9 + $0x28] sm:$0xff] (!%p722_p10) }
  0x9f   : > { %1680 = vmatprep.subr.bf16.mxu1 (!%p722_p10), %v1679_v5  ;;  %v1809_v14 = vpack.c.bf16 (!%p722_p10), %v967_v12, %v965_v11  ;;  %v844_v15 = vld [vmem:[%s2634_s9 + $0x38] sm:$0xff] (!%p722_p10)  ;;  %v970_v16 = vld [vmem:[%s2634_s9 + $0x428] sm:$0xff] (!%p722_p10)  ;;  %v841_v20 = vld [vmem:[%s2634_s9 + $0x20] sm:$0xff] (!%p722_p10) }
  0xa0   : > { %v972_v17 = vld [vmem:[%s2634_s9 + $0x438] sm:$0xff] (!%p722_p10)  ;;  %1808 = vmatprep.subr.bf16.mxu0 (!%p722_p10), %v1807_v9  ;;  %1682 = vmatpush1.bf16.msra.mxu1 (!%p722_p10), %v1681_v10  ;;  %v1683_v18 = vpack.c.bf16 (!%p722_p10), %v844_v15, %v842_v13  ;;  %v843_v21 = vld [vmem:[%s2634_s9 + $0x30] sm:$0xff] (!%p722_p10)  ;;  %v969_v22 = vld [vmem:[%s2634_s9 + $0x420] sm:$0xff] (!%p722_p10) }
  0xa1   : > { %v1811_v19 = vpack.c.bf16 %v972_v17, %v970_v16  ;;  %1810 = vmatpush1.bf16.msra.mxu0 %v1809_v14  ;;  %v1685_v23 = vpack.c.bf16 %v843_v21, %v841_v20  ;;  %v971_v24 = vld [vmem:[%s2634_s9 + $0x430] sm:$0xff]  ;;  %v846_v25 = vld [vmem:[%s2634_s9 + $0x48] sm:$0xff]  ;;  %v848_v26 = vld [vmem:[%s2634_s9 + $0x58] sm:$0xff]  ;;  %s3039_s25 = smov (!%p779_p11, %s1671_s25), 3  ;;  %s1678_s12 = sshll.u32 (%p2094_p6), %s2029_s14, 4 }
  0xa2   : > { %1684 = vmatprep.subr.bf16.mxu1 %v1683_v18  ;;  %v1813_v27 = vpack.c.bf16 %v971_v24, %v969_v22  ;;  %v1687_v28 = vpack.c.bf16 %v848_v26, %v846_v25  ;;  %v974_v29 = vld [vmem:[%s2634_s9 + $0x448] sm:$0xff]  ;;  %v976_v30 = vld [vmem:[%s2634_s9 + $0x458] sm:$0xff]  ;;  %v845_v31 = vld [vmem:[%s2634_s9 + $0x40] sm:$0xff]  ;;  %s781_s28 = scalar_lea.vmem %s3029_s2, %s3039_s25  ;;  %s1524_s6 = scalar_lea.vmem (%p2094_p6), %s3030_s3, %s1678_s12 }
  0xa3   : > { %1812 = vmatprep.subr.bf16.mxu0 %v1811_v19  ;;  %v1815_v32 = vpack.c.bf16 %v976_v30, %v974_v29  ;;  %v847_v33 = vld [vmem:[%s2634_s9 + $0x50] sm:$0xff]  ;;  %v973_v34 = vld [vmem:[%s2634_s9 + $0x440] sm:$0xff]  ;;  %v850_v37 = vld [vmem:[%s2634_s9 + $0x68] sm:$0xff] }
  0xa4   : > { %v975_v35 = vld [vmem:[%s2634_s9 + $0x450] sm:$0xff]  ;;  %1686 = vmatpush1.bf16.msra.mxu1 %v1685_v23  ;;  %v1689_v36 = vpack.c.bf16 %v847_v33, %v845_v31  ;;  %v852_v38 = vld [vmem:[%s2634_s9 + $0x78] sm:$0xff]  ;;  %v978_v39 = vld [vmem:[%s2634_s9 + $0x468] sm:$0xff] }
  0xa5   : > { %1814 = vmatpush1.bf16.msra.mxu0 %v1813_v27  ;;  %1688 = vmatprep.subr.bf16.mxu1 %v1687_v28  ;;  %v1817_v40 = vpack.c.bf16 %v975_v35, %v973_v34  ;;  %v1691_v41 = vpack.c.bf16 %v852_v38, %v850_v37  ;;  %v980_v42 = vld [vmem:[%s2634_s9 + $0x478] sm:$0xff]  ;;  %v849_v43 = vld [vmem:[%s2634_s9 + $0x60] sm:$0xff]  ;;  %v851_v44 = vld [vmem:[%s2634_s9 + $0x70] sm:$0xff] }
  0xa6   : > { %1816 = vmatprep.subr.bf16.mxu0 %v1815_v32  ;;  %v1819_v45 = vpack.c.bf16 %v980_v42, %v978_v39  ;;  %v977_v46 = vld [vmem:[%s2634_s9 + $0x460] sm:$0xff]  ;;  %v979_v47 = vld [vmem:[%s2634_s9 + $0x470] sm:$0xff]  ;;  %v854_v48 = vld [vmem:[%s2634_s9 + $0x88] sm:$0xff]  ;;  %v1693_v52 = vpack.c.bf16 %v851_v44, %v849_v43 }
  0xa7   : > { %v856_v49 = vld [vmem:[%s2634_s9 + $0x98] sm:$0xff]  ;;  %v982_v50 = vld [vmem:[%s2634_s9 + $0x488] sm:$0xff]  ;;  %v1821_v53 = vpack.c.bf16 %v979_v47, %v977_v46  ;;  %v853_v55 = vld [vmem:[%s2634_s9 + $0x80] sm:$0xff] }
  0xa8   : > { %v984_v51 = vld [vmem:[%s2634_s9 + $0x498] sm:$0xff]  ;;  %1690 = vmatpush1.bf16.msra.mxu1 %v1689_v36  ;;  %v1695_v54 = vpack.c.bf16 %v856_v49, %v854_v48  ;;  %v855_v56 = vld [vmem:[%s2634_s9 + $0x90] sm:$0xff]  ;;  %v981_v57 = vld [vmem:[%s2634_s9 + $0x480] sm:$0xff] }
  0xa9   : > { %1818 = vmatpush1.bf16.msra.mxu0 %v1817_v40  ;;  %1692 = vmatprep.subr.bf16.mxu1 %v1691_v41  ;;  %v1823_v58 = vpack.c.bf16 %v984_v51, %v982_v50  ;;  %v983_v59 = vld [vmem:[%s2634_s9 + $0x490] sm:$0xff]  ;;  %v858_v60 = vld [vmem:[%s2634_s9 + $0xa8] sm:$0xff]  ;;  %v860_v61 = vld [vmem:[%s2634_s9 + $0xb8] sm:$0xff]  ;;  %v1697_v0 = vpack.c.bf16 %v855_v56, %v853_v55 }
  0xaa   : > { %1820 = vmatprep.subr.bf16.mxu0 %v1819_v45  ;;  %v986_v62 = vld [vmem:[%s2634_s9 + $0x4a8] sm:$0xff]  ;;  %v988_v63 = vld [vmem:[%s2634_s9 + $0x4b8] sm:$0xff]  ;;  %v1825_v1 = vpack.c.bf16 %v983_v59, %v981_v57  ;;  %v1699_v2 = vpack.c.bf16 %v860_v61, %v858_v60  ;;  %v857_v3 = vld [vmem:[%s2634_s9 + $0xa0] sm:$0xff] }
  0xab   : > { %v859_v4 = vld [vmem:[%s2634_s9 + $0xb0] sm:$0xff]  ;;  %v985_v5 = vld [vmem:[%s2634_s9 + $0x4a0] sm:$0xff]  ;;  %v1827_v6 = vpack.c.bf16 %v988_v63, %v986_v62  ;;  %v862_v8 = vld [vmem:[%s2634_s9 + $0xc8] sm:$0xff] }
  0xac   : > { %1694 = vmatpush1.bf16.msra.mxu1 %v1693_v52  ;;  %v987_v7 = vld [vmem:[%s2634_s9 + $0x4b0] sm:$0xff]  ;;  %v864_v9 = vld [vmem:[%s2634_s9 + $0xd8] sm:$0xff]  ;;  %v990_v10 = vld [vmem:[%s2634_s9 + $0x4c8] sm:$0xff]  ;;  %v1701_v12 = vpack.c.bf16 %v859_v4, %v857_v3 }
  0xad   : > { %1822 = vmatpush1.bf16.msra.mxu0 %v1821_v53  ;;  %1696 = vmatprep.subr.bf16.mxu1 %v1695_v54  ;;  %v992_v11 = vld [vmem:[%s2634_s9 + $0x4d8] sm:$0xff]  ;;  %v1829_v13 = vpack.c.bf16 %v987_v7, %v985_v5  ;;  %v1703_v14 = vpack.c.bf16 %v864_v9, %v862_v8  ;;  %v861_v15 = vld [vmem:[%s2634_s9 + $0xc0] sm:$0xff]  ;;  %v863_v16 = vld [vmem:[%s2634_s9 + $0xd0] sm:$0xff] }
  0xae   : > { %1824 = vmatprep.subr.bf16.mxu0 %v1823_v58  ;;  %v989_v17 = vld [vmem:[%s2634_s9 + $0x4c0] sm:$0xff]  ;;  %v1831_v18 = vpack.c.bf16 %v992_v11, %v990_v10  ;;  %v991_v19 = vld [vmem:[%s2634_s9 + $0x4d0] sm:$0xff]  ;;  %v866_v20 = vld [vmem:[%s2634_s9 + $0xe8] sm:$0xff]  ;;  %v1705_v24 = vpack.c.bf16 %v863_v16, %v861_v15 }
  0xaf   : > { %v868_v21 = vld [vmem:[%s2634_s9 + $0xf8] sm:$0xff]  ;;  %v994_v22 = vld [vmem:[%s2634_s9 + $0x4e8] sm:$0xff]  ;;  %v1833_v25 = vpack.c.bf16 %v991_v19, %v989_v17  ;;  %v865_v27 = vld [vmem:[%s2634_s9 + $0xe0] sm:$0xff] }
  0xb0   : > { %1698 = vmatpush1.bf16.msra.mxu1 %v1697_v0  ;;  %v996_v23 = vld [vmem:[%s2634_s9 + $0x4f8] sm:$0xff]  ;;  %v1707_v26 = vpack.c.bf16 %v868_v21, %v866_v20  ;;  %v867_v28 = vld [vmem:[%s2634_s9 + $0xf0] sm:$0xff]  ;;  %v993_v29 = vld [vmem:[%s2634_s9 + $0x4e0] sm:$0xff] }
  0xb1   : > { %1826 = vmatpush1.bf16.msra.mxu0 %v1825_v1  ;;  %1700 = vmatprep.subr.bf16.mxu1 %v1699_v2  ;;  %v1835_v30 = vpack.c.bf16 %v996_v23, %v994_v22  ;;  %v995_v31 = vld [vmem:[%s2634_s9 + $0x4f0] sm:$0xff]  ;;  %v870_v32 = vld [vmem:[%s2634_s9 + $0x108] sm:$0xff]  ;;  %v872_v33 = vld [vmem:[%s2634_s9 + $0x118] sm:$0xff]  ;;  %v1709_v36 = vpack.c.bf16 %v867_v28, %v865_v27 }
  0xb2   : > { %1828 = vmatprep.subr.bf16.mxu0 %v1827_v6  ;;  %v998_v34 = vld [vmem:[%s2634_s9 + $0x508] sm:$0xff]  ;;  %v1000_v35 = vld [vmem:[%s2634_s9 + $0x518] sm:$0xff]  ;;  %v1837_v37 = vpack.c.bf16 %v995_v31, %v993_v29  ;;  %v1711_v38 = vpack.c.bf16 %v872_v33, %v870_v32  ;;  %v869_v39 = vld [vmem:[%s2634_s9 + $0x100] sm:$0xff] }
  0xb3   : > { %v871_v40 = vld [vmem:[%s2634_s9 + $0x110] sm:$0xff]  ;;  %v997_v41 = vld [vmem:[%s2634_s9 + $0x500] sm:$0xff]  ;;  %v1839_v42 = vpack.c.bf16 %v1000_v35, %v998_v34  ;;  %v874_v44 = vld [vmem:[%s2634_s9 + $0x128] sm:$0xff] }
  0xb4   : > { %1702 = vmatpush1.bf16.msra.mxu1 %v1701_v12  ;;  %v999_v43 = vld [vmem:[%s2634_s9 + $0x510] sm:$0xff]  ;;  %v876_v45 = vld [vmem:[%s2634_s9 + $0x138] sm:$0xff]  ;;  %v1002_v46 = vld [vmem:[%s2634_s9 + $0x528] sm:$0xff]  ;;  %v1713_v48 = vpack.c.bf16 %v871_v40, %v869_v39 }
  0xb5   : > { %1830 = vmatpush1.bf16.msra.mxu0 %v1829_v13  ;;  %1704 = vmatprep.subr.bf16.mxu1 %v1703_v14  ;;  %v1004_v47 = vld [vmem:[%s2634_s9 + $0x538] sm:$0xff]  ;;  %v1841_v49 = vpack.c.bf16 %v999_v43, %v997_v41  ;;  %v1715_v50 = vpack.c.bf16 %v876_v45, %v874_v44  ;;  %v873_v51 = vld [vmem:[%s2634_s9 + $0x120] sm:$0xff]  ;;  %v875_v52 = vld [vmem:[%s2634_s9 + $0x130] sm:$0xff] }
  0xb6   : > { %1832 = vmatprep.subr.bf16.mxu0 %v1831_v18  ;;  %v1001_v53 = vld [vmem:[%s2634_s9 + $0x520] sm:$0xff]  ;;  %v1843_v54 = vpack.c.bf16 %v1004_v47, %v1002_v46  ;;  %v1003_v55 = vld [vmem:[%s2634_s9 + $0x530] sm:$0xff]  ;;  %v878_v56 = vld [vmem:[%s2634_s9 + $0x148] sm:$0xff]  ;;  %v1717_v60 = vpack.c.bf16 %v875_v52, %v873_v51 }
  0xb7   : > { %v880_v57 = vld [vmem:[%s2634_s9 + $0x158] sm:$0xff]  ;;  %v1006_v58 = vld [vmem:[%s2634_s9 + $0x548] sm:$0xff]  ;;  %v1845_v61 = vpack.c.bf16 %v1003_v55, %v1001_v53  ;;  %v877_v63 = vld [vmem:[%s2634_s9 + $0x140] sm:$0xff] }
  0xb8   : > { %1706 = vmatpush1.bf16.msra.mxu1 %v1705_v24  ;;  %v1008_v59 = vld [vmem:[%s2634_s9 + $0x558] sm:$0xff]  ;;  %v1719_v62 = vpack.c.bf16 %v880_v57, %v878_v56  ;;  %v879_v0 = vld [vmem:[%s2634_s9 + $0x150] sm:$0xff]  ;;  %v1005_v1 = vld [vmem:[%s2634_s9 + $0x540] sm:$0xff] }
  0xb9   : > { %1834 = vmatpush1.bf16.msra.mxu0 %v1833_v25  ;;  %1708 = vmatprep.subr.bf16.mxu1 %v1707_v26  ;;  %v1847_v2 = vpack.c.bf16 %v1008_v59, %v1006_v58  ;;  %v1007_v3 = vld [vmem:[%s2634_s9 + $0x550] sm:$0xff]  ;;  %v882_v4 = vld [vmem:[%s2634_s9 + $0x168] sm:$0xff]  ;;  %v884_v5 = vld [vmem:[%s2634_s9 + $0x178] sm:$0xff]  ;;  %v1721_v8 = vpack.c.bf16 %v879_v0, %v877_v63 }
  0xba   : > { %1836 = vmatprep.subr.bf16.mxu0 %v1835_v30  ;;  %v1010_v6 = vld [vmem:[%s2634_s9 + $0x568] sm:$0xff]  ;;  %v1012_v7 = vld [vmem:[%s2634_s9 + $0x578] sm:$0xff]  ;;  %v1849_v9 = vpack.c.bf16 %v1007_v3, %v1005_v1  ;;  %v1723_v10 = vpack.c.bf16 %v884_v5, %v882_v4  ;;  %v881_v11 = vld [vmem:[%s2634_s9 + $0x160] sm:$0xff] }
  0xbb   : > { %v883_v12 = vld [vmem:[%s2634_s9 + $0x170] sm:$0xff]  ;;  %v1009_v13 = vld [vmem:[%s2634_s9 + $0x560] sm:$0xff]  ;;  %v1851_v14 = vpack.c.bf16 %v1012_v7, %v1010_v6  ;;  %v886_v16 = vld [vmem:[%s2634_s9 + $0x188] sm:$0xff] }
  0xbc   : > { %1710 = vmatpush1.bf16.msra.mxu1 %v1709_v36  ;;  %v1011_v15 = vld [vmem:[%s2634_s9 + $0x570] sm:$0xff]  ;;  %v888_v17 = vld [vmem:[%s2634_s9 + $0x198] sm:$0xff]  ;;  %v1014_v18 = vld [vmem:[%s2634_s9 + $0x588] sm:$0xff]  ;;  %v1725_v20 = vpack.c.bf16 %v883_v12, %v881_v11 }
  0xbd   : > { %1838 = vmatpush1.bf16.msra.mxu0 %v1837_v37  ;;  %1712 = vmatprep.subr.bf16.mxu1 %v1711_v38  ;;  %v1016_v19 = vld [vmem:[%s2634_s9 + $0x598] sm:$0xff]  ;;  %v1853_v21 = vpack.c.bf16 %v1011_v15, %v1009_v13  ;;  %v1727_v22 = vpack.c.bf16 %v888_v17, %v886_v16  ;;  %v885_v23 = vld [vmem:[%s2634_s9 + $0x180] sm:$0xff]  ;;  %v887_v24 = vld [vmem:[%s2634_s9 + $0x190] sm:$0xff] }
  0xbe   : > { %1840 = vmatprep.subr.bf16.mxu0 %v1839_v42  ;;  %v1013_v25 = vld [vmem:[%s2634_s9 + $0x580] sm:$0xff]  ;;  %v1855_v26 = vpack.c.bf16 %v1016_v19, %v1014_v18  ;;  %v1015_v27 = vld [vmem:[%s2634_s9 + $0x590] sm:$0xff]  ;;  %v890_v28 = vld [vmem:[%s2634_s9 + $0x1a8] sm:$0xff]  ;;  %v1729_v32 = vpack.c.bf16 %v887_v24, %v885_v23 }
  0xbf   : > { %v892_v29 = vld [vmem:[%s2634_s9 + $0x1b8] sm:$0xff]  ;;  %v1018_v30 = vld [vmem:[%s2634_s9 + $0x5a8] sm:$0xff]  ;;  %v1857_v33 = vpack.c.bf16 %v1015_v27, %v1013_v25  ;;  %v889_v35 = vld [vmem:[%s2634_s9 + $0x1a0] sm:$0xff] }
  0xc0   : > { %1714 = vmatpush1.bf16.msra.mxu1 %v1713_v48  ;;  %v1020_v31 = vld [vmem:[%s2634_s9 + $0x5b8] sm:$0xff]  ;;  %v1731_v34 = vpack.c.bf16 %v892_v29, %v890_v28  ;;  %v891_v36 = vld [vmem:[%s2634_s9 + $0x1b0] sm:$0xff]  ;;  %v1017_v37 = vld [vmem:[%s2634_s9 + $0x5a0] sm:$0xff] }
  0xc1   : > { %1842 = vmatpush1.bf16.msra.mxu0 %v1841_v49  ;;  %1716 = vmatprep.subr.bf16.mxu1 %v1715_v50  ;;  %v1859_v38 = vpack.c.bf16 %v1020_v31, %v1018_v30  ;;  %v1019_v39 = vld [vmem:[%s2634_s9 + $0x5b0] sm:$0xff]  ;;  %v894_v40 = vld [vmem:[%s2634_s9 + $0x1c8] sm:$0xff]  ;;  %v896_v41 = vld [vmem:[%s2634_s9 + $0x1d8] sm:$0xff]  ;;  %v1733_v44 = vpack.c.bf16 %v891_v36, %v889_v35 }
  0xc2   : > { %1844 = vmatprep.subr.bf16.mxu0 %v1843_v54  ;;  %v1022_v42 = vld [vmem:[%s2634_s9 + $0x5c8] sm:$0xff]  ;;  %v1024_v43 = vld [vmem:[%s2634_s9 + $0x5d8] sm:$0xff]  ;;  %v1861_v45 = vpack.c.bf16 %v1019_v39, %v1017_v37  ;;  %v1735_v46 = vpack.c.bf16 %v896_v41, %v894_v40  ;;  %v893_v47 = vld [vmem:[%s2634_s9 + $0x1c0] sm:$0xff] }
  0xc3   : > { %v895_v48 = vld [vmem:[%s2634_s9 + $0x1d0] sm:$0xff]  ;;  %v1021_v49 = vld [vmem:[%s2634_s9 + $0x5c0] sm:$0xff]  ;;  %v1863_v50 = vpack.c.bf16 %v1024_v43, %v1022_v42  ;;  %v898_v52 = vld [vmem:[%s2634_s9 + $0x1e8] sm:$0xff] }
  0xc4   : > { %1718 = vmatpush1.bf16.msra.mxu1 %v1717_v60  ;;  %v1023_v51 = vld [vmem:[%s2634_s9 + $0x5d0] sm:$0xff]  ;;  %v900_v53 = vld [vmem:[%s2634_s9 + $0x1f8] sm:$0xff]  ;;  %v1026_v54 = vld [vmem:[%s2634_s9 + $0x5e8] sm:$0xff]  ;;  %v1737_v56 = vpack.c.bf16 %v895_v48, %v893_v47 }
  0xc5   : > { %1846 = vmatpush1.bf16.msra.mxu0 %v1845_v61  ;;  %1720 = vmatprep.subr.bf16.mxu1 %v1719_v62  ;;  %v1028_v55 = vld [vmem:[%s2634_s9 + $0x5f8] sm:$0xff]  ;;  %v1865_v57 = vpack.c.bf16 %v1023_v51, %v1021_v49  ;;  %v1739_v58 = vpack.c.bf16 %v900_v53, %v898_v52  ;;  %v897_v59 = vld [vmem:[%s2634_s9 + $0x1e0] sm:$0xff]  ;;  %v899_v60 = vld [vmem:[%s2634_s9 + $0x1f0] sm:$0xff] }
  0xc6   : > { %1848 = vmatprep.subr.bf16.mxu0 %v1847_v2  ;;  %v1025_v61 = vld [vmem:[%s2634_s9 + $0x5e0] sm:$0xff]  ;;  %v1867_v62 = vpack.c.bf16 %v1028_v55, %v1026_v54  ;;  %v1027_v63 = vld [vmem:[%s2634_s9 + $0x5f0] sm:$0xff]  ;;  %v902_v0 = vld [vmem:[%s2634_s9 + $0x208] sm:$0xff]  ;;  %v1741_v4 = vpack.c.bf16 %v899_v60, %v897_v59 }
  0xc7   : > { %v904_v1 = vld [vmem:[%s2634_s9 + $0x218] sm:$0xff]  ;;  %v1030_v2 = vld [vmem:[%s2634_s9 + $0x608] sm:$0xff]  ;;  %v1869_v5 = vpack.c.bf16 %v1027_v63, %v1025_v61  ;;  %v901_v7 = vld [vmem:[%s2634_s9 + $0x200] sm:$0xff] }
  0xc8   : > { %1722 = vmatpush1.bf16.msra.mxu1 %v1721_v8  ;;  %v1032_v3 = vld [vmem:[%s2634_s9 + $0x618] sm:$0xff]  ;;  %v1743_v6 = vpack.c.bf16 %v904_v1, %v902_v0  ;;  %v903_v8 = vld [vmem:[%s2634_s9 + $0x210] sm:$0xff]  ;;  %v906_v12 = vld [vmem:[%s2634_s9 + $0x228] sm:$0xff] }
  0xc9   : > { %1850 = vmatpush1.bf16.msra.mxu0 %v1849_v9  ;;  %1724 = vmatprep.subr.bf16.mxu1 %v1723_v10  ;;  %v1029_v9 = vld [vmem:[%s2634_s9 + $0x600] sm:$0xff]  ;;  %v1871_v10 = vpack.c.bf16 %v1032_v3, %v1030_v2  ;;  %v1031_v11 = vld [vmem:[%s2634_s9 + $0x610] sm:$0xff]  ;;  %v908_v13 = vld [vmem:[%s2634_s9 + $0x238] sm:$0xff]  ;;  %v1745_v17 = vpack.c.bf16 %v903_v8, %v901_v7 }
  0xca   : > { %1852 = vmatprep.subr.bf16.mxu0 %v1851_v14  ;;  %v1034_v14 = vld [vmem:[%s2634_s9 + $0x628] sm:$0xff]  ;;  %v1036_v15 = vld [vmem:[%s2634_s9 + $0x638] sm:$0xff]  ;;  %v805_v16 = vld [vmem:[%s3027_s0] sm:$0xff]  ;;  %v1873_v19 = vpack.c.bf16 %v1031_v11, %v1029_v9 }
  0xcb   : > { %v809_v18 = vld [vmem:[%s3027_s0 + $0x20] sm:$0xff]  ;;  %v1875_v24 = vpack.c.bf16 %v1036_v15, %v1034_v14  ;;  %v1035_v25 = vld [vmem:[%s2634_s9 + $0x630] sm:$0xff]  ;;  %v912_v27 = vld [vmem:[%s2634_s9 + $0x258] sm:$0xff] }
  0xcc   : > { %1726 = vmatpush1.bf16.msra.mxu1 %v1725_v20  ;;  %v1747_v20 = vpack.c.bf16 %v908_v13, %v906_v12  ;;  %v1033_v23 = vld [vmem:[%s2634_s9 + $0x620] sm:$0xff]  ;;  %v1038_v28 = vld [vmem:[%s2634_s9 + $0x648] sm:$0xff]  ;;  %v1040_v29 = vld [vmem:[%s2634_s9 + $0x658] sm:$0xff] }
  0xcd   : > { %1854 = vmatpush1.bf16.msra.mxu0 %v1853_v21  ;;  %1728 = vmatprep.subr.bf16.mxu1 %v1727_v22  ;;  %v905_v21 = vld [vmem:[%s2634_s9 + $0x220] sm:$0xff]  ;;  %v907_v22 = vld [vmem:[%s2634_s9 + $0x230] sm:$0xff]  ;;  %v814_v30 = vld [vmem:[%s3027_s0 + $0x48] sm:$0xff]  ;;  %v1877_v35 = vpack.c.bf16 %v1035_v25, %v1033_v23  ;;  %v1879_v40 = vpack.c.bf16 %v1040_v29, %v1038_v28 }
  0xce   : > { %1856 = vmatprep.subr.bf16.mxu0 %v1855_v26  ;;  %v910_v26 = vld [vmem:[%s2634_s9 + $0x248] sm:$0xff]  ;;  %v1749_v31 = vpack.c.bf16 %v907_v22, %v905_v21  ;;  %v909_v37 = vld [vmem:[%s2634_s9 + $0x240] sm:$0xff]  ;;  %v1039_v41 = vld [vmem:[%s2634_s9 + $0x650] sm:$0xff] }
  0xcf   : > { %v1751_v36 = vpack.c.bf16 %v912_v27, %v910_v26  ;;  %v1037_v39 = vld [vmem:[%s2634_s9 + $0x640] sm:$0xff]  ;;  %v914_v42 = vld [vmem:[%s2634_s9 + $0x268] sm:$0xff]  ;;  %v916_v43 = vld [vmem:[%s2634_s9 + $0x278] sm:$0xff] }
  0xd0   : > { %1730 = vmatpush1.bf16.msra.mxu1 %v1729_v32  ;;  %v818_v32 = vld [vmem:[%s3027_s0 + $0x68] sm:$0xff]  ;;  %v1881_v48 = vpack.c.bf16 %v1039_v41, %v1037_v39  ;;  %v1755_v49 = vpack.c.bf16 %v916_v43, %v914_v42  ;;  %v915_v51 = vld [vmem:[%s2634_s9 + $0x270] sm:$0xff]  ;;  %v1041_v52 = vld [vmem:[%s2634_s9 + $0x660] sm:$0xff] }
  0xd1   : > { %1858 = vmatpush1.bf16.msra.mxu0 %v1857_v33  ;;  %1732 = vmatprep.subr.bf16.mxu1 %v1731_v34  ;;  %v813_v33 = vld [vmem:[%s3027_s0 + $0x40] sm:$0xff]  ;;  %v1043_v54 = vld [vmem:[%s2634_s9 + $0x670] sm:$0xff]  ;;  %v918_v55 = vld [vmem:[%s2634_s9 + $0x288] sm:$0xff] }
  0xd2   : > { %1860 = vmatprep.subr.bf16.mxu0 %v1859_v38  ;;  %v817_v34 = vld [vmem:[%s3027_s0 + $0x60] sm:$0xff]  ;;  %v911_v38 = vld [vmem:[%s2634_s9 + $0x250] sm:$0xff]  ;;  %v1885_v60 = vpack.c.bf16 %v1043_v54, %v1041_v52  ;;  %v922_v3 = vld [vmem:[%s2634_s9 + $0x2a8] sm:$0xff] }
  0xd3   : > { %v1753_v47 = vpack.c.bf16 %v911_v38, %v909_v37  ;;  %v919_v63 = vld [vmem:[%s2634_s9 + $0x290] sm:$0xff]  ;;  %v1045_v0 = vld [vmem:[%s2634_s9 + $0x680] sm:$0xff]  ;;  %v826_v9 = vld [vmem:[%s3027_s0 + $0xa8] sm:$0xff] }
  0xd4   : > { %1734 = vmatpush1.bf16.msra.mxu1 %v1733_v44  ;;  %v1042_v44 = vld [vmem:[%s2634_s9 + $0x668] sm:$0xff]  ;;  %v1047_v2 = vld [vmem:[%s2634_s9 + $0x690] sm:$0xff]  ;;  %v921_v8 = vld [vmem:[%s2634_s9 + $0x2a0] sm:$0xff] }
  0xd5   : > { %1862 = vmatpush1.bf16.msra.mxu0 %v1861_v45  ;;  %1736 = vmatprep.subr.bf16.mxu1 %v1735_v46  ;;  %v1044_v45 = vld [vmem:[%s2634_s9 + $0x678] sm:$0xff]  ;;  %v822_v46 = vld [vmem:[%s3027_s0 + $0x88] sm:$0xff]  ;;  %v1889_v11 = vpack.c.bf16 %v1047_v2, %v1045_v0  ;;  %v923_v13 = vld [vmem:[%s2634_s9 + $0x2b0] sm:$0xff] }
  0xd6   : > { %1864 = vmatprep.subr.bf16.mxu0 %v1863_v50  ;;  %v913_v50 = vld [vmem:[%s2634_s9 + $0x260] sm:$0xff]  ;;  %v1883_v53 = vpack.c.bf16 %v1044_v45, %v1042_v44  ;;  %v1056_v21 = vld [vmem:[%s2634_s9 + $0x6d8] sm:$0xff]  ;;  %v830_v22 = vld [vmem:[%s3027_s0 + $0xc8] sm:$0xff]  ;;  %v1765_v23 = vpack.c.bf16 %v923_v13, %v921_v8 }
  0xd7   : > { %v1757_v59 = vpack.c.bf16 %v915_v51, %v913_v50  ;;  %v1049_v14 = vld [vmem:[%s2634_s9 + $0x6a0] sm:$0xff]  ;;  %v834_v25 = vld [vmem:[%s3027_s0 + $0xe8] sm:$0xff]  ;;  %v927_v29 = vld [vmem:[%s2634_s9 + $0x2d0] sm:$0xff] }
  0xd8   : > { %1738 = vmatpush1.bf16.msra.mxu1 %v1737_v56  ;;  %v920_v56 = vld [vmem:[%s2634_s9 + $0x298] sm:$0xff]  ;;  %v825_v15 = vld [vmem:[%s3027_s0 + $0xa0] sm:$0xff]  ;;  %v931_v44 = vld [vmem:[%s2634_s9 + $0x2f0] sm:$0xff] }
  0xd9   : > { %1866 = vmatpush1.bf16.msra.mxu0 %v1865_v57  ;;  %1740 = vmatprep.subr.bf16.mxu1 %v1739_v58  ;;  %v1046_v57 = vld [vmem:[%s2634_s9 + $0x688] sm:$0xff]  ;;  %v1048_v58 = vld [vmem:[%s2634_s9 + $0x698] sm:$0xff]  ;;  %v1759_v61 = vpack.c.bf16 %v920_v56, %v918_v55  ;;  %v829_v26 = vld [vmem:[%s3027_s0 + $0xc0] sm:$0xff] }
  0xda   : > { %1868 = vmatprep.subr.bf16.mxu0 %v1867_v62  ;;  %v917_v62 = vld [vmem:[%s2634_s9 + $0x280] sm:$0xff]  ;;  %v1887_v1 = vpack.c.bf16 %v1048_v58, %v1046_v57  ;;  %v1060_v37 = vld [vmem:[%s2634_s9 + $0x6f8] sm:$0xff]  ;;  %v1062_v50 = vld [vmem:[%s2634_s9 + $0x708] sm:$0xff] }
  0xdb   : > { %v1761_v7 = vpack.c.bf16 %v919_v63, %v917_v62  ;;  %v808_v38 = vld [vmem:[%s3027_s0 + $0x18] sm:$0xff]  ;;  %v929_v43 = vld [vmem:[%s2634_s9 + $0x2e0] sm:$0xff]  ;;  %v935_v56 = vld [vmem:[%s2634_s9 + $0x310] sm:$0xff] }
  0xdc   : > { %1742 = vmatpush1.bf16.msra.mxu1 %v1741_v4  ;;  %v924_v4 = vld [vmem:[%s2634_s9 + $0x2b8] sm:$0xff]  ;;  %v1057_v45 = vld [vmem:[%s2634_s9 + $0x6e0] sm:$0xff]  ;;  %v1773_v52 = vpack.c.bf16 %v931_v44, %v929_v43  ;;  %v1066_v62 = vld [vmem:[%s2634_s9 + $0x728] sm:$0xff] }
  0xdd   : > { %1870 = vmatpush1.bf16.msra.mxu0 %v1869_v5  ;;  %1744 = vmatprep.subr.bf16.mxu1 %v1743_v6  ;;  %v1050_v5 = vld [vmem:[%s2634_s9 + $0x6a8] sm:$0xff]  ;;  %v1052_v6 = vld [vmem:[%s2634_s9 + $0x6b8] sm:$0xff]  ;;  %v1763_v12 = vpack.c.bf16 %v924_v4, %v922_v3  ;;  %v933_v55 = vld [vmem:[%s2634_s9 + $0x300] sm:$0xff] }
  0xde   : > { %1872 = vmatprep.subr.bf16.mxu0 %v1871_v10  ;;  %v821_v10 = vld [vmem:[%s3027_s0 + $0x80] sm:$0xff]  ;;  %v1064_v51 = vld [vmem:[%s2634_s9 + $0x718] sm:$0xff]  ;;  %v1777_v0 = vpack.c.bf16 %v935_v56, %v933_v55  ;;  %v939_v4 = vld [vmem:[%s2634_s9 + $0x330] sm:$0xff] }
  0xdf   : > { %1158 = vmatmul.mubr.f32.vlgmr.msra.gmra.mrb[0].mxu1 %v805_v16  ;;  %v1891_v16 = vpack.c.bf16 %v1052_v6, %v1050_v5  ;;  %v1061_v57 = vld [vmem:[%s2634_s9 + $0x700] sm:$0xff]  ;;  %v1903_v58 = vpack.c.bf16 %v1064_v51, %v1062_v50  ;;  %v1068_v63 = vld [vmem:[%s2634_s9 + $0x738] sm:$0xff]  ;;  %v942_v8 = vld [vmem:[%s2634_s9 + $0x348] sm:$0xff] }
  0xe0   : > { %1746 = vmatpush1.bf16.msra.mxu1 %v1745_v17  ;;  %1336 = vmatmul.mubr.f32.vlgmr.msra.gmra.mrb[0].mxu0 %v809_v18  ;;  %v1051_v17 = vld [vmem:[%s2634_s9 + $0x6b0] sm:$0xff]  ;;  %v926_v18 = vld [vmem:[%s2634_s9 + $0x2c8] sm:$0xff]  ;;  %v937_v3 = vld [vmem:[%s2634_s9 + $0x320] sm:$0xff]  ;;  %v1907_v6 = vpack.c.bf16 %v1068_v63, %v1066_v62 }
  0xe1   : > { %1874 = vmatpush1.bf16.msra.mxu0 %v1873_v19  ;;  %1748 = vmatprep.subr.bf16.mxu1 %v1747_v20  ;;  %v928_v19 = vld [vmem:[%s2634_s9 + $0x2d8] sm:$0xff]  ;;  %v1054_v20 = vld [vmem:[%s2634_s9 + $0x6c8] sm:$0xff]  ;;  %v1893_v27 = vpack.c.bf16 %v1051_v17, %v1049_v14  ;;  %v1065_v5 = vld [vmem:[%s2634_s9 + $0x720] sm:$0xff] }
  0xe2   : > { %1876 = vmatprep.subr.bf16.mxu0 %v1875_v24  ;;  %1163 = vmatprep.mubr.f32.mxu1 %v814_v30  ;;  %v925_v24 = vld [vmem:[%s2634_s9 + $0x2c0] sm:$0xff]  ;;  %v1767_v28 = vpack.c.bf16 %v928_v19, %v926_v18  ;;  %v1071_v19 = vld [vmem:[%s2634_s9 + $0x750] sm:$0xff]  ;;  %v954_v44 = vld [vmem:[%s2634_s9 + $0x3a8] sm:$0xff] }
  0xe3   : > { %1341 = vmatprep.mubr.f32.mxu0 %v818_v32  ;;  %1164 = vmatmul.mubr.f32.gmra.mrb[2].mxu1 %v813_v33  ;;  %v1053_v30 = vld [vmem:[%s2634_s9 + $0x6c0] sm:$0xff]  ;;  %v1895_v32 = vpack.c.bf16 %v1056_v21, %v1054_v20  ;;  %v1055_v33 = vld [vmem:[%s2634_s9 + $0x6d0] sm:$0xff]  ;;  %v1769_v39 = vpack.c.bf16 %v927_v29, %v925_v24  ;;  %v946_v20 = vld [vmem:[%s2634_s9 + $0x368] sm:$0xff] }
  0xe4   : > { %1750 = vmatpush1.bf16.msra.mxu1 %v1749_v31  ;;  %1342 = vmatmul.mubr.f32.gmra.mrb[2].mxu0 %v817_v34  ;;  %v833_v31 = vld [vmem:[%s3027_s0 + $0xe0] sm:$0xff]  ;;  %v930_v34 = vld [vmem:[%s2634_s9 + $0x2e8] sm:$0xff]  ;;  %v1897_v41 = vpack.c.bf16 %v1055_v33, %v1053_v30  ;;  %v948_v21 = vld [vmem:[%s2634_s9 + $0x378] sm:$0xff] }
  0xe5   : > { %1878 = vmatpush1.bf16.msra.mxu0 %v1877_v35  ;;  %1752 = vmatprep.subr.bf16.mxu1 %v1751_v36  ;;  %v932_v35 = vld [vmem:[%s2634_s9 + $0x2f8] sm:$0xff]  ;;  %v1058_v36 = vld [vmem:[%s2634_s9 + $0x6e8] sm:$0xff]  ;;  %v1069_v17 = vld [vmem:[%s2634_s9 + $0x740] sm:$0xff] }
  0xe6   : > { %1880 = vmatprep.subr.bf16.mxu0 %v1879_v40  ;;  %1169 = vmatprep.mubr.f32.mxu1 %v822_v46  ;;  %v812_v40 = vld [vmem:[%s3027_s0 + $0x38] sm:$0xff]  ;;  %v1771_v42 = vpack.c.bf16 %v932_v35, %v930_v34  ;;  %v1899_v46 = vpack.c.bf16 %v1060_v37, %v1058_v36  ;;  %v1073_v29 = vld [vmem:[%s2634_s9 + $0x760] sm:$0xff]  ;;  %v1078_v34 = vld [vmem:[%s2634_s9 + $0x788] sm:$0xff] }
  0xe7   : > { %1347 = vmatprep.mubr.f32.mxu0 %v826_v9  ;;  %1170 = vmatmul.mubr.f32.gmra.mrb[4].mxu1 %v821_v10  ;;  %v944_v9 = vld [vmem:[%s2634_s9 + $0x358] sm:$0xff]  ;;  %v1070_v10 = vld [vmem:[%s2634_s9 + $0x748] sm:$0xff]  ;;  %v1079_v43 = vld [vmem:[%s2634_s9 + $0x790] sm:$0xff] }
  0xe8   : > { %1754 = vmatpush1.bf16.msra.mxu1 %v1753_v47  ;;  %1348 = vmatmul.mubr.f32.gmra.mrb[4].mxu0 %v825_v15  ;;  %v1059_v47 = vld [vmem:[%s2634_s9 + $0x6f0] sm:$0xff]  ;;  %v1783_v14 = vpack.c.bf16 %v944_v9, %v942_v8  ;;  %v941_v15 = vld [vmem:[%s2634_s9 + $0x340] sm:$0xff]  ;;  %v952_v33 = vld [vmem:[%s2634_s9 + $0x398] sm:$0xff] }
  0xe9   : > { %1882 = vmatpush1.bf16.msra.mxu0 %v1881_v48  ;;  %1756 = vmatprep.subr.bf16.mxu1 %v1755_v49  ;;  %v934_v48 = vld [vmem:[%s2634_s9 + $0x308] sm:$0xff]  ;;  %v936_v49 = vld [vmem:[%s2634_s9 + $0x318] sm:$0xff]  ;;  %v953_v51 = vld [vmem:[%s2634_s9 + $0x3a0] sm:$0xff] }
  0xea   : > { %1884 = vmatprep.subr.bf16.mxu0 %v1883_v53  ;;  %1175 = vmatprep.mubr.f32.mxu1 %v830_v22  ;;  %v1901_v53 = vpack.c.bf16 %v1059_v47, %v1057_v45  ;;  %v1775_v54 = vpack.c.bf16 %v936_v49, %v934_v48  ;;  %v1074_v22 = vld [vmem:[%s2634_s9 + $0x768] sm:$0xff]  ;;  %v1080_v35 = vld [vmem:[%s2634_s9 + $0x798] sm:$0xff]  ;;  %v1083_v55 = vld [vmem:[%s2634_s9 + $0x7b0] sm:$0xff] }
  0xeb   : > { %1353 = vmatprep.mubr.f32.mxu0 %v834_v25  ;;  %1176 = vmatmul.mubr.f32.gmra.mrb[6].mxu1 %v829_v26  ;;  %v1913_v25 = vpack.c.bf16 %v1071_v19, %v1069_v17  ;;  %v1787_v26 = vpack.c.bf16 %v948_v21, %v946_v20  ;;  %v956_v45 = vld [vmem:[%s2634_s9 + $0x3b8] sm:$0xff]  ;;  %v958_v56 = vld [vmem:[%s2634_s9 + $0x3c8] sm:$0xff]  ;;  %v957_v63 = vld [vmem:[%s2634_s9 + $0x3c0] sm:$0xff] }
  0xec   : > { %1758 = vmatpush1.bf16.msra.mxu1 %v1757_v59  ;;  %1354 = vmatmul.mubr.f32.gmra.mrb[6].mxu0 %v833_v31  ;;  %v1063_v59 = vld [vmem:[%s2634_s9 + $0x710] sm:$0xff]  ;;  %v1084_v47 = vld [vmem:[%s2634_s9 + $0x7b8] sm:$0xff]  ;;  %v1795_v50 = vpack.c.bf16 %v956_v45, %v954_v44 }
  0xed   : > { %1886 = vmatpush1.bf16.msra.mxu0 %v1885_v60  ;;  %1760 = vmatprep.subr.bf16.mxu1 %v1759_v61  ;;  %v938_v60 = vld [vmem:[%s2634_s9 + $0x328] sm:$0xff]  ;;  %v940_v61 = vld [vmem:[%s2634_s9 + $0x338] sm:$0xff]  ;;  %v1075_v31 = vld [vmem:[%s2634_s9 + $0x770] sm:$0xff] }
  0xee   : > { %1888 = vmatprep.subr.bf16.mxu0 %v1887_v1  ;;  %1246 = vmatprep.mubr.f32.mxu1 %v808_v38  ;;  %v1905_v1 = vpack.c.bf16 %v1063_v59, %v1061_v57  ;;  %v1779_v2 = vpack.c.bf16 %v940_v61, %v938_v60  ;;  %v1917_v37 = vpack.c.bf16 %v1075_v31, %v1073_v29  ;;  %v960_v57 = vld [vmem:[%s2634_s9 + $0x3d8] sm:$0xff]  ;;  %v811_v19 = vld [vmem:[%s3027_s0 + $0x30] sm:$0xff] }
  0xef   : > { %1424 = vmatprep.mubr.f32.mxu0 %v812_v40  ;;  %v951_v40 = vld [vmem:[%s2634_s9 + $0x390] sm:$0xff]  ;;  %v1088_v59 = vld [vmem:[%s2634_s9 + $0x7d8] sm:$0xff]  ;;  %v1799_v62 = vpack.c.bf16 %v960_v57, %v958_v56 }
  0xf0   : > { %1762 = vmatpush1.bf16.msra.mxu1 %v1761_v7  ;;  %v1067_v7 = vld [vmem:[%s2634_s9 + $0x730] sm:$0xff]  ;;  %v816_v20 = vld [vmem:[%s3027_s0 + $0x58] sm:$0xff] }
  0xf1   : > { %1890 = vmatpush1.bf16.msra.mxu0 %v1889_v11  ;;  %1764 = vmatprep.subr.bf16.mxu1 %v1763_v12  ;;  %v1072_v11 = vld [vmem:[%s2634_s9 + $0x758] sm:$0xff]  ;;  %v1781_v12 = vpack.c.bf16 %v939_v4, %v937_v3  ;;  %v1909_v13 = vpack.c.bf16 %v1067_v7, %v1065_v5  ;;  %v1087_v3 = vld [vmem:[%s2634_s9 + $0x7d0] sm:$0xff]  ;;  %v962_v4 = vld [vmem:[%s2634_s9 + $0x3e8] sm:$0xff] }
  0xf2   : > { %1892 = vmatprep.subr.bf16.mxu0 %v1891_v16  ;;  %v943_v16 = vld [vmem:[%s2634_s9 + $0x350] sm:$0xff]  ;;  %v1911_v18 = vpack.c.bf16 %v1072_v11, %v1070_v10  ;;  %v964_v5 = vld [vmem:[%s2634_s9 + $0x3f8] sm:$0xff]  ;;  %v961_v11 = vld [vmem:[%s2634_s9 + $0x3e0] sm:$0xff] }
  0xf3   : > { %v1785_v24 = vpack.c.bf16 %v943_v16, %v941_v15  ;;  %v1092_v7 = vld [vmem:[%s2634_s9 + $0x7f8] sm:$0xff]  ;;  %v1803_v10 = vpack.c.bf16 %v964_v5, %v962_v4  ;;  %v1091_v15 = vld [vmem:[%s2634_s9 + $0x7f0] sm:$0xff] }
  0xf4   : > { %1766 = vmatpush1.bf16.msra.mxu1 %v1765_v23  ;;  %v1076_v23 = vld [vmem:[%s2634_s9 + $0x778] sm:$0xff]  ;;  %v835_v31 = vld [vmem:[%s3027_s0 + $0xf0] sm:$0xff] }
  0xf5   : > { %1894 = vmatpush1.bf16.msra.mxu0 %v1893_v27  ;;  %1768 = vmatprep.subr.bf16.mxu1 %v1767_v28  ;;  %v945_v27 = vld [vmem:[%s2634_s9 + $0x360] sm:$0xff]  ;;  %v947_v28 = vld [vmem:[%s2634_s9 + $0x370] sm:$0xff]  ;;  %v1915_v30 = vpack.c.bf16 %v1076_v23, %v1074_v22  ;;  %v820_v21 = vld [vmem:[%s3027_s0 + $0x78] sm:$0xff] }
  0xf6   : > { %1896 = vmatprep.subr.bf16.mxu0 %v1895_v32  ;;  %v950_v32 = vld [vmem:[%s2634_s9 + $0x388] sm:$0xff]  ;;  %v1789_v36 = vpack.c.bf16 %v947_v28, %v945_v27  ;;  %v815_v22 = vld [vmem:[%s3027_s0 + $0x50] sm:$0xff]  ;;  %v832_v28 = vld [vmem:[%s3027_s0 + $0xd8] sm:$0xff] }
  0xf7   : > { %v1791_v38 = vpack.c.bf16 %v952_v33, %v950_v32  ;;  %v819_v23 = vld [vmem:[%s3027_s0 + $0x70] sm:$0xff]  ;;  %v836_v29 = vld [vmem:[%s3027_s0 + $0xf8] sm:$0xff]  ;;  %v1478_v32 = vlaneseq }
  0xf8   : > { %1770 = vmatpush1.bf16.msra.mxu1 %v1769_v39  ;;  %v949_v39 = vld [vmem:[%s2634_s9 + $0x380] sm:$0xff]  ;;  %v827_v27 = vld [vmem:[%s3027_s0 + $0xb0] sm:$0xff] }
  0xf9   : > { %1898 = vmatpush1.bf16.msra.mxu0 %v1897_v41  ;;  %1772 = vmatprep.subr.bf16.mxu1 %v1771_v42  ;;  %v1077_v41 = vld [vmem:[%s2634_s9 + $0x780] sm:$0xff]  ;;  %v1919_v42 = vpack.c.bf16 %v1080_v35, %v1078_v34  ;;  %v1793_v48 = vpack.c.bf16 %v951_v40, %v949_v39  ;;  %v1479_v33 = vshrl.u32 %v1478_v32, 7 }
  0xfa   : > { %1900 = vmatprep.subr.bf16.mxu0 %v1899_v46  ;;  %v1082_v46 = vld [vmem:[%s2634_s9 + $0x7a8] sm:$0xff]  ;;  %v1921_v49 = vpack.c.bf16 %v1079_v43, %v1077_v41  ;;  %v1476_v35 = vld [vmem:[%s781_s28] sm:$0x3] }
  0xfb   : > { %v1480_v34 = vsub.s32 0, %v1479_v33 }
  0xfc   : > { %1774 = vmatpush1.bf16.msra.mxu1 %v1773_v52  ;;  %v955_v52 = vld [vmem:[%s2634_s9 + $0x3b0] sm:$0xff] }
  0xfd   : > { %1902 = vmatpush1.bf16.msra.mxu0 %v1901_v53  ;;  %1776 = vmatprep.subr.bf16.mxu1 %v1775_v54  ;;  %v1081_v53 = vld [vmem:[%s2634_s9 + $0x7a0] sm:$0xff]  ;;  %v1923_v54 = vpack.c.bf16 %v1084_v47, %v1082_v46  ;;  %v1797_v60 = vpack.c.bf16 %v955_v52, %v953_v51 }
  0xfe   : > { %1904 = vmatprep.subr.bf16.mxu0 %v1903_v58  ;;  %v1086_v58 = vld [vmem:[%s2634_s9 + $0x7c8] sm:$0xff]  ;;  %v1925_v61 = vpack.c.bf16 %v1083_v55, %v1081_v53 }
 0x100   : > { %1778 = vmatpush1.bf16.msra.mxu1 %v1777_v0  ;;  %v959_v0 = vld [vmem:[%s2634_s9 + $0x3d0] sm:$0xff] }
 0x101   : > { %1906 = vmatpush1.bf16.msra.mxu0 %v1905_v1  ;;  %1780 = vmatprep.subr.bf16.mxu1 %v1779_v2  ;;  %v1085_v1 = vld [vmem:[%s2634_s9 + $0x7c0] sm:$0xff]  ;;  %v1927_v2 = vpack.c.bf16 %v1088_v59, %v1086_v58  ;;  %v1801_v8 = vpack.c.bf16 %v959_v0, %v957_v63 }
 0x102   : > { %1908 = vmatprep.subr.bf16.mxu0 %v1907_v6  ;;  %v1090_v6 = vld [vmem:[%s2634_s9 + $0x7e8] sm:$0xff]  ;;  %v1929_v9 = vpack.c.bf16 %v1087_v3, %v1085_v1 }
 0x104   : > { %1782 = vmatpush1.bf16.msra.mxu1 %v1781_v12  ;;  %v963_v12 = vld [vmem:[%s2634_s9 + $0x3f0] sm:$0xff] }
 0x105   : > { %1910 = vmatpush1.bf16.msra.mxu0 %v1909_v13  ;;  %1784 = vmatprep.subr.bf16.mxu1 %v1783_v14  ;;  %v1931_v13 = vpack.c.bf16 %v1092_v7, %v1090_v6  ;;  %v1089_v14 = vld [vmem:[%s2634_s9 + $0x7e0] sm:$0xff]  ;;  %v1805_v16 = vpack.c.bf16 %v963_v12, %v961_v11 }
 0x106   : > { %1912 = vmatprep.subr.bf16.mxu0 %v1911_v18  ;;  %v1933_v17 = vpack.c.bf16 %v1091_v15, %v1089_v14  ;;  %v807_v18 = vld [vmem:[%s3027_s0 + $0x10] sm:$0xff] }
 0x108   : > { %1786 = vmatpush1.bf16.msra.mxu1 %v1785_v24  ;;  %v824_v24 = vld [vmem:[%s3027_s0 + $0x98] sm:$0xff] }
 0x109   : > { %1914 = vmatpush1.bf16.msra.mxu0 %v1913_v25  ;;  %1788 = vmatprep.subr.bf16.mxu1 %v1787_v26  ;;  %v828_v25 = vld [vmem:[%s3027_s0 + $0xb8] sm:$0xff]  ;;  %v823_v26 = vld [vmem:[%s3027_s0 + $0x90] sm:$0xff] }
 0x10a   : > { %1916 = vmatprep.subr.bf16.mxu0 %v1915_v30  ;;  %v831_v30 = vld [vmem:[%s3027_s0 + $0xd0] sm:$0xff] }
 0x10c   : > { %1790 = vmatpush1.bf16.msra.mxu1 %v1789_v36  ;;  %v1484_v36 = vsub.s32 1, %v1479_v33 }
 0x10d   : > { %1918 = vmatpush1.bf16.msra.mxu0 %v1917_v37  ;;  %1792 = vmatprep.subr.bf16.mxu1 %v1791_v38  ;;  %v1481_v38 = vrot.slane %v1476_v35, %v1480_v34 }
 0x10e   : > { %1920 = vmatprep.subr.bf16.mxu0 %v1919_v42  ;;  %v1485_v41 = vrot.slane %v1476_v35, %v1484_v36 }
 0x110   : > { %1794 = vmatpush1.bf16.msra.mxu1 %v1793_v48 }
 0x111   : > { %1922 = vmatpush1.bf16.msra.mxu0 %v1921_v49  ;;  %1796 = vmatprep.subr.bf16.mxu1 %v1795_v50 }
 0x112   : > { %1924 = vmatprep.subr.bf16.mxu0 %v1923_v54 }
 0x114   : > { %1798 = vmatpush1.bf16.msra.mxu1 %v1797_v60 }
 0x115   : > { %1926 = vmatpush1.bf16.msra.mxu0 %v1925_v61  ;;  %1800 = vmatprep.subr.bf16.mxu1 %v1799_v62 }
 0x116   : > { %1928 = vmatprep.subr.bf16.mxu0 %v1927_v2 }
 0x118   : > { %1802 = vmatpush1.bf16.msra.mxu1 %v1801_v8 }
 0x119   : > { %1930 = vmatpush1.bf16.msra.mxu0 %v1929_v9  ;;  %1804 = vmatprep.subr.bf16.mxu1 %v1803_v10 }
 0x11a   : > { %1932 = vmatprep.subr.bf16.mxu0 %v1931_v13 }
 0x11c   : > { %1806 = vmatpush1.bf16.msra.mxu1 %v1805_v16 }
 0x11d   : > { %1934 = vmatpush1.bf16.msra.mxu0 %v1933_v17 }
 0x11f   : > { %1247 = vmatmul.mubr.f32.vlgmr.msra.gmra.mrb[0].mxu1 %v807_v18 }
 0x120   : > { %1425 = vmatmul.mubr.f32.vlgmr.msra.gmra.mrb[0].mxu0 %v811_v19  ;;  %1252 = vmatprep.mubr.f32.mxu1 %v816_v20 }
 0x121   : > { %1430 = vmatprep.mubr.f32.mxu0 %v820_v21 }
 0x123   : > { %1253 = vmatmul.mubr.f32.gmra.mrb[2].mxu1 %v815_v22 }
 0x124   : > { %1431 = vmatmul.mubr.f32.gmra.mrb[2].mxu0 %v819_v23  ;;  %1258 = vmatprep.mubr.f32.mxu1 %v824_v24 }
 0x125   : > { %1436 = vmatprep.mubr.f32.mxu0 %v828_v25 }
 0x127   : > { %1259 = vmatmul.mubr.f32.gmra.mrb[4].mxu1 %v823_v26 }
 0x128   : > { %1437 = vmatmul.mubr.f32.gmra.mrb[4].mxu0 %v827_v27  ;;  %1264 = vmatprep.mubr.f32.mxu1 %v832_v28 }
 0x129   : > { %1442 = vmatprep.mubr.f32.mxu0 %v836_v29 }
 0x12b   : > { %1265 = vmatmul.mubr.f32.gmra.mrb[6].mxu1 %v831_v30 }
 0x12c   : > { %1443 = vmatmul.mubr.f32.gmra.mrb[6].mxu0 %v835_v31 }
 0x1f2   : > { %v1248_v37 = vpop.f32.mrb[0].mxu1 }
 0x1f3   : > { %v1426_v39 = vpop.f32.mrb[0].mxu0  ;;  %v1250_v40 = vpop.f32.mrb[1].mxu1 }
 0x1f4   : > { %v1935_v42 = vadd.f32 %v1426_v39, %v1248_v37  ;;  %v1428_v43 = vpop.f32.mrb[1].mxu0 }
 0x1f5   : > { %v1936_v44 = vadd.f32 %v1428_v43, %v1250_v40 }
 0x1f6   : > { %v1488_v45 = vadd.f32 %v1935_v42, %v1481_v38  ;;  %v1254_v46 = vpop.f32.mrb[2].mxu1 }
 0x1f7   : > { %v1489_v47 = vadd.f32 %v1936_v44, %v1485_v41  ;;  %v1432_v48 = vpop.f32.mrb[2].mxu0  ;;  %v1256_v49 = vpop.f32.mrb[3].mxu1 }
 0x1f8   : > { %v1496_v50 = vmax.f32 %v1488_v45, 0.0  ;;  %v1937_v51 = vadd.f32 %v1432_v48, %v1254_v46  ;;  %v1434_v52 = vpop.f32.mrb[3].mxu0 }
 0x1f9   : > { %v1497_v53 = vmax.f32 %v1489_v47, 0.0  ;;  %v1938_v54 = vadd.f32 %v1434_v52, %v1256_v49 }
 0x1fa   : > { %1504 = vst [vmem:[%s2988_s4] sm:$0xff] %v1496_v50  ;;  %v1490_v55 = vadd.f32 %v1937_v51, %v1481_v38  ;;  %v1260_v56 = vpop.f32.mrb[4].mxu1 }
 0x1fb   : > { %1505 = vst [vmem:[%s2988_s4 + $0x8] sm:$0xff] %v1497_v53  ;;  %v1491_v57 = vadd.f32 %v1938_v54, %v1485_v41  ;;  %v1438_v58 = vpop.f32.mrb[4].mxu0  ;;  %v1262_v59 = vpop.f32.mrb[5].mxu1 }
 0x1fc   : > { %v1498_v60 = vmax.f32 %v1490_v55, 0.0  ;;  %v1939_v61 = vadd.f32 %v1438_v58, %v1260_v56  ;;  %v1440_v62 = vpop.f32.mrb[5].mxu0 }
 0x1fd   : > { %v1499_v63 = vmax.f32 %v1491_v57, 0.0  ;;  %v1940_v0 = vadd.f32 %v1440_v62, %v1262_v59 }
 0x1fe   : > { %1506 = vst [vmem:[%s2988_s4 + $0x10] sm:$0xff] %v1498_v60  ;;  %v1492_v1 = vadd.f32 %v1939_v61, %v1481_v38  ;;  %v1266_v2 = vpop.f32.mrb[6].mxu1 }
 0x1ff   : > { %1507 = vst [vmem:[%s2988_s4 + $0x18] sm:$0xff] %v1499_v63  ;;  %v1493_v3 = vadd.f32 %v1940_v0, %v1485_v41  ;;  %v1444_v4 = vpop.f32.mrb[6].mxu0  ;;  %v1268_v5 = vpop.f32.mrb[7].mxu1 }
 0x200   : > { %v1500_v6 = vmax.f32 %v1492_v1, 0.0  ;;  %v1941_v7 = vadd.f32 %v1444_v4, %v1266_v2  ;;  %v1446_v8 = vpop.f32.mrb[7].mxu0 }
 0x201   : > { %v1501_v9 = vmax.f32 %v1493_v3, 0.0  ;;  %v1942_v10 = vadd.f32 %v1446_v8, %v1268_v5  ;;  %1518 = sbr.rel (!%p2094_p6) target bundleno = 528 (0x210), region = 67  ;;  %v1537_v15 = vld [vmem:[%s2988_s4] sm:$0xff] (%p2094_p6) }
 0x202   : > { %1508 = vst [vmem:[%s2988_s4 + $0x20] sm:$0xff] %v1500_v6  ;;  %v1494_v11 = vadd.f32 %v1941_v7, %v1481_v38  ;;  %v1539_v16 = vld [vmem:[%s2988_s4 + $0x8] sm:$0xff] (%p2094_p6)  ;;  %1538 = vst [vmem:[%s1524_s6] sm:$0xff] (%p2094_p6), %v1537_v15 }
 0x203   : > { %1509 = vst [vmem:[%s2988_s4 + $0x28] sm:$0xff] %v1501_v9  ;;  %v1495_v12 = vadd.f32 %v1942_v10, %v1485_v41  ;;  %1540 = vst [vmem:[%s1524_s6 + $0x8] sm:$0xff] (%p2094_p6), %v1539_v16 }
 0x204   : > { %v1502_v13 = vmax.f32 %v1494_v11, 0.0 }
 0x205   : > { %v1503_v14 = vmax.f32 %v1495_v12, 0.0  ;;  %v1541_v17 = vld [vmem:[%s2988_s4 + $0x10] sm:$0xff] (%p2094_p6) }
 0x206   : > { %1510 = vst [vmem:[%s2988_s4 + $0x30] sm:$0xff] %v1502_v13  ;;  %v1543_v18 = vld [vmem:[%s2988_s4 + $0x18] sm:$0xff] (%p2094_p6)  ;;  %1542 = vst [vmem:[%s1524_s6 + $0x20] sm:$0xff] (%p2094_p6), %v1541_v17 }
 0x207   : > { %1511 = vst [vmem:[%s2988_s4 + $0x38] sm:$0xff] %v1503_v14  ;;  %1544 = vst [vmem:[%s1524_s6 + $0x28] sm:$0xff] (%p2094_p6), %v1543_v18 }
 0x209   : > { %v1545_v19 = vld [vmem:[%s2988_s4 + $0x20] sm:$0xff] }
 0x20a   : > { %v1547_v20 = vld [vmem:[%s2988_s4 + $0x28] sm:$0xff]  ;;  %1546 = vst [vmem:[%s1524_s6 + $0x40] sm:$0xff] %v1545_v19 }
 0x20b   : > { %1548 = vst [vmem:[%s1524_s6 + $0x48] sm:$0xff] %v1547_v20 }
 0x20d   : > { %v1549_v21 = vld [vmem:[%s2988_s4 + $0x30] sm:$0xff] }
 0x20e   : > { %v1551_v22 = vld [vmem:[%s2988_s4 + $0x38] sm:$0xff]  ;;  %1550 = vst [vmem:[%s1524_s6 + $0x60] sm:$0xff] %v1549_v21 }
 0x20f   : > { %1552 = vst [vmem:[%s1524_s6 + $0x68] sm:$0xff] %v1551_v22 }
 0x210 PF: > { %s13_s16 = sadd.s32 1, %s2037_s16   ;;  %s3032_s12 = smov %s2025_s13 }
 0x211   : > { %p10_p12 = scmp.ge.s32.totalorder %s13_s16, 4   ;;  %s3033_s13 = smov %s2099_s22 }
 0x212   : > { %s3034_s14 = smov %s2033_s15  ;;  %s3035_s15 = smov %s3037_s17 }
 0x213   :  { %12 = sbr.rel (!%p10_p12) target bundleno = 3 (0x3), region = 127 }

// kernel: _lambda_.10
= control target key start
LH: loop header
LB: loop body
LE: loop exit
PB: predicated region body
PF: predicated region fallthrough
CT: control target
= control target key end

     0   :  { %s1639_s12 = smov 0   ;;  %s1641_s13 = smov 0   ;;  %s2162_s0 = inlined_call_operand.vmem [shape: f32[128,512], index: 0, kind: input, shape index: {}]   ;;  %s2163_s1 = inlined_call_operand.vmem [shape: f32[512,256], index: 1, kind: input, shape index: {}]   ;;  %s2164_s2 = inlined_call_operand.vmem [shape: f32[1,256], index: 2, kind: input, shape index: {}]   ;;  %s2165_s3 = inlined_call_operand.vmem [shape: f32[128,256], index: 3, kind: output, shape index: {}]  }
   0x1   :  { %s1643_s14 = smov 0   ;;  %s1645_s15 = smov 0  }
   0x2   :  { %s1647_s16 = smov 0  }
   0x3 LB: > { %s28_s17 = sadd.s32 1, %s1613_s15  ;;  %s1300_s18 = sadd.s32 4294967295, %s1617_s16   ;;  %s1617_s16 = sphi %s1647_s16, %s13_s16   ;;  %s1613_s15 = sphi %s1645_s15, %s2170_s15   ;;  %s1609_s14 = sphi %s1643_s14, %s2169_s14   ;;  %s1605_s13 = sphi %s1641_s13, %s2168_s13   ;;  %s1601_s12 = sphi %s1639_s12, %s2167_s12  }
   0x4   : > { %p30_p0 = scmp.ge.s32.totalorder %s28_s17, 2  ;;  %p76_p1 = scmp.ne.s32.totalorder %s1605_s13, %s1601_s12 }
   0x5   : > { %p77_p2 = scmp.eq.s32.totalorder %s1617_s16, 0  ;;  %p134_p4 = scmp.eq.s32.totalorder %s1300_s18, 1 }
   0x6   : > { %s2172_s17 = smov (%p30_p0, %s28_s17), 0  ;;  %s69_s20 = sadd.s32 1, %s1605_s13 }
   0x7   : > { %p78_p3 = por %p77_p2, %p76_p1  ;;  %s65_s19 = ssub.s32 %s1613_s15, %s2172_s17 }
   0x8   : > { %p67_p5 = scmp.eq.s32.totalorder %s65_s19, 0  ;;  %p1674_p6 = por %p134_p4, %p76_p1 }
   0x9   : > { %p1304_p7 = scmp.ge.s32.totalorder %s1617_s16, 2 }
   0xa   : > { %s1679_s22 = scalar_select %p67_p5, %s1605_s13, %s69_s20  }
   0xb   : > { %171 = sbr.rel (%p1304_p7) target bundleno = 54 (0x36), region = 20 }
  0x12   : > { %174 = sbr.rel (!%p78_p3) target bundleno = 54 (0x36), region = 24  ;;  %s176_s23 = sand.u32 (%p78_p3), 1, %s1605_s13  }
  0x13   : > { %s1306_s24 = sshll.u32 (%p78_p3), %s1613_s15, 3  ;;  %s1305_s25 = sshll.u32 (%p78_p3), %s176_s23, 9 }
  0x14   : > { %s1687_s28 = scalar_lea.vmem (%p78_p3), %s2163_s1, %s1306_s24  ;;  %s1692_s29 = scalar_lea.vmem (%p78_p3), [#allocation3], %s1305_s25 }
  0x15   : > { %v337_v0 = vld [vmem:[%s1687_s28] sm:$0xff] (%p78_p3)  ;;  %v339_v1 = vld [vmem:[%s1687_s28 + $0x10] sm:$0xff] (%p78_p3) }
  0x16   : > { %v341_v2 = vld [vmem:[%s1687_s28 + $0x20] sm:$0xff] (%p78_p3)  ;;  %338 = vst [vmem:[%s1692_s29] sm:$0xff] (%p78_p3), %v337_v0  ;;  %340 = vst [vmem:[%s1692_s29 + $0x8] sm:$0xff] (%p78_p3), %v339_v1  ;;  %v343_v3 = vld [vmem:[%s1687_s28 + $0x30] sm:$0xff] (%p78_p3) }
  0x17   : > { %342 = vst [vmem:[%s1692_s29 + $0x10] sm:$0xff] (%p78_p3), %v341_v2  ;;  %v345_v4 = vld [vmem:[%s1687_s28 + $0x40] sm:$0xff] (%p78_p3)  ;;  %v347_v5 = vld [vmem:[%s1687_s28 + $0x50] sm:$0xff] (%p78_p3)  ;;  %344 = vst [vmem:[%s1692_s29 + $0x18] sm:$0xff] (%p78_p3), %v343_v3 }
  0x18   : > { %346 = vst [vmem:[%s1692_s29 + $0x20] sm:$0xff] (%p78_p3), %v345_v4  ;;  %348 = vst [vmem:[%s1692_s29 + $0x28] sm:$0xff] (%p78_p3), %v347_v5  ;;  %v349_v6 = vld [vmem:[%s1687_s28 + $0x60] sm:$0xff] (%p78_p3)  ;;  %v351_v7 = vld [vmem:[%s1687_s28 + $0x70] sm:$0xff] (%p78_p3) }
  0x19   : > { %v353_v8 = vld [vmem:[%s1687_s28 + $0x80] sm:$0xff]  ;;  %350 = vst [vmem:[%s1692_s29 + $0x30] sm:$0xff] %v349_v6  ;;  %352 = vst [vmem:[%s1692_s29 + $0x38] sm:$0xff] %v351_v7  ;;  %v355_v9 = vld [vmem:[%s1687_s28 + $0x90] sm:$0xff] }
  0x1a   : > { %354 = vst [vmem:[%s1692_s29 + $0x40] sm:$0xff] %v353_v8  ;;  %v357_v10 = vld [vmem:[%s1687_s28 + $0xa0] sm:$0xff]  ;;  %v359_v11 = vld [vmem:[%s1687_s28 + $0xb0] sm:$0xff]  ;;  %356 = vst [vmem:[%s1692_s29 + $0x48] sm:$0xff] %v355_v9 }
  0x1b   : > { %358 = vst [vmem:[%s1692_s29 + $0x50] sm:$0xff] %v357_v10  ;;  %360 = vst [vmem:[%s1692_s29 + $0x58] sm:$0xff] %v359_v11  ;;  %v361_v12 = vld [vmem:[%s1687_s28 + $0xc0] sm:$0xff]  ;;  %v363_v13 = vld [vmem:[%s1687_s28 + $0xd0] sm:$0xff] }
  0x1c   : > { %v365_v14 = vld [vmem:[%s1687_s28 + $0xe0] sm:$0xff]  ;;  %362 = vst [vmem:[%s1692_s29 + $0x60] sm:$0xff] %v361_v12  ;;  %364 = vst [vmem:[%s1692_s29 + $0x68] sm:$0xff] %v363_v13  ;;  %v367_v15 = vld [vmem:[%s1687_s28 + $0xf0] sm:$0xff] }
  0x1d   : > { %366 = vst [vmem:[%s1692_s29 + $0x70] sm:$0xff] %v365_v14  ;;  %v369_v16 = vld [vmem:[%s1687_s28 + $0x100] sm:$0xff]  ;;  %v371_v17 = vld [vmem:[%s1687_s28 + $0x110] sm:$0xff]  ;;  %368 = vst [vmem:[%s1692_s29 + $0x78] sm:$0xff] %v367_v15 }
  0x1e   : > { %370 = vst [vmem:[%s1692_s29 + $0x80] sm:$0xff] %v369_v16  ;;  %372 = vst [vmem:[%s1692_s29 + $0x88] sm:$0xff] %v371_v17  ;;  %v373_v18 = vld [vmem:[%s1687_s28 + $0x120] sm:$0xff]  ;;  %v375_v19 = vld [vmem:[%s1687_s28 + $0x130] sm:$0xff] }
  0x1f   : > { %v377_v20 = vld [vmem:[%s1687_s28 + $0x140] sm:$0xff]  ;;  %374 = vst [vmem:[%s1692_s29 + $0x90] sm:$0xff] %v373_v18  ;;  %376 = vst [vmem:[%s1692_s29 + $0x98] sm:$0xff] %v375_v19  ;;  %v379_v21 = vld [vmem:[%s1687_s28 + $0x150] sm:$0xff] }
  0x20   : > { %378 = vst [vmem:[%s1692_s29 + $0xa0] sm:$0xff] %v377_v20  ;;  %v381_v22 = vld [vmem:[%s1687_s28 + $0x160] sm:$0xff]  ;;  %v383_v23 = vld [vmem:[%s1687_s28 + $0x170] sm:$0xff]  ;;  %380 = vst [vmem:[%s1692_s29 + $0xa8] sm:$0xff] %v379_v21 }
  0x21   : > { %382 = vst [vmem:[%s1692_s29 + $0xb0] sm:$0xff] %v381_v22  ;;  %384 = vst [vmem:[%s1692_s29 + $0xb8] sm:$0xff] %v383_v23  ;;  %v385_v24 = vld [vmem:[%s1687_s28 + $0x180] sm:$0xff]  ;;  %v387_v25 = vld [vmem:[%s1687_s28 + $0x190] sm:$0xff] }
  0x22   : > { %v389_v26 = vld [vmem:[%s1687_s28 + $0x1a0] sm:$0xff]  ;;  %386 = vst [vmem:[%s1692_s29 + $0xc0] sm:$0xff] %v385_v24  ;;  %388 = vst [vmem:[%s1692_s29 + $0xc8] sm:$0xff] %v387_v25  ;;  %v391_v27 = vld [vmem:[%s1687_s28 + $0x1b0] sm:$0xff] }
  0x23   : > { %390 = vst [vmem:[%s1692_s29 + $0xd0] sm:$0xff] %v389_v26  ;;  %v393_v28 = vld [vmem:[%s1687_s28 + $0x1c0] sm:$0xff]  ;;  %v395_v29 = vld [vmem:[%s1687_s28 + $0x1d0] sm:$0xff]  ;;  %392 = vst [vmem:[%s1692_s29 + $0xd8] sm:$0xff] %v391_v27 }
  0x24   : > { %394 = vst [vmem:[%s1692_s29 + $0xe0] sm:$0xff] %v393_v28  ;;  %396 = vst [vmem:[%s1692_s29 + $0xe8] sm:$0xff] %v395_v29  ;;  %v397_v30 = vld [vmem:[%s1687_s28 + $0x1e0] sm:$0xff]  ;;  %v399_v31 = vld [vmem:[%s1687_s28 + $0x1f0] sm:$0xff] }
  0x25   : > { %v401_v32 = vld [vmem:[%s1687_s28 + $0x200] sm:$0xff]  ;;  %398 = vst [vmem:[%s1692_s29 + $0xf0] sm:$0xff] %v397_v30  ;;  %400 = vst [vmem:[%s1692_s29 + $0xf8] sm:$0xff] %v399_v31  ;;  %v403_v33 = vld [vmem:[%s1687_s28 + $0x210] sm:$0xff] }
  0x26   : > { %402 = vst [vmem:[%s1692_s29 + $0x100] sm:$0xff] %v401_v32  ;;  %v405_v34 = vld [vmem:[%s1687_s28 + $0x220] sm:$0xff]  ;;  %v407_v35 = vld [vmem:[%s1687_s28 + $0x230] sm:$0xff]  ;;  %404 = vst [vmem:[%s1692_s29 + $0x108] sm:$0xff] %v403_v33 }
  0x27   : > { %406 = vst [vmem:[%s1692_s29 + $0x110] sm:$0xff] %v405_v34  ;;  %408 = vst [vmem:[%s1692_s29 + $0x118] sm:$0xff] %v407_v35  ;;  %v409_v36 = vld [vmem:[%s1687_s28 + $0x240] sm:$0xff]  ;;  %v411_v37 = vld [vmem:[%s1687_s28 + $0x250] sm:$0xff] }
  0x28   : > { %v413_v38 = vld [vmem:[%s1687_s28 + $0x260] sm:$0xff]  ;;  %410 = vst [vmem:[%s1692_s29 + $0x120] sm:$0xff] %v409_v36  ;;  %412 = vst [vmem:[%s1692_s29 + $0x128] sm:$0xff] %v411_v37  ;;  %v415_v39 = vld [vmem:[%s1687_s28 + $0x270] sm:$0xff] }
  0x29   : > { %414 = vst [vmem:[%s1692_s29 + $0x130] sm:$0xff] %v413_v38  ;;  %v417_v40 = vld [vmem:[%s1687_s28 + $0x280] sm:$0xff]  ;;  %v419_v41 = vld [vmem:[%s1687_s28 + $0x290] sm:$0xff]  ;;  %416 = vst [vmem:[%s1692_s29 + $0x138] sm:$0xff] %v415_v39 }
  0x2a   : > { %418 = vst [vmem:[%s1692_s29 + $0x140] sm:$0xff] %v417_v40  ;;  %420 = vst [vmem:[%s1692_s29 + $0x148] sm:$0xff] %v419_v41  ;;  %v421_v42 = vld [vmem:[%s1687_s28 + $0x2a0] sm:$0xff]  ;;  %v423_v43 = vld [vmem:[%s1687_s28 + $0x2b0] sm:$0xff] }
  0x2b   : > { %v425_v44 = vld [vmem:[%s1687_s28 + $0x2c0] sm:$0xff]  ;;  %422 = vst [vmem:[%s1692_s29 + $0x150] sm:$0xff] %v421_v42  ;;  %424 = vst [vmem:[%s1692_s29 + $0x158] sm:$0xff] %v423_v43  ;;  %v427_v45 = vld [vmem:[%s1687_s28 + $0x2d0] sm:$0xff] }
  0x2c   : > { %426 = vst [vmem:[%s1692_s29 + $0x160] sm:$0xff] %v425_v44  ;;  %v429_v46 = vld [vmem:[%s1687_s28 + $0x2e0] sm:$0xff]  ;;  %v431_v47 = vld [vmem:[%s1687_s28 + $0x2f0] sm:$0xff]  ;;  %428 = vst [vmem:[%s1692_s29 + $0x168] sm:$0xff] %v427_v45 }
  0x2d   : > { %430 = vst [vmem:[%s1692_s29 + $0x170] sm:$0xff] %v429_v46  ;;  %432 = vst [vmem:[%s1692_s29 + $0x178] sm:$0xff] %v431_v47  ;;  %v433_v48 = vld [vmem:[%s1687_s28 + $0x300] sm:$0xff]  ;;  %v435_v49 = vld [vmem:[%s1687_s28 + $0x310] sm:$0xff] }
  0x2e   : > { %v437_v50 = vld [vmem:[%s1687_s28 + $0x320] sm:$0xff]  ;;  %434 = vst [vmem:[%s1692_s29 + $0x180] sm:$0xff] %v433_v48  ;;  %436 = vst [vmem:[%s1692_s29 + $0x188] sm:$0xff] %v435_v49  ;;  %v439_v51 = vld [vmem:[%s1687_s28 + $0x330] sm:$0xff] }
  0x2f   : > { %438 = vst [vmem:[%s1692_s29 + $0x190] sm:$0xff] %v437_v50  ;;  %v441_v52 = vld [vmem:[%s1687_s28 + $0x340] sm:$0xff]  ;;  %v443_v53 = vld [vmem:[%s1687_s28 + $0x350] sm:$0xff]  ;;  %440 = vst [vmem:[%s1692_s29 + $0x198] sm:$0xff] %v439_v51 }
  0x30   : > { %442 = vst [vmem:[%s1692_s29 + $0x1a0] sm:$0xff] %v441_v52  ;;  %444 = vst [vmem:[%s1692_s29 + $0x1a8] sm:$0xff] %v443_v53  ;;  %v445_v54 = vld [vmem:[%s1687_s28 + $0x360] sm:$0xff]  ;;  %v447_v55 = vld [vmem:[%s1687_s28 + $0x370] sm:$0xff] }
  0x31   : > { %v449_v56 = vld [vmem:[%s1687_s28 + $0x380] sm:$0xff]  ;;  %446 = vst [vmem:[%s1692_s29 + $0x1b0] sm:$0xff] %v445_v54  ;;  %448 = vst [vmem:[%s1692_s29 + $0x1b8] sm:$0xff] %v447_v55  ;;  %v451_v57 = vld [vmem:[%s1687_s28 + $0x390] sm:$0xff] }
  0x32   : > { %450 = vst [vmem:[%s1692_s29 + $0x1c0] sm:$0xff] %v449_v56  ;;  %v453_v58 = vld [vmem:[%s1687_s28 + $0x3a0] sm:$0xff]  ;;  %v455_v59 = vld [vmem:[%s1687_s28 + $0x3b0] sm:$0xff]  ;;  %452 = vst [vmem:[%s1692_s29 + $0x1c8] sm:$0xff] %v451_v57 }
  0x33   : > { %454 = vst [vmem:[%s1692_s29 + $0x1d0] sm:$0xff] %v453_v58  ;;  %456 = vst [vmem:[%s1692_s29 + $0x1d8] sm:$0xff] %v455_v59  ;;  %v457_v60 = vld [vmem:[%s1687_s28 + $0x3c0] sm:$0xff]  ;;  %v459_v61 = vld [vmem:[%s1687_s28 + $0x3d0] sm:$0xff] }
  0x34   : > { %v461_v62 = vld [vmem:[%s1687_s28 + $0x3e0] sm:$0xff]  ;;  %458 = vst [vmem:[%s1692_s29 + $0x1e0] sm:$0xff] %v457_v60  ;;  %460 = vst [vmem:[%s1692_s29 + $0x1e8] sm:$0xff] %v459_v61  ;;  %v463_v63 = vld [vmem:[%s1687_s28 + $0x3f0] sm:$0xff] }
  0x35   : > { %462 = vst [vmem:[%s1692_s29 + $0x1f0] sm:$0xff] %v461_v62  ;;  %464 = vst [vmem:[%s1692_s29 + $0x1f8] sm:$0xff] %v463_v63 }
  0x36 PF: > { %p1307_p8 = scmp.ge.s32.totalorder %s1617_s16, 1  ;;  %p475_p9 = scmp.lt.s32.totalorder %s1617_s16, 3 }
  0x38   : > { %p476_p10 = pnand %p1307_p8, %p475_p9 }
  0x39   : > { %s482_s30 = sand.u32 (!%p476_p10), 1, %s1601_s12   ;;  %v571_v0 = vld [vmem:[%s2162_s0 + $0x8] sm:$0xff] (!%p476_p10)  ;;  %v573_v1 = vld [vmem:[%s2162_s0 + $0x18] sm:$0xff] (!%p476_p10)  ;;  %p530_p11 = scmp.lt.s32.totalorder (!%p476_p10), %s1609_s14, 1 }
  0x3a   : > { %479 = sbr.rel (%p476_p10) target bundleno = 387 (0x183), region = 66  ;;  %s1308_s8 = sshll.u32 (!%p476_p10), %s482_s30, 9  ;;  %762 = vmatprep.mubr.f32.mxu0 (!%p476_p10), %v571_v0  ;;  %907 = vmatprep.mubr.f32.mxu1 (!%p476_p10), %v573_v1 }
  0x3b   : > { %s1830_s9 = scalar_lea.vmem (!%p476_p10), [#allocation3], %s1308_s8  ;;  %s1309_s18 = sshll.u32 (!%p476_p10), %s482_s30, 7 }
  0x3c   : > { %v650_v2 = vld [vmem:[%s1830_s9 + $0x80] sm:$0xff] (!%p476_p10)  ;;  %v651_v3 = vld [vmem:[%s1830_s9 + $0x88] sm:$0xff] (!%p476_p10)  ;;  %v652_v13 = vld [vmem:[%s1830_s9 + $0x90] sm:$0xff] (!%p476_p10)  ;;  %s2092_s19 = scalar_lea.vmem (!%p476_p10), [#allocation4], %s1309_s18 }
  0x3d   : > { %v682_v4 = vld [vmem:[%s1830_s9 + $0x180] sm:$0xff] (!%p476_p10)  ;;  %v1475_v5 = vpack.c.bf16 (!%p476_p10), %v651_v3, %v650_v2  ;;  %v683_v6 = vld [vmem:[%s1830_s9 + $0x188] sm:$0xff] (!%p476_p10)  ;;  %v653_v15 = vld [vmem:[%s1830_s9 + $0x98] sm:$0xff] (!%p476_p10) }
  0x3e   : > { %v634_v7 = vld [vmem:[%s1830_s9] sm:$0xff] (!%p476_p10)  ;;  %v635_v8 = vld [vmem:[%s1830_s9 + $0x8] sm:$0xff] (!%p476_p10)  ;;  %v1507_v9 = vpack.c.bf16 (!%p476_p10), %v683_v6, %v682_v4  ;;  %v684_v16 = vld [vmem:[%s1830_s9 + $0x190] sm:$0xff] (!%p476_p10)  ;;  %v1479_v18 = vpack.c.bf16 (!%p476_p10), %v653_v15, %v652_v13 }
  0x3f   : > { %v1477_v10 = vpack.c.bf16 (!%p476_p10), %v635_v8, %v634_v7  ;;  %v666_v11 = vld [vmem:[%s1830_s9 + $0x100] sm:$0xff] (!%p476_p10)  ;;  %v667_v12 = vld [vmem:[%s1830_s9 + $0x108] sm:$0xff] (!%p476_p10)  ;;  %1476 = vmatprep.subr.bf16.mxu0 (!%p476_p10), %v1475_v5  ;;  %v685_v17 = vld [vmem:[%s1830_s9 + $0x198] sm:$0xff] (!%p476_p10) }
  0x40   : > { %v1509_v14 = vpack.c.bf16 (!%p476_p10), %v667_v12, %v666_v11  ;;  %1508 = vmatprep.subr.bf16.mxu1 (!%p476_p10), %v1507_v9  ;;  %v1511_v19 = vpack.c.bf16 (!%p476_p10), %v685_v17, %v684_v16  ;;  %v636_v20 = vld [vmem:[%s1830_s9 + $0x10] sm:$0xff] (!%p476_p10)  ;;  %v637_v21 = vld [vmem:[%s1830_s9 + $0x18] sm:$0xff] (!%p476_p10)  ;;  %v654_v25 = vld [vmem:[%s1830_s9 + $0xa0] sm:$0xff] (!%p476_p10) }
  0x41   : > { %1478 = vmatpush3.bf16.msra.mxu0 %v1477_v10  ;;  %v668_v22 = vld [vmem:[%s1830_s9 + $0x110] sm:$0xff]  ;;  %v1481_v23 = vpack.c.bf16 %v637_v21, %v636_v20  ;;  %v669_v24 = vld [vmem:[%s1830_s9 + $0x118] sm:$0xff]  ;;  %v655_v26 = vld [vmem:[%s1830_s9 + $0xa8] sm:$0xff]  ;;  %s531_s8 = scalar_select %p530_p11, %s1609_s14, 1 }
  0x42   : > { %1510 = vmatpush3.bf16.msra.mxu1 %v1509_v14  ;;  %1480 = vmatprep.subr.bf16.mxu0 %v1479_v18  ;;  %v1513_v27 = vpack.c.bf16 %v669_v24, %v668_v22  ;;  %v1483_v28 = vpack.c.bf16 %v655_v26, %v654_v25  ;;  %v686_v29 = vld [vmem:[%s1830_s9 + $0x1a0] sm:$0xff]  ;;  %v687_v30 = vld [vmem:[%s1830_s9 + $0x1a8] sm:$0xff]  ;;  %v656_v37 = vld [vmem:[%s1830_s9 + $0xb0] sm:$0xff]  ;;  %s1312_s12 = sshll.u32 (%p1674_p6), %s1609_s14, 3 }
  0x43   : > { %1512 = vmatprep.subr.bf16.mxu1 %v1511_v19  ;;  %v638_v31 = vld [vmem:[%s1830_s9 + $0x20] sm:$0xff]  ;;  %v1515_v32 = vpack.c.bf16 %v687_v30, %v686_v29  ;;  %v639_v33 = vld [vmem:[%s1830_s9 + $0x28] sm:$0xff]  ;;  %v657_v38 = vld [vmem:[%s1830_s9 + $0xb8] sm:$0xff]  ;;  %s532_s11 = scalar_lea.vmem %s2164_s2, %s531_s8  ;;  %s1105_s23 = scalar_lea.vmem (%p1674_p6), %s2165_s3, %s1312_s12 }
  0x44   : > { %v670_v34 = vld [vmem:[%s1830_s9 + $0x120] sm:$0xff]  ;;  %v671_v35 = vld [vmem:[%s1830_s9 + $0x128] sm:$0xff]  ;;  %v1485_v36 = vpack.c.bf16 %v639_v33, %v638_v31  ;;  %v688_v39 = vld [vmem:[%s1830_s9 + $0x1b0] sm:$0xff]  ;;  %v1487_v41 = vpack.c.bf16 %v657_v38, %v656_v37 }
  0x45   : > { %1482 = vmatpush3.bf16.msra.mxu0 %v1481_v23  ;;  %v1517_v40 = vpack.c.bf16 %v671_v35, %v670_v34  ;;  %v689_v42 = vld [vmem:[%s1830_s9 + $0x1b8] sm:$0xff]  ;;  %v640_v43 = vld [vmem:[%s1830_s9 + $0x30] sm:$0xff]  ;;  %v658_v48 = vld [vmem:[%s1830_s9 + $0xc0] sm:$0xff] }
  0x46   : > { %1514 = vmatpush3.bf16.msra.mxu1 %v1513_v27  ;;  %1484 = vmatprep.subr.bf16.mxu0 %v1483_v28  ;;  %v641_v44 = vld [vmem:[%s1830_s9 + $0x38] sm:$0xff]  ;;  %v1519_v45 = vpack.c.bf16 %v689_v42, %v688_v39  ;;  %v672_v46 = vld [vmem:[%s1830_s9 + $0x130] sm:$0xff]  ;;  %v659_v49 = vld [vmem:[%s1830_s9 + $0xc8] sm:$0xff] }
  0x47   : > { %1516 = vmatprep.subr.bf16.mxu1 %v1515_v32  ;;  %v673_v47 = vld [vmem:[%s1830_s9 + $0x138] sm:$0xff]  ;;  %v690_v50 = vld [vmem:[%s1830_s9 + $0x1c0] sm:$0xff]  ;;  %v691_v51 = vld [vmem:[%s1830_s9 + $0x1c8] sm:$0xff]  ;;  %v1489_v52 = vpack.c.bf16 %v641_v44, %v640_v43  ;;  %v1491_v54 = vpack.c.bf16 %v659_v49, %v658_v48 }
  0x48   : > { %v1521_v53 = vpack.c.bf16 %v673_v47, %v672_v46  ;;  %v642_v55 = vld [vmem:[%s1830_s9 + $0x40] sm:$0xff]  ;;  %v643_v56 = vld [vmem:[%s1830_s9 + $0x48] sm:$0xff]  ;;  %v1523_v58 = vpack.c.bf16 %v691_v51, %v690_v50  ;;  %v660_v60 = vld [vmem:[%s1830_s9 + $0xd0] sm:$0xff] }
  0x49   : > { %1486 = vmatpush3.bf16.msra.mxu0 %v1485_v36  ;;  %v674_v57 = vld [vmem:[%s1830_s9 + $0x140] sm:$0xff]  ;;  %v675_v59 = vld [vmem:[%s1830_s9 + $0x148] sm:$0xff]  ;;  %v661_v61 = vld [vmem:[%s1830_s9 + $0xd8] sm:$0xff]  ;;  %v1493_v0 = vpack.c.bf16 %v643_v56, %v642_v55 }
  0x4a   : > { %1518 = vmatpush3.bf16.msra.mxu1 %v1517_v40  ;;  %1488 = vmatprep.subr.bf16.mxu0 %v1487_v41  ;;  %v692_v62 = vld [vmem:[%s1830_s9 + $0x1d0] sm:$0xff]  ;;  %v693_v63 = vld [vmem:[%s1830_s9 + $0x1d8] sm:$0xff]  ;;  %v1525_v1 = vpack.c.bf16 %v675_v59, %v674_v57  ;;  %v1495_v2 = vpack.c.bf16 %v661_v61, %v660_v60  ;;  %v662_v8 = vld [vmem:[%s1830_s9 + $0xe0] sm:$0xff] }
  0x4b   : > { %1520 = vmatprep.subr.bf16.mxu1 %v1519_v45  ;;  %v644_v3 = vld [vmem:[%s1830_s9 + $0x50] sm:$0xff]  ;;  %v645_v4 = vld [vmem:[%s1830_s9 + $0x58] sm:$0xff]  ;;  %v1527_v6 = vpack.c.bf16 %v693_v63, %v692_v62  ;;  %v663_v9 = vld [vmem:[%s1830_s9 + $0xe8] sm:$0xff] }
  0x4c   : > { %v676_v5 = vld [vmem:[%s1830_s9 + $0x150] sm:$0xff]  ;;  %v677_v7 = vld [vmem:[%s1830_s9 + $0x158] sm:$0xff]  ;;  %v694_v10 = vld [vmem:[%s1830_s9 + $0x1e0] sm:$0xff]  ;;  %v1497_v12 = vpack.c.bf16 %v645_v4, %v644_v3  ;;  %v1499_v14 = vpack.c.bf16 %v663_v9, %v662_v8 }
  0x4d   : > { %1490 = vmatpush3.bf16.msra.mxu0 %v1489_v52  ;;  %v695_v11 = vld [vmem:[%s1830_s9 + $0x1e8] sm:$0xff]  ;;  %v1529_v13 = vpack.c.bf16 %v677_v7, %v676_v5  ;;  %v646_v15 = vld [vmem:[%s1830_s9 + $0x60] sm:$0xff]  ;;  %v664_v20 = vld [vmem:[%s1830_s9 + $0xf0] sm:$0xff] }
  0x4e   : > { %1522 = vmatpush3.bf16.msra.mxu1 %v1521_v53  ;;  %1492 = vmatprep.subr.bf16.mxu0 %v1491_v54  ;;  %v647_v16 = vld [vmem:[%s1830_s9 + $0x68] sm:$0xff]  ;;  %v678_v17 = vld [vmem:[%s1830_s9 + $0x160] sm:$0xff]  ;;  %v1531_v18 = vpack.c.bf16 %v695_v11, %v694_v10  ;;  %v665_v21 = vld [vmem:[%s1830_s9 + $0xf8] sm:$0xff] }
  0x4f   : > { %1524 = vmatprep.subr.bf16.mxu1 %v1523_v58  ;;  %v679_v19 = vld [vmem:[%s1830_s9 + $0x168] sm:$0xff]  ;;  %v696_v22 = vld [vmem:[%s1830_s9 + $0x1f0] sm:$0xff]  ;;  %v697_v23 = vld [vmem:[%s1830_s9 + $0x1f8] sm:$0xff]  ;;  %v1501_v24 = vpack.c.bf16 %v647_v16, %v646_v15  ;;  %v1503_v26 = vpack.c.bf16 %v665_v21, %v664_v20 }
  0x50   : > { %v1533_v25 = vpack.c.bf16 %v679_v19, %v678_v17  ;;  %v648_v27 = vld [vmem:[%s1830_s9 + $0x70] sm:$0xff]  ;;  %v649_v28 = vld [vmem:[%s1830_s9 + $0x78] sm:$0xff]  ;;  %v1535_v29 = vpack.c.bf16 %v697_v23, %v696_v22  ;;  %v570_v34 = vld [vmem:[%s2162_s0] sm:$0xff] }
  0x51   : > { %1494 = vmatpush3.bf16.msra.mxu0 %v1493_v0  ;;  %v680_v30 = vld [vmem:[%s1830_s9 + $0x170] sm:$0xff]  ;;  %v681_v31 = vld [vmem:[%s1830_s9 + $0x178] sm:$0xff]  ;;  %v1505_v32 = vpack.c.bf16 %v649_v28, %v648_v27  ;;  %v575_v36 = vld [vmem:[%s2162_s0 + $0x28] sm:$0xff] }
  0x52   : > { %1526 = vmatpush3.bf16.msra.mxu1 %v1525_v1  ;;  %1496 = vmatprep.subr.bf16.mxu0 %v1495_v2  ;;  %v1537_v33 = vpack.c.bf16 %v681_v31, %v680_v30  ;;  %v572_v35 = vld [vmem:[%s2162_s0 + $0x10] sm:$0xff]  ;;  %v577_v37 = vld [vmem:[%s2162_s0 + $0x38] sm:$0xff]  ;;  %v574_v38 = vld [vmem:[%s2162_s0 + $0x20] sm:$0xff] }
  0x53   : > { %1528 = vmatprep.subr.bf16.mxu1 %v1527_v6  ;;  %v576_v39 = vld [vmem:[%s2162_s0 + $0x30] sm:$0xff]  ;;  %v579_v40 = vld [vmem:[%s2162_s0 + $0x48] sm:$0xff]  ;;  %v581_v41 = vld [vmem:[%s2162_s0 + $0x58] sm:$0xff] }
  0x54   : > { %v578_v42 = vld [vmem:[%s2162_s0 + $0x40] sm:$0xff]  ;;  %v580_v43 = vld [vmem:[%s2162_s0 + $0x50] sm:$0xff]  ;;  %v583_v44 = vld [vmem:[%s2162_s0 + $0x68] sm:$0xff] }
  0x55   : > { %1498 = vmatpush3.bf16.msra.mxu0 %v1497_v12  ;;  %v585_v45 = vld [vmem:[%s2162_s0 + $0x78] sm:$0xff]  ;;  %v582_v46 = vld [vmem:[%s2162_s0 + $0x60] sm:$0xff]  ;;  %v584_v47 = vld [vmem:[%s2162_s0 + $0x70] sm:$0xff] }
  0x56   : > { %1530 = vmatpush3.bf16.msra.mxu1 %v1529_v13  ;;  %1500 = vmatprep.subr.bf16.mxu0 %v1499_v14  ;;  %v587_v48 = vld [vmem:[%s2162_s0 + $0x88] sm:$0xff]  ;;  %v589_v49 = vld [vmem:[%s2162_s0 + $0x98] sm:$0xff]  ;;  %v586_v50 = vld [vmem:[%s2162_s0 + $0x80] sm:$0xff] }
  0x57   : > { %1532 = vmatprep.subr.bf16.mxu1 %v1531_v18  ;;  %v588_v51 = vld [vmem:[%s2162_s0 + $0x90] sm:$0xff]  ;;  %v591_v52 = vld [vmem:[%s2162_s0 + $0xa8] sm:$0xff]  ;;  %v593_v53 = vld [vmem:[%s2162_s0 + $0xb8] sm:$0xff] }
  0x58   : > { %v590_v54 = vld [vmem:[%s2162_s0 + $0xa0] sm:$0xff]  ;;  %v592_v55 = vld [vmem:[%s2162_s0 + $0xb0] sm:$0xff]  ;;  %v595_v56 = vld [vmem:[%s2162_s0 + $0xc8] sm:$0xff] }
  0x59   : > { %1502 = vmatpush3.bf16.msra.mxu0 %v1501_v24  ;;  %v597_v57 = vld [vmem:[%s2162_s0 + $0xd8] sm:$0xff]  ;;  %v594_v58 = vld [vmem:[%s2162_s0 + $0xc0] sm:$0xff]  ;;  %v596_v59 = vld [vmem:[%s2162_s0 + $0xd0] sm:$0xff] }
  0x5a   : > { %1534 = vmatpush3.bf16.msra.mxu1 %v1533_v25  ;;  %1504 = vmatprep.subr.bf16.mxu0 %v1503_v26  ;;  %v599_v60 = vld [vmem:[%s2162_s0 + $0xe8] sm:$0xff]  ;;  %v601_v61 = vld [vmem:[%s2162_s0 + $0xf8] sm:$0xff]  ;;  %v598_v62 = vld [vmem:[%s2162_s0 + $0xe0] sm:$0xff] }
  0x5b   : > { %1536 = vmatprep.subr.bf16.mxu1 %v1535_v29  ;;  %v600_v63 = vld [vmem:[%s2162_s0 + $0xf0] sm:$0xff]  ;;  %v603_v0 = vld [vmem:[%s2162_s0 + $0x108] sm:$0xff]  ;;  %v605_v1 = vld [vmem:[%s2162_s0 + $0x118] sm:$0xff] }
  0x5c   : > { %v602_v2 = vld [vmem:[%s2162_s0 + $0x100] sm:$0xff]  ;;  %v604_v3 = vld [vmem:[%s2162_s0 + $0x110] sm:$0xff]  ;;  %v607_v4 = vld [vmem:[%s2162_s0 + $0x128] sm:$0xff] }
  0x5d   : > { %1506 = vmatpush3.bf16.msra.mxu0 %v1505_v32  ;;  %v609_v5 = vld [vmem:[%s2162_s0 + $0x138] sm:$0xff]  ;;  %v606_v6 = vld [vmem:[%s2162_s0 + $0x120] sm:$0xff]  ;;  %v608_v7 = vld [vmem:[%s2162_s0 + $0x130] sm:$0xff] }
  0x5e   : > { %1538 = vmatpush3.bf16.msra.mxu1 %v1537_v33  ;;  %v611_v8 = vld [vmem:[%s2162_s0 + $0x148] sm:$0xff]  ;;  %v613_v9 = vld [vmem:[%s2162_s0 + $0x158] sm:$0xff]  ;;  %v610_v10 = vld [vmem:[%s2162_s0 + $0x140] sm:$0xff] }
  0x5f   : > { %v612_v11 = vld [vmem:[%s2162_s0 + $0x150] sm:$0xff]  ;;  %v615_v12 = vld [vmem:[%s2162_s0 + $0x168] sm:$0xff]  ;;  %v617_v13 = vld [vmem:[%s2162_s0 + $0x178] sm:$0xff] }
  0x60   : > { %763 = vmatmul.mubr.f32.vlgmr.msra.gmra.mrb[0].mxu0 %v570_v34  ;;  %v614_v14 = vld [vmem:[%s2162_s0 + $0x160] sm:$0xff]  ;;  %v616_v15 = vld [vmem:[%s2162_s0 + $0x170] sm:$0xff]  ;;  %v619_v16 = vld [vmem:[%s2162_s0 + $0x188] sm:$0xff] }
  0x61   : > { %908 = vmatmul.mubr.f32.vlgmr.msra.gmra.mrb[0].mxu1 %v572_v35  ;;  %767 = vmatprep.mubr.f32.mxu0 %v575_v36  ;;  %v621_v17 = vld [vmem:[%s2162_s0 + $0x198] sm:$0xff]  ;;  %v618_v18 = vld [vmem:[%s2162_s0 + $0x180] sm:$0xff]  ;;  %v620_v19 = vld [vmem:[%s2162_s0 + $0x190] sm:$0xff] }
  0x62   : > { %912 = vmatprep.mubr.f32.mxu1 %v577_v37  ;;  %v623_v20 = vld [vmem:[%s2162_s0 + $0x1a8] sm:$0xff]  ;;  %v625_v21 = vld [vmem:[%s2162_s0 + $0x1b8] sm:$0xff]  ;;  %v622_v22 = vld [vmem:[%s2162_s0 + $0x1a0] sm:$0xff] }
  0x63   : > { %v624_v23 = vld [vmem:[%s2162_s0 + $0x1b0] sm:$0xff]  ;;  %v627_v24 = vld [vmem:[%s2162_s0 + $0x1c8] sm:$0xff]  ;;  %v629_v25 = vld [vmem:[%s2162_s0 + $0x1d8] sm:$0xff] }
  0x64   : > { %768 = vmatmul.mubr.f32.gmra.mrb[2].mxu0 %v574_v38  ;;  %v626_v26 = vld [vmem:[%s2162_s0 + $0x1c0] sm:$0xff]  ;;  %v628_v27 = vld [vmem:[%s2162_s0 + $0x1d0] sm:$0xff]  ;;  %v631_v28 = vld [vmem:[%s2162_s0 + $0x1e8] sm:$0xff] }
  0x65   : > { %913 = vmatmul.mubr.f32.gmra.mrb[2].mxu1 %v576_v39  ;;  %772 = vmatprep.mubr.f32.mxu0 %v579_v40  ;;  %v633_v29 = vld [vmem:[%s2162_s0 + $0x1f8] sm:$0xff]  ;;  %v630_v30 = vld [vmem:[%s2162_s0 + $0x1e0] sm:$0xff]  ;;  %v632_v31 = vld [vmem:[%s2162_s0 + $0x1f0] sm:$0xff] }
  0x66   : > { %917 = vmatprep.mubr.f32.mxu1 %v581_v41  ;;  %v2087_v38 = vld [vmem:[%s532_s11] ss:$0 sm:$0xff] }
  0x68   : > { %773 = vmatmul.mubr.f32.gmra.mrb[4].mxu0 %v578_v42 }
  0x69   : > { %918 = vmatmul.mubr.f32.gmra.mrb[4].mxu1 %v580_v43  ;;  %777 = vmatprep.mubr.f32.mxu0 %v583_v44 }
  0x6a   : > { %922 = vmatprep.mubr.f32.mxu1 %v585_v45 }
  0x6c   : > { %778 = vmatmul.mubr.f32.gmra.mrb[6].mxu0 %v582_v46 }
  0x6d   : > { %923 = vmatmul.mubr.f32.gmra.mrb[6].mxu1 %v584_v47  ;;  %782 = vmatprep.mubr.f32.mxu0 %v587_v48 }
  0x6e   : > { %927 = vmatprep.mubr.f32.mxu1 %v589_v49 }
  0x70   : > { %783 = vmatmul.mubr.f32.gmra.mrb[8].mxu0 %v586_v50 }
  0x71   : > { %928 = vmatmul.mubr.f32.gmra.mrb[8].mxu1 %v588_v51  ;;  %787 = vmatprep.mubr.f32.mxu0 %v591_v52 }
  0x72   : > { %932 = vmatprep.mubr.f32.mxu1 %v593_v53 }
  0x74   : > { %788 = vmatmul.mubr.f32.gmra.mrb[10].mxu0 %v590_v54 }
  0x75   : > { %933 = vmatmul.mubr.f32.gmra.mrb[10].mxu1 %v592_v55  ;;  %792 = vmatprep.mubr.f32.mxu0 %v595_v56 }
  0x76   : > { %937 = vmatprep.mubr.f32.mxu1 %v597_v57 }
  0x78   : > { %793 = vmatmul.mubr.f32.gmra.mrb[12].mxu0 %v594_v58 }
  0x79   : > { %938 = vmatmul.mubr.f32.gmra.mrb[12].mxu1 %v596_v59  ;;  %797 = vmatprep.mubr.f32.mxu0 %v599_v60 }
  0x7a   : > { %942 = vmatprep.mubr.f32.mxu1 %v601_v61 }
  0x7c   : > { %798 = vmatmul.mubr.f32.gmra.mrb[14].mxu0 %v598_v62 }
  0x7d   : > { %943 = vmatmul.mubr.f32.gmra.mrb[14].mxu1 %v600_v63  ;;  %802 = vmatprep.mubr.f32.mxu0 %v603_v0 }
  0x7e   : > { %947 = vmatprep.mubr.f32.mxu1 %v605_v1 }
  0x80   : > { %803 = vmatmul.mubr.f32.gmra.mrb[16].mxu0 %v602_v2 }
  0x81   : > { %948 = vmatmul.mubr.f32.gmra.mrb[16].mxu1 %v604_v3  ;;  %807 = vmatprep.mubr.f32.mxu0 %v607_v4 }
  0x82   : > { %952 = vmatprep.mubr.f32.mxu1 %v609_v5 }
  0x84   : > { %808 = vmatmul.mubr.f32.gmra.mrb[18].mxu0 %v606_v6 }
  0x85   : > { %953 = vmatmul.mubr.f32.gmra.mrb[18].mxu1 %v608_v7  ;;  %812 = vmatprep.mubr.f32.mxu0 %v611_v8 }
  0x86   : > { %957 = vmatprep.mubr.f32.mxu1 %v613_v9 }
  0x88   : > { %813 = vmatmul.mubr.f32.gmra.mrb[20].mxu0 %v610_v10 }
  0x89   : > { %958 = vmatmul.mubr.f32.gmra.mrb[20].mxu1 %v612_v11  ;;  %817 = vmatprep.mubr.f32.mxu0 %v615_v12 }
  0x8a   : > { %962 = vmatprep.mubr.f32.mxu1 %v617_v13 }
  0x8c   : > { %818 = vmatmul.mubr.f32.gmra.mrb[22].mxu0 %v614_v14 }
  0x8d   : > { %963 = vmatmul.mubr.f32.gmra.mrb[22].mxu1 %v616_v15  ;;  %822 = vmatprep.mubr.f32.mxu0 %v619_v16 }
  0x8e   : > { %967 = vmatprep.mubr.f32.mxu1 %v621_v17 }
  0x90   : > { %823 = vmatmul.mubr.f32.gmra.mrb[24].mxu0 %v618_v18 }
  0x91   : > { %968 = vmatmul.mubr.f32.gmra.mrb[24].mxu1 %v620_v19  ;;  %827 = vmatprep.mubr.f32.mxu0 %v623_v20 }
  0x92   : > { %972 = vmatprep.mubr.f32.mxu1 %v625_v21 }
  0x94   : > { %828 = vmatmul.mubr.f32.gmra.mrb[26].mxu0 %v622_v22 }
  0x95   : > { %973 = vmatmul.mubr.f32.gmra.mrb[26].mxu1 %v624_v23  ;;  %832 = vmatprep.mubr.f32.mxu0 %v627_v24 }
  0x96   : > { %977 = vmatprep.mubr.f32.mxu1 %v629_v25 }
  0x98   : > { %833 = vmatmul.mubr.f32.gmra.mrb[28].mxu0 %v626_v26 }
  0x99   : > { %978 = vmatmul.mubr.f32.gmra.mrb[28].mxu1 %v628_v27  ;;  %837 = vmatprep.mubr.f32.mxu0 %v631_v28 }
  0x9a   : > { %982 = vmatprep.mubr.f32.mxu1 %v633_v29 }
  0x9c   : > { %838 = vmatmul.mubr.f32.gmra.mrb[30].mxu0 %v630_v30 }
  0x9d   : > { %983 = vmatmul.mubr.f32.gmra.mrb[30].mxu1 %v632_v31 }
 0x133   : > { %v1347_v32 = vpop.f32.mrb[0].mxu0 }
 0x134   : > { %v1427_v33 = vpop.f32.mrb[0].mxu1  ;;  %v1348_v34 = vpop.f32.mrb[1].mxu0 }
 0x135   : > { %v1349_v35 = vadd.f32 %v1348_v34, %v1347_v32  ;;  %v1428_v36 = vpop.f32.mrb[1].mxu1 }
 0x136   : > { %v1429_v37 = vadd.f32 %v1428_v36, %v1427_v33 }
 0x137   : > { %v1350_v39 = vpop.f32.mrb[2].mxu0 }
 0x138   : > { %v910_v40 = vadd.f32 %v1429_v37, %v1349_v35  ;;  %v1430_v41 = vpop.f32.mrb[2].mxu1  ;;  %v1351_v42 = vpop.f32.mrb[3].mxu0 }
 0x139   : > { %v1352_v43 = vadd.f32 %v1351_v42, %v1350_v39  ;;  %v1431_v44 = vpop.f32.mrb[3].mxu1 }
 0x13a   : > { %v1046_v45 = vadd.f32 %v2087_v38, %v910_v40  ;;  %v1432_v46 = vadd.f32 %v1431_v44, %v1430_v41 }
 0x13b   : > { %v1353_v47 = vpop.f32.mrb[4].mxu0 }
 0x13c   : > { %v1062_v48 = vmax.f32 %v1046_v45, 0.0  ;;  %v915_v49 = vadd.f32 %v1432_v46, %v1352_v43  ;;  %v1433_v50 = vpop.f32.mrb[4].mxu1  ;;  %v1354_v51 = vpop.f32.mrb[5].mxu0 }
 0x13d   : > { %v1355_v52 = vadd.f32 %v1354_v51, %v1353_v47  ;;  %v1434_v53 = vpop.f32.mrb[5].mxu1 }
 0x13e   : > { %1078 = vst [vmem:[%s2092_s19] sm:$0xff] %v1062_v48  ;;  %v1047_v54 = vadd.f32 %v2087_v38, %v915_v49  ;;  %v1435_v55 = vadd.f32 %v1434_v53, %v1433_v50 }
 0x13f   : > { %v1356_v56 = vpop.f32.mrb[6].mxu0 }
 0x140   : > { %v1063_v57 = vmax.f32 %v1047_v54, 0.0  ;;  %v920_v58 = vadd.f32 %v1435_v55, %v1355_v52  ;;  %v1436_v59 = vpop.f32.mrb[6].mxu1  ;;  %v1357_v60 = vpop.f32.mrb[7].mxu0 }
 0x141   : > { %v1358_v61 = vadd.f32 %v1357_v60, %v1356_v56  ;;  %v1437_v62 = vpop.f32.mrb[7].mxu1 }
 0x142   : > { %1079 = vst [vmem:[%s2092_s19 + $0x8] sm:$0xff] %v1063_v57  ;;  %v1048_v63 = vadd.f32 %v2087_v38, %v920_v58  ;;  %v1438_v0 = vadd.f32 %v1437_v62, %v1436_v59 }
 0x143   : > { %v1359_v1 = vpop.f32.mrb[8].mxu0 }
 0x144   : > { %v1064_v2 = vmax.f32 %v1048_v63, 0.0  ;;  %v925_v3 = vadd.f32 %v1438_v0, %v1358_v61  ;;  %v1439_v4 = vpop.f32.mrb[8].mxu1  ;;  %v1360_v5 = vpop.f32.mrb[9].mxu0 }
 0x145   : > { %v1361_v6 = vadd.f32 %v1360_v5, %v1359_v1  ;;  %v1440_v7 = vpop.f32.mrb[9].mxu1 }
 0x146   : > { %1080 = vst [vmem:[%s2092_s19 + $0x10] sm:$0xff] %v1064_v2  ;;  %v1049_v8 = vadd.f32 %v2087_v38, %v925_v3  ;;  %v1441_v9 = vadd.f32 %v1440_v7, %v1439_v4 }
 0x147   : > { %v1362_v10 = vpop.f32.mrb[10].mxu0 }
 0x148   : > { %v1065_v11 = vmax.f32 %v1049_v8, 0.0  ;;  %v930_v12 = vadd.f32 %v1441_v9, %v1361_v6  ;;  %v1442_v13 = vpop.f32.mrb[10].mxu1  ;;  %v1363_v14 = vpop.f32.mrb[11].mxu0 }
 0x149   : > { %v1364_v15 = vadd.f32 %v1363_v14, %v1362_v10  ;;  %v1443_v16 = vpop.f32.mrb[11].mxu1 }
 0x14a   : > { %1081 = vst [vmem:[%s2092_s19 + $0x18] sm:$0xff] %v1065_v11  ;;  %v1050_v17 = vadd.f32 %v2087_v38, %v930_v12  ;;  %v1444_v18 = vadd.f32 %v1443_v16, %v1442_v13 }
 0x14b   : > { %v1365_v19 = vpop.f32.mrb[12].mxu0 }
 0x14c   : > { %v1066_v20 = vmax.f32 %v1050_v17, 0.0  ;;  %v935_v21 = vadd.f32 %v1444_v18, %v1364_v15  ;;  %v1445_v22 = vpop.f32.mrb[12].mxu1  ;;  %v1366_v23 = vpop.f32.mrb[13].mxu0 }
 0x14d   : > { %v1367_v24 = vadd.f32 %v1366_v23, %v1365_v19  ;;  %v1446_v25 = vpop.f32.mrb[13].mxu1 }
 0x14e   : > { %1082 = vst [vmem:[%s2092_s19 + $0x20] sm:$0xff] %v1066_v20  ;;  %v1051_v26 = vadd.f32 %v2087_v38, %v935_v21  ;;  %v1447_v27 = vadd.f32 %v1446_v25, %v1445_v22 }
 0x14f   : > { %v1368_v28 = vpop.f32.mrb[14].mxu0 }
 0x150   : > { %v1067_v29 = vmax.f32 %v1051_v26, 0.0  ;;  %v940_v30 = vadd.f32 %v1447_v27, %v1367_v24  ;;  %v1448_v31 = vpop.f32.mrb[14].mxu1  ;;  %v1369_v32 = vpop.f32.mrb[15].mxu0 }
 0x151   : > { %v1370_v33 = vadd.f32 %v1369_v32, %v1368_v28  ;;  %v1449_v34 = vpop.f32.mrb[15].mxu1 }
 0x152   : > { %1083 = vst [vmem:[%s2092_s19 + $0x28] sm:$0xff] %v1067_v29  ;;  %v1052_v35 = vadd.f32 %v2087_v38, %v940_v30  ;;  %v1450_v36 = vadd.f32 %v1449_v34, %v1448_v31 }
 0x153   : > { %v1371_v37 = vpop.f32.mrb[16].mxu0 }
 0x154   : > { %v1068_v39 = vmax.f32 %v1052_v35, 0.0  ;;  %v945_v40 = vadd.f32 %v1450_v36, %v1370_v33  ;;  %v1451_v41 = vpop.f32.mrb[16].mxu1  ;;  %v1372_v42 = vpop.f32.mrb[17].mxu0 }
 0x155   : > { %v1373_v43 = vadd.f32 %v1372_v42, %v1371_v37  ;;  %v1452_v44 = vpop.f32.mrb[17].mxu1 }
 0x156   : > { %1084 = vst [vmem:[%s2092_s19 + $0x30] sm:$0xff] %v1068_v39  ;;  %v1053_v45 = vadd.f32 %v2087_v38, %v945_v40  ;;  %v1453_v46 = vadd.f32 %v1452_v44, %v1451_v41 }
 0x157   : > { %v1374_v47 = vpop.f32.mrb[18].mxu0 }
 0x158   : > { %v1069_v48 = vmax.f32 %v1053_v45, 0.0  ;;  %v950_v49 = vadd.f32 %v1453_v46, %v1373_v43  ;;  %v1454_v50 = vpop.f32.mrb[18].mxu1  ;;  %v1375_v51 = vpop.f32.mrb[19].mxu0 }
 0x159   : > { %v1376_v52 = vadd.f32 %v1375_v51, %v1374_v47  ;;  %v1455_v53 = vpop.f32.mrb[19].mxu1  ;;  %v1163_v51 = vld [vmem:[%s2092_s19] sm:$0xff] (%p1674_p6) }
 0x15a   : > { %1085 = vst [vmem:[%s2092_s19 + $0x38] sm:$0xff] %v1069_v48  ;;  %v1054_v54 = vadd.f32 %v2087_v38, %v950_v49  ;;  %v1456_v55 = vadd.f32 %v1455_v53, %v1454_v50  ;;  %v1167_v53 = vld [vmem:[%s2092_s19 + $0x10] sm:$0xff] (%p1674_p6)  ;;  %1164 = vst [vmem:[%s1105_s23] sm:$0xff] (%p1674_p6), %v1163_v51 }
 0x15b   : > { %v1377_v56 = vpop.f32.mrb[20].mxu0  ;;  %1168 = vst [vmem:[%s1105_s23 + $0x20] sm:$0xff] (%p1674_p6), %v1167_v53 }
 0x15c   : > { %v1070_v57 = vmax.f32 %v1054_v54, 0.0  ;;  %v955_v58 = vadd.f32 %v1456_v55, %v1376_v52  ;;  %v1457_v59 = vpop.f32.mrb[20].mxu1  ;;  %v1378_v60 = vpop.f32.mrb[21].mxu0  ;;  %v1165_v52 = vld [vmem:[%s2092_s19 + $0x8] sm:$0xff] (%p1674_p6)  ;;  %v1171_v54 = vld [vmem:[%s2092_s19 + $0x20] sm:$0xff] (%p1674_p6) }
 0x15d   : > { %v1379_v61 = vadd.f32 %v1378_v60, %v1377_v56  ;;  %v1458_v62 = vpop.f32.mrb[21].mxu1  ;;  %v1173_v55 = vld [vmem:[%s2092_s19 + $0x28] sm:$0xff] (%p1674_p6)  ;;  %1166 = vst [vmem:[%s1105_s23 + $0x10] sm:$0xff] (%p1674_p6), %v1165_v52  ;;  %1172 = vst [vmem:[%s1105_s23 + $0x40] sm:$0xff] (%p1674_p6), %v1171_v54  ;;  %v1175_v56 = vld [vmem:[%s2092_s19 + $0x30] sm:$0xff] (%p1674_p6) }
 0x15e   : > { %1086 = vst [vmem:[%s2092_s19 + $0x40] sm:$0xff] %v1070_v57  ;;  %v1055_v63 = vadd.f32 %v2087_v38, %v955_v58  ;;  %v1459_v0 = vadd.f32 %v1458_v62, %v1457_v59  ;;  %1174 = vst [vmem:[%s1105_s23 + $0x50] sm:$0xff] (%p1674_p6), %v1173_v55 }
 0x15f   : > { %v1380_v1 = vpop.f32.mrb[22].mxu0  ;;  %1176 = vst [vmem:[%s1105_s23 + $0x60] sm:$0xff] (%p1674_p6), %v1175_v56 }
 0x160   : > { %v1071_v2 = vmax.f32 %v1055_v63, 0.0  ;;  %v960_v3 = vadd.f32 %v1459_v0, %v1379_v61  ;;  %v1460_v4 = vpop.f32.mrb[22].mxu1  ;;  %v1381_v5 = vpop.f32.mrb[23].mxu0 }
 0x161   : > { %v1382_v6 = vadd.f32 %v1381_v5, %v1380_v1  ;;  %v1461_v7 = vpop.f32.mrb[23].mxu1  ;;  %v1177_v57 = vld [vmem:[%s2092_s19 + $0x38] sm:$0xff] (%p1674_p6) }
 0x162   : > { %1087 = vst [vmem:[%s2092_s19 + $0x48] sm:$0xff] %v1071_v2  ;;  %v1056_v8 = vadd.f32 %v2087_v38, %v960_v3  ;;  %v1462_v9 = vadd.f32 %v1461_v7, %v1460_v4  ;;  %1178 = vst [vmem:[%s1105_s23 + $0x70] sm:$0xff] (%p1674_p6), %v1177_v57 }
 0x163   : > { %v1383_v10 = vpop.f32.mrb[24].mxu0 }
 0x164   : > { %v1072_v11 = vmax.f32 %v1056_v8, 0.0  ;;  %v965_v12 = vadd.f32 %v1462_v9, %v1382_v6  ;;  %v1463_v13 = vpop.f32.mrb[24].mxu1  ;;  %v1384_v14 = vpop.f32.mrb[25].mxu0 }
 0x165   : > { %v1385_v15 = vadd.f32 %v1384_v14, %v1383_v10  ;;  %v1464_v16 = vpop.f32.mrb[25].mxu1  ;;  %v1179_v58 = vld [vmem:[%s2092_s19 + $0x40] sm:$0xff] (%p1674_p6) }
 0x166   : > { %1088 = vst [vmem:[%s2092_s19 + $0x50] sm:$0xff] %v1072_v11  ;;  %v1057_v17 = vadd.f32 %v2087_v38, %v965_v12  ;;  %v1465_v18 = vadd.f32 %v1464_v16, %v1463_v13  ;;  %1180 = vst [vmem:[%s1105_s23 + $0x80] sm:$0xff] (%p1674_p6), %v1179_v58 }
 0x167   : > { %v1386_v19 = vpop.f32.mrb[26].mxu0 }
 0x168   : > { %v1073_v20 = vmax.f32 %v1057_v17, 0.0  ;;  %v970_v21 = vadd.f32 %v1465_v18, %v1385_v15  ;;  %v1466_v22 = vpop.f32.mrb[26].mxu1  ;;  %v1387_v23 = vpop.f32.mrb[27].mxu0 }
 0x169   : > { %v1388_v24 = vadd.f32 %v1387_v23, %v1386_v19  ;;  %v1467_v25 = vpop.f32.mrb[27].mxu1  ;;  %v1181_v59 = vld [vmem:[%s2092_s19 + $0x48] sm:$0xff] (%p1674_p6) }
 0x16a   : > { %1089 = vst [vmem:[%s2092_s19 + $0x58] sm:$0xff] %v1073_v20  ;;  %v1058_v26 = vadd.f32 %v2087_v38, %v970_v21  ;;  %v1468_v27 = vadd.f32 %v1467_v25, %v1466_v22  ;;  %1182 = vst [vmem:[%s1105_s23 + $0x90] sm:$0xff] (%p1674_p6), %v1181_v59 }
 0x16b   : > { %v1389_v28 = vpop.f32.mrb[28].mxu0 }
 0x16c   : > { %v1074_v29 = vmax.f32 %v1058_v26, 0.0  ;;  %v975_v30 = vadd.f32 %v1468_v27, %v1388_v24  ;;  %v1469_v31 = vpop.f32.mrb[28].mxu1  ;;  %v1390_v32 = vpop.f32.mrb[29].mxu0 }
 0x16d   : > { %v1391_v33 = vadd.f32 %v1390_v32, %v1389_v28  ;;  %v1470_v34 = vpop.f32.mrb[29].mxu1  ;;  %v1183_v60 = vld [vmem:[%s2092_s19 + $0x50] sm:$0xff] (%p1674_p6) }
 0x16e   : > { %1090 = vst [vmem:[%s2092_s19 + $0x60] sm:$0xff] %v1074_v29  ;;  %v1059_v35 = vadd.f32 %v2087_v38, %v975_v30  ;;  %v1471_v36 = vadd.f32 %v1470_v34, %v1469_v31  ;;  %1184 = vst [vmem:[%s1105_s23 + $0xa0] sm:$0xff] (%p1674_p6), %v1183_v60 }
 0x16f   : > { %v1392_v37 = vpop.f32.mrb[30].mxu0 }
 0x170   : > { %v1075_v39 = vmax.f32 %v1059_v35, 0.0  ;;  %v980_v40 = vadd.f32 %v1471_v36, %v1391_v33  ;;  %v1472_v41 = vpop.f32.mrb[30].mxu1  ;;  %v1393_v42 = vpop.f32.mrb[31].mxu0 }
 0x171   : > { %v1394_v43 = vadd.f32 %v1393_v42, %v1392_v37  ;;  %v1473_v44 = vpop.f32.mrb[31].mxu1  ;;  %v1185_v61 = vld [vmem:[%s2092_s19 + $0x58] sm:$0xff] (%p1674_p6) }
 0x172   : > { %1091 = vst [vmem:[%s2092_s19 + $0x68] sm:$0xff] %v1075_v39  ;;  %v1060_v45 = vadd.f32 %v2087_v38, %v980_v40  ;;  %v1474_v46 = vadd.f32 %v1473_v44, %v1472_v41  ;;  %1186 = vst [vmem:[%s1105_s23 + $0xb0] sm:$0xff] (%p1674_p6), %v1185_v61 }
 0x174   : > { %v1076_v47 = vmax.f32 %v1060_v45, 0.0  ;;  %v985_v48 = vadd.f32 %v1474_v46, %v1394_v43  ;;  %1100 = sbr.rel (!%p1674_p6) target bundleno = 387 (0x183), region = 82 }
 0x175   : > { %v1187_v62 = vld [vmem:[%s2092_s19 + $0x60] sm:$0xff] (%p1674_p6) }
 0x176   : > { %1092 = vst [vmem:[%s2092_s19 + $0x70] sm:$0xff] %v1076_v47  ;;  %v1061_v49 = vadd.f32 %v2087_v38, %v985_v48  ;;  %v1169_v38 = vld [vmem:[%s2092_s19 + $0x18] sm:$0xff] (%p1674_p6)  ;;  %1188 = vst [vmem:[%s1105_s23 + $0xc0] sm:$0xff] (%p1674_p6), %v1187_v62 }
 0x177   : > { %1170 = vst [vmem:[%s1105_s23 + $0x30] sm:$0xff] (%p1674_p6), %v1169_v38 }
 0x178   : > { %v1077_v50 = vmax.f32 %v1061_v49, 0.0 }
 0x179   : > { %v1189_v63 = vld [vmem:[%s2092_s19 + $0x68] sm:$0xff] (%p1674_p6) }
 0x17a   : > { %1093 = vst [vmem:[%s2092_s19 + $0x78] sm:$0xff] %v1077_v50  ;;  %1190 = vst [vmem:[%s1105_s23 + $0xd0] sm:$0xff] (%p1674_p6), %v1189_v63 }
 0x17d   : > { %v1191_v0 = vld [vmem:[%s2092_s19 + $0x70] sm:$0xff] }
 0x17e   : > { %1192 = vst [vmem:[%s1105_s23 + $0xe0] sm:$0xff] %v1191_v0 }
 0x181   : > { %v1193_v1 = vld [vmem:[%s2092_s19 + $0x78] sm:$0xff] }
 0x182   : > { %1194 = vst [vmem:[%s1105_s23 + $0xf0] sm:$0xff] %v1193_v1 }
 0x183 PF: > { %s13_s16 = sadd.s32 1, %s1617_s16   ;;  %s2167_s12 = smov %s1605_s13 }
 0x184   : > { %p10_p12 = scmp.ge.s32.totalorder %s13_s16, 4   ;;  %s2168_s13 = smov %s1679_s22 }
 0x185   : > { %s2169_s14 = smov %s1613_s15  ;;  %s2170_s15 = smov %s2172_s17 }
 0x186   :  { %12 = sbr.rel (!%p10_p12) target bundleno = 3 (0x3), region = 157 }

// kernel: _lambda_.11
= control target key start
LH: loop header
LB: loop body
LE: loop exit
PB: predicated region body
PF: predicated region fallthrough
CT: control target
= control target key end

     0   :  { %s2995_s12 = smov 0   ;;  %s2997_s13 = smov 0   ;;  %s4219_s0 = inlined_call_operand.vmem [shape: f32[512,3584], index: 0, kind: input, shape index: {}]   ;;  %s4220_s1 = inlined_call_operand.vmem [shape: f32[3584,128], index: 1, kind: input, shape index: {}]   ;;  %s4221_s2 = inlined_call_operand.vmem [shape: f32[1,128], index: 2, kind: input, shape index: {}]   ;;  %s4222_s3 = inlined_call_operand.vmem [shape: f32[512,128], index: 3, kind: output, shape index: {}]  }
   0x1   :  { %s2999_s14 = smov 0   ;;  %s3001_s15 = smov 0  }
   0x2   :  { %s3003_s16 = smov 0   ;;  %s3005_s17 = smov 0  }
   0x3   :  { %s3007_s18 = smov 0  }
   0x4 LB: > { %s25_s19 = sadd.s32 1, %s2963_s16  ;;  %s32_s20 = sadd.s32 1, %s2967_s17  ;;  %s2971_s18 = sphi %s3007_s18, %s13_s18   ;;  %s2967_s17 = sphi %s3005_s17, %s4228_s17   ;;  %s2963_s16 = sphi %s3003_s16, %s4227_s16   ;;  %s2959_s15 = sphi %s3001_s15, %s4226_s15   ;;  %s2955_s14 = sphi %s2999_s14, %s4225_s14   ;;  %s2951_s13 = sphi %s2997_s13, %s4224_s13   ;;  %s2947_s12 = sphi %s2995_s12, %s4223_s12  }
   0x5   : > { %p26_p0 = scmp.ge.s32.totalorder %s25_s19, 4  ;;  %p48_p1 = scmp.ne.s32.totalorder %s2951_s13, %s2947_s12 }
   0x6   : > { %p49_p2 = scmp.eq.s32.totalorder %s2971_s18, 0  ;;  %s41_s24 = sadd.s32 1, %s2951_s13 }
   0x7   : > { %s4230_s19 = smov (%p26_p0, %s25_s19), 0  ;;  %s4232_s20 = smov (!%p26_p0, %s32_s20), %s2967_s17 }
   0x8   : > { %p50_p3 = por %p49_p2, %p48_p1  ;;  %p34_p4 = scmp.ge.s32.totalorder %s4232_s20, 2 }
   0x9   : > { %s37_s21 = ssub.s32 %s2963_s16, %s4230_s19  ;;  %p2347_p6 = scmp.ge.s32.totalorder %s2971_s18, 8 }
   0xa   : > { %s4234_s20 = smov (%p34_p4, %s4232_s20), 0 }
   0xb   : > { %s36_s22 = ssub.s32 %s2967_s17, %s4234_s20  ;;  %162 = sbr.rel (%p2347_p6) target bundleno = 139 (0x8b), region = 20 }
   0xc   : > { %s38_s23 = sor.u32 %s37_s21, %s36_s22 }
   0xd   : > { %p39_p5 = scmp.eq.s32.totalorder %s38_s23, 0 }
   0xf   : > { %s3046_s25 = scalar_select %p39_p5, %s2951_s13, %s41_s24  }
  0x12   : > { %165 = sbr.rel (!%p50_p3) target bundleno = 139 (0x8b), region = 24  ;;  %s167_s26 = sand.u32 (%p50_p3), 1, %s2951_s13  }
  0x13   : > { %s171_s27 = smul.u32 (%p50_p3), 7, %s2963_s16 }
  0x14   : > { %s2792_s28 = smul.u32 (%p50_p3), 1792, %s167_s26 }
  0x15   : > { %s2793_s29 = smul.u32 (%p50_p3), 896, %s2967_s17 }
  0x16   : > { %s3060_s8 = scalar_lea.vmem (%p50_p3), [#allocation3], %s2792_s28 }
  0x17   : > { %s173_s30 = sadd.s32 (%p50_p3), %s2793_s29, %s171_s27 }
  0x18   : > { %s2350_s4 = sshll.u32 (%p50_p3), %s173_s30, 3 }
  0x19   : > { %s3055_s7 = scalar_lea.vmem %s4219_s0, %s2350_s4 }
  0x1a   : > { %v188_v0 = vld [vmem:[%s3055_s7] sm:$0xff]  ;;  %v190_v1 = vld [vmem:[%s3055_s7 + $0x8] sm:$0xff]  ;;  %v192_v2 = vld [vmem:[%s3055_s7 + $0x10] sm:$0xff] }
  0x1b   : > { %189 = vst [vmem:[%s3060_s8] sm:$0xff] %v188_v0  ;;  %191 = vst [vmem:[%s3060_s8 + $0x8] sm:$0xff] %v190_v1  ;;  %v194_v3 = vld [vmem:[%s3055_s7 + $0x18] sm:$0xff]  ;;  %v196_v4 = vld [vmem:[%s3055_s7 + $0x20] sm:$0xff] }
  0x1c   : > { %193 = vst [vmem:[%s3060_s8 + $0x10] sm:$0xff] %v192_v2  ;;  %v198_v5 = vld [vmem:[%s3055_s7 + $0x28] sm:$0xff]  ;;  %195 = vst [vmem:[%s3060_s8 + $0x18] sm:$0xff] %v194_v3  ;;  %v200_v6 = vld [vmem:[%s3055_s7 + $0x30] sm:$0xff] }
  0x1d   : > { %197 = vst [vmem:[%s3060_s8 + $0x20] sm:$0xff] %v196_v4  ;;  %199 = vst [vmem:[%s3060_s8 + $0x28] sm:$0xff] %v198_v5  ;;  %v202_v7 = vld [vmem:[%s3055_s7 + $0xe0] sm:$0xff]  ;;  %v204_v8 = vld [vmem:[%s3055_s7 + $0xe8] sm:$0xff] }
  0x1e   : > { %201 = vst [vmem:[%s3060_s8 + $0x30] sm:$0xff] %v200_v6  ;;  %203 = vst [vmem:[%s3060_s8 + $0x38] sm:$0xff] %v202_v7  ;;  %v206_v9 = vld [vmem:[%s3055_s7 + $0xf0] sm:$0xff]  ;;  %v208_v10 = vld [vmem:[%s3055_s7 + $0xf8] sm:$0xff] }
  0x1f   : > { %205 = vst [vmem:[%s3060_s8 + $0x40] sm:$0xff] %v204_v8  ;;  %v210_v11 = vld [vmem:[%s3055_s7 + $0x100] sm:$0xff]  ;;  %207 = vst [vmem:[%s3060_s8 + $0x48] sm:$0xff] %v206_v9  ;;  %v212_v12 = vld [vmem:[%s3055_s7 + $0x108] sm:$0xff] }
  0x20   : > { %209 = vst [vmem:[%s3060_s8 + $0x50] sm:$0xff] %v208_v10  ;;  %211 = vst [vmem:[%s3060_s8 + $0x58] sm:$0xff] %v210_v11  ;;  %v214_v13 = vld [vmem:[%s3055_s7 + $0x110] sm:$0xff]  ;;  %v216_v14 = vld [vmem:[%s3055_s7 + $0x1c0] sm:$0xff] }
  0x21   : > { %213 = vst [vmem:[%s3060_s8 + $0x60] sm:$0xff] %v212_v12  ;;  %215 = vst [vmem:[%s3060_s8 + $0x68] sm:$0xff] %v214_v13  ;;  %v218_v15 = vld [vmem:[%s3055_s7 + $0x1c8] sm:$0xff]  ;;  %v220_v16 = vld [vmem:[%s3055_s7 + $0x1d0] sm:$0xff] }
  0x22   : > { %217 = vst [vmem:[%s3060_s8 + $0x70] sm:$0xff] %v216_v14  ;;  %v222_v17 = vld [vmem:[%s3055_s7 + $0x1d8] sm:$0xff]  ;;  %219 = vst [vmem:[%s3060_s8 + $0x78] sm:$0xff] %v218_v15  ;;  %v224_v18 = vld [vmem:[%s3055_s7 + $0x1e0] sm:$0xff] }
  0x23   : > { %221 = vst [vmem:[%s3060_s8 + $0x80] sm:$0xff] %v220_v16  ;;  %223 = vst [vmem:[%s3060_s8 + $0x88] sm:$0xff] %v222_v17  ;;  %v226_v19 = vld [vmem:[%s3055_s7 + $0x1e8] sm:$0xff]  ;;  %v228_v20 = vld [vmem:[%s3055_s7 + $0x1f0] sm:$0xff] }
  0x24   : > { %225 = vst [vmem:[%s3060_s8 + $0x90] sm:$0xff] %v224_v18  ;;  %227 = vst [vmem:[%s3060_s8 + $0x98] sm:$0xff] %v226_v19  ;;  %v230_v21 = vld [vmem:[%s3055_s7 + $0x2a0] sm:$0xff]  ;;  %v232_v22 = vld [vmem:[%s3055_s7 + $0x2a8] sm:$0xff] }
  0x25   : > { %229 = vst [vmem:[%s3060_s8 + $0xa0] sm:$0xff] %v228_v20  ;;  %v234_v23 = vld [vmem:[%s3055_s7 + $0x2b0] sm:$0xff]  ;;  %231 = vst [vmem:[%s3060_s8 + $0xa8] sm:$0xff] %v230_v21  ;;  %v236_v24 = vld [vmem:[%s3055_s7 + $0x2b8] sm:$0xff] }
  0x26   : > { %233 = vst [vmem:[%s3060_s8 + $0xb0] sm:$0xff] %v232_v22  ;;  %235 = vst [vmem:[%s3060_s8 + $0xb8] sm:$0xff] %v234_v23  ;;  %v238_v25 = vld [vmem:[%s3055_s7 + $0x2c0] sm:$0xff]  ;;  %v240_v26 = vld [vmem:[%s3055_s7 + $0x2c8] sm:$0xff] }
  0x27   : > { %237 = vst [vmem:[%s3060_s8 + $0xc0] sm:$0xff] %v236_v24  ;;  %239 = vst [vmem:[%s3060_s8 + $0xc8] sm:$0xff] %v238_v25  ;;  %v242_v27 = vld [vmem:[%s3055_s7 + $0x2d0] sm:$0xff]  ;;  %v244_v28 = vld [vmem:[%s3055_s7 + $0x380] sm:$0xff] }
  0x28   : > { %241 = vst [vmem:[%s3060_s8 + $0xd0] sm:$0xff] %v240_v26  ;;  %v246_v29 = vld [vmem:[%s3055_s7 + $0x388] sm:$0xff]  ;;  %243 = vst [vmem:[%s3060_s8 + $0xd8] sm:$0xff] %v242_v27  ;;  %v248_v30 = vld [vmem:[%s3055_s7 + $0x390] sm:$0xff] }
  0x29   : > { %245 = vst [vmem:[%s3060_s8 + $0xe0] sm:$0xff] %v244_v28  ;;  %247 = vst [vmem:[%s3060_s8 + $0xe8] sm:$0xff] %v246_v29  ;;  %v250_v31 = vld [vmem:[%s3055_s7 + $0x398] sm:$0xff]  ;;  %v252_v32 = vld [vmem:[%s3055_s7 + $0x3a0] sm:$0xff] }
  0x2a   : > { %249 = vst [vmem:[%s3060_s8 + $0xf0] sm:$0xff] %v248_v30  ;;  %251 = vst [vmem:[%s3060_s8 + $0xf8] sm:$0xff] %v250_v31  ;;  %v254_v33 = vld [vmem:[%s3055_s7 + $0x3a8] sm:$0xff]  ;;  %v256_v34 = vld [vmem:[%s3055_s7 + $0x3b0] sm:$0xff] }
  0x2b   : > { %253 = vst [vmem:[%s3060_s8 + $0x100] sm:$0xff] %v252_v32  ;;  %v258_v35 = vld [vmem:[%s3055_s7 + $0x460] sm:$0xff]  ;;  %255 = vst [vmem:[%s3060_s8 + $0x108] sm:$0xff] %v254_v33  ;;  %v260_v36 = vld [vmem:[%s3055_s7 + $0x468] sm:$0xff] }
  0x2c   : > { %257 = vst [vmem:[%s3060_s8 + $0x110] sm:$0xff] %v256_v34  ;;  %259 = vst [vmem:[%s3060_s8 + $0x118] sm:$0xff] %v258_v35  ;;  %v262_v37 = vld [vmem:[%s3055_s7 + $0x470] sm:$0xff]  ;;  %v264_v38 = vld [vmem:[%s3055_s7 + $0x478] sm:$0xff] }
  0x2d   : > { %261 = vst [vmem:[%s3060_s8 + $0x120] sm:$0xff] %v260_v36  ;;  %263 = vst [vmem:[%s3060_s8 + $0x128] sm:$0xff] %v262_v37  ;;  %v266_v39 = vld [vmem:[%s3055_s7 + $0x480] sm:$0xff]  ;;  %v268_v40 = vld [vmem:[%s3055_s7 + $0x488] sm:$0xff] }
  0x2e   : > { %265 = vst [vmem:[%s3060_s8 + $0x130] sm:$0xff] %v264_v38  ;;  %v270_v41 = vld [vmem:[%s3055_s7 + $0x490] sm:$0xff]  ;;  %267 = vst [vmem:[%s3060_s8 + $0x138] sm:$0xff] %v266_v39  ;;  %v272_v42 = vld [vmem:[%s3055_s7 + $0x540] sm:$0xff] }
  0x2f   : > { %269 = vst [vmem:[%s3060_s8 + $0x140] sm:$0xff] %v268_v40  ;;  %271 = vst [vmem:[%s3060_s8 + $0x148] sm:$0xff] %v270_v41  ;;  %v274_v43 = vld [vmem:[%s3055_s7 + $0x548] sm:$0xff]  ;;  %v276_v44 = vld [vmem:[%s3055_s7 + $0x550] sm:$0xff] }
  0x30   : > { %273 = vst [vmem:[%s3060_s8 + $0x150] sm:$0xff] %v272_v42  ;;  %275 = vst [vmem:[%s3060_s8 + $0x158] sm:$0xff] %v274_v43  ;;  %v278_v45 = vld [vmem:[%s3055_s7 + $0x558] sm:$0xff]  ;;  %v280_v46 = vld [vmem:[%s3055_s7 + $0x560] sm:$0xff] }
  0x31   : > { %277 = vst [vmem:[%s3060_s8 + $0x160] sm:$0xff] %v276_v44  ;;  %v282_v47 = vld [vmem:[%s3055_s7 + $0x568] sm:$0xff]  ;;  %279 = vst [vmem:[%s3060_s8 + $0x168] sm:$0xff] %v278_v45  ;;  %v284_v48 = vld [vmem:[%s3055_s7 + $0x570] sm:$0xff] }
  0x32   : > { %281 = vst [vmem:[%s3060_s8 + $0x170] sm:$0xff] %v280_v46  ;;  %283 = vst [vmem:[%s3060_s8 + $0x178] sm:$0xff] %v282_v47  ;;  %v286_v49 = vld [vmem:[%s3055_s7 + $0x620] sm:$0xff]  ;;  %v288_v50 = vld [vmem:[%s3055_s7 + $0x628] sm:$0xff] }
  0x33   : > { %285 = vst [vmem:[%s3060_s8 + $0x180] sm:$0xff] %v284_v48  ;;  %287 = vst [vmem:[%s3060_s8 + $0x188] sm:$0xff] %v286_v49  ;;  %v290_v51 = vld [vmem:[%s3055_s7 + $0x630] sm:$0xff]  ;;  %v292_v52 = vld [vmem:[%s3055_s7 + $0x638] sm:$0xff] }
  0x34   : > { %289 = vst [vmem:[%s3060_s8 + $0x190] sm:$0xff] %v288_v50  ;;  %v294_v53 = vld [vmem:[%s3055_s7 + $0x640] sm:$0xff]  ;;  %291 = vst [vmem:[%s3060_s8 + $0x198] sm:$0xff] %v290_v51  ;;  %v296_v54 = vld [vmem:[%s3055_s7 + $0x648] sm:$0xff] }
  0x35   : > { %293 = vst [vmem:[%s3060_s8 + $0x1a0] sm:$0xff] %v292_v52  ;;  %295 = vst [vmem:[%s3060_s8 + $0x1a8] sm:$0xff] %v294_v53  ;;  %v298_v55 = vld [vmem:[%s3055_s7 + $0x650] sm:$0xff]  ;;  %v300_v56 = vld [vmem:[%s3055_s7 + $0x700] sm:$0xff] }
  0x36   : > { %297 = vst [vmem:[%s3060_s8 + $0x1b0] sm:$0xff] %v296_v54  ;;  %299 = vst [vmem:[%s3060_s8 + $0x1b8] sm:$0xff] %v298_v55  ;;  %v302_v57 = vld [vmem:[%s3055_s7 + $0x708] sm:$0xff]  ;;  %v304_v58 = vld [vmem:[%s3055_s7 + $0x710] sm:$0xff] }
  0x37   : > { %301 = vst [vmem:[%s3060_s8 + $0x1c0] sm:$0xff] %v300_v56  ;;  %v306_v59 = vld [vmem:[%s3055_s7 + $0x718] sm:$0xff]  ;;  %303 = vst [vmem:[%s3060_s8 + $0x1c8] sm:$0xff] %v302_v57  ;;  %v308_v60 = vld [vmem:[%s3055_s7 + $0x720] sm:$0xff] }
  0x38   : > { %305 = vst [vmem:[%s3060_s8 + $0x1d0] sm:$0xff] %v304_v58  ;;  %307 = vst [vmem:[%s3060_s8 + $0x1d8] sm:$0xff] %v306_v59  ;;  %v310_v61 = vld [vmem:[%s3055_s7 + $0x728] sm:$0xff]  ;;  %v312_v62 = vld [vmem:[%s3055_s7 + $0x730] sm:$0xff] }
  0x39   : > { %309 = vst [vmem:[%s3060_s8 + $0x1e0] sm:$0xff] %v308_v60  ;;  %311 = vst [vmem:[%s3060_s8 + $0x1e8] sm:$0xff] %v310_v61  ;;  %v314_v63 = vld [vmem:[%s3055_s7 + $0x7e0] sm:$0xff]  ;;  %v316_v0 = vld [vmem:[%s3055_s7 + $0x7e8] sm:$0xff] }
  0x3a   : > { %313 = vst [vmem:[%s3060_s8 + $0x1f0] sm:$0xff] %v312_v62  ;;  %v318_v1 = vld [vmem:[%s3055_s7 + $0x7f0] sm:$0xff]  ;;  %315 = vst [vmem:[%s3060_s8 + $0x1f8] sm:$0xff] %v314_v63  ;;  %v320_v2 = vld [vmem:[%s3055_s7 + $0x7f8] sm:$0xff] }
  0x3b   : > { %317 = vst [vmem:[%s3060_s8 + $0x200] sm:$0xff] %v316_v0  ;;  %319 = vst [vmem:[%s3060_s8 + $0x208] sm:$0xff] %v318_v1  ;;  %v322_v3 = vld [vmem:[%s3055_s7 + $0x800] sm:$0xff]  ;;  %v324_v4 = vld [vmem:[%s3055_s7 + $0x808] sm:$0xff] }
  0x3c   : > { %321 = vst [vmem:[%s3060_s8 + $0x210] sm:$0xff] %v320_v2  ;;  %323 = vst [vmem:[%s3060_s8 + $0x218] sm:$0xff] %v322_v3  ;;  %v326_v5 = vld [vmem:[%s3055_s7 + $0x810] sm:$0xff]  ;;  %v328_v6 = vld [vmem:[%s3055_s7 + $0x8c0] sm:$0xff] }
  0x3d   : > { %325 = vst [vmem:[%s3060_s8 + $0x220] sm:$0xff] %v324_v4  ;;  %v330_v7 = vld [vmem:[%s3055_s7 + $0x8c8] sm:$0xff]  ;;  %327 = vst [vmem:[%s3060_s8 + $0x228] sm:$0xff] %v326_v5  ;;  %v332_v8 = vld [vmem:[%s3055_s7 + $0x8d0] sm:$0xff] }
  0x3e   : > { %329 = vst [vmem:[%s3060_s8 + $0x230] sm:$0xff] %v328_v6  ;;  %331 = vst [vmem:[%s3060_s8 + $0x238] sm:$0xff] %v330_v7  ;;  %v334_v9 = vld [vmem:[%s3055_s7 + $0x8d8] sm:$0xff]  ;;  %v336_v10 = vld [vmem:[%s3055_s7 + $0x8e0] sm:$0xff] }
  0x3f   : > { %333 = vst [vmem:[%s3060_s8 + $0x240] sm:$0xff] %v332_v8  ;;  %335 = vst [vmem:[%s3060_s8 + $0x248] sm:$0xff] %v334_v9  ;;  %v338_v11 = vld [vmem:[%s3055_s7 + $0x8e8] sm:$0xff]  ;;  %v340_v12 = vld [vmem:[%s3055_s7 + $0x8f0] sm:$0xff] }
  0x40   : > { %337 = vst [vmem:[%s3060_s8 + $0x250] sm:$0xff] %v336_v10  ;;  %v342_v13 = vld [vmem:[%s3055_s7 + $0x9a0] sm:$0xff]  ;;  %339 = vst [vmem:[%s3060_s8 + $0x258] sm:$0xff] %v338_v11  ;;  %v344_v14 = vld [vmem:[%s3055_s7 + $0x9a8] sm:$0xff] }
  0x41   : > { %341 = vst [vmem:[%s3060_s8 + $0x260] sm:$0xff] %v340_v12  ;;  %343 = vst [vmem:[%s3060_s8 + $0x268] sm:$0xff] %v342_v13  ;;  %v346_v15 = vld [vmem:[%s3055_s7 + $0x9b0] sm:$0xff]  ;;  %v348_v16 = vld [vmem:[%s3055_s7 + $0x9b8] sm:$0xff] }
  0x42   : > { %345 = vst [vmem:[%s3060_s8 + $0x270] sm:$0xff] %v344_v14  ;;  %347 = vst [vmem:[%s3060_s8 + $0x278] sm:$0xff] %v346_v15  ;;  %v350_v17 = vld [vmem:[%s3055_s7 + $0x9c0] sm:$0xff]  ;;  %v352_v18 = vld [vmem:[%s3055_s7 + $0x9c8] sm:$0xff] }
  0x43   : > { %349 = vst [vmem:[%s3060_s8 + $0x280] sm:$0xff] %v348_v16  ;;  %v354_v19 = vld [vmem:[%s3055_s7 + $0x9d0] sm:$0xff]  ;;  %351 = vst [vmem:[%s3060_s8 + $0x288] sm:$0xff] %v350_v17  ;;  %v356_v20 = vld [vmem:[%s3055_s7 + $0xa80] sm:$0xff] }
  0x44   : > { %353 = vst [vmem:[%s3060_s8 + $0x290] sm:$0xff] %v352_v18  ;;  %355 = vst [vmem:[%s3060_s8 + $0x298] sm:$0xff] %v354_v19  ;;  %v358_v21 = vld [vmem:[%s3055_s7 + $0xa88] sm:$0xff]  ;;  %v360_v22 = vld [vmem:[%s3055_s7 + $0xa90] sm:$0xff] }
  0x45   : > { %357 = vst [vmem:[%s3060_s8 + $0x2a0] sm:$0xff] %v356_v20  ;;  %359 = vst [vmem:[%s3060_s8 + $0x2a8] sm:$0xff] %v358_v21  ;;  %v362_v23 = vld [vmem:[%s3055_s7 + $0xa98] sm:$0xff]  ;;  %v364_v24 = vld [vmem:[%s3055_s7 + $0xaa0] sm:$0xff] }
  0x46   : > { %361 = vst [vmem:[%s3060_s8 + $0x2b0] sm:$0xff] %v360_v22  ;;  %v366_v25 = vld [vmem:[%s3055_s7 + $0xaa8] sm:$0xff]  ;;  %363 = vst [vmem:[%s3060_s8 + $0x2b8] sm:$0xff] %v362_v23  ;;  %v368_v26 = vld [vmem:[%s3055_s7 + $0xab0] sm:$0xff] }
  0x47   : > { %365 = vst [vmem:[%s3060_s8 + $0x2c0] sm:$0xff] %v364_v24  ;;  %367 = vst [vmem:[%s3060_s8 + $0x2c8] sm:$0xff] %v366_v25  ;;  %v370_v27 = vld [vmem:[%s3055_s7 + $0xb60] sm:$0xff]  ;;  %v372_v28 = vld [vmem:[%s3055_s7 + $0xb68] sm:$0xff] }
  0x48   : > { %369 = vst [vmem:[%s3060_s8 + $0x2d0] sm:$0xff] %v368_v26  ;;  %371 = vst [vmem:[%s3060_s8 + $0x2d8] sm:$0xff] %v370_v27  ;;  %v374_v29 = vld [vmem:[%s3055_s7 + $0xb70] sm:$0xff]  ;;  %v376_v30 = vld [vmem:[%s3055_s7 + $0xb78] sm:$0xff] }
  0x49   : > { %373 = vst [vmem:[%s3060_s8 + $0x2e0] sm:$0xff] %v372_v28  ;;  %v378_v31 = vld [vmem:[%s3055_s7 + $0xb80] sm:$0xff]  ;;  %375 = vst [vmem:[%s3060_s8 + $0x2e8] sm:$0xff] %v374_v29  ;;  %v380_v32 = vld [vmem:[%s3055_s7 + $0xb88] sm:$0xff] }
  0x4a   : > { %377 = vst [vmem:[%s3060_s8 + $0x2f0] sm:$0xff] %v376_v30  ;;  %379 = vst [vmem:[%s3060_s8 + $0x2f8] sm:$0xff] %v378_v31  ;;  %v382_v33 = vld [vmem:[%s3055_s7 + $0xb90] sm:$0xff]  ;;  %v384_v34 = vld [vmem:[%s3055_s7 + $0xc40] sm:$0xff] }
  0x4b   : > { %381 = vst [vmem:[%s3060_s8 + $0x300] sm:$0xff] %v380_v32  ;;  %383 = vst [vmem:[%s3060_s8 + $0x308] sm:$0xff] %v382_v33  ;;  %v386_v35 = vld [vmem:[%s3055_s7 + $0xc48] sm:$0xff]  ;;  %v388_v36 = vld [vmem:[%s3055_s7 + $0xc50] sm:$0xff] }
  0x4c   : > { %385 = vst [vmem:[%s3060_s8 + $0x310] sm:$0xff] %v384_v34  ;;  %v390_v37 = vld [vmem:[%s3055_s7 + $0xc58] sm:$0xff]  ;;  %387 = vst [vmem:[%s3060_s8 + $0x318] sm:$0xff] %v386_v35  ;;  %v392_v38 = vld [vmem:[%s3055_s7 + $0xc60] sm:$0xff] }
  0x4d   : > { %389 = vst [vmem:[%s3060_s8 + $0x320] sm:$0xff] %v388_v36  ;;  %391 = vst [vmem:[%s3060_s8 + $0x328] sm:$0xff] %v390_v37  ;;  %v394_v39 = vld [vmem:[%s3055_s7 + $0xc68] sm:$0xff]  ;;  %v396_v40 = vld [vmem:[%s3055_s7 + $0xc70] sm:$0xff] }
  0x4e   : > { %393 = vst [vmem:[%s3060_s8 + $0x330] sm:$0xff] %v392_v38  ;;  %395 = vst [vmem:[%s3060_s8 + $0x338] sm:$0xff] %v394_v39  ;;  %v398_v41 = vld [vmem:[%s3055_s7 + $0xd20] sm:$0xff]  ;;  %v400_v42 = vld [vmem:[%s3055_s7 + $0xd28] sm:$0xff] }
  0x4f   : > { %397 = vst [vmem:[%s3060_s8 + $0x340] sm:$0xff] %v396_v40  ;;  %v402_v43 = vld [vmem:[%s3055_s7 + $0xd30] sm:$0xff]  ;;  %399 = vst [vmem:[%s3060_s8 + $0x348] sm:$0xff] %v398_v41  ;;  %v404_v44 = vld [vmem:[%s3055_s7 + $0xd38] sm:$0xff] }
  0x50   : > { %401 = vst [vmem:[%s3060_s8 + $0x350] sm:$0xff] %v400_v42  ;;  %403 = vst [vmem:[%s3060_s8 + $0x358] sm:$0xff] %v402_v43  ;;  %v406_v45 = vld [vmem:[%s3055_s7 + $0xd40] sm:$0xff]  ;;  %v408_v46 = vld [vmem:[%s3055_s7 + $0xd48] sm:$0xff] }
  0x51   : > { %405 = vst [vmem:[%s3060_s8 + $0x360] sm:$0xff] %v404_v44  ;;  %407 = vst [vmem:[%s3060_s8 + $0x368] sm:$0xff] %v406_v45  ;;  %v410_v47 = vld [vmem:[%s3055_s7 + $0xd50] sm:$0xff]  ;;  %v412_v48 = vld [vmem:[%s3055_s7 + $0xe00] sm:$0xff] }
  0x52   : > { %409 = vst [vmem:[%s3060_s8 + $0x370] sm:$0xff] %v408_v46  ;;  %v414_v49 = vld [vmem:[%s3055_s7 + $0xe08] sm:$0xff]  ;;  %411 = vst [vmem:[%s3060_s8 + $0x378] sm:$0xff] %v410_v47  ;;  %v416_v50 = vld [vmem:[%s3055_s7 + $0xe10] sm:$0xff] }
  0x53   : > { %413 = vst [vmem:[%s3060_s8 + $0x380] sm:$0xff] %v412_v48  ;;  %415 = vst [vmem:[%s3060_s8 + $0x388] sm:$0xff] %v414_v49  ;;  %v418_v51 = vld [vmem:[%s3055_s7 + $0xe18] sm:$0xff]  ;;  %v420_v52 = vld [vmem:[%s3055_s7 + $0xe20] sm:$0xff] }
  0x54   : > { %417 = vst [vmem:[%s3060_s8 + $0x390] sm:$0xff] %v416_v50  ;;  %419 = vst [vmem:[%s3060_s8 + $0x398] sm:$0xff] %v418_v51  ;;  %v422_v53 = vld [vmem:[%s3055_s7 + $0xe28] sm:$0xff]  ;;  %v424_v54 = vld [vmem:[%s3055_s7 + $0xe30] sm:$0xff] }
  0x55   : > { %421 = vst [vmem:[%s3060_s8 + $0x3a0] sm:$0xff] %v420_v52  ;;  %v426_v55 = vld [vmem:[%s3055_s7 + $0xee0] sm:$0xff]  ;;  %423 = vst [vmem:[%s3060_s8 + $0x3a8] sm:$0xff] %v422_v53  ;;  %v428_v56 = vld [vmem:[%s3055_s7 + $0xee8] sm:$0xff] }
  0x56   : > { %425 = vst [vmem:[%s3060_s8 + $0x3b0] sm:$0xff] %v424_v54  ;;  %427 = vst [vmem:[%s3060_s8 + $0x3b8] sm:$0xff] %v426_v55  ;;  %v430_v57 = vld [vmem:[%s3055_s7 + $0xef0] sm:$0xff]  ;;  %v432_v58 = vld [vmem:[%s3055_s7 + $0xef8] sm:$0xff] }
  0x57   : > { %429 = vst [vmem:[%s3060_s8 + $0x3c0] sm:$0xff] %v428_v56  ;;  %431 = vst [vmem:[%s3060_s8 + $0x3c8] sm:$0xff] %v430_v57  ;;  %v434_v59 = vld [vmem:[%s3055_s7 + $0xf00] sm:$0xff]  ;;  %v436_v60 = vld [vmem:[%s3055_s7 + $0xf08] sm:$0xff] }
  0x58   : > { %433 = vst [vmem:[%s3060_s8 + $0x3d0] sm:$0xff] %v432_v58  ;;  %v438_v61 = vld [vmem:[%s3055_s7 + $0xf10] sm:$0xff]  ;;  %435 = vst [vmem:[%s3060_s8 + $0x3d8] sm:$0xff] %v434_v59  ;;  %v440_v62 = vld [vmem:[%s3055_s7 + $0xfc0] sm:$0xff] }
  0x59   : > { %437 = vst [vmem:[%s3060_s8 + $0x3e0] sm:$0xff] %v436_v60  ;;  %439 = vst [vmem:[%s3060_s8 + $0x3e8] sm:$0xff] %v438_v61  ;;  %v442_v63 = vld [vmem:[%s3055_s7 + $0xfc8] sm:$0xff]  ;;  %v444_v0 = vld [vmem:[%s3055_s7 + $0xfd0] sm:$0xff] }
  0x5a   : > { %441 = vst [vmem:[%s3060_s8 + $0x3f0] sm:$0xff] %v440_v62  ;;  %443 = vst [vmem:[%s3060_s8 + $0x3f8] sm:$0xff] %v442_v63  ;;  %v446_v1 = vld [vmem:[%s3055_s7 + $0xfd8] sm:$0xff]  ;;  %v448_v2 = vld [vmem:[%s3055_s7 + $0xfe0] sm:$0xff] }
  0x5b   : > { %445 = vst [vmem:[%s3060_s8 + $0x400] sm:$0xff] %v444_v0  ;;  %v450_v3 = vld [vmem:[%s3055_s7 + $0xfe8] sm:$0xff]  ;;  %447 = vst [vmem:[%s3060_s8 + $0x408] sm:$0xff] %v446_v1  ;;  %v452_v4 = vld [vmem:[%s3055_s7 + $0xff0] sm:$0xff] }
  0x5c   : > { %449 = vst [vmem:[%s3060_s8 + $0x410] sm:$0xff] %v448_v2  ;;  %451 = vst [vmem:[%s3060_s8 + $0x418] sm:$0xff] %v450_v3  ;;  %v454_v5 = vld [vmem:[%s3055_s7 + $0x10a0] sm:$0xff]  ;;  %v456_v6 = vld [vmem:[%s3055_s7 + $0x10a8] sm:$0xff] }
  0x5d   : > { %453 = vst [vmem:[%s3060_s8 + $0x420] sm:$0xff] %v452_v4  ;;  %455 = vst [vmem:[%s3060_s8 + $0x428] sm:$0xff] %v454_v5  ;;  %v458_v7 = vld [vmem:[%s3055_s7 + $0x10b0] sm:$0xff]  ;;  %v460_v8 = vld [vmem:[%s3055_s7 + $0x10b8] sm:$0xff] }
  0x5e   : > { %457 = vst [vmem:[%s3060_s8 + $0x430] sm:$0xff] %v456_v6  ;;  %v462_v9 = vld [vmem:[%s3055_s7 + $0x10c0] sm:$0xff]  ;;  %459 = vst [vmem:[%s3060_s8 + $0x438] sm:$0xff] %v458_v7  ;;  %v464_v10 = vld [vmem:[%s3055_s7 + $0x10c8] sm:$0xff] }
  0x5f   : > { %461 = vst [vmem:[%s3060_s8 + $0x440] sm:$0xff] %v460_v8  ;;  %463 = vst [vmem:[%s3060_s8 + $0x448] sm:$0xff] %v462_v9  ;;  %v466_v11 = vld [vmem:[%s3055_s7 + $0x10d0] sm:$0xff]  ;;  %v468_v12 = vld [vmem:[%s3055_s7 + $0x1180] sm:$0xff] }
  0x60   : > { %465 = vst [vmem:[%s3060_s8 + $0x450] sm:$0xff] %v464_v10  ;;  %467 = vst [vmem:[%s3060_s8 + $0x458] sm:$0xff] %v466_v11  ;;  %v470_v13 = vld [vmem:[%s3055_s7 + $0x1188] sm:$0xff]  ;;  %v472_v14 = vld [vmem:[%s3055_s7 + $0x1190] sm:$0xff] }
  0x61   : > { %469 = vst [vmem:[%s3060_s8 + $0x460] sm:$0xff] %v468_v12  ;;  %v474_v15 = vld [vmem:[%s3055_s7 + $0x1198] sm:$0xff]  ;;  %471 = vst [vmem:[%s3060_s8 + $0x468] sm:$0xff] %v470_v13  ;;  %v476_v16 = vld [vmem:[%s3055_s7 + $0x11a0] sm:$0xff] }
  0x62   : > { %473 = vst [vmem:[%s3060_s8 + $0x470] sm:$0xff] %v472_v14  ;;  %475 = vst [vmem:[%s3060_s8 + $0x478] sm:$0xff] %v474_v15  ;;  %v478_v17 = vld [vmem:[%s3055_s7 + $0x11a8] sm:$0xff]  ;;  %v480_v18 = vld [vmem:[%s3055_s7 + $0x11b0] sm:$0xff] }
  0x63   : > { %477 = vst [vmem:[%s3060_s8 + $0x480] sm:$0xff] %v476_v16  ;;  %479 = vst [vmem:[%s3060_s8 + $0x488] sm:$0xff] %v478_v17  ;;  %v482_v19 = vld [vmem:[%s3055_s7 + $0x1260] sm:$0xff]  ;;  %v484_v20 = vld [vmem:[%s3055_s7 + $0x1268] sm:$0xff] }
  0x64   : > { %481 = vst [vmem:[%s3060_s8 + $0x490] sm:$0xff] %v480_v18  ;;  %v486_v21 = vld [vmem:[%s3055_s7 + $0x1270] sm:$0xff]  ;;  %483 = vst [vmem:[%s3060_s8 + $0x498] sm:$0xff] %v482_v19  ;;  %v488_v22 = vld [vmem:[%s3055_s7 + $0x1278] sm:$0xff] }
  0x65   : > { %485 = vst [vmem:[%s3060_s8 + $0x4a0] sm:$0xff] %v484_v20  ;;  %487 = vst [vmem:[%s3060_s8 + $0x4a8] sm:$0xff] %v486_v21  ;;  %v490_v23 = vld [vmem:[%s3055_s7 + $0x1280] sm:$0xff]  ;;  %v492_v24 = vld [vmem:[%s3055_s7 + $0x1288] sm:$0xff] }
  0x66   : > { %489 = vst [vmem:[%s3060_s8 + $0x4b0] sm:$0xff] %v488_v22  ;;  %491 = vst [vmem:[%s3060_s8 + $0x4b8] sm:$0xff] %v490_v23  ;;  %v494_v25 = vld [vmem:[%s3055_s7 + $0x1290] sm:$0xff]  ;;  %v496_v26 = vld [vmem:[%s3055_s7 + $0x1340] sm:$0xff] }
  0x67   : > { %493 = vst [vmem:[%s3060_s8 + $0x4c0] sm:$0xff] %v492_v24  ;;  %v498_v27 = vld [vmem:[%s3055_s7 + $0x1348] sm:$0xff]  ;;  %495 = vst [vmem:[%s3060_s8 + $0x4c8] sm:$0xff] %v494_v25  ;;  %v500_v28 = vld [vmem:[%s3055_s7 + $0x1350] sm:$0xff] }
  0x68   : > { %497 = vst [vmem:[%s3060_s8 + $0x4d0] sm:$0xff] %v496_v26  ;;  %499 = vst [vmem:[%s3060_s8 + $0x4d8] sm:$0xff] %v498_v27  ;;  %v502_v29 = vld [vmem:[%s3055_s7 + $0x1358] sm:$0xff]  ;;  %v504_v30 = vld [vmem:[%s3055_s7 + $0x1360] sm:$0xff] }
  0x69   : > { %501 = vst [vmem:[%s3060_s8 + $0x4e0] sm:$0xff] %v500_v28  ;;  %503 = vst [vmem:[%s3060_s8 + $0x4e8] sm:$0xff] %v502_v29  ;;  %v506_v31 = vld [vmem:[%s3055_s7 + $0x1368] sm:$0xff]  ;;  %v508_v32 = vld [vmem:[%s3055_s7 + $0x1370] sm:$0xff] }
  0x6a   : > { %505 = vst [vmem:[%s3060_s8 + $0x4f0] sm:$0xff] %v504_v30  ;;  %v510_v33 = vld [vmem:[%s3055_s7 + $0x1420] sm:$0xff]  ;;  %507 = vst [vmem:[%s3060_s8 + $0x4f8] sm:$0xff] %v506_v31  ;;  %v512_v34 = vld [vmem:[%s3055_s7 + $0x1428] sm:$0xff] }
  0x6b   : > { %509 = vst [vmem:[%s3060_s8 + $0x500] sm:$0xff] %v508_v32  ;;  %511 = vst [vmem:[%s3060_s8 + $0x508] sm:$0xff] %v510_v33  ;;  %v514_v35 = vld [vmem:[%s3055_s7 + $0x1430] sm:$0xff]  ;;  %v516_v36 = vld [vmem:[%s3055_s7 + $0x1438] sm:$0xff] }
  0x6c   : > { %513 = vst [vmem:[%s3060_s8 + $0x510] sm:$0xff] %v512_v34  ;;  %515 = vst [vmem:[%s3060_s8 + $0x518] sm:$0xff] %v514_v35  ;;  %v518_v37 = vld [vmem:[%s3055_s7 + $0x1440] sm:$0xff]  ;;  %v520_v38 = vld [vmem:[%s3055_s7 + $0x1448] sm:$0xff] }
  0x6d   : > { %517 = vst [vmem:[%s3060_s8 + $0x520] sm:$0xff] %v516_v36  ;;  %v522_v39 = vld [vmem:[%s3055_s7 + $0x1450] sm:$0xff]  ;;  %519 = vst [vmem:[%s3060_s8 + $0x528] sm:$0xff] %v518_v37  ;;  %v524_v40 = vld [vmem:[%s3055_s7 + $0x1500] sm:$0xff] }
  0x6e   : > { %521 = vst [vmem:[%s3060_s8 + $0x530] sm:$0xff] %v520_v38  ;;  %523 = vst [vmem:[%s3060_s8 + $0x538] sm:$0xff] %v522_v39  ;;  %v526_v41 = vld [vmem:[%s3055_s7 + $0x1508] sm:$0xff]  ;;  %v528_v42 = vld [vmem:[%s3055_s7 + $0x1510] sm:$0xff] }
  0x6f   : > { %525 = vst [vmem:[%s3060_s8 + $0x540] sm:$0xff] %v524_v40  ;;  %527 = vst [vmem:[%s3060_s8 + $0x548] sm:$0xff] %v526_v41  ;;  %v530_v43 = vld [vmem:[%s3055_s7 + $0x1518] sm:$0xff]  ;;  %v532_v44 = vld [vmem:[%s3055_s7 + $0x1520] sm:$0xff] }
  0x70   : > { %529 = vst [vmem:[%s3060_s8 + $0x550] sm:$0xff] %v528_v42  ;;  %v534_v45 = vld [vmem:[%s3055_s7 + $0x1528] sm:$0xff]  ;;  %531 = vst [vmem:[%s3060_s8 + $0x558] sm:$0xff] %v530_v43  ;;  %v536_v46 = vld [vmem:[%s3055_s7 + $0x1530] sm:$0xff] }
  0x71   : > { %533 = vst [vmem:[%s3060_s8 + $0x560] sm:$0xff] %v532_v44  ;;  %535 = vst [vmem:[%s3060_s8 + $0x568] sm:$0xff] %v534_v45  ;;  %v538_v47 = vld [vmem:[%s3055_s7 + $0x15e0] sm:$0xff]  ;;  %v540_v48 = vld [vmem:[%s3055_s7 + $0x15e8] sm:$0xff] }
  0x72   : > { %537 = vst [vmem:[%s3060_s8 + $0x570] sm:$0xff] %v536_v46  ;;  %539 = vst [vmem:[%s3060_s8 + $0x578] sm:$0xff] %v538_v47  ;;  %v542_v49 = vld [vmem:[%s3055_s7 + $0x15f0] sm:$0xff]  ;;  %v544_v50 = vld [vmem:[%s3055_s7 + $0x15f8] sm:$0xff] }
  0x73   : > { %541 = vst [vmem:[%s3060_s8 + $0x580] sm:$0xff] %v540_v48  ;;  %v546_v51 = vld [vmem:[%s3055_s7 + $0x1600] sm:$0xff]  ;;  %543 = vst [vmem:[%s3060_s8 + $0x588] sm:$0xff] %v542_v49  ;;  %v548_v52 = vld [vmem:[%s3055_s7 + $0x1608] sm:$0xff] }
  0x74   : > { %545 = vst [vmem:[%s3060_s8 + $0x590] sm:$0xff] %v544_v50  ;;  %547 = vst [vmem:[%s3060_s8 + $0x598] sm:$0xff] %v546_v51  ;;  %v550_v53 = vld [vmem:[%s3055_s7 + $0x1610] sm:$0xff]  ;;  %v552_v54 = vld [vmem:[%s3055_s7 + $0x16c0] sm:$0xff] }
  0x75   : > { %549 = vst [vmem:[%s3060_s8 + $0x5a0] sm:$0xff] %v548_v52  ;;  %551 = vst [vmem:[%s3060_s8 + $0x5a8] sm:$0xff] %v550_v53  ;;  %v554_v55 = vld [vmem:[%s3055_s7 + $0x16c8] sm:$0xff]  ;;  %v556_v56 = vld [vmem:[%s3055_s7 + $0x16d0] sm:$0xff] }
  0x76   : > { %553 = vst [vmem:[%s3060_s8 + $0x5b0] sm:$0xff] %v552_v54  ;;  %v558_v57 = vld [vmem:[%s3055_s7 + $0x16d8] sm:$0xff]  ;;  %555 = vst [vmem:[%s3060_s8 + $0x5b8] sm:$0xff] %v554_v55  ;;  %v560_v58 = vld [vmem:[%s3055_s7 + $0x16e0] sm:$0xff] }
  0x77   : > { %557 = vst [vmem:[%s3060_s8 + $0x5c0] sm:$0xff] %v556_v56  ;;  %559 = vst [vmem:[%s3060_s8 + $0x5c8] sm:$0xff] %v558_v57  ;;  %v562_v59 = vld [vmem:[%s3055_s7 + $0x16e8] sm:$0xff]  ;;  %v564_v60 = vld [vmem:[%s3055_s7 + $0x16f0] sm:$0xff] }
  0x78   : > { %561 = vst [vmem:[%s3060_s8 + $0x5d0] sm:$0xff] %v560_v58  ;;  %563 = vst [vmem:[%s3060_s8 + $0x5d8] sm:$0xff] %v562_v59  ;;  %v566_v61 = vld [vmem:[%s3055_s7 + $0x17a0] sm:$0xff]  ;;  %v568_v62 = vld [vmem:[%s3055_s7 + $0x17a8] sm:$0xff] }
  0x79   : > { %565 = vst [vmem:[%s3060_s8 + $0x5e0] sm:$0xff] %v564_v60  ;;  %v570_v63 = vld [vmem:[%s3055_s7 + $0x17b0] sm:$0xff]  ;;  %567 = vst [vmem:[%s3060_s8 + $0x5e8] sm:$0xff] %v566_v61  ;;  %v572_v0 = vld [vmem:[%s3055_s7 + $0x17b8] sm:$0xff] }
  0x7a   : > { %569 = vst [vmem:[%s3060_s8 + $0x5f0] sm:$0xff] %v568_v62  ;;  %571 = vst [vmem:[%s3060_s8 + $0x5f8] sm:$0xff] %v570_v63  ;;  %v574_v1 = vld [vmem:[%s3055_s7 + $0x17c0] sm:$0xff]  ;;  %v576_v2 = vld [vmem:[%s3055_s7 + $0x17c8] sm:$0xff] }
  0x7b   : > { %573 = vst [vmem:[%s3060_s8 + $0x600] sm:$0xff] %v572_v0  ;;  %575 = vst [vmem:[%s3060_s8 + $0x608] sm:$0xff] %v574_v1  ;;  %v578_v3 = vld [vmem:[%s3055_s7 + $0x17d0] sm:$0xff]  ;;  %v580_v4 = vld [vmem:[%s3055_s7 + $0x1880] sm:$0xff] }
  0x7c   : > { %577 = vst [vmem:[%s3060_s8 + $0x610] sm:$0xff] %v576_v2  ;;  %v582_v5 = vld [vmem:[%s3055_s7 + $0x1888] sm:$0xff]  ;;  %579 = vst [vmem:[%s3060_s8 + $0x618] sm:$0xff] %v578_v3  ;;  %v584_v6 = vld [vmem:[%s3055_s7 + $0x1890] sm:$0xff] }
  0x7d   : > { %581 = vst [vmem:[%s3060_s8 + $0x620] sm:$0xff] %v580_v4  ;;  %583 = vst [vmem:[%s3060_s8 + $0x628] sm:$0xff] %v582_v5  ;;  %v586_v7 = vld [vmem:[%s3055_s7 + $0x1898] sm:$0xff]  ;;  %v588_v8 = vld [vmem:[%s3055_s7 + $0x18a0] sm:$0xff] }
  0x7e   : > { %585 = vst [vmem:[%s3060_s8 + $0x630] sm:$0xff] %v584_v6  ;;  %587 = vst [vmem:[%s3060_s8 + $0x638] sm:$0xff] %v586_v7  ;;  %v590_v9 = vld [vmem:[%s3055_s7 + $0x18a8] sm:$0xff]  ;;  %v592_v10 = vld [vmem:[%s3055_s7 + $0x18b0] sm:$0xff] }
  0x7f   : > { %589 = vst [vmem:[%s3060_s8 + $0x640] sm:$0xff] %v588_v8  ;;  %v594_v11 = vld [vmem:[%s3055_s7 + $0x1960] sm:$0xff]  ;;  %591 = vst [vmem:[%s3060_s8 + $0x648] sm:$0xff] %v590_v9  ;;  %v596_v12 = vld [vmem:[%s3055_s7 + $0x1968] sm:$0xff] }
  0x80   : > { %593 = vst [vmem:[%s3060_s8 + $0x650] sm:$0xff] %v592_v10  ;;  %595 = vst [vmem:[%s3060_s8 + $0x658] sm:$0xff] %v594_v11  ;;  %v598_v13 = vld [vmem:[%s3055_s7 + $0x1970] sm:$0xff]  ;;  %v600_v14 = vld [vmem:[%s3055_s7 + $0x1978] sm:$0xff] }
  0x81   : > { %597 = vst [vmem:[%s3060_s8 + $0x660] sm:$0xff] %v596_v12  ;;  %599 = vst [vmem:[%s3060_s8 + $0x668] sm:$0xff] %v598_v13  ;;  %v602_v15 = vld [vmem:[%s3055_s7 + $0x1980] sm:$0xff]  ;;  %v604_v16 = vld [vmem:[%s3055_s7 + $0x1988] sm:$0xff] }
  0x82   : > { %601 = vst [vmem:[%s3060_s8 + $0x670] sm:$0xff] %v600_v14  ;;  %v606_v17 = vld [vmem:[%s3055_s7 + $0x1990] sm:$0xff]  ;;  %603 = vst [vmem:[%s3060_s8 + $0x678] sm:$0xff] %v602_v15  ;;  %v608_v18 = vld [vmem:[%s3055_s7 + $0x1a40] sm:$0xff] }
  0x83   : > { %605 = vst [vmem:[%s3060_s8 + $0x680] sm:$0xff] %v604_v16  ;;  %607 = vst [vmem:[%s3060_s8 + $0x688] sm:$0xff] %v606_v17  ;;  %v610_v19 = vld [vmem:[%s3055_s7 + $0x1a48] sm:$0xff]  ;;  %v612_v20 = vld [vmem:[%s3055_s7 + $0x1a50] sm:$0xff] }
  0x84   : > { %609 = vst [vmem:[%s3060_s8 + $0x690] sm:$0xff] %v608_v18  ;;  %611 = vst [vmem:[%s3060_s8 + $0x698] sm:$0xff] %v610_v19  ;;  %v614_v21 = vld [vmem:[%s3055_s7 + $0x1a58] sm:$0xff]  ;;  %v616_v22 = vld [vmem:[%s3055_s7 + $0x1a60] sm:$0xff] }
  0x85   : > { %613 = vst [vmem:[%s3060_s8 + $0x6a0] sm:$0xff] %v612_v20  ;;  %v618_v23 = vld [vmem:[%s3055_s7 + $0x1a68] sm:$0xff]  ;;  %615 = vst [vmem:[%s3060_s8 + $0x6a8] sm:$0xff] %v614_v21  ;;  %v620_v24 = vld [vmem:[%s3055_s7 + $0x1a70] sm:$0xff] }
  0x86   : > { %617 = vst [vmem:[%s3060_s8 + $0x6b0] sm:$0xff] %v616_v22  ;;  %619 = vst [vmem:[%s3060_s8 + $0x6b8] sm:$0xff] %v618_v23  ;;  %v622_v25 = vld [vmem:[%s3055_s7 + $0x1b20] sm:$0xff]  ;;  %v624_v26 = vld [vmem:[%s3055_s7 + $0x1b28] sm:$0xff] }
  0x87   : > { %621 = vst [vmem:[%s3060_s8 + $0x6c0] sm:$0xff] %v620_v24  ;;  %623 = vst [vmem:[%s3060_s8 + $0x6c8] sm:$0xff] %v622_v25  ;;  %v626_v27 = vld [vmem:[%s3055_s7 + $0x1b30] sm:$0xff]  ;;  %v628_v28 = vld [vmem:[%s3055_s7 + $0x1b38] sm:$0xff] }
  0x88   : > { %625 = vst [vmem:[%s3060_s8 + $0x6d0] sm:$0xff] %v624_v26  ;;  %v630_v29 = vld [vmem:[%s3055_s7 + $0x1b40] sm:$0xff]  ;;  %627 = vst [vmem:[%s3060_s8 + $0x6d8] sm:$0xff] %v626_v27  ;;  %v632_v30 = vld [vmem:[%s3055_s7 + $0x1b48] sm:$0xff] }
  0x89   : > { %629 = vst [vmem:[%s3060_s8 + $0x6e0] sm:$0xff] %v628_v28  ;;  %631 = vst [vmem:[%s3060_s8 + $0x6e8] sm:$0xff] %v630_v29  ;;  %v634_v31 = vld [vmem:[%s3055_s7 + $0x1b50] sm:$0xff] }
  0x8a   : > { %633 = vst [vmem:[%s3060_s8 + $0x6f0] sm:$0xff] %v632_v30  ;;  %635 = vst [vmem:[%s3060_s8 + $0x6f8] sm:$0xff] %v634_v31 }
  0x8b PF: > { %p2351_p7 = scmp.ge.s32.totalorder %s2971_s18, 1  ;;  %p652_p8 = scmp.lt.s32.totalorder %s2971_s18, 9 }
  0x8d   : > { %p653_p9 = pnand %p2351_p7, %p652_p8 }
  0x8e   : > { %s659_s9 = sand.u32 (!%p653_p9), 1, %s2947_s12   ;;  %s698_s10 = smul.u32 (!%p653_p9), 112, %s2955_s14 }
  0x8f   : > { %656 = sbr.rel (%p653_p9) target bundleno = 712 (0x2c8), region = 51  ;;  %s2353_s21 = sshll.u32 (!%p653_p9), %s2959_s15, 5 }
  0x90   : > { %s2794_s11 = smul.u32 (!%p653_p9), 1792, %s659_s9  ;;  %p699_p10 = scmp.lt.s32.totalorder (!%p653_p9), %s698_s10, 447 }
  0x91   : > { %p711_p11 = scmp.lt.s32.totalorder (!%p653_p9), %s2353_s21, 63  ;;  %p2355_p12 = scmp.ne.s32.totalorder (!%p653_p9), %s2955_s14, 0 }
  0x92   : > { %s3522_s12 = scalar_lea.vmem (!%p653_p9), [#allocation3], %s2794_s11 }
  0x96   : > { %s4236_s10 = smov (!%p699_p10, %s698_s10), 447  ;;  %s4238_s21 = smov (!%p711_p11, %s2353_s21), 63 }
  0x97   : > { %s2352_s22 = sshll.u32 %s4236_s10, 3  ;;  %s2354_s27 = sshll.u32 %s4238_s21, 3  ;;  %v2973_v32 = vmov (!%p2355_p12), 0.0  }
  0x98   : > { %s3515_s26 = scalar_lea.vmem %s4220_s1, %s2352_s22  ;;  %s3520_s30 = scalar_lea.vmem %s4222_s3, %s2354_s27  ;;  %723 = vst [vmem:[#allocation2] sm:$0xff] (!%p2355_p12), %v2973_v32  ;;  %724 = vst [vmem:[#allocation2 + $0x8] sm:$0xff] (!%p2355_p12), %v2973_v32 }
  0x99   : > { %722 = sbr.rel (%p2355_p12) target bundleno = 168 (0xa8), region = 59  ;;  %725 = vst [vmem:[#allocation2 + $0x10] sm:$0xff] (!%p2355_p12), %v2973_v32  ;;  %726 = vst [vmem:[#allocation2 + $0x18] sm:$0xff] (!%p2355_p12), %v2973_v32 }
  0x9a   : > { %727 = vst [vmem:[#allocation2 + $0x20] sm:$0xff] (!%p2355_p12), %v2973_v32  ;;  %728 = vst [vmem:[#allocation2 + $0x28] sm:$0xff] (!%p2355_p12), %v2973_v32 }
  0x9b   : > { %729 = vst [vmem:[#allocation2 + $0x30] sm:$0xff] (!%p2355_p12), %v2973_v32  ;;  %730 = vst [vmem:[#allocation2 + $0x38] sm:$0xff] (!%p2355_p12), %v2973_v32 }
  0x9c   : > { %731 = vst [vmem:[#allocation2 + $0x40] sm:$0xff] (!%p2355_p12), %v2973_v32  ;;  %732 = vst [vmem:[#allocation2 + $0x48] sm:$0xff] (!%p2355_p12), %v2973_v32 }
  0x9d   : > { %733 = vst [vmem:[#allocation2 + $0x50] sm:$0xff] (!%p2355_p12), %v2973_v32  ;;  %734 = vst [vmem:[#allocation2 + $0x58] sm:$0xff] (!%p2355_p12), %v2973_v32 }
  0x9e   : > { %735 = vst [vmem:[#allocation2 + $0x60] sm:$0xff] (!%p2355_p12), %v2973_v32  ;;  %736 = vst [vmem:[#allocation2 + $0x68] sm:$0xff] (!%p2355_p12), %v2973_v32 }
  0x9f   : > { %737 = vst [vmem:[#allocation2 + $0x70] sm:$0xff] (!%p2355_p12), %v2973_v32  ;;  %738 = vst [vmem:[#allocation2 + $0x78] sm:$0xff] (!%p2355_p12), %v2973_v32 }
  0xa0   : > { %739 = vst [vmem:[#allocation2 + $0x80] sm:$0xff] %v2973_v32  ;;  %740 = vst [vmem:[#allocation2 + $0x88] sm:$0xff] %v2973_v32 }
  0xa1   : > { %741 = vst [vmem:[#allocation2 + $0x90] sm:$0xff] %v2973_v32  ;;  %742 = vst [vmem:[#allocation2 + $0x98] sm:$0xff] %v2973_v32 }
  0xa2   : > { %743 = vst [vmem:[#allocation2 + $0xa0] sm:$0xff] %v2973_v32  ;;  %744 = vst [vmem:[#allocation2 + $0xa8] sm:$0xff] %v2973_v32 }
  0xa3   : > { %745 = vst [vmem:[#allocation2 + $0xb0] sm:$0xff] %v2973_v32  ;;  %746 = vst [vmem:[#allocation2 + $0xb8] sm:$0xff] %v2973_v32 }
  0xa4   : > { %747 = vst [vmem:[#allocation2 + $0xc0] sm:$0xff] %v2973_v32  ;;  %748 = vst [vmem:[#allocation2 + $0xc8] sm:$0xff] %v2973_v32 }
  0xa5   : > { %749 = vst [vmem:[#allocation2 + $0xd0] sm:$0xff] %v2973_v32  ;;  %750 = vst [vmem:[#allocation2 + $0xd8] sm:$0xff] %v2973_v32 }
  0xa6   : > { %751 = vst [vmem:[#allocation2 + $0xe0] sm:$0xff] %v2973_v32  ;;  %752 = vst [vmem:[#allocation2 + $0xe8] sm:$0xff] %v2973_v32 }
  0xa7   : > { %753 = vst [vmem:[#allocation2 + $0xf0] sm:$0xff] %v2973_v32  ;;  %754 = vst [vmem:[#allocation2 + $0xf8] sm:$0xff] %v2973_v32 }
  0xa8 PF: > { %v1011_v33 = vld [vmem:[%s3515_s26] sm:$0xff]  ;;  %v1012_v34 = vld [vmem:[%s3515_s26 + $0x8] sm:$0xff]  ;;  %v2974_v36 = vmov 0.0|0.0   ;;  %v1013_v39 = vld [vmem:[%s3515_s26 + $0x10] sm:$0xff]  ;;  %p2356_p13 = scmp.ne.s32.totalorder %s2955_s14, 3 }
  0xa9   : > { %v1043_v35 = vld [vmem:[%s3515_s26 + $0x100] sm:$0xff]  ;;  %2488 = vmatprep.subr.bf16.mxu1 %v2974_v36  ;;  %2536 = vmatprep.subr.bf16.mxu0 %v2974_v36  ;;  %v2489_v37 = vpack.c.bf16 %v1012_v34, %v1011_v33  ;;  %v1044_v38 = vld [vmem:[%s3515_s26 + $0x108] sm:$0xff]  ;;  %v1014_v40 = vld [vmem:[%s3515_s26 + $0x18] sm:$0xff] }
  0xaa   : > { %v3533_v41 = vpack.c.bf16 %v1044_v38, %v1043_v35  ;;  %v1045_v42 = vld [vmem:[%s3515_s26 + $0x110] sm:$0xff]  ;;  %v1046_v43 = vld [vmem:[%s3515_s26 + $0x118] sm:$0xff]  ;;  %v2492_v44 = vpack.c.bf16 %v1014_v40, %v1013_v39  ;;  %v1015_v46 = vld [vmem:[%s3515_s26 + $0x20] sm:$0xff] }
  0xab   : > { %2490 = vmatpush1.bf16.msra.mxu1 %v2489_v37  ;;  %v3539_v45 = vpack.c.bf16 %v1046_v43, %v1045_v42  ;;  %v1016_v47 = vld [vmem:[%s3515_s26 + $0x28] sm:$0xff]  ;;  %v1047_v48 = vld [vmem:[%s3515_s26 + $0x120] sm:$0xff]  ;;  %v1017_v52 = vld [vmem:[%s3515_s26 + $0x30] sm:$0xff] }
  0xac   : > { %2538 = vmatpush1.bf16.msra.mxu0 %v3533_v41  ;;  %2491 = vmatprep.subr.bf16.mxu1 %v2974_v36  ;;  %v1048_v49 = vld [vmem:[%s3515_s26 + $0x128] sm:$0xff]  ;;  %v2495_v50 = vpack.c.bf16 %v1016_v47, %v1015_v46  ;;  %v1018_v53 = vld [vmem:[%s3515_s26 + $0x38] sm:$0xff]  ;;  %v1049_v54 = vld [vmem:[%s3515_s26 + $0x130] sm:$0xff] }
  0xad   : > { %2539 = vmatprep.subr.bf16.mxu0 %v2974_v36  ;;  %v3548_v51 = vpack.c.bf16 %v1048_v49, %v1047_v48  ;;  %v1050_v55 = vld [vmem:[%s3515_s26 + $0x138] sm:$0xff]  ;;  %v2498_v56 = vpack.c.bf16 %v1018_v53, %v1017_v52  ;;  %v1019_v58 = vld [vmem:[%s3515_s26 + $0x40] sm:$0xff]  ;;  %v1020_v59 = vld [vmem:[%s3515_s26 + $0x48] sm:$0xff] }
  0xae   : > { %v3557_v57 = vpack.c.bf16 %v1050_v55, %v1049_v54  ;;  %v1051_v60 = vld [vmem:[%s3515_s26 + $0x140] sm:$0xff]  ;;  %v1052_v61 = vld [vmem:[%s3515_s26 + $0x148] sm:$0xff]  ;;  %v2501_v62 = vpack.c.bf16 %v1020_v59, %v1019_v58  ;;  %v1021_v0 = vld [vmem:[%s3515_s26 + $0x50] sm:$0xff] }
  0xaf   : > { %2493 = vmatpush1.bf16.msra.mxu1 %v2492_v44  ;;  %v3566_v63 = vpack.c.bf16 %v1052_v61, %v1051_v60  ;;  %v1022_v1 = vld [vmem:[%s3515_s26 + $0x58] sm:$0xff]  ;;  %v1053_v2 = vld [vmem:[%s3515_s26 + $0x150] sm:$0xff]  ;;  %v1023_v6 = vld [vmem:[%s3515_s26 + $0x60] sm:$0xff] }
  0xb0   : > { %2541 = vmatpush1.bf16.msra.mxu0 %v3539_v45  ;;  %2494 = vmatprep.subr.bf16.mxu1 %v2974_v36  ;;  %v1054_v3 = vld [vmem:[%s3515_s26 + $0x158] sm:$0xff]  ;;  %v2504_v4 = vpack.c.bf16 %v1022_v1, %v1021_v0  ;;  %v1024_v7 = vld [vmem:[%s3515_s26 + $0x68] sm:$0xff]  ;;  %v1055_v8 = vld [vmem:[%s3515_s26 + $0x160] sm:$0xff] }
  0xb1   : > { %2542 = vmatprep.subr.bf16.mxu0 %v2974_v36  ;;  %v3575_v5 = vpack.c.bf16 %v1054_v3, %v1053_v2  ;;  %v1056_v9 = vld [vmem:[%s3515_s26 + $0x168] sm:$0xff]  ;;  %v790_v11 = vld [vmem:[%s3522_s12 + $0x18] sm:$0xff]  ;;  %v2507_v12 = vpack.c.bf16 %v1024_v7, %v1023_v6  ;;  %v1025_v14 = vld [vmem:[%s3515_s26 + $0x70] sm:$0xff] }
  0xb2   : > { %v788_v10 = vld [vmem:[%s3522_s12 + $0x8] sm:$0xff]  ;;  %1412 = vmatprep.mubr.f32.mxu0 %v790_v11  ;;  %v3586_v13 = vpack.c.bf16 %v1056_v9, %v1055_v8  ;;  %v1026_v15 = vld [vmem:[%s3515_s26 + $0x78] sm:$0xff]  ;;  %v1057_v16 = vld [vmem:[%s3515_s26 + $0x170] sm:$0xff] }
  0xb3   : > { %2496 = vmatpush1.bf16.msra.mxu1 %v2495_v50  ;;  %1187 = vmatprep.mubr.f32.mxu1 %v788_v10  ;;  %v1058_v17 = vld [vmem:[%s3515_s26 + $0x178] sm:$0xff]  ;;  %v2510_v18 = vpack.c.bf16 %v1026_v15, %v1025_v14  ;;  %v1027_v20 = vld [vmem:[%s3515_s26 + $0x80] sm:$0xff]  ;;  %v1028_v21 = vld [vmem:[%s3515_s26 + $0x88] sm:$0xff] }
  0xb4   : > { %2544 = vmatpush1.bf16.msra.mxu0 %v3548_v51  ;;  %2497 = vmatprep.subr.bf16.mxu1 %v2974_v36  ;;  %v3595_v19 = vpack.c.bf16 %v1058_v17, %v1057_v16  ;;  %v1059_v22 = vld [vmem:[%s3515_s26 + $0x180] sm:$0xff]  ;;  %v1060_v23 = vld [vmem:[%s3515_s26 + $0x188] sm:$0xff]  ;;  %v2513_v24 = vpack.c.bf16 %v1028_v21, %v1027_v20  ;;  %v1029_v26 = vld [vmem:[%s3515_s26 + $0x90] sm:$0xff] }
  0xb5   : > { %2545 = vmatprep.subr.bf16.mxu0 %v2974_v36  ;;  %v3604_v25 = vpack.c.bf16 %v1060_v23, %v1059_v22  ;;  %v1030_v27 = vld [vmem:[%s3515_s26 + $0x98] sm:$0xff]  ;;  %v1061_v28 = vld [vmem:[%s3515_s26 + $0x190] sm:$0xff]  ;;  %v1031_v32 = vld [vmem:[%s3515_s26 + $0xa0] sm:$0xff] }
  0xb6   : > { %v1062_v29 = vld [vmem:[%s3515_s26 + $0x198] sm:$0xff]  ;;  %v2516_v30 = vpack.c.bf16 %v1030_v27, %v1029_v26  ;;  %v1032_v33 = vld [vmem:[%s3515_s26 + $0xa8] sm:$0xff]  ;;  %v1063_v34 = vld [vmem:[%s3515_s26 + $0x1a0] sm:$0xff] }
  0xb7   : > { %2499 = vmatpush1.bf16.msra.mxu1 %v2498_v56  ;;  %v3613_v31 = vpack.c.bf16 %v1062_v29, %v1061_v28  ;;  %v1064_v35 = vld [vmem:[%s3515_s26 + $0x1a8] sm:$0xff]  ;;  %v2519_v37 = vpack.c.bf16 %v1032_v33, %v1031_v32  ;;  %v1033_v39 = vld [vmem:[%s3515_s26 + $0xb0] sm:$0xff]  ;;  %v1034_v40 = vld [vmem:[%s3515_s26 + $0xb8] sm:$0xff] }
  0xb8   : > { %2547 = vmatpush1.bf16.msra.mxu0 %v3557_v57  ;;  %2500 = vmatprep.subr.bf16.mxu1 %v2974_v36  ;;  %v3622_v38 = vpack.c.bf16 %v1064_v35, %v1063_v34  ;;  %v1065_v42 = vld [vmem:[%s3515_s26 + $0x1b0] sm:$0xff]  ;;  %v1066_v43 = vld [vmem:[%s3515_s26 + $0x1b8] sm:$0xff]  ;;  %v2522_v44 = vpack.c.bf16 %v1034_v40, %v1033_v39  ;;  %v1035_v47 = vld [vmem:[%s3515_s26 + $0xc0] sm:$0xff] }
  0xb9   : > { %2548 = vmatprep.subr.bf16.mxu0 %v2974_v36  ;;  %v3631_v46 = vpack.c.bf16 %v1066_v43, %v1065_v42  ;;  %v1036_v48 = vld [vmem:[%s3515_s26 + $0xc8] sm:$0xff]  ;;  %v1067_v49 = vld [vmem:[%s3515_s26 + $0x1c0] sm:$0xff]  ;;  %v1037_v54 = vld [vmem:[%s3515_s26 + $0xd0] sm:$0xff] }
  0xba   : > { %v1068_v50 = vld [vmem:[%s3515_s26 + $0x1c8] sm:$0xff]  ;;  %v2525_v52 = vpack.c.bf16 %v1036_v48, %v1035_v47  ;;  %v1038_v55 = vld [vmem:[%s3515_s26 + $0xd8] sm:$0xff]  ;;  %v1069_v56 = vld [vmem:[%s3515_s26 + $0x1d0] sm:$0xff] }
  0xbb   : > { %2502 = vmatpush1.bf16.msra.mxu1 %v2501_v62  ;;  %v3640_v53 = vpack.c.bf16 %v1068_v50, %v1067_v49  ;;  %v1070_v58 = vld [vmem:[%s3515_s26 + $0x1d8] sm:$0xff]  ;;  %v2528_v59 = vpack.c.bf16 %v1038_v55, %v1037_v54  ;;  %v1039_v61 = vld [vmem:[%s3515_s26 + $0xe0] sm:$0xff]  ;;  %v1040_v62 = vld [vmem:[%s3515_s26 + $0xe8] sm:$0xff] }
  0xbc   : > { %2550 = vmatpush1.bf16.msra.mxu0 %v3566_v63  ;;  %2503 = vmatprep.subr.bf16.mxu1 %v2974_v36  ;;  %v3649_v60 = vpack.c.bf16 %v1070_v58, %v1069_v56  ;;  %v1071_v0 = vld [vmem:[%s3515_s26 + $0x1e0] sm:$0xff]  ;;  %v1072_v1 = vld [vmem:[%s3515_s26 + $0x1e8] sm:$0xff]  ;;  %v2531_v2 = vpack.c.bf16 %v1040_v62, %v1039_v61  ;;  %v1042_v6 = vld [vmem:[%s3515_s26 + $0xf8] sm:$0xff] }
  0xbd   : > { %2551 = vmatprep.subr.bf16.mxu0 %v2974_v36  ;;  %v3658_v3 = vpack.c.bf16 %v1072_v1, %v1071_v0  ;;  %v1073_v7 = vld [vmem:[%s3515_s26 + $0x1f0] sm:$0xff]  ;;  %v1074_v8 = vld [vmem:[%s3515_s26 + $0x1f8] sm:$0xff]  ;;  %v1075_v11 = vld [vmem:[%s3515_s26 + $0x200] sm:$0xff] }
  0xbe   : > { %v3667_v10 = vpack.c.bf16 %v1074_v8, %v1073_v7  ;;  %v787_v14 = vld [vmem:[%s3522_s12] sm:$0xff]  ;;  %v789_v15 = vld [vmem:[%s3522_s12 + $0x10] sm:$0xff]  ;;  %v1078_v20 = vld [vmem:[%s3515_s26 + $0x218] sm:$0xff] }
  0xbf   : > { %2505 = vmatpush1.bf16.msra.mxu1 %v2504_v4  ;;  %v1041_v4 = vld [vmem:[%s3515_s26 + $0xf0] sm:$0xff]  ;;  %v795_v17 = vld [vmem:[%s3522_s12 + $0x40] sm:$0xff]  ;;  %v794_v22 = vld [vmem:[%s3522_s12 + $0x38] sm:$0xff] }
  0xc0   : > { %2553 = vmatpush1.bf16.msra.mxu0 %v3575_v5  ;;  %2506 = vmatprep.subr.bf16.mxu1 %v2974_v36  ;;  %v2534_v9 = vpack.c.bf16 %v1042_v6, %v1041_v4  ;;  %v797_v21 = vld [vmem:[%s3522_s12 + $0x50] sm:$0xff]  ;;  %v796_v23 = vld [vmem:[%s3522_s12 + $0x48] sm:$0xff]  ;;  %v1079_v28 = vld [vmem:[%s3515_s26 + $0x220] sm:$0xff] }
  0xc1   : > { %2554 = vmatprep.subr.bf16.mxu0 %v2974_v36  ;;  %v804_v27 = vld [vmem:[%s3522_s12 + $0x88] sm:$0xff]  ;;  %v809_v32 = vld [vmem:[%s3522_s12 + $0xb0] sm:$0xff]  ;;  %v811_v34 = vld [vmem:[%s3522_s12 + $0xc0] sm:$0xff] }
  0xc2   : > { %v1080_v29 = vld [vmem:[%s3515_s26 + $0x228] sm:$0xff]  ;;  %v1081_v35 = vld [vmem:[%s3515_s26 + $0x230] sm:$0xff]  ;;  %v810_v40 = vld [vmem:[%s3522_s12 + $0xb8] sm:$0xff] }
  0xc3   : > { %2508 = vmatpush1.bf16.msra.mxu1 %v2507_v12  ;;  %v1076_v12 = vld [vmem:[%s3515_s26 + $0x208] sm:$0xff]  ;;  %v2591_v33 = vpack.c.bf16 %v1080_v29, %v1079_v28  ;;  %v818_v43 = vld [vmem:[%s3522_s12 + $0xf8] sm:$0xff]  ;;  %v815_v48 = vld [vmem:[%s3522_s12 + $0xe0] sm:$0xff] }
  0xc4   : > { %2556 = vmatpush1.bf16.msra.mxu0 %v3586_v13  ;;  %2509 = vmatprep.subr.bf16.mxu1 %v2974_v36  ;;  %v2585_v16 = vpack.c.bf16 %v1076_v12, %v1075_v11  ;;  %v808_v39 = vld [vmem:[%s3522_s12 + $0xa8] sm:$0xff]  ;;  %v817_v49 = vld [vmem:[%s3522_s12 + $0xf0] sm:$0xff]  ;;  %v823_v50 = vld [vmem:[%s3522_s12 + $0x120] sm:$0xff] }
  0xc5   : > { %2557 = vmatprep.subr.bf16.mxu0 %v2974_v36  ;;  %v1084_v47 = vld [vmem:[%s3515_s26 + $0x248] sm:$0xff]  ;;  %v1085_v54 = vld [vmem:[%s3515_s26 + $0x250] sm:$0xff]  ;;  %v1086_v55 = vld [vmem:[%s3515_s26 + $0x258] sm:$0xff] }
  0xc6   : > { %v822_v56 = vld [vmem:[%s3522_s12 + $0x118] sm:$0xff]  ;;  %v824_v58 = vld [vmem:[%s3522_s12 + $0x128] sm:$0xff]  ;;  %v2600_v61 = vpack.c.bf16 %v1086_v55, %v1085_v54  ;;  %v1087_v62 = vld [vmem:[%s3515_s26 + $0x260] sm:$0xff] }
  0xc7   : > { %2511 = vmatpush1.bf16.msra.mxu1 %v2510_v18  ;;  %v1077_v18 = vld [vmem:[%s3515_s26 + $0x210] sm:$0xff]  ;;  %v1088_v0 = vld [vmem:[%s3515_s26 + $0x268] sm:$0xff]  ;;  %v1090_v8 = vld [vmem:[%s3515_s26 + $0x278] sm:$0xff] }
  0xc8   : > { %2559 = vmatpush1.bf16.msra.mxu0 %v3595_v19  ;;  %2512 = vmatprep.subr.bf16.mxu1 %v2974_v36  ;;  %v2588_v26 = vpack.c.bf16 %v1078_v20, %v1077_v18  ;;  %v829_v1 = vld [vmem:[%s3522_s12 + $0x150] sm:$0xff]  ;;  %v2603_v6 = vpack.c.bf16 %v1088_v0, %v1087_v62  ;;  %v838_v11 = vld [vmem:[%s3522_s12 + $0x198] sm:$0xff]  ;;  %v844_v12 = vld [vmem:[%s3522_s12 + $0x1c8] sm:$0xff] }
  0xc9   : > { %2560 = vmatprep.subr.bf16.mxu0 %v2974_v36  ;;  %v837_v4 = vld [vmem:[%s3522_s12 + $0x190] sm:$0xff]  ;;  %v851_v20 = vld [vmem:[%s3522_s12 + $0x200] sm:$0xff]  ;;  %v860_v29 = vld [vmem:[%s3522_s12 + $0x248] sm:$0xff] }
  0xca   : > { %v1089_v7 = vld [vmem:[%s3515_s26 + $0x270] sm:$0xff]  ;;  %v878_v54 = vld [vmem:[%s3522_s12 + $0x2d8] sm:$0xff]  ;;  %v880_v55 = vld [vmem:[%s3522_s12 + $0x2e8] sm:$0xff] }
  0xcb   : > { %2514 = vmatpush1.bf16.msra.mxu1 %v2513_v24  ;;  %v802_v24 = vld [vmem:[%s3522_s12 + $0x78] sm:$0xff]  ;;  %v845_v18 = vld [vmem:[%s3522_s12 + $0x1d0] sm:$0xff]  ;;  %v887_v62 = vld [vmem:[%s3522_s12 + $0x320] sm:$0xff] }
  0xcc   : > { %2562 = vmatpush1.bf16.msra.mxu0 %v3604_v25  ;;  %2515 = vmatprep.subr.bf16.mxu1 %v2974_v36  ;;  %v893_v0 = vld [vmem:[%s3522_s12 + $0x350] sm:$0xff] }
  0xcd   : > { %2563 = vmatprep.subr.bf16.mxu0 %v2974_v36 }
  0xcf   : > { %2517 = vmatpush1.bf16.msra.mxu1 %v2516_v30  ;;  %v803_v30 = vld [vmem:[%s3522_s12 + $0x80] sm:$0xff] }
  0xd0   : > { %2565 = vmatpush1.bf16.msra.mxu0 %v3613_v31  ;;  %2518 = vmatprep.subr.bf16.mxu1 %v2974_v36 }
  0xd1   : > { %2566 = vmatprep.subr.bf16.mxu0 %v2974_v36 }
  0xd3   : > { %2520 = vmatpush1.bf16.msra.mxu1 %v2519_v37  ;;  %v1082_v37 = vld [vmem:[%s3515_s26 + $0x238] sm:$0xff] }
  0xd4   : > { %2568 = vmatpush1.bf16.msra.mxu0 %v3622_v38  ;;  %2521 = vmatprep.subr.bf16.mxu1 %v2974_v36  ;;  %v2594_v42 = vpack.c.bf16 %v1082_v37, %v1081_v35  ;;  %v867_v35 = vld [vmem:[%s3522_s12 + $0x280] sm:$0xff]  ;;  %v1098_v37 = vld [vmem:[%s3515_s26 + $0x2b8] sm:$0xff] }
  0xd5   : > { %2569 = vmatprep.subr.bf16.mxu0 %v2974_v36 }
  0xd7   : > { %2523 = vmatpush1.bf16.msra.mxu1 %v2522_v44  ;;  %v1083_v44 = vld [vmem:[%s3515_s26 + $0x240] sm:$0xff] }
  0xd8   : > { %2571 = vmatpush1.bf16.msra.mxu0 %v3631_v46  ;;  %2524 = vmatprep.subr.bf16.mxu1 %v2974_v36 }
  0xd9   : > { %2572 = vmatprep.subr.bf16.mxu0 %v2974_v36 }
  0xdb   : > { %2526 = vmatpush1.bf16.msra.mxu1 %v2525_v52  ;;  %v825_v52 = vld [vmem:[%s3522_s12 + $0x130] sm:$0xff] }
  0xdc   : > { %2574 = vmatpush1.bf16.msra.mxu0 %v3640_v53  ;;  %2527 = vmatprep.subr.bf16.mxu1 %v2974_v36 }
  0xdd   : > { %2575 = vmatprep.subr.bf16.mxu0 %v2974_v36 }
  0xdf   : > { %2529 = vmatpush1.bf16.msra.mxu1 %v2528_v59  ;;  %v830_v59 = vld [vmem:[%s3522_s12 + $0x158] sm:$0xff] }
  0xe0   : > { %2577 = vmatpush1.bf16.msra.mxu0 %v3649_v60  ;;  %2530 = vmatprep.subr.bf16.mxu1 %v2974_v36 }
  0xe1   : > { %2578 = vmatprep.subr.bf16.mxu0 %v2974_v36 }
  0xe3   : > { %2532 = vmatpush1.bf16.msra.mxu1 %v2531_v2  ;;  %v831_v2 = vld [vmem:[%s3522_s12 + $0x160] sm:$0xff] }
  0xe4   : > { %2580 = vmatpush1.bf16.msra.mxu0 %v3658_v3  ;;  %2533 = vmatprep.subr.bf16.mxu1 %v2974_v36 }
  0xe5   : > { %2581 = vmatprep.subr.bf16.mxu0 %v2974_v36 }
  0xe7   : > { %2535 = vmatpush1.bf16.msra.mxu1 %v2534_v9  ;;  %v836_v9 = vld [vmem:[%s3522_s12 + $0x188] sm:$0xff] }
  0xe8   : > { %2583 = vmatpush1.bf16.msra.mxu0 %v3667_v10  ;;  %2664 = vmatprep.subr.bf16.mxu1 %v2974_v36 }
  0xe9   : > { %2584 = vmatprep.subr.bf16.mxu0 %v2974_v36 }
  0xea   : > { %1188 = vmatmul.mubr.f32.vlgmr.msra.gmra.mrb[0].mxu1 %v787_v14  ;;  %v2606_v14 = vpack.c.bf16 %v1090_v8, %v1089_v7  ;;  %v1108_v7 = vld [vmem:[%s3515_s26 + $0x308] sm:$0xff]  ;;  %v894_v8 = vld [vmem:[%s3522_s12 + $0x358] sm:$0xff] }
  0xeb   : > { %1413 = vmatmul.mubr.f32.vlgmr.msra.gmra.mrb[0].mxu0 %v789_v15  ;;  %2680 = vmatpush1.bf16.msra.mxu1 %v3533_v41  ;;  %v801_v41 = vld [vmem:[%s3522_s12 + $0x70] sm:$0xff]  ;;  %v846_v15 = vld [vmem:[%s3522_s12 + $0x1d8] sm:$0xff] }
  0xec   : > { %2586 = vmatpush1.bf16.msra.mxu0 %v2585_v16  ;;  %1192 = vmatprep.mubr.f32.mxu1 %v795_v17  ;;  %v1092_v16 = vld [vmem:[%s3515_s26 + $0x288] sm:$0xff]  ;;  %v843_v17 = vld [vmem:[%s3522_s12 + $0x1c0] sm:$0xff] }
  0xed   : > { %1417 = vmatprep.mubr.f32.mxu0 %v797_v21  ;;  %2587 = vmatprep.subr.bf16.mxu0 %v2974_v36 }
  0xee   : > { %1193 = vmatmul.mubr.f32.gmra.mrb[2].mxu1 %v794_v22  ;;  %2665 = vmatprep.subr.bf16.mxu1 %v2974_v36  ;;  %v853_v22 = vld [vmem:[%s3522_s12 + $0x210] sm:$0xff] }
  0xef   : > { %1418 = vmatmul.mubr.f32.gmra.mrb[2].mxu0 %v796_v23  ;;  %1197 = vmatprep.mubr.f32.mxu1 %v802_v24  ;;  %v1094_v23 = vld [vmem:[%s3515_s26 + $0x298] sm:$0xff] }
  0xf0   : > { %1422 = vmatprep.mubr.f32.mxu0 %v804_v27  ;;  %2589 = vmatpush1.bf16.msra.mxu0 %v2588_v26  ;;  %v850_v24 = vld [vmem:[%s3522_s12 + $0x1f8] sm:$0xff]  ;;  %v852_v26 = vld [vmem:[%s3522_s12 + $0x208] sm:$0xff] }
  0xf1   : > { %2681 = vmatpush1.bf16.msra.mxu1 %v3539_v45  ;;  %2590 = vmatprep.subr.bf16.mxu0 %v2974_v36  ;;  %v816_v45 = vld [vmem:[%s3522_s12 + $0xe8] sm:$0xff]  ;;  %v858_v27 = vld [vmem:[%s3522_s12 + $0x238] sm:$0xff] }
  0xf2   : > { %1198 = vmatmul.mubr.f32.gmra.mrb[4].mxu1 %v801_v41  ;;  %2666 = vmatprep.subr.bf16.mxu1 %v2974_v36  ;;  %v1096_v41 = vld [vmem:[%s3515_s26 + $0x2a8] sm:$0xff] }
  0xf3   : > { %1423 = vmatmul.mubr.f32.gmra.mrb[4].mxu0 %v803_v30  ;;  %1202 = vmatprep.mubr.f32.mxu1 %v809_v32  ;;  %v857_v30 = vld [vmem:[%s3522_s12 + $0x230] sm:$0xff]  ;;  %v859_v32 = vld [vmem:[%s3522_s12 + $0x240] sm:$0xff] }
  0xf4   : > { %1427 = vmatprep.mubr.f32.mxu0 %v811_v34  ;;  %2592 = vmatpush1.bf16.msra.mxu0 %v2591_v33  ;;  %v865_v33 = vld [vmem:[%s3522_s12 + $0x270] sm:$0xff] }
  0xf5   : > { %2682 = vmatpush1.bf16.msra.mxu1 %v3548_v51  ;;  %2593 = vmatprep.subr.bf16.mxu0 %v2974_v36  ;;  %v2597_v51 = vpack.c.bf16 %v1084_v47, %v1083_v44  ;;  %v1100_v44 = vld [vmem:[%s3515_s26 + $0x2c8] sm:$0xff]  ;;  %v871_v47 = vld [vmem:[%s3522_s12 + $0x2a0] sm:$0xff] }
  0xf6   : > { %1203 = vmatmul.mubr.f32.gmra.mrb[6].mxu1 %v808_v39  ;;  %2667 = vmatprep.subr.bf16.mxu1 %v2974_v36  ;;  %v864_v39 = vld [vmem:[%s3522_s12 + $0x268] sm:$0xff] }
  0xf7   : > { %1428 = vmatmul.mubr.f32.gmra.mrb[6].mxu0 %v810_v40  ;;  %1207 = vmatprep.mubr.f32.mxu1 %v816_v45  ;;  %v866_v40 = vld [vmem:[%s3522_s12 + $0x278] sm:$0xff]  ;;  %v872_v45 = vld [vmem:[%s3522_s12 + $0x2a8] sm:$0xff] }
  0xf8   : > { %1432 = vmatprep.mubr.f32.mxu0 %v818_v43  ;;  %2595 = vmatpush1.bf16.msra.mxu0 %v2594_v42  ;;  %v874_v43 = vld [vmem:[%s3522_s12 + $0x2b8] sm:$0xff] }
  0xf9   : > { %2596 = vmatprep.subr.bf16.mxu0 %v2974_v36  ;;  %2683 = vmatpush1.bf16.msra.mxu1 %v3557_v57  ;;  %v832_v57 = vld [vmem:[%s3522_s12 + $0x168] sm:$0xff] }
  0xfa   : > { %1208 = vmatmul.mubr.f32.gmra.mrb[8].mxu1 %v815_v48  ;;  %2668 = vmatprep.subr.bf16.mxu1 %v2974_v36  ;;  %v873_v48 = vld [vmem:[%s3522_s12 + $0x2b0] sm:$0xff] }
  0xfb   : > { %1433 = vmatmul.mubr.f32.gmra.mrb[8].mxu0 %v817_v49  ;;  %1212 = vmatprep.mubr.f32.mxu1 %v823_v50  ;;  %v879_v49 = vld [vmem:[%s3522_s12 + $0x2e0] sm:$0xff] }
  0xfc   : > { %1437 = vmatprep.mubr.f32.mxu0 %v825_v52  ;;  %2598 = vmatpush1.bf16.msra.mxu0 %v2597_v51  ;;  %v881_v51 = vld [vmem:[%s3522_s12 + $0x2f0] sm:$0xff]  ;;  %v1102_v52 = vld [vmem:[%s3515_s26 + $0x2d8] sm:$0xff] }
  0xfd   : > { %2599 = vmatprep.subr.bf16.mxu0 %v2974_v36  ;;  %2684 = vmatpush1.bf16.msra.mxu1 %v3566_v63  ;;  %v839_v63 = vld [vmem:[%s3522_s12 + $0x1a0] sm:$0xff] }
  0xfe   : > { %1213 = vmatmul.mubr.f32.gmra.mrb[10].mxu1 %v822_v56  ;;  %2669 = vmatprep.subr.bf16.mxu1 %v2974_v36  ;;  %v886_v56 = vld [vmem:[%s3522_s12 + $0x318] sm:$0xff] }
  0xff   : > { %1438 = vmatmul.mubr.f32.gmra.mrb[10].mxu0 %v824_v58  ;;  %1217 = vmatprep.mubr.f32.mxu1 %v830_v59  ;;  %v888_v59 = vld [vmem:[%s3522_s12 + $0x328] sm:$0xff] }
 0x100   : > { %1442 = vmatprep.mubr.f32.mxu0 %v832_v57  ;;  %2601 = vmatpush1.bf16.msra.mxu0 %v2600_v61  ;;  %v1104_v61 = vld [vmem:[%s3515_s26 + $0x2e8] sm:$0xff]  ;;  %v885_v57 = vld [vmem:[%s3522_s12 + $0x310] sm:$0xff] }
 0x101   : > { %2602 = vmatprep.subr.bf16.mxu0 %v2974_v36  ;;  %2685 = vmatpush1.bf16.msra.mxu1 %v3575_v5  ;;  %v1091_v5 = vld [vmem:[%s3515_s26 + $0x280] sm:$0xff] }
 0x102   : > { %1218 = vmatmul.mubr.f32.gmra.mrb[12].mxu1 %v829_v1  ;;  %2670 = vmatprep.subr.bf16.mxu1 %v2974_v36  ;;  %v2609_v21 = vpack.c.bf16 %v1092_v16, %v1091_v5  ;;  %v907_v5 = vld [vmem:[%s3522_s12 + $0x3c0] sm:$0xff]  ;;  %v909_v16 = vld [vmem:[%s3522_s12 + $0x3d0] sm:$0xff] }
 0x103   : > { %1443 = vmatmul.mubr.f32.gmra.mrb[12].mxu0 %v831_v2  ;;  %1222 = vmatprep.mubr.f32.mxu1 %v837_v4  ;;  %v895_v2 = vld [vmem:[%s3522_s12 + $0x360] sm:$0xff]  ;;  %v1106_v4 = vld [vmem:[%s3515_s26 + $0x2f8] sm:$0xff] }
 0x104   : > { %1447 = vmatprep.mubr.f32.mxu0 %v839_v63  ;;  %2604 = vmatpush1.bf16.msra.mxu0 %v2603_v6  ;;  %v892_v6 = vld [vmem:[%s3522_s12 + $0x348] sm:$0xff]  ;;  %v1107_v63 = vld [vmem:[%s3515_s26 + $0x300] sm:$0xff] }
 0x105   : > { %2605 = vmatprep.subr.bf16.mxu0 %v2974_v36  ;;  %2686 = vmatpush1.bf16.msra.mxu1 %v3586_v13  ;;  %v1093_v13 = vld [vmem:[%s3515_s26 + $0x290] sm:$0xff] }
 0x106   : > { %1223 = vmatmul.mubr.f32.gmra.mrb[14].mxu1 %v836_v9  ;;  %2671 = vmatprep.subr.bf16.mxu1 %v2974_v36  ;;  %v2612_v28 = vpack.c.bf16 %v1094_v23, %v1093_v13  ;;  %v900_v9 = vld [vmem:[%s3522_s12 + $0x388] sm:$0xff]  ;;  %v922_v23 = vld [vmem:[%s3522_s12 + $0x438] sm:$0xff] }
 0x107   : > { %1448 = vmatmul.mubr.f32.gmra.mrb[14].mxu0 %v838_v11  ;;  %1227 = vmatprep.mubr.f32.mxu1 %v844_v12  ;;  %v902_v12 = vld [vmem:[%s3522_s12 + $0x398] sm:$0xff]  ;;  %v920_v13 = vld [vmem:[%s3522_s12 + $0x428] sm:$0xff] }
 0x108   : > { %1452 = vmatprep.mubr.f32.mxu0 %v846_v15  ;;  %2607 = vmatpush1.bf16.msra.mxu0 %v2606_v14  ;;  %v899_v14 = vld [vmem:[%s3522_s12 + $0x380] sm:$0xff]  ;;  %v901_v15 = vld [vmem:[%s3522_s12 + $0x390] sm:$0xff] }
 0x109   : > { %2608 = vmatprep.subr.bf16.mxu0 %v2974_v36  ;;  %2687 = vmatpush1.bf16.msra.mxu1 %v3595_v19  ;;  %v1095_v19 = vld [vmem:[%s3515_s26 + $0x2a0] sm:$0xff] }
 0x10a   : > { %1228 = vmatmul.mubr.f32.gmra.mrb[16].mxu1 %v843_v17  ;;  %2672 = vmatprep.subr.bf16.mxu1 %v2974_v36  ;;  %v2615_v34 = vpack.c.bf16 %v1096_v41, %v1095_v19  ;;  %v914_v17 = vld [vmem:[%s3522_s12 + $0x3f8] sm:$0xff]  ;;  %v937_v19 = vld [vmem:[%s3522_s12 + $0x4b0] sm:$0xff] }
 0x10b   : > { %1453 = vmatmul.mubr.f32.gmra.mrb[16].mxu0 %v845_v18  ;;  %1232 = vmatprep.mubr.f32.mxu1 %v851_v20  ;;  %v916_v18 = vld [vmem:[%s3522_s12 + $0x408] sm:$0xff]  ;;  %v915_v20 = vld [vmem:[%s3522_s12 + $0x400] sm:$0xff]  ;;  %v934_v41 = vld [vmem:[%s3522_s12 + $0x498] sm:$0xff] }
 0x10c   : > { %1457 = vmatprep.mubr.f32.mxu0 %v853_v22  ;;  %2610 = vmatpush1.bf16.msra.mxu0 %v2609_v21  ;;  %v921_v21 = vld [vmem:[%s3522_s12 + $0x430] sm:$0xff]  ;;  %v923_v22 = vld [vmem:[%s3522_s12 + $0x440] sm:$0xff] }
 0x10d   : > { %2611 = vmatprep.subr.bf16.mxu0 %v2974_v36  ;;  %2688 = vmatpush1.bf16.msra.mxu1 %v3604_v25  ;;  %v1097_v25 = vld [vmem:[%s3515_s26 + $0x2b0] sm:$0xff] }
 0x10e   : > { %1233 = vmatmul.mubr.f32.gmra.mrb[18].mxu1 %v850_v24  ;;  %2673 = vmatprep.subr.bf16.mxu1 %v2974_v36  ;;  %v2618_v42 = vpack.c.bf16 %v1098_v37, %v1097_v25  ;;  %v928_v24 = vld [vmem:[%s3522_s12 + $0x468] sm:$0xff]  ;;  %v949_v25 = vld [vmem:[%s3522_s12 + $0x510] sm:$0xff]  ;;  %v951_v37 = vld [vmem:[%s3522_s12 + $0x520] sm:$0xff] }
 0x10f   : > { %1458 = vmatmul.mubr.f32.gmra.mrb[18].mxu0 %v852_v26  ;;  %1237 = vmatprep.mubr.f32.mxu1 %v858_v27  ;;  %v930_v26 = vld [vmem:[%s3522_s12 + $0x478] sm:$0xff]  ;;  %v927_v27 = vld [vmem:[%s3522_s12 + $0x460] sm:$0xff] }
 0x110   : > { %1462 = vmatprep.mubr.f32.mxu0 %v860_v29  ;;  %2613 = vmatpush1.bf16.msra.mxu0 %v2612_v28  ;;  %v929_v28 = vld [vmem:[%s3522_s12 + $0x470] sm:$0xff]  ;;  %v935_v29 = vld [vmem:[%s3522_s12 + $0x4a0] sm:$0xff] }
 0x111   : > { %2614 = vmatprep.subr.bf16.mxu0 %v2974_v36  ;;  %2689 = vmatpush1.bf16.msra.mxu1 %v3613_v31  ;;  %v1099_v31 = vld [vmem:[%s3515_s26 + $0x2c0] sm:$0xff] }
 0x112   : > { %1238 = vmatmul.mubr.f32.gmra.mrb[20].mxu1 %v857_v30  ;;  %2674 = vmatprep.subr.bf16.mxu1 %v2974_v36  ;;  %v2621_v50 = vpack.c.bf16 %v1100_v44, %v1099_v31  ;;  %v936_v30 = vld [vmem:[%s3522_s12 + $0x4a8] sm:$0xff]  ;;  %v791_v31 = vld [vmem:[%s3522_s12 + $0x20] sm:$0xff] }
 0x113   : > { %1463 = vmatmul.mubr.f32.gmra.mrb[20].mxu0 %v859_v32  ;;  %1242 = vmatprep.mubr.f32.mxu1 %v865_v33  ;;  %v942_v32 = vld [vmem:[%s3522_s12 + $0x4d8] sm:$0xff]  ;;  %v944_v33 = vld [vmem:[%s3522_s12 + $0x4e8] sm:$0xff]  ;;  %v963_v44 = vld [vmem:[%s3522_s12 + $0x580] sm:$0xff] }
 0x114   : > { %1467 = vmatprep.mubr.f32.mxu0 %v867_v35  ;;  %2616 = vmatpush1.bf16.msra.mxu0 %v2615_v34  ;;  %v941_v34 = vld [vmem:[%s3522_s12 + $0x4d0] sm:$0xff]  ;;  %v943_v35 = vld [vmem:[%s3522_s12 + $0x4e0] sm:$0xff] }
 0x115   : > { %2617 = vmatprep.subr.bf16.mxu0 %v2974_v36  ;;  %2690 = vmatpush1.bf16.msra.mxu1 %v3622_v38  ;;  %v1101_v38 = vld [vmem:[%s3515_s26 + $0x2d0] sm:$0xff] }
 0x116   : > { %1243 = vmatmul.mubr.f32.gmra.mrb[22].mxu1 %v864_v39  ;;  %2675 = vmatprep.subr.bf16.mxu1 %v2974_v36  ;;  %v2624_v58 = vpack.c.bf16 %v1102_v52, %v1101_v38  ;;  %v948_v39 = vld [vmem:[%s3522_s12 + $0x508] sm:$0xff]  ;;  %v969_v38 = vld [vmem:[%s3522_s12 + $0x5b0] sm:$0xff] }
 0x117   : > { %1468 = vmatmul.mubr.f32.gmra.mrb[22].mxu0 %v866_v40  ;;  %1247 = vmatprep.mubr.f32.mxu1 %v872_v45  ;;  %v950_v40 = vld [vmem:[%s3522_s12 + $0x518] sm:$0xff]  ;;  %v956_v45 = vld [vmem:[%s3522_s12 + $0x548] sm:$0xff]  ;;  %v805_v52 = vld [vmem:[%s3522_s12 + $0x90] sm:$0xff] }
 0x118   : > { %1472 = vmatprep.mubr.f32.mxu0 %v874_v43  ;;  %2619 = vmatpush1.bf16.msra.mxu0 %v2618_v42  ;;  %v792_v42 = vld [vmem:[%s3522_s12 + $0x28] sm:$0xff]  ;;  %v955_v43 = vld [vmem:[%s3522_s12 + $0x540] sm:$0xff] }
 0x119   : > { %2620 = vmatprep.subr.bf16.mxu0 %v2974_v36  ;;  %2691 = vmatpush1.bf16.msra.mxu1 %v3631_v46  ;;  %v1103_v46 = vld [vmem:[%s3515_s26 + $0x2e0] sm:$0xff] }
 0x11a   : > { %1248 = vmatmul.mubr.f32.gmra.mrb[24].mxu1 %v871_v47  ;;  %2676 = vmatprep.subr.bf16.mxu1 %v2974_v36  ;;  %v2627_v1 = vpack.c.bf16 %v1104_v61, %v1103_v46  ;;  %v799_v47 = vld [vmem:[%s3522_s12 + $0x60] sm:$0xff]  ;;  %v820_v46 = vld [vmem:[%s3522_s12 + $0x108] sm:$0xff] }
 0x11b   : > { %1473 = vmatmul.mubr.f32.gmra.mrb[24].mxu0 %v873_v48  ;;  %1252 = vmatprep.mubr.f32.mxu1 %v879_v49  ;;  %v962_v48 = vld [vmem:[%s3522_s12 + $0x578] sm:$0xff]  ;;  %v983_v61 = vld [vmem:[%s3522_s12 + $0x620] sm:$0xff] }
 0x11c   : > { %1477 = vmatprep.mubr.f32.mxu0 %v881_v51  ;;  %2622 = vmatpush1.bf16.msra.mxu0 %v2621_v50  ;;  %v798_v49 = vld [vmem:[%s3522_s12 + $0x58] sm:$0xff] }
 0x11d   : > { %2623 = vmatprep.subr.bf16.mxu0 %v2974_v36  ;;  %2692 = vmatpush1.bf16.msra.mxu1 %v3640_v53  ;;  %v1105_v53 = vld [vmem:[%s3515_s26 + $0x2f0] sm:$0xff]  ;;  %v970_v50 = vld [vmem:[%s3522_s12 + $0x5b8] sm:$0xff] }
 0x11e   : > { %1253 = vmatmul.mubr.f32.gmra.mrb[26].mxu1 %v878_v54  ;;  %2677 = vmatprep.subr.bf16.mxu1 %v2974_v36  ;;  %v2630_v11 = vpack.c.bf16 %v1106_v4, %v1105_v53  ;;  %v806_v51 = vld [vmem:[%s3522_s12 + $0x98] sm:$0xff]  ;;  %v977_v54 = vld [vmem:[%s3522_s12 + $0x5f0] sm:$0xff] }
 0x11f   : > { %1478 = vmatmul.mubr.f32.gmra.mrb[26].mxu0 %v880_v55  ;;  %1257 = vmatprep.mubr.f32.mxu1 %v886_v56  ;;  %v813_v55 = vld [vmem:[%s3522_s12 + $0xd0] sm:$0xff]  ;;  %v976_v56 = vld [vmem:[%s3522_s12 + $0x5e8] sm:$0xff]  ;;  %v998_v53 = vld [vmem:[%s3522_s12 + $0x698] sm:$0xff] }
 0x120   : > { %1482 = vmatprep.mubr.f32.mxu0 %v888_v59  ;;  %2625 = vmatpush1.bf16.msra.mxu0 %v2624_v58  ;;  %v812_v58 = vld [vmem:[%s3522_s12 + $0xc8] sm:$0xff]  ;;  %v834_v4 = vld [vmem:[%s3522_s12 + $0x178] sm:$0xff] }
 0x121   : > { %2626 = vmatprep.subr.bf16.mxu0 %v2974_v36  ;;  %2693 = vmatpush1.bf16.msra.mxu1 %v3649_v60  ;;  %v3816_v60 = vpack.c.bf16 %v1108_v7, %v1107_v63  ;;  %v984_v59 = vld [vmem:[%s3522_s12 + $0x628] sm:$0xff]  ;;  %v833_v63 = vld [vmem:[%s3522_s12 + $0x170] sm:$0xff] }
 0x122   : > { %1258 = vmatmul.mubr.f32.gmra.mrb[28].mxu1 %v885_v57  ;;  %2678 = vmatprep.subr.bf16.mxu1 %v2974_v36  ;;  %v819_v57 = vld [vmem:[%s3522_s12 + $0x100] sm:$0xff]  ;;  %v1005_v7 = vld [vmem:[%s3522_s12 + $0x6d0] sm:$0xff] }
 0x123   : > { %1483 = vmatmul.mubr.f32.gmra.mrb[28].mxu0 %v887_v62  ;;  %1262 = vmatprep.mubr.f32.mxu1 %v893_v0  ;;  %v991_v62 = vld [vmem:[%s3522_s12 + $0x660] sm:$0xff] }
 0x124   : > { %1487 = vmatprep.mubr.f32.mxu0 %v895_v2  ;;  %2628 = vmatpush1.bf16.msra.mxu0 %v2627_v1  ;;  %v827_v0 = vld [vmem:[%s3522_s12 + $0x140] sm:$0xff]  ;;  %v990_v1 = vld [vmem:[%s3522_s12 + $0x658] sm:$0xff] }
 0x125   : > { %2629 = vmatprep.subr.bf16.mxu0 %v2974_v36  ;;  %2694 = vmatpush1.bf16.msra.mxu1 %v3658_v3  ;;  %v908_v3 = vld [vmem:[%s3522_s12 + $0x3c8] sm:$0xff]  ;;  %v826_v2 = vld [vmem:[%s3522_s12 + $0x138] sm:$0xff] }
 0x126   : > { %1263 = vmatmul.mubr.f32.gmra.mrb[30].mxu1 %v892_v6  ;;  %2679 = vmatprep.subr.bf16.mxu1 %v2974_v36  ;;  %v906_v36 = vld [vmem:[%s3522_s12 + $0x3b8] sm:$0xff]  ;;  %v997_v6 = vld [vmem:[%s3522_s12 + $0x690] sm:$0xff] }
 0x127   : > { %1488 = vmatmul.mubr.f32.gmra.mrb[30].mxu0 %v894_v8  ;;  %1267 = vmatprep.mubr.f32.mxu1 %v900_v9  ;;  %v841_v8 = vld [vmem:[%s3522_s12 + $0x1b0] sm:$0xff]  ;;  %v1004_v9 = vld [vmem:[%s3522_s12 + $0x6c8] sm:$0xff] }
 0x128   : > { %1492 = vmatprep.mubr.f32.mxu0 %v902_v12  ;;  %2631 = vmatpush1.bf16.msra.mxu0 %v2630_v11  ;;  %v840_v11 = vld [vmem:[%s3522_s12 + $0x1a8] sm:$0xff]  ;;  %v958_v12 = vld [vmem:[%s3522_s12 + $0x558] sm:$0xff] }
 0x129   : > { %2695 = vmatpush1.bf16.msra.mxu1 %v3667_v10  ;;  %v913_v10 = vld [vmem:[%s3522_s12 + $0x3f0] sm:$0xff] }
 0x12a   : > { %1268 = vmatmul.mubr.f32.gmra.mrb[32].mxu1 %v899_v14  ;;  %2633 = vmatprep.subr.bf16.mxu1 %v3816_v60  ;;  %v848_v14 = vld [vmem:[%s3522_s12 + $0x1e8] sm:$0xff] }
 0x12b   : > { %1493 = vmatmul.mubr.f32.gmra.mrb[32].mxu0 %v901_v15  ;;  %1272 = vmatprep.mubr.f32.mxu1 %v907_v5  ;;  %v1109_v15 = vld [vmem:[%s3515_s26 + $0x310] sm:$0xff]  ;;  %v1110_v5 = vld [vmem:[%s3515_s26 + $0x318] sm:$0xff] }
 0x12c   : > { %1497 = vmatprep.mubr.f32.mxu0 %v909_v16  ;;  %v957_v16 = vld [vmem:[%s3522_s12 + $0x550] sm:$0xff] }
 0x12e   : > { %1273 = vmatmul.mubr.f32.gmra.mrb[34].mxu1 %v906_v36  ;;  %v847_v36 = vld [vmem:[%s3522_s12 + $0x1e0] sm:$0xff] }
 0x12f   : > { %1498 = vmatmul.mubr.f32.gmra.mrb[34].mxu0 %v908_v3  ;;  %1277 = vmatprep.mubr.f32.mxu1 %v914_v17  ;;  %v965_v3 = vld [vmem:[%s3522_s12 + $0x590] sm:$0xff]  ;;  %v855_v17 = vld [vmem:[%s3522_s12 + $0x220] sm:$0xff] }
 0x130   : > { %1502 = vmatprep.mubr.f32.mxu0 %v916_v18  ;;  %v2636_v18 = vpack.c.bf16 %v1110_v5, %v1109_v15  ;;  %v925_v15 = vld [vmem:[%s3522_s12 + $0x450] sm:$0xff]  ;;  %v842_v5 = vld [vmem:[%s3522_s12 + $0x1b8] sm:$0xff] }
 0x132   : > { %1278 = vmatmul.mubr.f32.gmra.mrb[36].mxu1 %v913_v10  ;;  %v1111_v10 = vld [vmem:[%s3515_s26 + $0x320] sm:$0xff] }
 0x133   : > { %1503 = vmatmul.mubr.f32.gmra.mrb[36].mxu0 %v915_v20  ;;  %1282 = vmatprep.mubr.f32.mxu1 %v921_v21  ;;  %v1112_v20 = vld [vmem:[%s3515_s26 + $0x328] sm:$0xff] }
 0x134   : > { %1507 = vmatprep.mubr.f32.mxu0 %v923_v22  ;;  %v964_v21 = vld [vmem:[%s3522_s12 + $0x588] sm:$0xff]  ;;  %v854_v22 = vld [vmem:[%s3522_s12 + $0x218] sm:$0xff] }
 0x136   : > { %1283 = vmatmul.mubr.f32.gmra.mrb[38].mxu1 %v920_v13  ;;  %v972_v13 = vld [vmem:[%s3522_s12 + $0x5c8] sm:$0xff] }
 0x137   : > { %1508 = vmatmul.mubr.f32.gmra.mrb[38].mxu0 %v922_v23  ;;  %1287 = vmatprep.mubr.f32.mxu1 %v928_v24  ;;  %v862_v23 = vld [vmem:[%s3522_s12 + $0x258] sm:$0xff]  ;;  %v2640_v24 = vpack.c.bf16 %v1112_v20, %v1111_v10  ;;  %v863_v10 = vld [vmem:[%s3522_s12 + $0x260] sm:$0xff] }
 0x138   : > { %1512 = vmatprep.mubr.f32.mxu0 %v930_v26  ;;  %v1113_v26 = vld [vmem:[%s3515_s26 + $0x330] sm:$0xff]  ;;  %v939_v20 = vld [vmem:[%s3522_s12 + $0x4c0] sm:$0xff] }
 0x13a   : > { %1288 = vmatmul.mubr.f32.gmra.mrb[40].mxu1 %v927_v27  ;;  %v1114_v27 = vld [vmem:[%s3515_s26 + $0x338] sm:$0xff] }
 0x13b   : > { %1513 = vmatmul.mubr.f32.gmra.mrb[40].mxu0 %v929_v28  ;;  %1292 = vmatprep.mubr.f32.mxu1 %v935_v29  ;;  %v861_v28 = vld [vmem:[%s3522_s12 + $0x250] sm:$0xff]  ;;  %v979_v29 = vld [vmem:[%s3522_s12 + $0x600] sm:$0xff] }
 0x13c   : > { %1517 = vmatprep.mubr.f32.mxu0 %v937_v19  ;;  %v869_v19 = vld [vmem:[%s3522_s12 + $0x290] sm:$0xff] }
 0x13e   : > { %1293 = vmatmul.mubr.f32.gmra.mrb[42].mxu1 %v934_v41  ;;  %v2644_v41 = vpack.c.bf16 %v1114_v27, %v1113_v26  ;;  %v945_v26 = vld [vmem:[%s3522_s12 + $0x4f0] sm:$0xff]  ;;  %v891_v27 = vld [vmem:[%s3522_s12 + $0x340] sm:$0xff] }
 0x13f   : > { %1518 = vmatmul.mubr.f32.gmra.mrb[42].mxu0 %v936_v30  ;;  %1297 = vmatprep.mubr.f32.mxu1 %v942_v32  ;;  %v1115_v30 = vld [vmem:[%s3515_s26 + $0x340] sm:$0xff]  ;;  %v1116_v32 = vld [vmem:[%s3515_s26 + $0x348] sm:$0xff] }
 0x140   : > { %1522 = vmatprep.mubr.f32.mxu0 %v944_v33  ;;  %v978_v33 = vld [vmem:[%s3522_s12 + $0x5f8] sm:$0xff] }
 0x142   : > { %1298 = vmatmul.mubr.f32.gmra.mrb[44].mxu1 %v941_v34  ;;  %v868_v34 = vld [vmem:[%s3522_s12 + $0x288] sm:$0xff] }
 0x143   : > { %1523 = vmatmul.mubr.f32.gmra.mrb[44].mxu0 %v943_v35  ;;  %1302 = vmatprep.mubr.f32.mxu1 %v949_v25  ;;  %v986_v35 = vld [vmem:[%s3522_s12 + $0x638] sm:$0xff]  ;;  %v876_v25 = vld [vmem:[%s3522_s12 + $0x2c8] sm:$0xff] }
 0x144   : > { %1527 = vmatprep.mubr.f32.mxu0 %v951_v37  ;;  %v2648_v37 = vpack.c.bf16 %v1116_v32, %v1115_v30  ;;  %v912_v30 = vld [vmem:[%s3522_s12 + $0x3e8] sm:$0xff]  ;;  %v959_v32 = vld [vmem:[%s3522_s12 + $0x560] sm:$0xff] }
 0x146   : > { %1303 = vmatmul.mubr.f32.gmra.mrb[46].mxu1 %v948_v39  ;;  %v1117_v39 = vld [vmem:[%s3515_s26 + $0x350] sm:$0xff] }
 0x147   : > { %1528 = vmatmul.mubr.f32.gmra.mrb[46].mxu0 %v950_v40  ;;  %1307 = vmatprep.mubr.f32.mxu1 %v956_v45  ;;  %v1118_v40 = vld [vmem:[%s3515_s26 + $0x358] sm:$0xff]  ;;  %v985_v45 = vld [vmem:[%s3522_s12 + $0x630] sm:$0xff] }
 0x148   : > { %1637 = vmatprep.mubr.f32.mxu0 %v792_v42  ;;  %v875_v42 = vld [vmem:[%s3522_s12 + $0x2c0] sm:$0xff] }
 0x14a   : > { %1308 = vmatmul.mubr.f32.gmra.mrb[48].mxu1 %v955_v43  ;;  %v993_v43 = vld [vmem:[%s3522_s12 + $0x670] sm:$0xff] }
 0x14b   : > { %1638 = vmatmul.mubr.f32.vlgmr.msra.gmra.mrb[0].mxu0 %v791_v31  ;;  %1312 = vmatprep.mubr.f32.mxu1 %v963_v44  ;;  %v883_v31 = vld [vmem:[%s3522_s12 + $0x300] sm:$0xff]  ;;  %v2652_v44 = vpack.c.bf16 %v1118_v40, %v1117_v39  ;;  %v974_v39 = vld [vmem:[%s3522_s12 + $0x5d8] sm:$0xff]  ;;  %v940_v40 = vld [vmem:[%s3522_s12 + $0x4c8] sm:$0xff] }
 0x14c   : > { %1642 = vmatprep.mubr.f32.mxu0 %v799_v47  ;;  %v1119_v47 = vld [vmem:[%s3515_s26 + $0x360] sm:$0xff] }
 0x14e   : > { %1313 = vmatmul.mubr.f32.gmra.mrb[50].mxu1 %v962_v48  ;;  %v1120_v48 = vld [vmem:[%s3515_s26 + $0x368] sm:$0xff] }
 0x14f   : > { %1643 = vmatmul.mubr.f32.gmra.mrb[2].mxu0 %v798_v49  ;;  %1317 = vmatprep.mubr.f32.mxu1 %v970_v50  ;;  %v992_v49 = vld [vmem:[%s3522_s12 + $0x668] sm:$0xff]  ;;  %v882_v50 = vld [vmem:[%s3522_s12 + $0x2f8] sm:$0xff] }
 0x150   : > { %1647 = vmatprep.mubr.f32.mxu0 %v806_v51  ;;  %v1000_v51 = vld [vmem:[%s3522_s12 + $0x6a8] sm:$0xff] }
 0x152   : > { %1318 = vmatmul.mubr.f32.gmra.mrb[52].mxu1 %v969_v38  ;;  %v890_v38 = vld [vmem:[%s3522_s12 + $0x338] sm:$0xff] }
 0x153   : > { %1648 = vmatmul.mubr.f32.gmra.mrb[4].mxu0 %v805_v52  ;;  %1322 = vmatprep.mubr.f32.mxu1 %v977_v54  ;;  %v2656_v52 = vpack.c.bf16 %v1120_v48, %v1119_v47  ;;  %v1121_v54 = vld [vmem:[%s3515_s26 + $0x370] sm:$0xff]  ;;  %v988_v48 = vld [vmem:[%s3522_s12 + $0x648] sm:$0xff] }
 0x154   : > { %1652 = vmatprep.mubr.f32.mxu0 %v813_v55  ;;  %v1122_v55 = vld [vmem:[%s3515_s26 + $0x378] sm:$0xff]  ;;  %v961_v47 = vld [vmem:[%s3522_s12 + $0x570] sm:$0xff] }
 0x156   : > { %1323 = vmatmul.mubr.f32.gmra.mrb[54].mxu1 %v976_v56  ;;  %v999_v56 = vld [vmem:[%s3522_s12 + $0x6a0] sm:$0xff] }
 0x157   : > { %1653 = vmatmul.mubr.f32.gmra.mrb[6].mxu0 %v812_v58  ;;  %1327 = vmatprep.mubr.f32.mxu1 %v984_v59  ;;  %v889_v58 = vld [vmem:[%s3522_s12 + $0x330] sm:$0xff]  ;;  %v1007_v59 = vld [vmem:[%s3522_s12 + $0x6e0] sm:$0xff] }
 0x158   : > { %1657 = vmatprep.mubr.f32.mxu0 %v820_v46  ;;  %v897_v46 = vld [vmem:[%s3522_s12 + $0x370] sm:$0xff] }
 0x15a   : > { %1328 = vmatmul.mubr.f32.gmra.mrb[56].mxu1 %v983_v61  ;;  %v2660_v61 = vpack.c.bf16 %v1122_v55, %v1121_v54  ;;  %v994_v54 = vld [vmem:[%s3522_s12 + $0x678] sm:$0xff]  ;;  %v989_v55 = vld [vmem:[%s3522_s12 + $0x650] sm:$0xff] }
 0x15b   : > { %1658 = vmatmul.mubr.f32.gmra.mrb[8].mxu0 %v819_v57  ;;  %1332 = vmatprep.mubr.f32.mxu1 %v991_v62  ;;  %v1006_v57 = vld [vmem:[%s3522_s12 + $0x6d8] sm:$0xff]  ;;  %v896_v62 = vld [vmem:[%s3522_s12 + $0x368] sm:$0xff] }
 0x15c   : > { %1662 = vmatprep.mubr.f32.mxu0 %v827_v0  ;;  %v904_v0 = vld [vmem:[%s3522_s12 + $0x3a8] sm:$0xff] }
 0x15e   : > { %1333 = vmatmul.mubr.f32.gmra.mrb[58].mxu1 %v990_v1  ;;  %v793_v1 = vld [vmem:[%s3522_s12 + $0x30] sm:$0xff] }
 0x15f   : > { %1663 = vmatmul.mubr.f32.gmra.mrb[10].mxu0 %v826_v2  ;;  %1337 = vmatprep.mubr.f32.mxu1 %v998_v53  ;;  %v800_v2 = vld [vmem:[%s3522_s12 + $0x68] sm:$0xff]  ;;  %v903_v53 = vld [vmem:[%s3522_s12 + $0x3a0] sm:$0xff] }
 0x160   : > { %1667 = vmatprep.mubr.f32.mxu0 %v834_v4  ;;  %v807_v4 = vld [vmem:[%s3522_s12 + $0xa0] sm:$0xff] }
 0x162   : > { %1338 = vmatmul.mubr.f32.gmra.mrb[60].mxu1 %v997_v6  ;;  %v911_v6 = vld [vmem:[%s3522_s12 + $0x3e0] sm:$0xff] }
 0x163   : > { %1668 = vmatmul.mubr.f32.gmra.mrb[12].mxu0 %v833_v63  ;;  %1342 = vmatprep.mubr.f32.mxu1 %v1005_v7  ;;  %v814_v63 = vld [vmem:[%s3522_s12 + $0xd8] sm:$0xff] }
 0x164   : > { %1672 = vmatprep.mubr.f32.mxu0 %v841_v8  ;;  %v910_v7 = vld [vmem:[%s3522_s12 + $0x3d8] sm:$0xff]  ;;  %v821_v8 = vld [vmem:[%s3522_s12 + $0x110] sm:$0xff] }
 0x166   : > { %1343 = vmatmul.mubr.f32.gmra.mrb[62].mxu1 %v1004_v9  ;;  %v918_v9 = vld [vmem:[%s3522_s12 + $0x418] sm:$0xff] }
 0x167   : > { %1673 = vmatmul.mubr.f32.gmra.mrb[14].mxu0 %v840_v11  ;;  %1532 = vmatprep.mubr.f32.mxu1 %v958_v12  ;;  %v828_v11 = vld [vmem:[%s3522_s12 + $0x148] sm:$0xff]  ;;  %v917_v12 = vld [vmem:[%s3522_s12 + $0x410] sm:$0xff] }
 0x168   : > { %1677 = vmatprep.mubr.f32.mxu0 %v848_v14  ;;  %v835_v14 = vld [vmem:[%s3522_s12 + $0x180] sm:$0xff] }
 0x16a   : > { %1533 = vmatmul.mubr.f32.vlgmr.msra.gmra.mrb[48].mxu1 %v957_v16  ;;  %v924_v16 = vld [vmem:[%s3522_s12 + $0x448] sm:$0xff] }
 0x16b   : > { %1678 = vmatmul.mubr.f32.gmra.mrb[16].mxu0 %v847_v36  ;;  %2635 = vmatpush3.bf16.msra.mxu1 %v3816_v60  ;;  %v971_v60 = vld [vmem:[%s3522_s12 + $0x5c0] sm:$0xff]  ;;  %v849_v36 = vld [vmem:[%s3522_s12 + $0x1f0] sm:$0xff] }
 0x16c   : > { %1537 = vmatprep.mubr.f32.mxu1 %v965_v3  ;;  %1682 = vmatprep.mubr.f32.mxu0 %v855_v17  ;;  %v932_v3 = vld [vmem:[%s3522_s12 + $0x488] sm:$0xff] }
 0x16d   : > { %2637 = vmatprep.subr.bf16.mxu1 %v2636_v18  ;;  %v856_v17 = vld [vmem:[%s3522_s12 + $0x228] sm:$0xff] }
 0x16e   : > { %1538 = vmatmul.mubr.f32.gmra.mrb[50].mxu1 %v964_v21  ;;  %v870_v21 = vld [vmem:[%s3522_s12 + $0x298] sm:$0xff] }
 0x16f   : > { %1683 = vmatmul.mubr.f32.gmra.mrb[18].mxu0 %v854_v22  ;;  %2639 = vmatpush3.bf16.msra.mxu1 %v2636_v18  ;;  %v931_v18 = vld [vmem:[%s3522_s12 + $0x480] sm:$0xff]  ;;  %v938_v22 = vld [vmem:[%s3522_s12 + $0x4b8] sm:$0xff] }
 0x170   : > { %1542 = vmatprep.mubr.f32.mxu1 %v972_v13  ;;  %1687 = vmatprep.mubr.f32.mxu0 %v862_v23  ;;  %v877_v13 = vld [vmem:[%s3522_s12 + $0x2d0] sm:$0xff]  ;;  %v946_v23 = vld [vmem:[%s3522_s12 + $0x4f8] sm:$0xff] }
 0x171   : > { %2641 = vmatprep.subr.bf16.mxu1 %v2640_v24 }
 0x172   : > { %1543 = vmatmul.mubr.f32.gmra.mrb[52].mxu1 %v971_v60  ;;  %v953_v60 = vld [vmem:[%s3522_s12 + $0x530] sm:$0xff] }
 0x173   : > { %1688 = vmatmul.mubr.f32.gmra.mrb[20].mxu0 %v861_v28  ;;  %2643 = vmatpush3.bf16.msra.mxu1 %v2640_v24  ;;  %v884_v24 = vld [vmem:[%s3522_s12 + $0x308] sm:$0xff]  ;;  %v898_v28 = vld [vmem:[%s3522_s12 + $0x378] sm:$0xff] }
 0x174   : > { %1547 = vmatprep.mubr.f32.mxu1 %v979_v29  ;;  %1692 = vmatprep.mubr.f32.mxu0 %v869_v19  ;;  %v952_v29 = vld [vmem:[%s3522_s12 + $0x528] sm:$0xff]  ;;  %v905_v19 = vld [vmem:[%s3522_s12 + $0x3b0] sm:$0xff] }
 0x175   : > { %2645 = vmatprep.subr.bf16.mxu1 %v2644_v41 }
 0x176   : > { %1548 = vmatmul.mubr.f32.gmra.mrb[54].mxu1 %v978_v33  ;;  %v919_v33 = vld [vmem:[%s3522_s12 + $0x420] sm:$0xff] }
 0x177   : > { %1693 = vmatmul.mubr.f32.gmra.mrb[22].mxu0 %v868_v34  ;;  %2647 = vmatpush3.bf16.msra.mxu1 %v2644_v41  ;;  %v960_v41 = vld [vmem:[%s3522_s12 + $0x568] sm:$0xff]  ;;  %v967_v34 = vld [vmem:[%s3522_s12 + $0x5a0] sm:$0xff] }
 0x178   : > { %1552 = vmatprep.mubr.f32.mxu1 %v986_v35  ;;  %1697 = vmatprep.mubr.f32.mxu0 %v876_v25  ;;  %v926_v35 = vld [vmem:[%s3522_s12 + $0x458] sm:$0xff] }
 0x179   : > { %2649 = vmatprep.subr.bf16.mxu1 %v2648_v37  ;;  %v966_v25 = vld [vmem:[%s3522_s12 + $0x598] sm:$0xff] }
 0x17a   : > { %1553 = vmatmul.mubr.f32.gmra.mrb[56].mxu1 %v985_v45  ;;  %v973_v45 = vld [vmem:[%s3522_s12 + $0x5d0] sm:$0xff] }
 0x17b   : > { %1698 = vmatmul.mubr.f32.gmra.mrb[24].mxu0 %v875_v42  ;;  %2651 = vmatpush3.bf16.msra.mxu1 %v2648_v37  ;;  %v933_v37 = vld [vmem:[%s3522_s12 + $0x490] sm:$0xff]  ;;  %v947_v42 = vld [vmem:[%s3522_s12 + $0x500] sm:$0xff] }
 0x17c   : > { %1557 = vmatprep.mubr.f32.mxu1 %v993_v43  ;;  %1702 = vmatprep.mubr.f32.mxu0 %v883_v31  ;;  %v981_v43 = vld [vmem:[%s3522_s12 + $0x610] sm:$0xff]  ;;  %v954_v31 = vld [vmem:[%s3522_s12 + $0x538] sm:$0xff] }
 0x17d   : > { %2653 = vmatprep.subr.bf16.mxu1 %v2652_v44 }
 0x17e   : > { %1558 = vmatmul.mubr.f32.gmra.mrb[58].mxu1 %v992_v49  ;;  %v968_v49 = vld [vmem:[%s3522_s12 + $0x5a8] sm:$0xff] }
 0x17f   : > { %1703 = vmatmul.mubr.f32.gmra.mrb[26].mxu0 %v882_v50  ;;  %2655 = vmatpush3.bf16.msra.mxu1 %v2652_v44  ;;  %v980_v44 = vld [vmem:[%s3522_s12 + $0x608] sm:$0xff]  ;;  %v987_v50 = vld [vmem:[%s3522_s12 + $0x640] sm:$0xff] }
 0x180   : > { %1562 = vmatprep.mubr.f32.mxu1 %v1000_v51  ;;  %1707 = vmatprep.mubr.f32.mxu0 %v890_v38  ;;  %v975_v51 = vld [vmem:[%s3522_s12 + $0x5e0] sm:$0xff] }
 0x181   : > { %2657 = vmatprep.subr.bf16.mxu1 %v2656_v52  ;;  %v995_v38 = vld [vmem:[%s3522_s12 + $0x680] sm:$0xff] }
 0x182   : > { %1563 = vmatmul.mubr.f32.gmra.mrb[60].mxu1 %v999_v56 }
 0x183   : > { %1708 = vmatmul.mubr.f32.gmra.mrb[28].mxu0 %v889_v58  ;;  %2659 = vmatpush3.bf16.msra.mxu1 %v2656_v52  ;;  %v982_v52 = vld [vmem:[%s3522_s12 + $0x618] sm:$0xff] }
 0x184   : > { %1567 = vmatprep.mubr.f32.mxu1 %v1007_v59  ;;  %1712 = vmatprep.mubr.f32.mxu0 %v897_v46  ;;  %v1002_v58 = vld [vmem:[%s3522_s12 + $0x6b8] sm:$0xff]  ;;  %v996_v46 = vld [vmem:[%s3522_s12 + $0x688] sm:$0xff] }
 0x185   : > { %2661 = vmatprep.subr.bf16.mxu1 %v2660_v61 }
 0x186   : > { %1568 = vmatmul.mubr.f32.gmra.mrb[62].mxu1 %v1006_v57  ;;  %v1003_v57 = vld [vmem:[%s3522_s12 + $0x6c0] sm:$0xff] }
 0x187   : > { %1713 = vmatmul.mubr.f32.gmra.mrb[30].mxu0 %v896_v62  ;;  %2663 = vmatpush3.bf16.msra.mxu1 %v2660_v61  ;;  %v1001_v61 = vld [vmem:[%s3522_s12 + $0x6b0] sm:$0xff] }
 0x188   : > { %1717 = vmatprep.mubr.f32.mxu0 %v904_v0  ;;  %2440 = vmatprep.mubr.f32.mxu1 %v793_v1  ;;  %v1009_v0 = vld [vmem:[%s3522_s12 + $0x6f0] sm:$0xff] }
 0x18a   : > { %2441 = vmatmul.mubr.f32.vlgmr.msra.gmra.mrb[64].mxu1 %v800_v2  ;;  %v1010_v2 = vld [vmem:[%s3522_s12 + $0x6f8] sm:$0xff] }
 0x18b   : > { %1718 = vmatmul.mubr.f32.gmra.mrb[32].mxu0 %v903_v53  ;;  %2443 = vmatprep.mubr.f32.mxu1 %v807_v4  ;;  %v1008_v53 = vld [vmem:[%s3522_s12 + $0x6e8] sm:$0xff] }
 0x18c   : > { %1722 = vmatprep.mubr.f32.mxu0 %v911_v6 }
 0x18e   : > { %2444 = vmatmul.mubr.f32.gmra.mrb[66].mxu1 %v814_v63 }
 0x18f   : > { %1723 = vmatmul.mubr.f32.gmra.mrb[34].mxu0 %v910_v7  ;;  %2446 = vmatprep.mubr.f32.mxu1 %v821_v8 }
 0x190   : > { %1727 = vmatprep.mubr.f32.mxu0 %v918_v9 }
 0x192   : > { %2447 = vmatmul.mubr.f32.gmra.mrb[68].mxu1 %v828_v11 }
 0x193   : > { %1728 = vmatmul.mubr.f32.gmra.mrb[36].mxu0 %v917_v12  ;;  %2449 = vmatprep.mubr.f32.mxu1 %v835_v14 }
 0x194   : > { %1732 = vmatprep.mubr.f32.mxu0 %v925_v15 }
 0x196   : > { %2450 = vmatmul.mubr.f32.gmra.mrb[70].mxu1 %v842_v5 }
 0x197   : > { %1733 = vmatmul.mubr.f32.gmra.mrb[38].mxu0 %v924_v16  ;;  %2452 = vmatprep.mubr.f32.mxu1 %v849_v36 }
 0x198   : > { %1737 = vmatprep.mubr.f32.mxu0 %v932_v3 }
 0x19a   : > { %2453 = vmatmul.mubr.f32.gmra.mrb[72].mxu1 %v856_v17 }
 0x19b   : > { %1738 = vmatmul.mubr.f32.gmra.mrb[40].mxu0 %v931_v18  ;;  %2455 = vmatprep.mubr.f32.mxu1 %v863_v10 }
 0x19c   : > { %1742 = vmatprep.mubr.f32.mxu0 %v939_v20 }
 0x19e   : > { %2456 = vmatmul.mubr.f32.gmra.mrb[74].mxu1 %v870_v21 }
 0x19f   : > { %1743 = vmatmul.mubr.f32.gmra.mrb[42].mxu0 %v938_v22  ;;  %2458 = vmatprep.mubr.f32.mxu1 %v877_v13 }
 0x1a0   : > { %1747 = vmatprep.mubr.f32.mxu0 %v946_v23 }
 0x1a2   : > { %2459 = vmatmul.mubr.f32.gmra.mrb[76].mxu1 %v884_v24 }
 0x1a3   : > { %1748 = vmatmul.mubr.f32.gmra.mrb[44].mxu0 %v945_v26  ;;  %2461 = vmatprep.mubr.f32.mxu1 %v891_v27 }
 0x1a4   : > { %1752 = vmatprep.mubr.f32.mxu0 %v953_v60 }
 0x1a6   : > { %2462 = vmatmul.mubr.f32.gmra.mrb[78].mxu1 %v898_v28 }
 0x1a7   : > { %1753 = vmatmul.mubr.f32.gmra.mrb[46].mxu0 %v952_v29  ;;  %2464 = vmatprep.mubr.f32.mxu1 %v905_v19 }
 0x1a8   : > { %1757 = vmatprep.mubr.f32.mxu0 %v960_v41 }
 0x1aa   : > { %2465 = vmatmul.mubr.f32.gmra.mrb[80].mxu1 %v912_v30 }
 0x1ab   : > { %1758 = vmatmul.mubr.f32.gmra.mrb[48].mxu0 %v959_v32  ;;  %2467 = vmatprep.mubr.f32.mxu1 %v919_v33 }
 0x1ac   : > { %1762 = vmatprep.mubr.f32.mxu0 %v967_v34 }
 0x1ae   : > { %2468 = vmatmul.mubr.f32.gmra.mrb[82].mxu1 %v926_v35 }
 0x1af   : > { %1763 = vmatmul.mubr.f32.gmra.mrb[50].mxu0 %v966_v25  ;;  %2470 = vmatprep.mubr.f32.mxu1 %v933_v37 }
 0x1b0   : > { %1767 = vmatprep.mubr.f32.mxu0 %v974_v39 }
 0x1b2   : > { %2471 = vmatmul.mubr.f32.gmra.mrb[84].mxu1 %v940_v40 }
 0x1b3   : > { %1768 = vmatmul.mubr.f32.gmra.mrb[52].mxu0 %v973_v45  ;;  %2473 = vmatprep.mubr.f32.mxu1 %v947_v42 }
 0x1b4   : > { %1772 = vmatprep.mubr.f32.mxu0 %v981_v43 }
 0x1b6   : > { %2474 = vmatmul.mubr.f32.gmra.mrb[86].mxu1 %v954_v31 }
 0x1b7   : > { %1773 = vmatmul.mubr.f32.gmra.mrb[54].mxu0 %v980_v44  ;;  %2476 = vmatprep.mubr.f32.mxu1 %v961_v47 }
 0x1b8   : > { %1777 = vmatprep.mubr.f32.mxu0 %v988_v48 }
 0x1ba   : > { %2477 = vmatmul.mubr.f32.gmra.mrb[88].mxu1 %v968_v49 }
 0x1bb   : > { %1778 = vmatmul.mubr.f32.gmra.mrb[56].mxu0 %v987_v50  ;;  %2479 = vmatprep.mubr.f32.mxu1 %v975_v51 }
 0x1bc   : > { %1782 = vmatprep.mubr.f32.mxu0 %v995_v38 }
 0x1bd   : > { %v3986_v56 = vpop.f32.mrb[0].mxu1 }
 0x1be   : > { %2480 = vmatmul.mubr.f32.gmra.mrb[90].mxu1 %v982_v52  ;;  %v1191_v59 = vpop.f32.mrb[1].mxu1 }
 0x1bf   : > { %1783 = vmatmul.mubr.f32.gmra.mrb[58].mxu0 %v994_v54  ;;  %2482 = vmatprep.mubr.f32.mxu1 %v989_v55 }
 0x1c0   : > { %1787 = vmatprep.mubr.f32.mxu0 %v1002_v58 }
 0x1c1   : > { %v1194_v62 = vpop.f32.mrb[2].mxu1 }
 0x1c2   : > { %2483 = vmatmul.mubr.f32.gmra.mrb[92].mxu1 %v996_v46  ;;  %v1196_v1 = vpop.f32.mrb[3].mxu1 }
 0x1c3   : > { %1788 = vmatmul.mubr.f32.gmra.mrb[60].mxu0 %v1001_v61  ;;  %2485 = vmatprep.mubr.f32.mxu1 %v1003_v57 }
 0x1c4   : > { %1792 = vmatprep.mubr.f32.mxu0 %v1009_v0 }
 0x1c5   : > { %v1199_v4 = vpop.f32.mrb[4].mxu1 }
 0x1c6   : > { %2486 = vmatmul.mubr.f32.gmra.mrb[94].mxu1 %v1010_v2  ;;  %v1201_v6 = vpop.f32.mrb[5].mxu1 }
 0x1c7   : > { %1793 = vmatmul.mubr.f32.gmra.mrb[62].mxu0 %v1008_v53 }
 0x1c9   : > { %v1204_v63 = vpop.f32.mrb[6].mxu1 }
 0x1ca   : > { %v1206_v7 = vpop.f32.mrb[7].mxu1 }
 0x1cd   : > { %v1209_v8 = vpop.f32.mrb[8].mxu1 }
 0x1ce   : > { %v1211_v9 = vpop.f32.mrb[9].mxu1 }
 0x1d1   : > { %v1214_v11 = vpop.f32.mrb[10].mxu1 }
 0x1d2   : > { %v1216_v12 = vpop.f32.mrb[11].mxu1 }
 0x1d5   : > { %v1219_v14 = vpop.f32.mrb[12].mxu1 }
 0x1d6   : > { %v1221_v15 = vpop.f32.mrb[13].mxu1 }
 0x1d9   : > { %v1224_v5 = vpop.f32.mrb[14].mxu1 }
 0x1da   : > { %v1226_v16 = vpop.f32.mrb[15].mxu1 }
 0x1dd   : > { %v1229_v36 = vpop.f32.mrb[16].mxu1 }
 0x1de   : > { %v1231_v3 = vpop.f32.mrb[17].mxu1 }
 0x1e1   : > { %v1234_v17 = vpop.f32.mrb[18].mxu1 }
 0x1e2   : > { %v1236_v18 = vpop.f32.mrb[19].mxu1 }
 0x1e5   : > { %v3995_v10 = vpop.f32.mrb[20].mxu1 }
 0x1e6   : > { %v1241_v20 = vpop.f32.mrb[21].mxu1 }
 0x1e9   : > { %v3997_v21 = vpop.f32.mrb[22].mxu1 }
 0x1ea   : > { %v1246_v22 = vpop.f32.mrb[23].mxu1 }
 0x1ed   : > { %v3999_v13 = vpop.f32.mrb[24].mxu1 }
 0x1ee   : > { %v1251_v23 = vpop.f32.mrb[25].mxu1 }
 0x1f1   : > { %v4001_v24 = vpop.f32.mrb[26].mxu1 }
 0x1f2   : > { %v1256_v26 = vpop.f32.mrb[27].mxu1 }
 0x1f5   : > { %v4003_v27 = vpop.f32.mrb[28].mxu1 }
 0x1f6   : > { %v1261_v60 = vpop.f32.mrb[29].mxu1 }
 0x1f9   : > { %v4005_v28 = vpop.f32.mrb[30].mxu1 }
 0x1fa   : > { %v1266_v29 = vpop.f32.mrb[31].mxu1 }
 0x1fd   : > { %v4007_v19 = vpop.f32.mrb[32].mxu1 }
 0x1fe   : > { %v1271_v41 = vpop.f32.mrb[33].mxu1 }
 0x201   : > { %v4009_v30 = vpop.f32.mrb[34].mxu1 }
 0x202   : > { %v1276_v32 = vpop.f32.mrb[35].mxu1 }
 0x205   : > { %v4011_v33 = vpop.f32.mrb[36].mxu1 }
 0x206   : > { %v1281_v34 = vpop.f32.mrb[37].mxu1 }
 0x209   : > { %v4013_v35 = vpop.f32.mrb[38].mxu1 }
 0x20a   : > { %v1286_v25 = vpop.f32.mrb[39].mxu1 }
 0x20d   : > { %v4015_v37 = vpop.f32.mrb[40].mxu1 }
 0x20e   : > { %v1291_v39 = vpop.f32.mrb[41].mxu1 }
 0x211   : > { %v4017_v40 = vpop.f32.mrb[42].mxu1 }
 0x212   : > { %v1296_v45 = vpop.f32.mrb[43].mxu1 }
 0x215   : > { %v4019_v42 = vpop.f32.mrb[44].mxu1 }
 0x216   : > { %v1301_v43 = vpop.f32.mrb[45].mxu1 }
 0x219   : > { %v4021_v31 = vpop.f32.mrb[46].mxu1 }
 0x21a   : > { %v1306_v44 = vpop.f32.mrb[47].mxu1 }
 0x21e   : > { %v1639_v47 = vpop.f32.mrb[0].mxu0 }
 0x21f   : > { %v4024_v48 = vadd.f32 %v1639_v47, %v3986_v56  ;;  %v1641_v49 = vpop.f32.mrb[1].mxu0 }
 0x222   : > { %v1644_v50 = vpop.f32.mrb[2].mxu0 }
 0x223   : > { %v4026_v51 = vadd.f32 %v1644_v50, %v1194_v62  ;;  %v1646_v38 = vpop.f32.mrb[3].mxu0 }
 0x226   : > { %v1649_v52 = vpop.f32.mrb[4].mxu0 }
 0x227   : > { %v4028_v54 = vadd.f32 %v1649_v52, %v1199_v4  ;;  %v1651_v55 = vpop.f32.mrb[5].mxu0 }
 0x22a   : > { %v1654_v58 = vpop.f32.mrb[6].mxu0 }
 0x22b   : > { %v4030_v59 = vadd.f32 %v1654_v58, %v1204_v63  ;;  %v1656_v46 = vpop.f32.mrb[7].mxu0 }
 0x22e   : > { %v1659_v61 = vpop.f32.mrb[8].mxu0 }
 0x22f   : > { %v4032_v57 = vadd.f32 %v1659_v61, %v1209_v8  ;;  %v1661_v0 = vpop.f32.mrb[9].mxu0 }
 0x232   : > { %v1664_v1 = vpop.f32.mrb[10].mxu0 }
 0x233   : > { %v4034_v56 = vadd.f32 %v1664_v1, %v1214_v11  ;;  %v1666_v2 = vpop.f32.mrb[11].mxu0 }
 0x234   : > { %v756_v2 = vld [vmem:[#allocation2 + $0x8] sm:$0xff] }
 0x236   : > { %v1669_v53 = vpop.f32.mrb[12].mxu0 }
 0x237   : > { %v4036_v62 = vadd.f32 %v1669_v53, %v1219_v14  ;;  %v1671_v6 = vpop.f32.mrb[13].mxu0 }
 0x23a   : > { %v1674_v7 = vpop.f32.mrb[14].mxu0 }
 0x23b   : > { %v4038_v4 = vadd.f32 %v1674_v7, %v1224_v5  ;;  %v1676_v9 = vpop.f32.mrb[15].mxu0  ;;  %v755_v7 = vld [vmem:[#allocation2] sm:$0xff] }
 0x23d   : > { %v4040_v12 = vpop.f32.mrb[48].mxu1 }
 0x23e   : > { %v1679_v63 = vpop.f32.mrb[16].mxu0  ;;  %v1536_v15 = vpop.f32.mrb[49].mxu1 }
 0x23f   : > { %v4042_v16 = vadd.f32 %v1679_v63, %v1229_v36  ;;  %v1681_v8 = vpop.f32.mrb[17].mxu0 }
 0x241   : > { %v4044_v3 = vpop.f32.mrb[50].mxu1 }
 0x242   : > { %v1684_v11 = vpop.f32.mrb[18].mxu0  ;;  %v1541_v18 = vpop.f32.mrb[51].mxu1 }
 0x243   : > { %v4046_v20 = vadd.f32 %v1684_v11, %v1234_v17  ;;  %v1686_v14 = vpop.f32.mrb[19].mxu0  ;;  %v758_v18 = vld [vmem:[#allocation2 + $0x18] sm:$0xff] }
 0x245   : > { %v4048_v22 = vpop.f32.mrb[52].mxu1 }
 0x246   : > { %v1689_v23 = vpop.f32.mrb[20].mxu0  ;;  %v1546_v5 = vpop.f32.mrb[53].mxu1 }
 0x247   : > { %v4051_v26 = vadd.f32 %v1689_v23, %v3995_v10  ;;  %v1691_v60 = vpop.f32.mrb[21].mxu0  ;;  %v757_v5 = vld [vmem:[#allocation2 + $0x10] sm:$0xff] }
 0x249   : > { %v4053_v29 = vpop.f32.mrb[54].mxu1 }
 0x24a   : > { %v1694_v36 = vpop.f32.mrb[22].mxu0  ;;  %v1551_v41 = vpop.f32.mrb[55].mxu1 }
 0x24b   : > { %v4056_v32 = vadd.f32 %v1694_v36, %v3997_v21  ;;  %v1696_v34 = vpop.f32.mrb[23].mxu0 }
 0x24d   : > { %v4058_v25 = vpop.f32.mrb[56].mxu1 }
 0x24e   : > { %v1699_v17 = vpop.f32.mrb[24].mxu0  ;;  %v1556_v39 = vpop.f32.mrb[57].mxu1 }
 0x24f   : > { %v4061_v45 = vadd.f32 %v1699_v17, %v3999_v13  ;;  %v1701_v43 = vpop.f32.mrb[25].mxu0 }
 0x251   : > { %v4063_v44 = vpop.f32.mrb[58].mxu1 }
 0x252   : > { %v1704_v10 = vpop.f32.mrb[26].mxu0  ;;  %v1561_v47 = vpop.f32.mrb[59].mxu1 }
 0x253   : > { %v4066_v49 = vadd.f32 %v1704_v10, %v4001_v24  ;;  %v1706_v50 = vpop.f32.mrb[27].mxu0  ;;  %v759_v10 = vld [vmem:[#allocation2 + $0x20] sm:$0xff] }
 0x255   : > { %v4068_v38 = vpop.f32.mrb[60].mxu1 }
 0x256   : > { %v1709_v21 = vpop.f32.mrb[28].mxu0  ;;  %v1566_v52 = vpop.f32.mrb[61].mxu1 }
 0x257   : > { %v4071_v55 = vadd.f32 %v1709_v21, %v4003_v27  ;;  %v1711_v58 = vpop.f32.mrb[29].mxu0 }
 0x259   : > { %v4073_v46 = vpop.f32.mrb[62].mxu1 }
 0x25a   : > { %v1714_v13 = vpop.f32.mrb[30].mxu0  ;;  %v1571_v61 = vpop.f32.mrb[63].mxu1 }
 0x25b   : > { %v4076_v0 = vadd.f32 %v1714_v13, %v4005_v28  ;;  %v1716_v1 = vpop.f32.mrb[31].mxu0 }
 0x25c   : > { %v761_v1 = vld [vmem:[#allocation2 + $0x30] sm:$0xff] }
 0x25d   : > { %v2442_v24 = vpop.f32.mrb[64].mxu1 }
 0x25e   : > { %v1719_v53 = vpop.f32.mrb[32].mxu0  ;;  %v1870_v6 = vadd.f32 %v4026_v51, %v2442_v24  ;;  %v1864_v9 = vpop.f32.mrb[65].mxu1 }
 0x25f   : > { %v4080_v63 = vadd.f32 %v1719_v53, %v4007_v19  ;;  %v1721_v27 = vpop.f32.mrb[33].mxu0  ;;  %v1865_v15 = vadd.f32 %v4024_v48, %v1864_v9  ;;  %v760_v48 = vld [vmem:[#allocation2 + $0x28] sm:$0xff] }
 0x260   : > { %v2024_v8 = vadd.f32 %v1870_v6, %v756_v2 }
 0x261   : > { %v2023_v11 = vadd.f32 %v1865_v15, %v755_v7  ;;  %v2445_v14 = vpop.f32.mrb[66].mxu1  ;;  %v763_v15 = vld [vmem:[#allocation2 + $0x40] sm:$0xff] }
 0x262   : > { %2056 = vst [vmem:[#allocation2 + $0x8] sm:$0xff] %v2024_v8  ;;  %v1724_v28 = vpop.f32.mrb[34].mxu0  ;;  %v1880_v23 = vadd.f32 %v4030_v59, %v2445_v14  ;;  %v1874_v60 = vpop.f32.mrb[67].mxu1 }
 0x263   : > { %2055 = vst [vmem:[#allocation2] sm:$0xff] %v2023_v11  ;;  %v4085_v51 = vadd.f32 %v1724_v28, %v4009_v30  ;;  %v1726_v36 = vpop.f32.mrb[35].mxu0  ;;  %v1875_v19 = vadd.f32 %v4028_v54, %v1874_v60  ;;  %v762_v54 = vld [vmem:[#allocation2 + $0x38] sm:$0xff]  ;;  %v765_v60 = vld [vmem:[#allocation2 + $0x50] sm:$0xff] }
 0x264   : > { %v2026_v41 = vadd.f32 %v1880_v23, %v758_v18 }
 0x265   : > { %v2025_v34 = vadd.f32 %v1875_v19, %v757_v5  ;;  %v2448_v17 = vpop.f32.mrb[68].mxu1 }
 0x266   : > { %2058 = vst [vmem:[#allocation2 + $0x18] sm:$0xff] %v2026_v41  ;;  %v1729_v39 = vpop.f32.mrb[36].mxu0  ;;  %v1890_v43 = vadd.f32 %v4034_v56, %v2448_v17  ;;  %v1884_v47 = vpop.f32.mrb[69].mxu1 }
 0x267   : > { %2057 = vst [vmem:[#allocation2 + $0x10] sm:$0xff] %v2025_v34  ;;  %v4090_v59 = vadd.f32 %v1729_v39, %v4011_v33  ;;  %v1731_v50 = vpop.f32.mrb[37].mxu0  ;;  %v1885_v30 = vadd.f32 %v4032_v57, %v1884_v47  ;;  %v764_v57 = vld [vmem:[#allocation2 + $0x48] sm:$0xff] }
 0x268   : > { %v2028_v21 = vadd.f32 %v1890_v43, %v760_v48  ;;  %v768_v48 = vld [vmem:[#allocation2 + $0x68] sm:$0xff]  ;;  %v767_v43 = vld [vmem:[#allocation2 + $0x60] sm:$0xff] }
 0x269   : > { %v2027_v52 = vadd.f32 %v1885_v30, %v759_v10  ;;  %v2451_v58 = vpop.f32.mrb[70].mxu1 }
 0x26a   : > { %2060 = vst [vmem:[#allocation2 + $0x28] sm:$0xff] %v2028_v21  ;;  %v1734_v13 = vpop.f32.mrb[38].mxu0  ;;  %v1900_v61 = vadd.f32 %v4038_v4, %v2451_v58  ;;  %v1894_v2 = vpop.f32.mrb[71].mxu1  ;;  %v769_v58 = vld [vmem:[#allocation2 + $0x70] sm:$0xff] }
 0x26b   : > { %2059 = vst [vmem:[#allocation2 + $0x20] sm:$0xff] %v2027_v52  ;;  %v4095_v56 = vadd.f32 %v1734_v13, %v4013_v35  ;;  %v1736_v24 = vpop.f32.mrb[39].mxu0  ;;  %v1895_v33 = vadd.f32 %v4036_v62, %v1894_v2  ;;  %v766_v62 = vld [vmem:[#allocation2 + $0x58] sm:$0xff] }
 0x26c   : > { %v2030_v53 = vadd.f32 %v1900_v61, %v762_v54  ;;  %v772_v24 = vld [vmem:[#allocation2 + $0x88] sm:$0xff] }
 0x26d   : > { %v2029_v6 = vadd.f32 %v1895_v33, %v761_v1  ;;  %v2454_v7 = vpop.f32.mrb[72].mxu1 }
 0x26e   : > { %2062 = vst [vmem:[#allocation2 + $0x38] sm:$0xff] %v2030_v53  ;;  %v1739_v9 = vpop.f32.mrb[40].mxu0  ;;  %v1910_v27 = vadd.f32 %v4046_v20, %v2454_v7  ;;  %v1904_v8 = vpop.f32.mrb[73].mxu1 }
 0x26f   : > { %2061 = vst [vmem:[#allocation2 + $0x30] sm:$0xff] %v2029_v6  ;;  %v4100_v4 = vadd.f32 %v1739_v9, %v4015_v37  ;;  %v1741_v11 = vpop.f32.mrb[41].mxu0  ;;  %v1905_v35 = vadd.f32 %v4042_v16, %v1904_v8  ;;  %v771_v6 = vld [vmem:[#allocation2 + $0x80] sm:$0xff] }
 0x270   : > { %v2032_v18 = vadd.f32 %v1910_v27, %v764_v57 }
 0x271   : > { %v2031_v14 = vadd.f32 %v1905_v35, %v763_v15  ;;  %v2457_v28 = vpop.f32.mrb[74].mxu1  ;;  %v774_v15 = vld [vmem:[#allocation2 + $0x98] sm:$0xff]  ;;  %v773_v35 = vld [vmem:[#allocation2 + $0x90] sm:$0xff] }
 0x272   : > { %2064 = vst [vmem:[#allocation2 + $0x48] sm:$0xff] %v2032_v18  ;;  %v1744_v23 = vpop.f32.mrb[42].mxu0  ;;  %v1920_v5 = vadd.f32 %v4056_v32, %v2457_v28  ;;  %v1914_v36 = vpop.f32.mrb[75].mxu1 }
 0x273   : > { %2063 = vst [vmem:[#allocation2 + $0x40] sm:$0xff] %v2031_v14  ;;  %v2717_v20 = vadd.f32 %v1744_v23, %v4017_v40  ;;  %v1746_v19 = vpop.f32.mrb[43].mxu0  ;;  %v1915_v37 = vadd.f32 %v4051_v26, %v1914_v36  ;;  %v770_v26 = vld [vmem:[#allocation2 + $0x78] sm:$0xff]  ;;  %v776_v23 = vld [vmem:[#allocation2 + $0xa8] sm:$0xff]  ;;  %v775_v36 = vld [vmem:[#allocation2 + $0xa0] sm:$0xff] }
 0x274   : > { %v2034_v41 = vadd.f32 %v1920_v5, %v766_v62 }
 0x275   : > { %v2033_v34 = vadd.f32 %v1915_v37, %v765_v60  ;;  %v2460_v16 = vpop.f32.mrb[76].mxu1 }
 0x276   : > { %2066 = vst [vmem:[#allocation2 + $0x58] sm:$0xff] %v2034_v41  ;;  %v1749_v17 = vpop.f32.mrb[44].mxu0  ;;  %v1930_v39 = vadd.f32 %v4066_v49, %v2460_v16  ;;  %v1924_v10 = vpop.f32.mrb[77].mxu1 }
 0x277   : > { %2065 = vst [vmem:[#allocation2 + $0x50] sm:$0xff] %v2033_v34  ;;  %v4108_v32 = vadd.f32 %v1749_v17, %v4019_v42  ;;  %v1751_v47 = vpop.f32.mrb[45].mxu0  ;;  %v1925_v40 = vadd.f32 %v4061_v45, %v1924_v10 }
 0x278   : > { %v2036_v50 = vadd.f32 %v1930_v39, %v768_v48  ;;  %v778_v48 = vld [vmem:[#allocation2 + $0xb8] sm:$0xff]  ;;  %v777_v39 = vld [vmem:[#allocation2 + $0xb0] sm:$0xff] }
 0x279   : > { %v2035_v30 = vadd.f32 %v1925_v40, %v767_v43  ;;  %v2463_v21 = vpop.f32.mrb[78].mxu1 }
 0x27a   : > { %2068 = vst [vmem:[#allocation2 + $0x68] sm:$0xff] %v2036_v50  ;;  %v1754_v52 = vpop.f32.mrb[46].mxu0  ;;  %v1940_v54 = vadd.f32 %v4076_v0, %v2463_v21  ;;  %v1934_v13 = vpop.f32.mrb[79].mxu1  ;;  %v780_v50 = vld [vmem:[#allocation2 + $0xc8] sm:$0xff]  ;;  %v779_v21 = vld [vmem:[#allocation2 + $0xc0] sm:$0xff] }
 0x27b   : > { %2067 = vst [vmem:[#allocation2 + $0x60] sm:$0xff] %v2035_v30  ;;  %v2719_v49 = vadd.f32 %v1754_v52, %v4021_v31  ;;  %v1756_v61 = vpop.f32.mrb[47].mxu0  ;;  %v1935_v42 = vadd.f32 %v4071_v55, %v1934_v13 }
 0x27c   : > { %v2038_v1 = vadd.f32 %v1940_v54, %v770_v26 }
 0x27d   : > { %v2037_v2 = vadd.f32 %v1935_v42, %v769_v58  ;;  %v2466_v45 = vpop.f32.mrb[80].mxu1 }
 0x27e   : > { %2070 = vst [vmem:[#allocation2 + $0x78] sm:$0xff] %v2038_v1  ;;  %v1759_v33 = vpop.f32.mrb[48].mxu0  ;;  %v1950_v53 = vadd.f32 %v4085_v51, %v2466_v45  ;;  %v1944_v57 = vpop.f32.mrb[81].mxu1 }
 0x27f   : > { %2069 = vst [vmem:[#allocation2 + $0x70] sm:$0xff] %v2037_v2  ;;  %v2720_v0 = vadd.f32 %v1759_v33, %v4040_v12  ;;  %v1761_v7 = vpop.f32.mrb[49].mxu0  ;;  %v1945_v9 = vadd.f32 %v4080_v63, %v1944_v57  ;;  %v781_v2 = vld [vmem:[#allocation2 + $0xd0] sm:$0xff] }
 0x280   : > { %v2040_v31 = vadd.f32 %v1950_v53, %v772_v24  ;;  %v784_v7 = vld [vmem:[#allocation2 + $0xe8] sm:$0xff] }
 0x281   : > { %v2039_v27 = vadd.f32 %v1945_v9, %v771_v6  ;;  %v2469_v55 = vpop.f32.mrb[82].mxu1 }
 0x282   : > { %2072 = vst [vmem:[#allocation2 + $0x88] sm:$0xff] %v2040_v31  ;;  %v1764_v8 = vpop.f32.mrb[50].mxu0  ;;  %v1960_v11 = vadd.f32 %v4095_v56, %v2469_v55  ;;  %v1954_v18 = vpop.f32.mrb[83].mxu1  ;;  %v783_v31 = vld [vmem:[#allocation2 + $0xe0] sm:$0xff] }
 0x283   : > { %2071 = vst [vmem:[#allocation2 + $0x80] sm:$0xff] %v2039_v27  ;;  %v2721_v51 = vadd.f32 %v1764_v8, %v4044_v3  ;;  %v1766_v14 = vpop.f32.mrb[51].mxu0  ;;  %v1955_v62 = vadd.f32 %v4090_v59, %v1954_v18 }
 0x284   : > { %v2042_v12 = vadd.f32 %v1960_v11, %v774_v15 }
 0x285   : > { %v2041_v28 = vadd.f32 %v1955_v62, %v773_v35  ;;  %v2472_v63 = vpop.f32.mrb[84].mxu1 }
 0x286   : > { %2074 = vst [vmem:[#allocation2 + $0x98] sm:$0xff] %v2042_v12  ;;  %v1769_v5 = vpop.f32.mrb[52].mxu0  ;;  %v1970_v60 = vadd.f32 %v2717_v20, %v2472_v63  ;;  %v1964_v19 = vpop.f32.mrb[85].mxu1 }
 0x287   : > { %2073 = vst [vmem:[#allocation2 + $0x90] sm:$0xff] %v2041_v28  ;;  %v2722_v56 = vadd.f32 %v1769_v5, %v4048_v22  ;;  %v1771_v37 = vpop.f32.mrb[53].mxu0  ;;  %v1965_v41 = vadd.f32 %v4100_v4, %v1964_v19  ;;  %v2092_v19 = vld [vmem:[#allocation2 + $0x8] sm:$0xff] (!%p2356_p13) }
 0x288   : > { %v2044_v34 = vadd.f32 %v1970_v60, %v776_v23  ;;  %v786_v23 = vld [vmem:[#allocation2 + $0xf8] sm:$0xff]  ;;  %v2093_v37 = vld [vmem:[#allocation2 + $0x10] sm:$0xff] (!%p2356_p13) }
 0x289   : > { %v2043_v3 = vadd.f32 %v1965_v41, %v775_v36  ;;  %v2475_v16 = vpop.f32.mrb[86].mxu1  ;;  %v4132_v36 = vld [vmem:[%s4221_s2] ss:$0 sm:$0xff] (!%p2356_p13)  ;;  %v2094_v41 = vld [vmem:[#allocation2 + $0x18] sm:$0xff] (!%p2356_p13) }
 0x28a   : > { %2076 = vst [vmem:[#allocation2 + $0xa8] sm:$0xff] %v2044_v34  ;;  %v1774_v59 = vpop.f32.mrb[54].mxu0  ;;  %v1980_v17 = vadd.f32 %v2719_v49, %v2475_v16  ;;  %v1974_v43 = vpop.f32.mrb[87].mxu1  ;;  %v2095_v34 = vld [vmem:[#allocation2 + $0x20] sm:$0xff] (!%p2356_p13)  ;;  %v2096_v16 = vld [vmem:[#allocation2 + $0x28] sm:$0xff] (!%p2356_p13) }
 0x28b   : > { %2075 = vst [vmem:[#allocation2 + $0xa0] sm:$0xff] %v2043_v3  ;;  %v2723_v20 = vadd.f32 %v1774_v59, %v4053_v29  ;;  %v1776_v10 = vpop.f32.mrb[55].mxu0  ;;  %v1975_v47 = vadd.f32 %v4108_v32, %v1974_v43  ;;  %v782_v29 = vld [vmem:[#allocation2 + $0xd8] sm:$0xff]  ;;  %v2132_v3 = vadd.f32 (!%p2356_p13), %v4132_v36, %v2093_v37  ;;  %v2097_v59 = vld [vmem:[#allocation2 + $0x30] sm:$0xff] (!%p2356_p13)  ;;  %v2135_v43 = vadd.f32 (!%p2356_p13), %v4132_v36, %v2096_v16 }
 0x28c   : > { %v2046_v40 = vadd.f32 %v1980_v17, %v778_v48  ;;  %v2133_v48 = vadd.f32 (!%p2356_p13), %v4132_v36, %v2094_v41  ;;  %v2134_v17 = vadd.f32 (!%p2356_p13), %v4132_v36, %v2095_v34  ;;  %v2136_v10 = vadd.f32 (!%p2356_p13), %v4132_v36, %v2097_v59 }
 0x28d   : > { %v2045_v22 = vadd.f32 %v1975_v47, %v777_v39  ;;  %v2478_v30 = vpop.f32.mrb[88].mxu1  ;;  %v2098_v39 = vld [vmem:[#allocation2 + $0x38] sm:$0xff] (!%p2356_p13)  ;;  %v2100_v47 = vld [vmem:[#allocation2 + $0x48] sm:$0xff] (!%p2356_p13) }
 0x28e   : > { %2078 = vst [vmem:[#allocation2 + $0xb8] sm:$0xff] %v2046_v40  ;;  %v1779_v4 = vpop.f32.mrb[56].mxu0  ;;  %v1990_v26 = vadd.f32 %v2721_v51, %v2478_v30  ;;  %v1984_v52 = vpop.f32.mrb[89].mxu1  ;;  %v785_v51 = vld [vmem:[#allocation2 + $0xf0] sm:$0xff]  ;;  %v2137_v40 = vadd.f32 (!%p2356_p13), %v4132_v36, %v2098_v39  ;;  %v2102_v30 = vld [vmem:[#allocation2 + $0x58] sm:$0xff] (!%p2356_p13) }
 0x28f   : > { %2077 = vst [vmem:[#allocation2 + $0xb0] sm:$0xff] %v2045_v22  ;;  %v2724_v54 = vadd.f32 %v1779_v4, %v4058_v25  ;;  %v1781_v58 = vpop.f32.mrb[57].mxu0  ;;  %v1985_v13 = vadd.f32 %v2720_v0, %v1984_v52  ;;  %v2101_v22 = vld [vmem:[#allocation2 + $0x50] sm:$0xff] (!%p2356_p13)  ;;  %v2139_v4 = vadd.f32 (!%p2356_p13), %v4132_v36, %v2100_v47  ;;  %v2104_v52 = vld [vmem:[#allocation2 + $0x68] sm:$0xff] (!%p2356_p13) }
 0x290   : > { %v2048_v49 = vadd.f32 %v1990_v26, %v780_v50  ;;  %v2103_v26 = vld [vmem:[#allocation2 + $0x60] sm:$0xff] (!%p2356_p13)  ;;  %v2105_v58 = vld [vmem:[#allocation2 + $0x70] sm:$0xff] (!%p2356_p13) }
 0x291   : > { %v2047_v61 = vadd.f32 %v1985_v13, %v779_v21  ;;  %v2481_v42 = vpop.f32.mrb[90].mxu1  ;;  %v2140_v21 = vadd.f32 (!%p2356_p13), %v4132_v36, %v2101_v22  ;;  %v2142_v13 = vadd.f32 (!%p2356_p13), %v4132_v36, %v2103_v26 }
 0x292   : > { %2080 = vst [vmem:[#allocation2 + $0xc8] sm:$0xff] %v2048_v49  ;;  %v1784_v32 = vpop.f32.mrb[58].mxu0  ;;  %v2000_v1 = vadd.f32 %v2723_v20, %v2481_v42  ;;  %v1994_v24 = vpop.f32.mrb[91].mxu1  ;;  %v2099_v20 = vld [vmem:[#allocation2 + $0x40] sm:$0xff] (!%p2356_p13)  ;;  %v2106_v49 = vld [vmem:[#allocation2 + $0x78] sm:$0xff] (!%p2356_p13) }
 0x293   : > { %2079 = vst [vmem:[#allocation2 + $0xc0] sm:$0xff] %v2047_v61  ;;  %v2725_v45 = vadd.f32 %v1784_v32, %v4063_v44  ;;  %v1786_v33 = vpop.f32.mrb[59].mxu0  ;;  %v1995_v53 = vadd.f32 %v2722_v56, %v1994_v24  ;;  %v2131_v56 = vadd.f32 (!%p2356_p13), %v4132_v36, %v2092_v19  ;;  %v2138_v50 = vadd.f32 (!%p2356_p13), %v4132_v36, %v2099_v20 }
 0x294   : > { %v2050_v6 = vadd.f32 %v2000_v1, %v782_v29  ;;  %v2143_v61 = vadd.f32 (!%p2356_p13), %v4132_v36, %v2104_v52  ;;  %v2107_v29 = vld [vmem:[#allocation2 + $0x80] sm:$0xff] (!%p2356_p13)  ;;  %v2144_v32 = vadd.f32 (!%p2356_p13), %v4132_v36, %v2105_v58  ;;  %v2108_v1 = vld [vmem:[#allocation2 + $0x88] sm:$0xff] (!%p2356_p13)  ;;  %v2145_v24 = vadd.f32 (!%p2356_p13), %v4132_v36, %v2106_v49 }
 0x295   : > { %v2049_v57 = vadd.f32 %v1995_v53, %v781_v2  ;;  %v2484_v25 = vpop.f32.mrb[92].mxu1  ;;  %v2146_v53 = vadd.f32 (!%p2356_p13), %v4132_v36, %v2107_v29 }
 0x296   : > { %2082 = vst [vmem:[#allocation2 + $0xd8] sm:$0xff] %v2050_v6  ;;  %v1789_v0 = vpop.f32.mrb[60].mxu0  ;;  %v2010_v9 = vadd.f32 %v2725_v45, %v2484_v25  ;;  %v2004_v27 = vpop.f32.mrb[93].mxu1  ;;  %v2109_v45 = vld [vmem:[#allocation2 + $0x90] sm:$0xff] (!%p2356_p13)  ;;  %v2110_v6 = vld [vmem:[#allocation2 + $0x98] sm:$0xff] (!%p2356_p13)  ;;  %v2111_v25 = vld [vmem:[#allocation2 + $0xa0] sm:$0xff] (!%p2356_p13) }
 0x297   : > { %2081 = vst [vmem:[#allocation2 + $0xd0] sm:$0xff] %v2049_v57  ;;  %v2726_v15 = vadd.f32 %v1789_v0, %v4068_v38  ;;  %v1791_v55 = vpop.f32.mrb[61].mxu0  ;;  %v2005_v8 = vadd.f32 %v2724_v54, %v2004_v27  ;;  %v2091_v38 = vld [vmem:[#allocation2] sm:$0xff] (!%p2356_p13)  ;;  %v2141_v54 = vadd.f32 (!%p2356_p13), %v4132_v36, %v2102_v30 }
 0x298   : > { %v2052_v11 = vadd.f32 %v2010_v9, %v784_v7  ;;  %v2147_v7 = vadd.f32 (!%p2356_p13), %v4132_v36, %v2108_v1  ;;  %v2148_v9 = vadd.f32 (!%p2356_p13), %v4132_v36, %v2109_v45  ;;  %v2113_v55 = vld [vmem:[#allocation2 + $0xb0] sm:$0xff] (!%p2356_p13) }
 0x299   : > { %v2051_v35 = vadd.f32 %v2005_v8, %v783_v31  ;;  %v2487_v18 = vpop.f32.mrb[94].mxu1  ;;  %v2112_v31 = vld [vmem:[#allocation2 + $0xa8] sm:$0xff] (!%p2356_p13) }
 0x29a   : > { %2084 = vst [vmem:[#allocation2 + $0xe8] sm:$0xff] %v2052_v11  ;;  %v1794_v44 = vpop.f32.mrb[62].mxu0  ;;  %v2014_v14 = vpop.f32.mrb[95].mxu1  ;;  %v2150_v11 = vadd.f32 (!%p2356_p13), %v4132_v36, %v2111_v25 }
 0x29b   : > { %2083 = vst [vmem:[#allocation2 + $0xe0] sm:$0xff] %v2051_v35  ;;  %v2727_v62 = vadd.f32 %v1794_v44, %v4073_v46  ;;  %v1796_v12 = vpop.f32.mrb[63].mxu0  ;;  %v2015_v28 = vadd.f32 %v2726_v15, %v2014_v14  ;;  %2090 = sbr.rel (%p2356_p13) target bundleno = 712 (0x2c8), region = 63  ;;  %v2130_v46 = vadd.f32 (!%p2356_p13), %v4132_v36, %v2091_v38  ;;  %v2149_v15 = vadd.f32 (!%p2356_p13), %v4132_v36, %v2110_v6  ;;  %v2114_v35 = vld [vmem:[#allocation2 + $0xb8] sm:$0xff] (!%p2356_p13) }
 0x29c   : > { %v2151_v44 = vadd.f32 (!%p2356_p13), %v4132_v36, %v2112_v31  ;;  %v2116_v12 = vld [vmem:[#allocation2 + $0xc8] sm:$0xff] (!%p2356_p13) }
 0x29d   : > { %v2020_v63 = vadd.f32 %v2727_v62, %v2487_v18  ;;  %v2053_v5 = vadd.f32 %v2015_v28, %v785_v51  ;;  %2853 = vtanh.f32 (!%p2356_p13), %v2130_v46  ;;  %v2115_v51 = vld [vmem:[#allocation2 + $0xc0] sm:$0xff] (!%p2356_p13)  ;;  %v2152_v62 = vadd.f32 (!%p2356_p13), %v4132_v36, %v2113_v55  ;;  %v2118_v38 = vld [vmem:[#allocation2 + $0xd8] sm:$0xff] (!%p2356_p13) }
 0x29e   : > { %2855 = vtanh.f32 (!%p2356_p13), %v2131_v56  ;;  %v2155_v46 = vadd.f32 (!%p2356_p13), %v4132_v36, %v2116_v12 }
 0x29f   : > { %v2054_v60 = vadd.f32 %v2020_v63, %v786_v23  ;;  %2085 = vst [vmem:[#allocation2 + $0xf0] sm:$0xff] %v2053_v5  ;;  %2857 = vtanh.f32 (!%p2356_p13), %v2132_v3  ;;  %v2153_v23 = vadd.f32 (!%p2356_p13), %v4132_v36, %v2114_v35  ;;  %v2117_v63 = vld [vmem:[#allocation2 + $0xd0] sm:$0xff] (!%p2356_p13) }
 0x2a0   : > { %2859 = vtanh.f32 (!%p2356_p13), %v2133_v48  ;;  %v2156_v41 = vadd.f32 (!%p2356_p13), %v4132_v36, %v2117_v63  ;;  %v2157_v48 = vadd.f32 (!%p2356_p13), %v4132_v36, %v2118_v38 }
 0x2a1   : > { %2086 = vst [vmem:[#allocation2 + $0xf8] sm:$0xff] %v2054_v60  ;;  %2861 = vtanh.f32 (!%p2356_p13), %v2134_v17  ;;  %v2154_v60 = vadd.f32 (!%p2356_p13), %v4132_v36, %v2115_v51  ;;  %v2120_v34 = vld [vmem:[#allocation2 + $0xe8] sm:$0xff] (!%p2356_p13) }
 0x2a2   : > { %2863 = vtanh.f32 %v2135_v43  ;;  %v2119_v56 = vld [vmem:[#allocation2 + $0xe0] sm:$0xff]  ;;  %v2159_v20 = vadd.f32 %v4132_v36, %v2120_v34 }
 0x2a3   : > { %2865 = vtanh.f32 %v2136_v10  ;;  %v2158_v17 = vadd.f32 %v4132_v36, %v2119_v56 }
 0x2a4   : > { %2867 = vtanh.f32 %v2137_v40 }
 0x2a5   : > { %2869 = vtanh.f32 %v2138_v50 }
 0x2a6   : > { %2871 = vtanh.f32 %v2139_v4  ;;  %v2121_v16 = vld [vmem:[#allocation2 + $0xf0] sm:$0xff] }
 0x2a7   : > { %v2854_v42 = vpop.eup %2853  ;;  %2873 = vtanh.f32 %v2140_v21  ;;  %v2160_v47 = vadd.f32 %v4132_v36, %v2121_v16 }
 0x2a8   : > { %v2856_v2 = vpop.eup %2855  ;;  %2194 = vst [vmem:[%s3520_s30] sm:$0xff] %v2854_v42  ;;  %2875 = vtanh.f32 %v2141_v54  ;;  %v2122_v39 = vld [vmem:[#allocation2 + $0xf8] sm:$0xff] }
 0x2a9   : > { %v2858_v33 = vpop.eup %2857  ;;  %2195 = vst [vmem:[%s3520_s30 + $0x8] sm:$0xff] %v2856_v2  ;;  %2877 = vtanh.f32 %v2142_v13  ;;  %v2161_v22 = vadd.f32 %v4132_v36, %v2122_v39 }
 0x2aa   : > { %v2860_v57 = vpop.eup %2859  ;;  %2196 = vst [vmem:[%s3520_s30 + $0x10] sm:$0xff] %v2858_v33  ;;  %2879 = vtanh.f32 %v2143_v61 }
 0x2ab   : > { %v2862_v0 = vpop.eup %2861  ;;  %2197 = vst [vmem:[%s3520_s30 + $0x18] sm:$0xff] %v2860_v57  ;;  %2881 = vtanh.f32 %v2144_v32 }
 0x2ac   : > { %v2864_v27 = vpop.eup %2863  ;;  %2198 = vst [vmem:[%s3520_s30 + $0x20] sm:$0xff] %v2862_v0  ;;  %2883 = vtanh.f32 %v2145_v24 }
 0x2ad   : > { %v2866_v8 = vpop.eup %2865  ;;  %2199 = vst [vmem:[%s3520_s30 + $0x28] sm:$0xff] %v2864_v27  ;;  %2885 = vtanh.f32 %v2146_v53 }
 0x2ae   : > { %v2868_v18 = vpop.eup %2867  ;;  %2200 = vst [vmem:[%s3520_s30 + $0x30] sm:$0xff] %v2866_v8  ;;  %2887 = vtanh.f32 %v2147_v7 }
 0x2af   : > { %v2870_v14 = vpop.eup %2869  ;;  %2201 = vst [vmem:[%s3520_s30 + $0x38] sm:$0xff] %v2868_v18  ;;  %2889 = vtanh.f32 %v2148_v9 }
 0x2b0   : > { %v2872_v28 = vpop.eup %2871  ;;  %2202 = vst [vmem:[%s3520_s30 + $0x40] sm:$0xff] %v2870_v14  ;;  %2891 = vtanh.f32 %v2149_v15 }
 0x2b1   : > { %v2874_v5 = vpop.eup %2873  ;;  %2203 = vst [vmem:[%s3520_s30 + $0x48] sm:$0xff] %v2872_v28  ;;  %2893 = vtanh.f32 %v2150_v11 }
 0x2b2   : > { %v2876_v19 = vpop.eup %2875  ;;  %2204 = vst [vmem:[%s3520_s30 + $0x50] sm:$0xff] %v2874_v5  ;;  %2895 = vtanh.f32 %v2151_v44 }
 0x2b3   : > { %v2878_v37 = vpop.eup %2877  ;;  %2205 = vst [vmem:[%s3520_s30 + $0x58] sm:$0xff] %v2876_v19  ;;  %2897 = vtanh.f32 %v2152_v62 }
 0x2b4   : > { %v2880_v3 = vpop.eup %2879  ;;  %2206 = vst [vmem:[%s3520_s30 + $0x60] sm:$0xff] %v2878_v37  ;;  %2899 = vtanh.f32 %v2153_v23 }
 0x2b5   : > { %v2882_v59 = vpop.eup %2881  ;;  %2207 = vst [vmem:[%s3520_s30 + $0x68] sm:$0xff] %v2880_v3  ;;  %2901 = vtanh.f32 %v2154_v60 }
 0x2b6   : > { %v2884_v43 = vpop.eup %2883  ;;  %2208 = vst [vmem:[%s3520_s30 + $0x70] sm:$0xff] %v2882_v59  ;;  %2903 = vtanh.f32 %v2155_v46 }
 0x2b7   : > { %v2886_v10 = vpop.eup %2885  ;;  %2209 = vst [vmem:[%s3520_s30 + $0x78] sm:$0xff] %v2884_v43  ;;  %2905 = vtanh.f32 %v2156_v41 }
 0x2b8   : > { %v2888_v40 = vpop.eup %2887  ;;  %2210 = vst [vmem:[%s3520_s30 + $0x80] sm:$0xff] %v2886_v10  ;;  %2907 = vtanh.f32 %v2157_v48 }
 0x2b9   : > { %v2890_v50 = vpop.eup %2889  ;;  %2211 = vst [vmem:[%s3520_s30 + $0x88] sm:$0xff] %v2888_v40  ;;  %2909 = vtanh.f32 %v2158_v17 }
 0x2ba   : > { %v2892_v30 = vpop.eup %2891  ;;  %2212 = vst [vmem:[%s3520_s30 + $0x90] sm:$0xff] %v2890_v50  ;;  %2911 = vtanh.f32 %v2159_v20 }
 0x2bb   : > { %v2894_v4 = vpop.eup %2893  ;;  %2213 = vst [vmem:[%s3520_s30 + $0x98] sm:$0xff] %v2892_v30  ;;  %2913 = vtanh.f32 %v2160_v47 }
 0x2bc   : > { %v2896_v26 = vpop.eup %2895  ;;  %2214 = vst [vmem:[%s3520_s30 + $0xa0] sm:$0xff] %v2894_v4  ;;  %2915 = vtanh.f32 %v2161_v22 }
 0x2bd   : > { %v2898_v36 = vpop.eup %2897  ;;  %2215 = vst [vmem:[%s3520_s30 + $0xa8] sm:$0xff] %v2896_v26 }
 0x2be   : > { %v2900_v21 = vpop.eup %2899  ;;  %2216 = vst [vmem:[%s3520_s30 + $0xb0] sm:$0xff] %v2898_v36 }
 0x2bf   : > { %v2902_v52 = vpop.eup %2901  ;;  %2217 = vst [vmem:[%s3520_s30 + $0xb8] sm:$0xff] %v2900_v21 }
 0x2c0   : > { %v2904_v54 = vpop.eup %2903  ;;  %2218 = vst [vmem:[%s3520_s30 + $0xc0] sm:$0xff] %v2902_v52 }
 0x2c1   : > { %v2906_v58 = vpop.eup %2905  ;;  %2219 = vst [vmem:[%s3520_s30 + $0xc8] sm:$0xff] %v2904_v54 }
 0x2c2   : > { %v2908_v13 = vpop.eup %2907  ;;  %2220 = vst [vmem:[%s3520_s30 + $0xd0] sm:$0xff] %v2906_v58 }
 0x2c3   : > { %v2910_v49 = vpop.eup %2909  ;;  %2221 = vst [vmem:[%s3520_s30 + $0xd8] sm:$0xff] %v2908_v13 }
 0x2c4   : > { %v2912_v61 = vpop.eup %2911  ;;  %2222 = vst [vmem:[%s3520_s30 + $0xe0] sm:$0xff] %v2910_v49 }
 0x2c5   : > { %v2914_v29 = vpop.eup %2913  ;;  %2223 = vst [vmem:[%s3520_s30 + $0xe8] sm:$0xff] %v2912_v61 }
 0x2c6   : > { %v2916_v42 = vpop.eup %2915  ;;  %2224 = vst [vmem:[%s3520_s30 + $0xf0] sm:$0xff] %v2914_v29 }
 0x2c7   : > { %2225 = vst [vmem:[%s3520_s30 + $0xf8] sm:$0xff] %v2916_v42 }
 0x2c8 PF: > { %s13_s18 = sadd.s32 1, %s2971_s18   ;;  %s4223_s12 = smov %s2951_s13 }
 0x2c9   : > { %p10_p0 = scmp.ge.s32.totalorder %s13_s18, 10   ;;  %s4224_s13 = smov %s3046_s25 }
 0x2ca   : > { %s4225_s14 = smov %s2963_s16  ;;  %s4226_s15 = smov %s2967_s17 }
 0x2cb   : > { %s4227_s16 = smov %s4230_s19  ;;  %s4228_s17 = smov %s4234_s20 }
 0x2cc   :  { %12 = sbr.rel (!%p10_p0) target bundleno = 4 (0x4), region = 104 }

</bundles_post_ra>
